<compile_context>
chip_gen: v7x
topology: tpu7x:2x2x1
jax: 0.10.0
libtpu: 0.0.40
codegen_flags: <defaults>
</compile_context>

<pallas_src>
import jax
import jax.numpy as jnp
from jax import lax
from jax.experimental import pallas as pl
from jax.experimental.pallas import tpu as pltpu


IN = 784        # input features
HIDDEN = 300    # dense1 width
CLASSES = 10    # dense3 width


def _round_up(n: int, m: int) -> int:
    return ((n + m - 1) // m) * m


HP = _round_up(HIDDEN, 128)   # 384  lane-dense hidden width
CP = _round_up(CLASSES, 128)  # 128  lane-dense class width


def mnist_dnn_kernel(x_ref, w1_ref, b1_ref, w2_ref, b2_ref,
                     dense1_ref, logits_ref, predict_ref):
    w1 = w1_ref[...]
    w2 = w2_ref[...]
    # f32 path: pin full precision so results match the reference to 1e-4.
    # bf16 path: operands are already bf16, default precision is fine.
    prec = (lax.Precision.HIGHEST if w1.dtype == jnp.float32
            else lax.Precision.DEFAULT)

    # dense1 = relu(x @ W1 + b1)        (TM, 784) @ (784, 384) -> (TM, 384)
    x = x_ref[...].astype(w1.dtype)
    h = jnp.dot(x, w1, preferred_element_type=jnp.float32,
                precision=prec) + b1_ref[...]
    h = jnp.maximum(h, 0.0)
    dense1_ref[...] = h

    # logits = dense1 @ W2 + b2         (TM, 384) @ (384, 128) -> (TM, 128)
    # Padded logit columns carry a -1e30 bias -> exp() underflows to 0 below,
    # so the softmax only sees the 10 real classes.
    logits = jnp.dot(h.astype(w2.dtype), w2, preferred_element_type=jnp.float32,
                     precision=prec) + b2_ref[...]
    logits_ref[...] = logits

    # predict = softmax(logits, dim=1)  (max-stabilized, exact normalization)
    m = jnp.max(logits, axis=1, keepdims=True)
    e = jnp.exp(logits - m)
    predict_ref[...] = e / jnp.sum(e, axis=1, keepdims=True)


def prepare_mnist_dnn_params(w1, b1, w2, b2, *, use_bf16=False):
    """One-time lane-dense padding of the parameters (do this at load time).

    w1: (784, 300)  b1: (300,)  w2: (300, 10)  b2: (10,)   (w1/w2 already
    transposed vs. torch's (out, in) layout).
    """
    wdt = jnp.bfloat16 if use_bf16 else jnp.float32
    w1p = jnp.zeros((IN, HP), wdt).at[:, :HIDDEN].set(w1.astype(wdt))
    b1p = jnp.zeros((1, HP), jnp.float32).at[0, :HIDDEN].set(b1.astype(jnp.float32))
    w2p = jnp.zeros((HP, CP), wdt).at[:HIDDEN, :CLASSES].set(w2.astype(wdt))
    # very negative bias on padded logit columns -> softmax ignores them
    b2p = jnp.full((1, CP), -1e30, jnp.float32).at[0, :CLASSES].set(b2.astype(jnp.float32))
    return (w1p, b1p, w2p, b2p)


def _select_tile(batch: int, tm: int) -> int:
    """Pick a batch tile: big (DMA-efficient), but with >=2 grid steps when the
    batch permits (v7x megacore), and sized to minimize ragged-block waste."""
    tm = max(8, min(tm, 2048))            # TM<=2048 keeps VMEM < ~28 MiB everywhere
    n_steps = pl.cdiv(batch, tm)
    if batch >= 16 and n_steps < 2:
        n_steps = 2                       # keep both v7x TensorCores busy
    return _round_up(pl.cdiv(batch, n_steps), 8)


def mnist_dnn_forward(x, params, *, tm=2048):
    """Pallas forward. Returns ([x, dense1, predict], logits) like the torch module.

    x:      (B, 784) float32 (cast to bf16 here if params were prepared with bf16)
    params: output of prepare_mnist_dnn_params(...)
    """
    w1p, b1p, w2p, b2p = params
    x = x.astype(w1p.dtype) if w1p.dtype == jnp.bfloat16 else x.astype(jnp.float32)

    B = x.shape[0]
    TM = _select_tile(B, tm)
    grid = (pl.cdiv(B, TM),)              # ragged last block handled by Pallas

    dense1_p, logits_p, predict_p = pl.pallas_call(
        mnist_dnn_kernel,
        out_shape=(
            jax.ShapeDtypeStruct((B, HP), jnp.float32),
            jax.ShapeDtypeStruct((B, CP), jnp.float32),
            jax.ShapeDtypeStruct((B, CP), jnp.float32),
        ),
        grid_spec=pltpu.PrefetchScalarGridSpec(
            num_scalar_prefetch=0,
            grid=grid,
            in_specs=[
                pl.BlockSpec((TM, IN), lambda i: (i, 0)),     # x tile (pipelined)
                pl.BlockSpec((IN, HP), lambda i: (0, 0)),     # W1 resident
                pl.BlockSpec((1, HP), lambda i: (0, 0)),      # b1 resident
                pl.BlockSpec((HP, CP), lambda i: (0, 0)),     # W2 resident
                pl.BlockSpec((1, CP), lambda i: (0, 0)),      # b2 resident
            ],
            out_specs=[
                pl.BlockSpec((TM, HP), lambda i: (i, 0)),     # dense1 tile
                pl.BlockSpec((TM, CP), lambda i: (i, 0)),     # logits tile
                pl.BlockSpec((TM, CP), lambda i: (i, 0)),     # predict tile
            ],
        ),
        compiler_params=pltpu.CompilerParams(
            dimension_semantics=("parallel",),                # shard across TCs
            vmem_limit_bytes=48 * 1024 * 1024,
        ),
    )(x, w1p, b1p, w2p, b2p)

    # Slice off the lane padding (batch is unpadded by construction).
    dense1 = dense1_p[:, :HIDDEN]
    logits = logits_p[:, :CLASSES]
    predict = predict_p[:, :CLASSES]
    return ([x, dense1, predict], logits)


def _reference(x, w1, b1, w2, b2):
    hp = lax.Precision.HIGHEST
    h = jnp.maximum(jnp.dot(x, w1, precision=hp) + b1, 0.0)
    logits = jnp.dot(h, w2, precision=hp) + b2
    predict = jax.nn.softmax(logits, axis=1)
    return h, logits, predict


def _check(B, x, w1, b1, w2, b2, params):
    (x_out, dense1, predict), logits = jax.block_until_ready(
        mnist_dnn_forward(x, params)
    )
    h_ref, logits_ref, predict_ref = _reference(x, w1, b1, w2, b2)
    assert x_out.shape == (B, IN)
    assert dense1.shape == (B, HIDDEN)
    assert logits.shape == (B, CLASSES)
    assert predict.shape == (B, CLASSES)
    assert jnp.allclose(dense1, h_ref, atol=1e-4, rtol=1e-4)
    assert jnp.allclose(logits, logits_ref, atol=1e-4, rtol=1e-4)
    assert jnp.allclose(predict, predict_ref, atol=1e-4, rtol=1e-4)
    assert jnp.allclose(jnp.sum(predict, axis=1), 1.0, atol=1e-5)


if __name__ == "__main__":
    key = jax.random.PRNGKey(0)
    k_x, k_w1, k_b1, k_w2, k_b2, k_x2 = jax.random.split(key, 6)

    # Deterministic synthetic parameters (uniform, roughly torch default scale).
    w1 = jax.random.uniform(k_w1, (IN, HIDDEN), jnp.float32, -0.035, 0.035)
    b1 = jax.random.uniform(k_b1, (HIDDEN,), jnp.float32, -0.035, 0.035)
    w2 = jax.random.uniform(k_w2, (HIDDEN, CLASSES), jnp.float32, -0.057, 0.057)
    b2 = jax.random.uniform(k_b2, (CLASSES,), jnp.float32, -0.057, 0.057)

    # Padding done ONCE, outside the forward pass.
    params = prepare_mnist_dnn_params(w1, b1, w2, b2, use_bf16=False)

    # Small demo batch (single grid step).
    B1 = 8
    x1 = jax.random.normal(k_x, (B1, IN), dtype=jnp.float32)
    _check(B1, x1, w1, b1, w2, b2, params)

    # Larger ragged batch: exercises the >=2-step grid (megacore split) and the
    # masked partial last block (no explicit batch-padding copy).
    B2 = 300
    x2 = jax.random.normal(k_x2, (B2, IN), dtype=jnp.float32)
    _check(B2, x2, w1, b1, w2, b2, params)

    print("KERNEL_OK")
</pallas_src>

<mosaic_0001>
module attributes {stable_mosaic.version = 11 : i64} {
  func.func @mnist_dnn_kernel(%arg0: i32, %arg1: memref<8x784xf32, #tpu.memory_space<vmem>>, %arg2: memref<784x384xf32, #tpu.memory_space<vmem>>, %arg3: memref<1x384xf32, #tpu.memory_space<vmem>>, %arg4: memref<384x128xf32, #tpu.memory_space<vmem>>, %arg5: memref<1x128xf32, #tpu.memory_space<vmem>>, %arg6: memref<8x384xf32, #tpu.memory_space<vmem>>, %arg7: memref<8x128xf32, #tpu.memory_space<vmem>>, %arg8: memref<8x128xf32, #tpu.memory_space<vmem>>) attributes {dimension_semantics = [#tpu.dimension_semantics<parallel>], iteration_bounds = array<i64: 1>, scalar_prefetch = 0 : i64, scratch_operands = 0 : i64, tpu.core_type = #tpu.core_type<tc>, window_params = [{transform_indices = @transform_0, window_bounds = array<i64: 8, 784>}, {pipeline_mode = #tpu.pipeline_mode<synchronous>, transform_indices = @transform_1, window_bounds = array<i64: 784, 384>}, {pipeline_mode = #tpu.pipeline_mode<synchronous>, transform_indices = @transform_2, window_bounds = array<i64: 1, 384>}, {pipeline_mode = #tpu.pipeline_mode<synchronous>, transform_indices = @transform_3, window_bounds = array<i64: 384, 128>}, {pipeline_mode = #tpu.pipeline_mode<synchronous>, transform_indices = @transform_4, window_bounds = array<i64: 1, 128>}, {transform_indices = @transform_5, window_bounds = array<i64: 8, 384>}, {transform_indices = @transform_6, window_bounds = array<i64: 8, 128>}, {transform_indices = @transform_7, window_bounds = array<i64: 8, 128>}]} {
    %c0 = arith.constant 0 : index
    %c0_0 = arith.constant 0 : index
    %0 = vector.load %arg2[%c0, %c0_0] : memref<784x384xf32, #tpu.memory_space<vmem>>, vector<784x384xf32>
    %c0_1 = arith.constant 0 : index
    %c0_2 = arith.constant 0 : index
    %1 = vector.load %arg4[%c0_1, %c0_2] : memref<384x128xf32, #tpu.memory_space<vmem>>, vector<384x128xf32>
    %c0_3 = arith.constant 0 : index
    %c0_4 = arith.constant 0 : index
    %2 = vector.load %arg1[%c0_3, %c0_4] : memref<8x784xf32, #tpu.memory_space<vmem>>, vector<8x784xf32>
    %cst = arith.constant dense<0.000000e+00> : vector<8x384xf32>
    %3 = tpu.matmul %2, %0, %cst {dimension_numbers = #tpu.dot_dimension_numbers<[1], [0], [0], [1], [0, 0, 1, 1], [], []>, precision = #tpu.contract_precision<fp32>} : vector<8x784xf32>, vector<784x384xf32>, vector<8x384xf32> -> vector<8x384xf32>
    %c0_5 = arith.constant 0 : index
    %c0_6 = arith.constant 0 : index
    %4 = vector.load %arg3[%c0_5, %c0_6] : memref<1x384xf32, #tpu.memory_space<vmem>>, vector<1x384xf32>
    %5 = vector.broadcast %4 : vector<1x384xf32> to vector<8x384xf32>
    %6 = arith.addf %3, %5 : vector<8x384xf32>
    %cst_7 = arith.constant 0.000000e+00 : f32
    %7 = vector.broadcast %cst_7 : f32 to vector<8x384xf32>
    %8 = arith.maximumf %6, %7 : vector<8x384xf32>
    %c0_8 = arith.constant 0 : index
    %c0_9 = arith.constant 0 : index
    %9 = vector.load %arg6[%c0_8, %c0_9] : memref<8x384xf32, #tpu.memory_space<vmem>>, vector<8x384xf32>
    tpu.vector_store %arg6[%c0_8, %c0_9], %8 {strides = array<i32>} : memref<8x384xf32, #tpu.memory_space<vmem>>, vector<8x384xf32>,
    %cst_10 = arith.constant dense<0.000000e+00> : vector<8x128xf32>
    %10 = tpu.matmul %8, %1, %cst_10 {dimension_numbers = #tpu.dot_dimension_numbers<[1], [0], [0], [1], [0, 0, 1, 1], [], []>, precision = #tpu.contract_precision<fp32>} : vector<8x384xf32>, vector<384x128xf32>, vector<8x128xf32> -> vector<8x128xf32>
    %c0_11 = arith.constant 0 : index
    %c0_12 = arith.constant 0 : index
    %11 = vector.load %arg5[%c0_11, %c0_12] : memref<1x128xf32, #tpu.memory_space<vmem>>, vector<1x128xf32>
    %12 = vector.broadcast %11 : vector<1x128xf32> to vector<8x128xf32>
    %13 = arith.addf %10, %12 : vector<8x128xf32>
    %c0_13 = arith.constant 0 : index
    %c0_14 = arith.constant 0 : index
    %14 = vector.load %arg7[%c0_13, %c0_14] : memref<8x128xf32, #tpu.memory_space<vmem>>, vector<8x128xf32>
    tpu.vector_store %arg7[%c0_13, %c0_14], %13 {strides = array<i32>} : memref<8x128xf32, #tpu.memory_space<vmem>>, vector<8x128xf32>,
    %cst_15 = arith.constant dense<0xFF800000> : vector<8xf32>
    %15 = vector.multi_reduction <maximumf>, %13, %cst_15 [1] : vector<8x128xf32> to vector<8xf32>
    %16 = vector.shape_cast %15 : vector<8xf32> to vector<8x1xf32>
    %17 = vector.broadcast %16 : vector<8x1xf32> to vector<8x128xf32>
    %18 = arith.subf %13, %17 : vector<8x128xf32>
    %19 = math.exp %18 : vector<8x128xf32>
    %cst_16 = arith.constant dense<0.000000e+00> : vector<8xf32>
    %20 = vector.multi_reduction <add>, %19, %cst_16 [1] : vector<8x128xf32> to vector<8xf32>
    %21 = vector.shape_cast %20 : vector<8xf32> to vector<8x1xf32>
    %22 = vector.broadcast %21 : vector<8x1xf32> to vector<8x128xf32>
    %23 = arith.divf %19, %22 : vector<8x128xf32>
    %c0_17 = arith.constant 0 : index
    %c0_18 = arith.constant 0 : index
    %24 = vector.load %arg8[%c0_17, %c0_18] : memref<8x128xf32, #tpu.memory_space<vmem>>, vector<8x128xf32>
    tpu.vector_store %arg8[%c0_17, %c0_18], %23 {strides = array<i32>} : memref<8x128xf32, #tpu.memory_space<vmem>>, vector<8x128xf32>,
    return
  }
  func.func @transform_0(%arg0: i32) -> (i32, i32) {
    %c0_i32 = arith.constant 0 : i32
    %c0_i32_0 = arith.constant 0 : i32
    return %arg0, %c0_i32 : i32, i32
  }
  func.func @transform_1(%arg0: i32) -> (i32, i32) {
    %c0_i32 = arith.constant 0 : i32
    %c0_i32_0 = arith.constant 0 : i32
    %c0_i32_1 = arith.constant 0 : i32
    return %c0_i32, %c0_i32_0 : i32, i32
  }
  func.func @transform_2(%arg0: i32) -> (i32, i32) {
    %c0_i32 = arith.constant 0 : i32
    %c0_i32_0 = arith.constant 0 : i32
    %c0_i32_1 = arith.constant 0 : i32
    return %c0_i32, %c0_i32_0 : i32, i32
  }
  func.func @transform_3(%arg0: i32) -> (i32, i32) {
    %c0_i32 = arith.constant 0 : i32
    %c0_i32_0 = arith.constant 0 : i32
    %c0_i32_1 = arith.constant 0 : i32
    return %c0_i32, %c0_i32_0 : i32, i32
  }
  func.func @transform_4(%arg0: i32) -> (i32, i32) {
    %c0_i32 = arith.constant 0 : i32
    %c0_i32_0 = arith.constant 0 : i32
    %c0_i32_1 = arith.constant 0 : i32
    return %c0_i32, %c0_i32_0 : i32, i32
  }
  func.func @transform_5(%arg0: i32) -> (i32, i32) {
    %c0_i32 = arith.constant 0 : i32
    %c0_i32_0 = arith.constant 0 : i32
    return %arg0, %c0_i32 : i32, i32
  }
  func.func @transform_6(%arg0: i32) -> (i32, i32) {
    %c0_i32 = arith.constant 0 : i32
    %c0_i32_0 = arith.constant 0 : i32
    return %arg0, %c0_i32 : i32, i32
  }
  func.func @transform_7(%arg0: i32) -> (i32, i32) {
    %c0_i32 = arith.constant 0 : i32
    %c0_i32_0 = arith.constant 0 : i32
    return %arg0, %c0_i32 : i32, i32
  }
}

</mosaic_0001>

<bundles_post_ra>
// kernel: tpu_custom_call.1
= control target key start
LH: loop header
LB: loop body
LE: loop exit
PB: predicated region body
PF: predicated region fallthrough
CT: control target
= control target key end

     0   :  { %13 = vsyncpa [#allocation3], 0  ;;  %s18034_s0 = inlined_call_operand.hbm [shape: f32[8,784], index: 0, kind: input, shape index: {}]   ;;  %s18035_s1 = inlined_call_operand.hbm [shape: f32[784,384], index: 1, kind: input, shape index: {}]   ;;  %s18036_s2 = inlined_call_operand.hbm [shape: f32[1,384], index: 2, kind: input, shape index: {}]   ;;  %s18037_s3 = inlined_call_operand.hbm [shape: f32[384,128], index: 3, kind: input, shape index: {}]   ;;  %s18038_s4 = inlined_call_operand.hbm [shape: f32[1,128], index: 4, kind: input, shape index: {}]   ;;  %s18039_s5 = inlined_call_operand.hbm [shape: f32[8,384], index: 5, kind: output, shape index: {0}]   ;;  %s18040_s6 = inlined_call_operand.hbm [shape: f32[8,128], index: 6, kind: output, shape index: {1}]   ;;  %s18041_s7 = inlined_call_operand.hbm [shape: f32[8,128], index: 7, kind: output, shape index: {2}]  }
   0x1   :  { %14 = vsyncpa [#allocation6], 0 }
   0x2   :  { %15 = vsyncpa [#allocation9], 0 }
   0x3   :  { %16 = vsyncpa [#allocation4], 0 }
   0x4   :  { %17 = vsyncpa [#allocation13], 0  ;;  %s13012_s24 = smov [#allocation5]   ;;  %s12826_s28 = scalar_lea.hbm %s18035_s1, 37632 }
   0x5   :  { %s33_s25 = sshll.u32 %s13012_s24, 4  ;;  %p12827_p0 = scmp.ne.s32.totalorder %s18035_s1, %s12826_s28  ;;  %s34_s25 = int_to_ptr.vmem [resolvable:$true] %s33_s25 }
   0x6   :  { %p12830_p1 = scmp.lt.u32.totalorder %s12826_s28, %s18035_s1 }
   0x8   :  { %p12832_p2 = pnand %p12830_p1, %p12827_p0 }
   0xa   :  { %12835 = shalt.err (!%p12832_p2)
}
   0xb   :  { %s12836_s10 = scalar_lea.vmem %s34_s25, 37632  ;;  %p12841_p4 = scmp.lt.s32.totalorder %s34_s25, %s34_s25 }
   0xc   :  { %p12837_p3 = scmp.ne.s32.totalorder %s34_s25, %s12836_s10  ;;  %p12842_p5 = scmp.lt.s32.totalorder %s12836_s10, %s12836_s10 }
   0xe   :  { %p12843_p6 = por %p12842_p5, %p12841_p4 }
  0x10   :  { %p12844_p7 = pnand %p12843_p6, %p12837_p3 }
  0x12   :  { %12847 = shalt.err (!%p12844_p7)
}
  0x13   :  { %s13013_s11 = smov 384   ;;  %s13014_s12 = smov 24  }
  0x14   :  { %39 = dma.hbm_to_vmem [thread:$0]  %s18035_s1, 37632, %s34_s25, [#allocation6], %s13013_s11, %s13013_s11, %s13014_s12  }
  0x15   :  { %s13015_s15 = smov [#allocation8]   ;;  %s12848_s19 = scalar_lea.hbm %s18037_s3, 6144 }
  0x16   :  { %s55_s16 = sshll.u32 %s13015_s15, 4  ;;  %p12849_p8 = scmp.ne.s32.totalorder %s18037_s3, %s12848_s19  ;;  %s56_s16 = int_to_ptr.vmem [resolvable:$true] %s55_s16 }
  0x17   :  { %p12852_p9 = scmp.lt.u32.totalorder %s12848_s19, %s18037_s3 }
  0x19   :  { %p12854_p10 = pnand %p12852_p9, %p12849_p8 }
  0x1b   :  { %12857 = shalt.err (!%p12854_p10)
}
  0x1c   :  { %s12858_s24 = scalar_lea.vmem %s56_s16, 6144  ;;  %p12863_p12 = scmp.lt.s32.totalorder %s56_s16, %s56_s16 }
  0x1d   :  { %p12859_p11 = scmp.ne.s32.totalorder %s56_s16, %s12858_s24  ;;  %p12864_p13 = scmp.lt.s32.totalorder %s12858_s24, %s12858_s24 }
  0x1f   :  { %p12865_p0 = por %p12864_p13, %p12863_p12 }
  0x21   :  { %p12866_p1 = pnand %p12865_p0, %p12859_p11 }
  0x23   :  { %12869 = shalt.err (!%p12866_p1)
}
  0x24   :  { %s13016_s1 = smov 128   ;;  %s13017_s25 = smov 8  }
  0x25   :  { %61 = dma.hbm_to_vmem [thread:$0]  %s18037_s3, 6144, %s56_s16, [#allocation9], %s13016_s1, %s13016_s1, %s13017_s25  }
  0x26   :  { %s13018_s28 = smov [#allocation2]   ;;  %s13019_s30 = smov [#allocation7]  }
  0x27   :  { %s24_s29 = sshll.u32 %s13018_s28, 4  ;;  %s46_s8 = sshll.u32 %s13019_s30, 4  ;;  %s25_s29 = int_to_ptr.vmem [resolvable:$true] %s24_s29  ;;  %s47_s8 = int_to_ptr.vmem [resolvable:$true] %s46_s8 }
  0x28   :  { %s12870_s11 = scalar_lea.hbm %s18034_s0, 896 }
  0x29   :  { %p12871_p2 = scmp.ne.s32.totalorder %s18034_s0, %s12870_s11  ;;  %p12874_p3 = scmp.lt.u32.totalorder %s12870_s11, %s18034_s0 }
  0x2b   :  { %p12876_p4 = pnand %p12874_p3, %p12871_p2 }
  0x2d   :  { %12879 = shalt.err (!%p12876_p4)
}
  0x2e   :  { %s12880_s3 = scalar_lea.vmem %s25_s29, 896  ;;  %p12885_p6 = scmp.lt.s32.totalorder %s25_s29, %s25_s29 }
  0x2f   :  { %p12881_p5 = scmp.ne.s32.totalorder %s25_s29, %s12880_s3  ;;  %p12886_p7 = scmp.lt.s32.totalorder %s12880_s3, %s12880_s3 }
  0x31   :  { %p12887_p8 = por %p12886_p7, %p12885_p6 }
  0x33   :  { %p12888_p9 = pnand %p12887_p8, %p12881_p5 }
  0x35   :  { %12891 = shalt.err (!%p12888_p9)
}
  0x36   :  { %27 = dma.hbm_to_vmem [thread:$0]  %s18034_s0, 896, %s25_s29, [#allocation3]  }
  0x37   :  { %s12892_s20 = scalar_lea.hbm %s18036_s2, 48 }
  0x38   :  { %p12893_p10 = scmp.ne.s32.totalorder %s18036_s2, %s12892_s20  ;;  %p12896_p11 = scmp.lt.u32.totalorder %s12892_s20, %s18036_s2 }
  0x3a   :  { %p12898_p12 = pnand %p12896_p11, %p12893_p10 }
  0x3c   :  { %12901 = shalt.err (!%p12898_p12)
}
  0x3d   :  { %s12902_s1 = scalar_lea.vmem %s47_s8, 48  ;;  %s12906_s25 = scalar_lea.vmem %s47_s8, 64 }
  0x3e   :  { %p12903_p13 = scmp.ne.s32.totalorder %s47_s8, %s12902_s1  ;;  %p12907_p0 = scmp.lt.s32.totalorder %s47_s8, %s47_s8 }
  0x3f   :  { %p12908_p1 = scmp.lt.s32.totalorder %s12906_s25, %s12902_s1 }
  0x41   :  { %p12909_p2 = por %p12908_p1, %p12907_p0 }
  0x43   :  { %p12910_p3 = pnand %p12909_p2, %p12903_p13 }
  0x45   :  { %12913 = shalt.err (!%p12910_p3)
}
  0x46   :  { %49 = dma.hbm_to_vmem [thread:$0]  %s18036_s2, 48, %s47_s8, [#allocation6]  }
  0x47   :  { %s13020_s27 = smov [#allocation10]   ;;  %s12914_s9 = scalar_lea.hbm %s18038_s4, 16 }
  0x48   :  { %s68_s28 = sshll.u32 %s13020_s27, 4  ;;  %p12915_p4 = scmp.ne.s32.totalorder %s18038_s4, %s12914_s9  ;;  %s69_s28 = int_to_ptr.vmem [resolvable:$true] %s68_s28 }
  0x49   :  { %p12918_p5 = scmp.lt.u32.totalorder %s12914_s9, %s18038_s4 }
  0x4b   :  { %p12920_p6 = pnand %p12918_p5, %p12915_p4 }
  0x4d   :  { %12923 = shalt.err (!%p12920_p6)
}
  0x4e   :  { %s12924_s14 = scalar_lea.vmem %s69_s28, 16  ;;  %s12928_s2 = scalar_lea.vmem %s69_s28, 32 }
  0x4f   :  { %p12925_p7 = scmp.ne.s32.totalorder %s69_s28, %s12924_s14  ;;  %p12929_p8 = scmp.lt.s32.totalorder %s69_s28, %s69_s28 }
  0x50   :  { %p12930_p9 = scmp.lt.s32.totalorder %s12928_s2, %s12924_s14 }
  0x52   :  { %p12931_p10 = por %p12930_p9, %p12929_p8 }
  0x54   :  { %p12932_p11 = pnand %p12931_p10, %p12925_p7 }
  0x56   :  { %12935 = shalt.err (!%p12932_p11)
}
  0x57   :  { %71 = dma.hbm_to_vmem [thread:$0]  %s18038_s4, 16, %s69_s28, [#allocation9]  }
  0x58   :  { %13002 = dma.done.wait [#allocation3], 896  }
  0x59   :  { %13003 = vsyncadd [#allocation3], 4294966400 }
  0x5a   :  { %13004 = dma.done.wait [#allocation6], 37680  }
  0x5b   :  { %13005 = vsyncadd [#allocation6], 4294929616 }
  0x5c   :  { %13006 = dma.done.wait [#allocation9], 6160  }
  0x5d   :  { %13007 = vsyncadd [#allocation9], 4294961136  ;;  %v88_v0 = vld [vmem:[#allocation5 + $0x8] sm:$0xff]  ;;  %v91_v1 = vld [vmem:[#allocation5 + $0x20] sm:$0xff]  ;;  %vm453_vm0 = vcmask 130048   ;;  %vm13023_vm1 = vmmov 0  }
  0x5e   :  { %v87_v2 = vld [vmem:[#allocation5] sm:$0xff]  ;;  %v457_v3 = vand.u32 4294901760, %v88_v0  ;;  %v461_v4 = vand.u32 4294901760, %v91_v1  ;;  %v90_v5 = vld [vmem:[#allocation5 + $0x18] sm:$0xff]  ;;  %v97_v8 = vld [vmem:[#allocation5 + $0x50] sm:$0xff]  ;;  %s13024_s4 = smov [#allocation12]  }
  0x5f   :  { %v459_v6 = vand.u32 4294901760, %v87_v2  ;;  %v94_v7 = vld [vmem:[#allocation5 + $0x38] sm:$0xff]  ;;  %v463_v9 = vand.u32 4294901760, %v90_v5  ;;  %v469_v11 = vand.u32 4294901760, %v97_v8  ;;  %v93_v12 = vld [vmem:[#allocation5 + $0x30] sm:$0xff]  ;;  %v96_v17 = vld [vmem:[#allocation5 + $0x48] sm:$0xff] }
  0x60   :  { %v465_v10 = vand.u32 4294901760, %v94_v7  ;;  %v13127_v13 = vsub.f32 %v88_v0, %v457_v3  ;;  %v13129_v14 = vsub.f32 %v91_v1, %v461_v4  ;;  %v13133_v16 = vpack.c.bf16 %v461_v4, %v457_v3  ;;  %v100_v42 = vld [vmem:[#allocation5 + $0x68] sm:$0xff]  ;;  %v103_v43 = vld [vmem:[#allocation5 + $0x80] sm:$0xff]  ;;  %v102_v49 = vld [vmem:[#allocation5 + $0x78] sm:$0xff]  ;;  %s9388_s3 = sshll.u32 %s13024_s4, 4  ;;  %s13025_s16 = smov [#allocation11]   ;;  %s9389_s3 = int_to_ptr.vmem [resolvable:$true] %s9388_s3 }
  0x61   :  { %v13131_v15 = vsub.f32 %v87_v2, %v459_v6  ;;  %v13135_v18 = vsub.f32 %v90_v5, %v463_v9  ;;  %v13137_v19 = vpack.c.bf16 %v463_v9, %v459_v6  ;;  %v13141_v21 = vsub.f32 %v97_v8, %v469_v11  ;;  %v99_v48 = vld [vmem:[#allocation5 + $0x60] sm:$0xff]  ;;  %v106_v54 = vld [vmem:[#allocation5 + $0x98] sm:$0xff]  ;;  %v109_v55 = vld [vmem:[#allocation5 + $0xb0] sm:$0xff]  ;;  %s9378_s17 = sshll.u32 %s13025_s16, 4  ;;  %s12936_s18 = scalar_lea.vmem %s9389_s3, 128  ;;  %s9379_s17 = int_to_ptr.vmem [resolvable:$true] %s9378_s17 }
  0x62   :  { %18986 = vst [vmem:[#allocation20_spill] sm:$0xff] %v13127_v13  ;;  %18987 = vst [vmem:[#allocation21_spill] sm:$0xff] %v13129_v14  ;;  %v13139_v20 = vsub.f32 %v94_v7, %v465_v10  ;;  %v18067_v22 = vand.u32 4294901760, %v13127_v13  ;;  %v18064_v23 = vand.u32 4294901760, %v13129_v14  ;;  %10630 = vmatprep.subr.bf16.mxu1 %v13133_v16  ;;  %v467_v25 = vand.u32 4294901760, %v93_v12  ;;  %v105_v8 = vld [vmem:[#allocation5 + $0x90] sm:$0xff]  ;;  %p12937_p12 = scmp.ne.s32.totalorder %s9389_s3, %s12936_s18  ;;  %p12941_p13 = scmp.lt.s32.totalorder %s9389_s3, %s9389_s3 }
  0x63   :  { %18988 = vst [vmem:[#allocation22_spill] sm:$0xff] %v13131_v15  ;;  %18989 = vst [vmem:[#allocation23_spill] sm:$0xff] %v13133_v16  ;;  %v18063_v24 = vand.u32 4294901760, %v13131_v15  ;;  %v18062_v26 = vand.u32 4294901760, %v13135_v18  ;;  %10632 = vmatpush1.bf16.msra.mxu1 %v13137_v19  ;;  %v18059_v28 = vand.u32 4294901760, %v13141_v21  ;;  %v471_v29 = vand.u32 4294901760, %v96_v17  ;;  %p12942_p0 = scmp.lt.s32.totalorder %s12936_s18, %s12936_s18 }
  0x64   :  { %18990 = vst [vmem:[#allocation24_spill] sm:$0xff] %v13135_v18  ;;  %18991 = vst [vmem:[#allocation25_spill] sm:$0xff] %v13137_v19  ;;  %v18061_v27 = vand.u32 4294901760, %v13139_v20  ;;  %v605_v30 = vsub.f32 %v13127_v13, %v18067_v22  ;;  %v617_v31 = vsub.f32 %v13129_v14, %v18064_v23  ;;  %v13160_v33 = vsub.f32 %v93_v12, %v467_v25  ;;  %v108_v9 = vld [vmem:[#allocation5 + $0xa8] sm:$0xff] }
  0x65   :  { %18992 = vst [vmem:[#allocation26_spill] sm:$0xff] %v13139_v20  ;;  %18993 = vst [vmem:[#allocation27_spill] sm:$0xff] %v13141_v21  ;;  %v611_v32 = vsub.f32 %v13131_v15, %v18063_v24  ;;  %v623_v34 = vsub.f32 %v13135_v18, %v18062_v26  ;;  %v641_v36 = vsub.f32 %v13141_v21, %v18059_v28  ;;  %v473_v59 = vand.u32 4294901760, %v100_v42  ;;  %v129_v28 = vld [vmem:[#allocation5 + $0x150] sm:$0xff]  ;;  %p12943_p1 = por %p12942_p0, %p12941_p13 }
  0x66   :  { %18994 = vst [vmem:[#allocation28_spill] sm:$0xff] %v13160_v33  ;;  %v629_v35 = vsub.f32 %v13139_v20, %v18061_v27  ;;  %v13171_v37 = vsub.f32 %v96_v17, %v471_v29  ;;  %v606_v38 = vand.u32 4294901760, %v605_v30  ;;  %v618_v39 = vand.u32 4294901760, %v617_v31 }
  0x67   :  { %v612_v40 = vand.u32 4294901760, %v611_v32  ;;  %v18056_v41 = vand.u32 4294901760, %v13160_v33  ;;  %v624_v44 = vand.u32 4294901760, %v623_v34  ;;  %v642_v46 = vand.u32 4294901760, %v641_v36  ;;  %p12944_p2 = pnand %p12943_p1, %p12937_p12 }
  0x68   :  { %18995 = vst [vmem:[#allocation29_spill] sm:$0xff] %v13171_v37  ;;  %v630_v45 = vand.u32 4294901760, %v629_v35  ;;  %v18054_v47 = vand.u32 4294901760, %v13171_v37  ;;  %v10693_v50 = vpack.c.bf16 %v618_v39, %v606_v38  ;;  %v13178_v52 = vpack.c.bf16 %v469_v11, %v465_v10 }
  0x69   :  { %v635_v51 = vsub.f32 %v13160_v33, %v18056_v41  ;;  %v13180_v53 = vpack.c.bf16 %v471_v29, %v467_v25  ;;  %v10695_v56 = vpack.c.bf16 %v624_v44, %v612_v40  ;;  %v477_v61 = vand.u32 4294901760, %v103_v43 }
  0x6a   :  { %18996 = vst [vmem:[#allocation30_spill] sm:$0xff] %v13178_v52  ;;  %v10697_v57 = vpack.c.bf16 %v642_v46, %v630_v45  ;;  %v647_v58 = vsub.f32 %v13171_v37, %v18054_v47  ;;  %10694 = vmatprep.subr.bf16.mxu0 %v10693_v50  ;;  %10634 = vmatprep.subr.bf16.mxu1 %v13178_v52  ;;  %v475_v62 = vand.u32 4294901760, %v99_v48  ;;  %v479_v63 = vand.u32 4294901760, %v102_v49 }
  0x6b   :  { %18997 = vst [vmem:[#allocation31_spill] sm:$0xff] %v13180_v53  ;;  %v636_v60 = vand.u32 4294901760, %v635_v51  ;;  %10696 = vmatpush1.bf16.msra.mxu0 %v10695_v56  ;;  %10636 = vmatpush1.bf16.msra.mxu1 %v13180_v53  ;;  %v13187_v1 = vsub.f32 %v100_v42, %v473_v59  ;;  %v481_v2 = vand.u32 4294901760, %v106_v54  ;;  %v485_v3 = vand.u32 4294901760, %v109_v55 }
  0x6c   :  { %v648_v0 = vand.u32 4294901760, %v647_v58  ;;  %10698 = vmatprep.subr.bf16.mxu0 %v10697_v57  ;;  %v13189_v4 = vsub.f32 %v103_v43, %v477_v61  ;;  %v13191_v5 = vsub.f32 %v99_v48, %v475_v62  ;;  %v13193_v6 = vsub.f32 %v102_v49, %v479_v63 }
  0x6d   :  { %18998 = vst [vmem:[#allocation32_spill] sm:$0xff] %v13187_v1  ;;  %v13195_v7 = vpack.c.bf16 %v477_v61, %v473_v59  ;;  %v18053_v11 = vand.u32 4294901760, %v13187_v1  ;;  %v13198_v12 = vpack.c.bf16 %v479_v63, %v475_v62  ;;  %v13200_v17 = vsub.f32 %v106_v54, %v481_v2  ;;  %v112_v54 = vld [vmem:[#allocation5 + $0xc8] sm:$0xff]  ;;  %v114_v61 = vld [vmem:[#allocation5 + $0xd8] sm:$0xff] }
  0x6e   :  { %18999 = vst [vmem:[#allocation33_spill] sm:$0xff] %v13189_v4  ;;  %19000 = vst [vmem:[#allocation34_spill] sm:$0xff] %v13191_v5  ;;  %v10699_v10 = vpack.c.bf16 %v648_v0, %v636_v60  ;;  %v18052_v25 = vand.u32 4294901760, %v13189_v4  ;;  %v18050_v29 = vand.u32 4294901760, %v13191_v5  ;;  %v18049_v30 = vand.u32 4294901760, %v13193_v6  ;;  %v111_v60 = vld [vmem:[#allocation5 + $0xc0] sm:$0xff] }
  0x6f   :  { %19001 = vst [vmem:[#allocation35_spill] sm:$0xff] %v13193_v6  ;;  %19002 = vst [vmem:[#allocation36_spill] sm:$0xff] %v13195_v7  ;;  %10638 = vmatprep.subr.bf16.mxu1 %v13195_v7  ;;  %v13206_v31 = vsub.f32 %v109_v55, %v485_v3  ;;  %v653_v32 = vsub.f32 %v13187_v1, %v18053_v11  ;;  %v18047_v34 = vand.u32 4294901760, %v13200_v17  ;;  %v483_v35 = vand.u32 4294901760, %v105_v8  ;;  %v115_v55 = vld [vmem:[#allocation5 + $0xe0] sm:$0xff]  ;;  %v118_v62 = vld [vmem:[#allocation5 + $0xf8] sm:$0xff] }
  0x70   :  { %19003 = vst [vmem:[#allocation37_spill] sm:$0xff] %v13198_v12  ;;  %19004 = vst [vmem:[#allocation38_spill] sm:$0xff] %v13200_v17  ;;  %10700 = vmatpush1.bf16.msra.mxu0 %v10699_v10  ;;  %10640 = vmatpush1.bf16.msra.mxu1 %v13198_v12  ;;  %v487_v36 = vand.u32 4294901760, %v108_v9  ;;  %v665_v38 = vsub.f32 %v13189_v4, %v18052_v25  ;;  %v659_v39 = vsub.f32 %v13191_v5, %v18050_v29  ;;  %v124_v29 = vld [vmem:[#allocation5 + $0x128] sm:$0xff] }
  0x71   :  { %19005 = vst [vmem:[#allocation39_spill] sm:$0xff] %v13206_v31  ;;  %v671_v40 = vsub.f32 %v13193_v6, %v18049_v30  ;;  %v18046_v42 = vand.u32 4294901760, %v13206_v31  ;;  %v654_v43 = vand.u32 4294901760, %v653_v32  ;;  %v677_v44 = vsub.f32 %v13200_v17, %v18047_v34  ;;  %v148_v7 = vld [vmem:[#allocation5 + $0x1e8] sm:$0xff] }
  0x72   :  { %v13226_v45 = vsub.f32 %v105_v8, %v483_v35  ;;  %v13228_v46 = vsub.f32 %v108_v9, %v487_v36  ;;  %v666_v48 = vand.u32 4294901760, %v665_v38  ;;  %v660_v49 = vand.u32 4294901760, %v659_v39 }
  0x73   :  { %v672_v50 = vand.u32 4294901760, %v671_v40  ;;  %v689_v51 = vsub.f32 %v13206_v31, %v18046_v42  ;;  %v678_v56 = vand.u32 4294901760, %v677_v44  ;;  %v13235_v59 = vpack.c.bf16 %v485_v3, %v481_v2 }
  0x74   :  { %19006 = vst [vmem:[#allocation40_spill] sm:$0xff] %v13226_v45  ;;  %19007 = vst [vmem:[#allocation41_spill] sm:$0xff] %v13228_v46  ;;  %v18043_v57 = vand.u32 4294901760, %v13226_v45  ;;  %v18042_v58 = vand.u32 4294901760, %v13228_v46  ;;  %v10701_v63 = vpack.c.bf16 %v666_v48, %v654_v43  ;;  %v13237_v9 = vpack.c.bf16 %v487_v36, %v483_v35  ;;  %v121_v35 = vld [vmem:[#allocation5 + $0x110] sm:$0xff] }
  0x75   :  { %19008 = vst [vmem:[#allocation42_spill] sm:$0xff] %v13235_v59  ;;  %v10703_v0 = vpack.c.bf16 %v672_v50, %v660_v49  ;;  %v690_v8 = vand.u32 4294901760, %v689_v51  ;;  %10642 = vmatprep.subr.bf16.mxu1 %v13235_v59  ;;  %v489_v2 = vand.u32 4294901760, %v112_v54  ;;  %v493_v3 = vand.u32 4294901760, %v115_v55  ;;  %v117_v50 = vld [vmem:[#allocation5 + $0xf0] sm:$0xff] }
  0x76   :  { %19009 = vst [vmem:[#allocation43_spill] sm:$0xff] %v13237_v9  ;;  %v683_v10 = vsub.f32 %v13226_v45, %v18043_v57  ;;  %v695_v32 = vsub.f32 %v13228_v46, %v18042_v58  ;;  %10702 = vmatprep.subr.bf16.mxu0 %v10701_v63  ;;  %10644 = vmatpush1.bf16.msra.mxu1 %v13237_v9  ;;  %v491_v39 = vand.u32 4294901760, %v111_v60  ;;  %v495_v40 = vand.u32 4294901760, %v114_v61  ;;  %v141_v9 = vld [vmem:[#allocation5 + $0x1b0] sm:$0xff] }
  0x77   :  { %v10705_v38 = vpack.c.bf16 %v690_v8, %v678_v56  ;;  %v497_v36 = vand.u32 4294901760, %v118_v62  ;;  %10704 = vmatpush1.bf16.msra.mxu0 %v10703_v0  ;;  %v13247_v48 = vsub.f32 %v112_v54, %v489_v2  ;;  %v13249_v49 = vsub.f32 %v115_v55, %v493_v3  ;;  %v120_v8 = vld [vmem:[#allocation5 + $0x108] sm:$0xff] }
  0x78   :  { %v684_v43 = vand.u32 4294901760, %v683_v10  ;;  %v696_v44 = vand.u32 4294901760, %v695_v32  ;;  %v13251_v51 = vsub.f32 %v111_v60, %v491_v39  ;;  %v13253_v58 = vsub.f32 %v114_v61, %v495_v40 }
  0x79   :  { %19010 = vst [vmem:[#allocation44_spill] sm:$0xff] %v13247_v48  ;;  %19011 = vst [vmem:[#allocation45_spill] sm:$0xff] %v13249_v49  ;;  %10706 = vmatprep.subr.bf16.mxu0 %v10705_v38  ;;  %v13255_v56 = vpack.c.bf16 %v493_v3, %v489_v2  ;;  %v13257_v63 = vpack.c.bf16 %v495_v40, %v491_v39  ;;  %v18044_v0 = vand.u32 4294901760, %v13247_v48  ;;  %v18045_v10 = vand.u32 4294901760, %v13249_v49 }
  0x7a   :  { %19012 = vst [vmem:[#allocation46_spill] sm:$0xff] %v13251_v51  ;;  %19013 = vst [vmem:[#allocation47_spill] sm:$0xff] %v13253_v58  ;;  %v10707_v57 = vpack.c.bf16 %v696_v44, %v684_v43  ;;  %v501_v54 = vand.u32 4294901760, %v121_v35  ;;  %v18048_v55 = vand.u32 4294901760, %v13251_v51  ;;  %v18051_v32 = vand.u32 4294901760, %v13253_v58 }
  0x7b   :  { %19014 = vst [vmem:[#allocation48_spill] sm:$0xff] %v13255_v56  ;;  %19015 = vst [vmem:[#allocation49_spill] sm:$0xff] %v13257_v63  ;;  %10646 = vmatprep.subr.bf16.mxu1 %v13255_v56  ;;  %v13264_v60 = vsub.f32 %v118_v62, %v497_v36  ;;  %v499_v61 = vand.u32 4294901760, %v117_v50  ;;  %v701_v2 = vsub.f32 %v13247_v48, %v18044_v0  ;;  %v503_v39 = vand.u32 4294901760, %v120_v8 }
  0x7c   :  { %10708 = vmatpush1.bf16.msra.mxu0 %v10707_v57  ;;  %v713_v3 = vsub.f32 %v13249_v49, %v18045_v10  ;;  %10648 = vmatpush1.bf16.msra.mxu1 %v13257_v63  ;;  %v13273_v38 = vsub.f32 %v121_v35, %v501_v54  ;;  %v707_v62 = vsub.f32 %v13251_v51, %v18048_v55 }
  0x7d   :  { %19016 = vst [vmem:[#allocation50_spill] sm:$0xff] %v13264_v60  ;;  %v719_v57 = vsub.f32 %v13253_v58, %v18051_v32  ;;  %v18055_v40 = vand.u32 4294901760, %v13264_v60  ;;  %v13282_v43 = vsub.f32 %v117_v50, %v499_v61  ;;  %v702_v44 = vand.u32 4294901760, %v701_v2  ;;  %v127_v32 = vld [vmem:[#allocation5 + $0x140] sm:$0xff] }
  0x7e   :  { %19017 = vst [vmem:[#allocation51_spill] sm:$0xff] %v13273_v38  ;;  %v714_v0 = vand.u32 4294901760, %v713_v3  ;;  %v18057_v10 = vand.u32 4294901760, %v13273_v38  ;;  %v13285_v42 = vsub.f32 %v120_v8, %v503_v39  ;;  %v708_v35 = vand.u32 4294901760, %v707_v62  ;;  %v123_v8 = vld [vmem:[#allocation5 + $0x120] sm:$0xff]  ;;  %v126_v62 = vld [vmem:[#allocation5 + $0x138] sm:$0xff] }
  0x7f   :  { %19018 = vst [vmem:[#allocation52_spill] sm:$0xff] %v13282_v43  ;;  %v720_v34 = vand.u32 4294901760, %v719_v57  ;;  %v725_v55 = vsub.f32 %v13264_v60, %v18055_v40  ;;  %v18058_v30 = vand.u32 4294901760, %v13282_v43  ;;  %v13295_v3 = vpack.c.bf16 %v501_v54, %v497_v36  ;;  %v130_v57 = vld [vmem:[#allocation5 + $0x158] sm:$0xff]  ;;  %v172_v60 = vld [vmem:[#allocation5 + $0x2a8] sm:$0xff] }
  0x80   :  { %19019 = vst [vmem:[#allocation53_spill] sm:$0xff] %v13285_v42  ;;  %v10709_v25 = vpack.c.bf16 %v714_v0, %v702_v44  ;;  %v737_v50 = vsub.f32 %v13273_v38, %v18057_v10  ;;  %v18060_v2 = vand.u32 4294901760, %v13285_v42  ;;  %v13300_v41 = vpack.c.bf16 %v503_v39, %v499_v61 }
  0x81   :  { %19020 = vst [vmem:[#allocation54_spill] sm:$0xff] %v13295_v3  ;;  %v10711_v11 = vpack.c.bf16 %v720_v34, %v708_v35  ;;  %v726_v47 = vand.u32 4294901760, %v725_v55  ;;  %v731_v40 = vsub.f32 %v13282_v43, %v18058_v30  ;;  %10650 = vmatprep.subr.bf16.mxu1 %v13295_v3  ;;  %v505_v36 = vand.u32 4294901760, %v124_v29  ;;  %v133_v35 = vld [vmem:[#allocation5 + $0x170] sm:$0xff] }
  0x82   :  { %19021 = vst [vmem:[#allocation55_spill] sm:$0xff] %v13300_v41  ;;  %10710 = vmatprep.subr.bf16.mxu0 %v10709_v25  ;;  %v738_v0 = vand.u32 4294901760, %v737_v50  ;;  %v743_v44 = vsub.f32 %v13285_v42, %v18060_v2  ;;  %v509_v54 = vand.u32 4294901760, %v127_v32  ;;  %10652 = vmatpush1.bf16.msra.mxu1 %v13300_v41  ;;  %v507_v34 = vand.u32 4294901760, %v123_v8  ;;  %v165_v42 = vld [vmem:[#allocation5 + $0x270] sm:$0xff] }
  0x83   :  { %10712 = vmatpush1.bf16.msra.mxu0 %v10711_v11  ;;  %v732_v10 = vand.u32 4294901760, %v731_v40  ;;  %v511_v55 = vand.u32 4294901760, %v126_v62  ;;  %v513_v30 = vand.u32 4294901760, %v130_v57  ;;  %v13307_v25 = vsub.f32 %v124_v29, %v505_v36  ;;  %v132_v40 = vld [vmem:[#allocation5 + $0x168] sm:$0xff] }
  0x84   :  { %v10713_v61 = vpack.c.bf16 %v738_v0, %v726_v47  ;;  %v744_v39 = vand.u32 4294901760, %v743_v44  ;;  %v13309_v50 = vsub.f32 %v127_v32, %v509_v54  ;;  %v13311_v2 = vsub.f32 %v123_v8, %v507_v34 }
  0x85   :  { %19022 = vst [vmem:[#allocation56_spill] sm:$0xff] %v13307_v25  ;;  %v13313_v27 = vsub.f32 %v126_v62, %v511_v55  ;;  %v13315_v26 = vpack.c.bf16 %v509_v54, %v505_v36  ;;  %v13317_v11 = vpack.c.bf16 %v511_v55, %v507_v34  ;;  %v18066_v23 = vand.u32 4294901760, %v13307_v25 }
  0x86   :  { %19023 = vst [vmem:[#allocation57_spill] sm:$0xff] %v13309_v50  ;;  %19024 = vst [vmem:[#allocation58_spill] sm:$0xff] %v13311_v2  ;;  %10714 = vmatprep.subr.bf16.mxu0 %v10713_v61  ;;  %v10715_v24 = vpack.c.bf16 %v744_v39, %v732_v10  ;;  %v18065_v47 = vand.u32 4294901760, %v13309_v50  ;;  %v517_v29 = vand.u32 4294901760, %v133_v35  ;;  %v18068_v32 = vand.u32 4294901760, %v13311_v2 }
  0x87   :  { %19025 = vst [vmem:[#allocation59_spill] sm:$0xff] %v13313_v27  ;;  %19026 = vst [vmem:[#allocation60_spill] sm:$0xff] %v13315_v26  ;;  %v18073_v0 = vand.u32 4294901760, %v13313_v27  ;;  %10654 = vmatprep.subr.bf16.mxu1 %v13315_v26  ;;  %v13324_v8 = vsub.f32 %v130_v57, %v513_v30  ;;  %v515_v62 = vand.u32 4294901760, %v129_v28  ;;  %v749_v44 = vsub.f32 %v13307_v25, %v18066_v23  ;;  %v136_v26 = vld [vmem:[#allocation5 + $0x188] sm:$0xff] }
  0x88   :  { %19027 = vst [vmem:[#allocation61_spill] sm:$0xff] %v13317_v11  ;;  %10716 = vmatpush1.bf16.msra.mxu0 %v10715_v24  ;;  %v761_v10 = vsub.f32 %v13309_v50, %v18065_v47  ;;  %10656 = vmatpush1.bf16.msra.mxu1 %v13317_v11  ;;  %v13333_v36 = vsub.f32 %v133_v35, %v517_v29  ;;  %v519_v54 = vand.u32 4294901760, %v132_v40 }
  0x89   :  { %19028 = vst [vmem:[#allocation62_spill] sm:$0xff] %v13324_v8  ;;  %v755_v57 = vsub.f32 %v13311_v2, %v18068_v32  ;;  %v767_v24 = vsub.f32 %v13313_v27, %v18073_v0  ;;  %v18080_v34 = vand.u32 4294901760, %v13324_v8  ;;  %v13342_v55 = vsub.f32 %v129_v28, %v515_v62  ;;  %v139_v0 = vld [vmem:[#allocation5 + $0x1a0] sm:$0xff] }
  0x8a   :  { %19029 = vst [vmem:[#allocation63_spill] sm:$0xff] %v13333_v36  ;;  %v750_v61 = vand.u32 4294901760, %v749_v44  ;;  %v762_v39 = vand.u32 4294901760, %v761_v10  ;;  %v18083_v47 = vand.u32 4294901760, %v13333_v36  ;;  %v13345_v23 = vsub.f32 %v132_v40, %v519_v54  ;;  %v135_v40 = vld [vmem:[#allocation5 + $0x180] sm:$0xff] }
  0x8b   :  { %19030 = vst [vmem:[#allocation64_spill] sm:$0xff] %v13342_v55  ;;  %v756_v35 = vand.u32 4294901760, %v755_v57  ;;  %v768_v22 = vand.u32 4294901760, %v767_v24  ;;  %v773_v32 = vsub.f32 %v13324_v8, %v18080_v34  ;;  %v18084_v11 = vand.u32 4294901760, %v13342_v55  ;;  %v138_v57 = vld [vmem:[#allocation5 + $0x198] sm:$0xff]  ;;  %v160_v8 = vld [vmem:[#allocation5 + $0x248] sm:$0xff] }
  0x8c   :  { %19031 = vst [vmem:[#allocation65_spill] sm:$0xff] %v13345_v23  ;;  %v10717_v41 = vpack.c.bf16 %v762_v39, %v750_v61  ;;  %v785_v28 = vsub.f32 %v13333_v36, %v18083_v47  ;;  %v18087_v44 = vand.u32 4294901760, %v13345_v23  ;;  %v13355_v10 = vpack.c.bf16 %v517_v29, %v513_v30  ;;  %v142_v24 = vld [vmem:[#allocation5 + $0x1b8] sm:$0xff] }
  0x8d   :  { %v10719_v3 = vpack.c.bf16 %v768_v22, %v756_v35  ;;  %v774_v63 = vand.u32 4294901760, %v773_v32  ;;  %v779_v34 = vsub.f32 %v13342_v55, %v18084_v11  ;;  %v13360_v56 = vpack.c.bf16 %v519_v54, %v515_v62  ;;  %v145_v35 = vld [vmem:[#allocation5 + $0x1d0] sm:$0xff] }
  0x8e   :  { %19032 = vst [vmem:[#allocation66_spill] sm:$0xff] %v13355_v10  ;;  %10718 = vmatprep.subr.bf16.mxu0 %v10717_v41  ;;  %v786_v61 = vand.u32 4294901760, %v785_v28  ;;  %v791_v39 = vsub.f32 %v13345_v23, %v18087_v44  ;;  %10658 = vmatprep.subr.bf16.mxu1 %v13355_v10  ;;  %v521_v30 = vand.u32 4294901760, %v136_v26  ;;  %v525_v29 = vand.u32 4294901760, %v139_v0  ;;  %v153_v23 = vld [vmem:[#allocation5 + $0x210] sm:$0xff] }
  0x8f   :  { %19033 = vst [vmem:[#allocation67_spill] sm:$0xff] %v13360_v56  ;;  %10720 = vmatpush1.bf16.msra.mxu0 %v10719_v3  ;;  %v780_v47 = vand.u32 4294901760, %v779_v34  ;;  %10660 = vmatpush1.bf16.msra.mxu1 %v13360_v56  ;;  %v523_v22 = vand.u32 4294901760, %v135_v40  ;;  %v527_v32 = vand.u32 4294901760, %v138_v57  ;;  %v529_v11 = vand.u32 4294901760, %v142_v24  ;;  %v144_v34 = vld [vmem:[#allocation5 + $0x1c8] sm:$0xff] }
  0x90   :  { %v10721_v62 = vpack.c.bf16 %v786_v61, %v774_v63  ;;  %v792_v54 = vand.u32 4294901760, %v791_v39  ;;  %v13367_v41 = vsub.f32 %v136_v26, %v521_v30  ;;  %v13369_v28 = vsub.f32 %v139_v0, %v525_v29 }
  0x91   :  { %v13371_v44 = vsub.f32 %v135_v40, %v523_v22  ;;  %v13373_v10 = vsub.f32 %v138_v57, %v527_v32  ;;  %v13375_v59 = vpack.c.bf16 %v525_v29, %v521_v30  ;;  %v13377_v3 = vpack.c.bf16 %v527_v32, %v523_v22 }
  0x92   :  { %19034 = vst [vmem:[#allocation68_spill] sm:$0xff] %v13367_v41  ;;  %19035 = vst [vmem:[#allocation69_spill] sm:$0xff] %v13369_v28  ;;  %10722 = vmatprep.subr.bf16.mxu0 %v10721_v62  ;;  %v10723_v56 = vpack.c.bf16 %v792_v54, %v780_v47  ;;  %v18097_v12 = vand.u32 4294901760, %v13367_v41  ;;  %v18096_v63 = vand.u32 4294901760, %v13369_v28  ;;  %v533_v26 = vand.u32 4294901760, %v145_v35 }
  0x93   :  { %19036 = vst [vmem:[#allocation70_spill] sm:$0xff] %v13371_v44  ;;  %19037 = vst [vmem:[#allocation71_spill] sm:$0xff] %v13373_v10  ;;  %v18100_v0 = vand.u32 4294901760, %v13371_v44  ;;  %v18105_v61 = vand.u32 4294901760, %v13373_v10  ;;  %10662 = vmatprep.subr.bf16.mxu1 %v13375_v59  ;;  %v13384_v40 = vsub.f32 %v142_v24, %v529_v11  ;;  %v531_v57 = vand.u32 4294901760, %v141_v9 }
  0x94   :  { %19038 = vst [vmem:[#allocation72_spill] sm:$0xff] %v13375_v59  ;;  %19039 = vst [vmem:[#allocation73_spill] sm:$0xff] %v13377_v3  ;;  %10724 = vmatpush1.bf16.msra.mxu0 %v10723_v56  ;;  %v797_v39 = vsub.f32 %v13367_v41, %v18097_v12  ;;  %v809_v47 = vsub.f32 %v13369_v28, %v18096_v63  ;;  %10664 = vmatpush1.bf16.msra.mxu1 %v13377_v3  ;;  %v535_v29 = vand.u32 4294901760, %v144_v34 }
  0x95   :  { %19040 = vst [vmem:[#allocation74_spill] sm:$0xff] %v13384_v40  ;;  %v13393_v30 = vsub.f32 %v145_v35, %v533_v26  ;;  %v803_v24 = vsub.f32 %v13371_v44, %v18100_v0  ;;  %v815_v56 = vsub.f32 %v13373_v10, %v18105_v61  ;;  %v18112_v22 = vand.u32 4294901760, %v13384_v40  ;;  %v151_v61 = vld [vmem:[#allocation5 + $0x200] sm:$0xff] }
  0x96   :  { %v13402_v32 = vsub.f32 %v141_v9, %v531_v57  ;;  %v798_v62 = vand.u32 4294901760, %v797_v39  ;;  %v810_v54 = vand.u32 4294901760, %v809_v47  ;;  %v13405_v12 = vsub.f32 %v144_v34, %v535_v29  ;;  %v147_v34 = vld [vmem:[#allocation5 + $0x1e0] sm:$0xff] }
  0x97   :  { %19041 = vst [vmem:[#allocation75_spill] sm:$0xff] %v13393_v30  ;;  %v18115_v63 = vand.u32 4294901760, %v13393_v30  ;;  %v804_v35 = vand.u32 4294901760, %v803_v24  ;;  %v816_v3 = vand.u32 4294901760, %v815_v56  ;;  %v821_v0 = vsub.f32 %v13384_v40, %v18112_v22  ;;  %v150_v24 = vld [vmem:[#allocation5 + $0x1f8] sm:$0xff] }
  0x98   :  { %19042 = vst [vmem:[#allocation76_spill] sm:$0xff] %v13402_v32  ;;  %19043 = vst [vmem:[#allocation77_spill] sm:$0xff] %v13405_v12  ;;  %v18116_v59 = vand.u32 4294901760, %v13402_v32  ;;  %v10725_v53 = vpack.c.bf16 %v810_v54, %v798_v62  ;;  %v18119_v39 = vand.u32 4294901760, %v13405_v12  ;;  %v13415_v47 = vpack.c.bf16 %v533_v26, %v529_v11  ;;  %v154_v56 = vld [vmem:[#allocation5 + $0x218] sm:$0xff] }
  0x99   :  { %v833_v9 = vsub.f32 %v13393_v30, %v18115_v63  ;;  %v10727_v52 = vpack.c.bf16 %v816_v3, %v804_v35  ;;  %v822_v19 = vand.u32 4294901760, %v821_v0  ;;  %v13420_v16 = vpack.c.bf16 %v535_v29, %v531_v57  ;;  %v157_v35 = vld [vmem:[#allocation5 + $0x230] sm:$0xff] }
  0x9a   :  { %19044 = vst [vmem:[#allocation78_spill] sm:$0xff] %v13415_v47  ;;  %v827_v22 = vsub.f32 %v13402_v32, %v18116_v59  ;;  %10726 = vmatprep.subr.bf16.mxu0 %v10725_v53  ;;  %v839_v54 = vsub.f32 %v13405_v12, %v18119_v39  ;;  %10666 = vmatprep.subr.bf16.mxu1 %v13415_v47  ;;  %v537_v11 = vand.u32 4294901760, %v148_v7  ;;  %v541_v26 = vand.u32 4294901760, %v151_v61 }
  0x9b   :  { %19045 = vst [vmem:[#allocation79_spill] sm:$0xff] %v13420_v16  ;;  %v834_v62 = vand.u32 4294901760, %v833_v9  ;;  %10728 = vmatpush1.bf16.msra.mxu0 %v10727_v52  ;;  %10668 = vmatpush1.bf16.msra.mxu1 %v13420_v16  ;;  %v539_v3 = vand.u32 4294901760, %v147_v34  ;;  %v543_v0 = vand.u32 4294901760, %v150_v24  ;;  %v545_v59 = vand.u32 4294901760, %v154_v56 }
  0x9c   :  { %v828_v63 = vand.u32 4294901760, %v827_v22  ;;  %v840_v29 = vand.u32 4294901760, %v839_v54  ;;  %v13427_v53 = vsub.f32 %v148_v7, %v537_v11  ;;  %v13429_v9 = vsub.f32 %v151_v61, %v541_v26  ;;  %v156_v22 = vld [vmem:[#allocation5 + $0x228] sm:$0xff] }
  0x9d   :  { %v10729_v57 = vpack.c.bf16 %v834_v62, %v822_v19  ;;  %v13431_v39 = vsub.f32 %v147_v34, %v539_v3  ;;  %v13433_v47 = vsub.f32 %v150_v24, %v543_v0  ;;  %v13435_v55 = vpack.c.bf16 %v541_v26, %v537_v11 }
  0x9e   :  { %19046 = vst [vmem:[#allocation80_spill] sm:$0xff] %v13427_v53  ;;  %19047 = vst [vmem:[#allocation81_spill] sm:$0xff] %v13429_v9  ;;  %v13437_v52 = vpack.c.bf16 %v543_v0, %v539_v3  ;;  %v10731_v16 = vpack.c.bf16 %v840_v29, %v828_v63  ;;  %v18129_v36 = vand.u32 4294901760, %v13427_v53  ;;  %v18128_v19 = vand.u32 4294901760, %v13429_v9 }
  0x9f   :  { %19048 = vst [vmem:[#allocation82_spill] sm:$0xff] %v13431_v39  ;;  %19049 = vst [vmem:[#allocation83_spill] sm:$0xff] %v13433_v47  ;;  %10730 = vmatprep.subr.bf16.mxu0 %v10729_v57  ;;  %v549_v7 = vand.u32 4294901760, %v157_v35  ;;  %v18132_v61 = vand.u32 4294901760, %v13431_v39  ;;  %v18137_v62 = vand.u32 4294901760, %v13433_v47  ;;  %10670 = vmatprep.subr.bf16.mxu1 %v13435_v55  ;;  %v13444_v34 = vsub.f32 %v154_v56, %v545_v59 }
  0xa0   :  { %19050 = vst [vmem:[#allocation84_spill] sm:$0xff] %v13435_v55  ;;  %19051 = vst [vmem:[#allocation85_spill] sm:$0xff] %v13437_v52  ;;  %v547_v24 = vand.u32 4294901760, %v153_v23  ;;  %10732 = vmatpush1.bf16.msra.mxu0 %v10731_v16  ;;  %v845_v54 = vsub.f32 %v13427_v53, %v18129_v36  ;;  %v857_v63 = vsub.f32 %v13429_v9, %v18128_v19  ;;  %10672 = vmatpush1.bf16.msra.mxu1 %v13437_v52 }
  0xa1   :  { %19052 = vst [vmem:[#allocation86_spill] sm:$0xff] %v13444_v34  ;;  %v13453_v11 = vsub.f32 %v157_v35, %v549_v7  ;;  %v551_v26 = vand.u32 4294901760, %v156_v22  ;;  %v851_v56 = vsub.f32 %v13431_v39, %v18132_v61  ;;  %v863_v16 = vsub.f32 %v13433_v47, %v18137_v62  ;;  %v163_v62 = vld [vmem:[#allocation5 + $0x260] sm:$0xff] }
  0xa2   :  { %v18144_v3 = vand.u32 4294901760, %v13444_v34  ;;  %v13462_v0 = vsub.f32 %v153_v23, %v547_v24  ;;  %v846_v57 = vand.u32 4294901760, %v845_v54  ;;  %v858_v29 = vand.u32 4294901760, %v857_v63 }
  0xa3   :  { %19053 = vst [vmem:[#allocation87_spill] sm:$0xff] %v13453_v11  ;;  %v18147_v19 = vand.u32 4294901760, %v13453_v11  ;;  %v13465_v36 = vsub.f32 %v156_v22, %v551_v26  ;;  %v852_v35 = vand.u32 4294901760, %v851_v56  ;;  %v864_v52 = vand.u32 4294901760, %v863_v16  ;;  %v159_v22 = vld [vmem:[#allocation5 + $0x240] sm:$0xff]  ;;  %v162_v56 = vld [vmem:[#allocation5 + $0x258] sm:$0xff] }
  0xa4   :  { %19054 = vst [vmem:[#allocation88_spill] sm:$0xff] %v13462_v0  ;;  %v869_v61 = vsub.f32 %v13444_v34, %v18144_v3  ;;  %v18148_v55 = vand.u32 4294901760, %v13462_v0  ;;  %v10733_v27 = vpack.c.bf16 %v858_v29, %v846_v57  ;;  %v13475_v63 = vpack.c.bf16 %v549_v7, %v545_v59  ;;  %v166_v16 = vld [vmem:[#allocation5 + $0x278] sm:$0xff] }
  0xa5   :  { %19055 = vst [vmem:[#allocation89_spill] sm:$0xff] %v13465_v36  ;;  %v881_v23 = vsub.f32 %v13453_v11, %v18147_v19  ;;  %v18151_v54 = vand.u32 4294901760, %v13465_v36  ;;  %v10735_v2 = vpack.c.bf16 %v864_v52, %v852_v35  ;;  %v13480_v25 = vpack.c.bf16 %v551_v26, %v547_v24  ;;  %v169_v35 = vld [vmem:[#allocation5 + $0x290] sm:$0xff] }
  0xa6   :  { %19056 = vst [vmem:[#allocation90_spill] sm:$0xff] %v13475_v63  ;;  %v870_v50 = vand.u32 4294901760, %v869_v61  ;;  %v875_v3 = vsub.f32 %v13462_v0, %v18148_v55  ;;  %10734 = vmatprep.subr.bf16.mxu0 %v10733_v27  ;;  %10674 = vmatprep.subr.bf16.mxu1 %v13475_v63  ;;  %v553_v59 = vand.u32 4294901760, %v160_v8  ;;  %v557_v7 = vand.u32 4294901760, %v163_v62 }
  0xa7   :  { %19057 = vst [vmem:[#allocation91_spill] sm:$0xff] %v13480_v25  ;;  %v882_v57 = vand.u32 4294901760, %v881_v23  ;;  %v887_v29 = vsub.f32 %v13465_v36, %v18151_v54  ;;  %10736 = vmatpush1.bf16.msra.mxu0 %v10735_v2  ;;  %10676 = vmatpush1.bf16.msra.mxu1 %v13480_v25  ;;  %v555_v52 = vand.u32 4294901760, %v159_v22  ;;  %v559_v61 = vand.u32 4294901760, %v162_v56 }
  0xa8   :  { %v876_v19 = vand.u32 4294901760, %v875_v3  ;;  %v561_v55 = vand.u32 4294901760, %v166_v16  ;;  %v13487_v27 = vsub.f32 %v160_v8, %v553_v59  ;;  %v13489_v23 = vsub.f32 %v163_v62, %v557_v7  ;;  %v168_v3 = vld [vmem:[#allocation5 + $0x288] sm:$0xff] }
  0xa9   :  { %v10737_v24 = vpack.c.bf16 %v882_v57, %v870_v50  ;;  %v888_v26 = vand.u32 4294901760, %v887_v29  ;;  %v13491_v54 = vsub.f32 %v159_v22, %v555_v52  ;;  %v13493_v63 = vsub.f32 %v162_v56, %v559_v61 }
  0xaa   :  { %19058 = vst [vmem:[#allocation92_spill] sm:$0xff] %v13487_v27  ;;  %19059 = vst [vmem:[#allocation93_spill] sm:$0xff] %v13489_v23  ;;  %v13495_v43 = vpack.c.bf16 %v557_v7, %v553_v59  ;;  %v13497_v2 = vpack.c.bf16 %v559_v61, %v555_v52  ;;  %v18161_v38 = vand.u32 4294901760, %v13487_v27  ;;  %v18160_v50 = vand.u32 4294901760, %v13489_v23 }
  0xab   :  { %19060 = vst [vmem:[#allocation94_spill] sm:$0xff] %v13491_v54  ;;  %19061 = vst [vmem:[#allocation95_spill] sm:$0xff] %v13493_v63  ;;  %10738 = vmatprep.subr.bf16.mxu0 %v10737_v24  ;;  %v10739_v25 = vpack.c.bf16 %v888_v26, %v876_v19  ;;  %v565_v8 = vand.u32 4294901760, %v169_v35  ;;  %v18164_v62 = vand.u32 4294901760, %v13491_v54  ;;  %v18169_v57 = vand.u32 4294901760, %v13493_v63 }
  0xac   :  { %19062 = vst [vmem:[#allocation96_spill] sm:$0xff] %v13495_v43  ;;  %19063 = vst [vmem:[#allocation97_spill] sm:$0xff] %v13497_v2  ;;  %10678 = vmatprep.subr.bf16.mxu1 %v13495_v43  ;;  %v13504_v22 = vsub.f32 %v166_v16, %v561_v55  ;;  %v563_v56 = vand.u32 4294901760, %v165_v42  ;;  %v893_v29 = vsub.f32 %v13487_v27, %v18161_v38  ;;  %v567_v7 = vand.u32 4294901760, %v168_v3 }
  0xad   :  { %10740 = vmatpush1.bf16.msra.mxu0 %v10739_v25  ;;  %v905_v19 = vsub.f32 %v13489_v23, %v18160_v50  ;;  %10680 = vmatpush1.bf16.msra.mxu1 %v13497_v2  ;;  %v13513_v59 = vsub.f32 %v169_v35, %v565_v8  ;;  %v899_v16 = vsub.f32 %v13491_v54, %v18164_v62 }
  0xae   :  { %19064 = vst [vmem:[#allocation98_spill] sm:$0xff] %v13504_v22  ;;  %v911_v25 = vsub.f32 %v13493_v63, %v18169_v57  ;;  %v18176_v52 = vand.u32 4294901760, %v13504_v22  ;;  %v13522_v61 = vsub.f32 %v165_v42, %v563_v56  ;;  %v894_v24 = vand.u32 4294901760, %v893_v29  ;;  %v175_v57 = vld [vmem:[#allocation5 + $0x2c0] sm:$0xff] }
  0xaf   :  { %19065 = vst [vmem:[#allocation99_spill] sm:$0xff] %v13513_v59  ;;  %v906_v26 = vand.u32 4294901760, %v905_v19  ;;  %v18179_v50 = vand.u32 4294901760, %v13513_v59  ;;  %v13525_v38 = vsub.f32 %v168_v3, %v567_v7  ;;  %v900_v35 = vand.u32 4294901760, %v899_v16  ;;  %v171_v3 = vld [vmem:[#allocation5 + $0x2a0] sm:$0xff]  ;;  %v174_v16 = vld [vmem:[#allocation5 + $0x2b8] sm:$0xff] }
  0xb0   :  { %19066 = vst [vmem:[#allocation100_spill] sm:$0xff] %v13522_v61  ;;  %v912_v2 = vand.u32 4294901760, %v911_v25  ;;  %v917_v62 = vsub.f32 %v13504_v22, %v18176_v52  ;;  %v18180_v43 = vand.u32 4294901760, %v13522_v61  ;;  %v13535_v19 = vpack.c.bf16 %v565_v8, %v561_v55  ;;  %v178_v25 = vld [vmem:[#allocation5 + $0x2d8] sm:$0xff] }
  0xb1   :  { %19067 = vst [vmem:[#allocation101_spill] sm:$0xff] %v13525_v38  ;;  %v10741_v58 = vpack.c.bf16 %v906_v26, %v894_v24  ;;  %v929_v42 = vsub.f32 %v13513_v59, %v18179_v50  ;;  %v18183_v29 = vand.u32 4294901760, %v13525_v38  ;;  %v13540_v22 = vpack.c.bf16 %v567_v7, %v563_v56 }
  0xb2   :  { %19068 = vst [vmem:[#allocation102_spill] sm:$0xff] %v13535_v19  ;;  %v10743_v51 = vpack.c.bf16 %v912_v2, %v900_v35  ;;  %v918_v63 = vand.u32 4294901760, %v917_v62  ;;  %v923_v52 = vsub.f32 %v13522_v61, %v18180_v43  ;;  %10682 = vmatprep.subr.bf16.mxu1 %v13535_v19  ;;  %v569_v55 = vand.u32 4294901760, %v172_v60  ;;  %v181_v35 = vld [vmem:[#allocation5 + $0x2f0] sm:$0xff] }
  0xb3   :  { %19069 = vst [vmem:[#allocation103_spill] sm:$0xff] %v13540_v22  ;;  %10742 = vmatprep.subr.bf16.mxu0 %v10741_v58  ;;  %v930_v24 = vand.u32 4294901760, %v929_v42  ;;  %v935_v26 = vsub.f32 %v13525_v38, %v18183_v29  ;;  %v573_v8 = vand.u32 4294901760, %v175_v57  ;;  %10684 = vmatpush1.bf16.msra.mxu1 %v13540_v22  ;;  %v571_v2 = vand.u32 4294901760, %v171_v3  ;;  %v177_v61 = vld [vmem:[#allocation5 + $0x2d0] sm:$0xff] }
  0xb4   :  { %10744 = vmatpush1.bf16.msra.mxu0 %v10743_v51  ;;  %v924_v50 = vand.u32 4294901760, %v923_v52  ;;  %v575_v62 = vand.u32 4294901760, %v174_v16  ;;  %v577_v43 = vand.u32 4294901760, %v178_v25  ;;  %v13547_v58 = vsub.f32 %v172_v60, %v569_v55  ;;  %v180_v52 = vld [vmem:[#allocation5 + $0x2e8] sm:$0xff] }
  0xb5   :  { %v10745_v56 = vpack.c.bf16 %v930_v24, %v918_v63  ;;  %v936_v7 = vand.u32 4294901760, %v935_v26  ;;  %v13549_v42 = vsub.f32 %v175_v57, %v573_v8  ;;  %v13551_v29 = vsub.f32 %v171_v3, %v571_v2 }
  0xb6   :  { %19070 = vst [vmem:[#allocation104_spill] sm:$0xff] %v13547_v58  ;;  %v13553_v19 = vsub.f32 %v174_v16, %v575_v62  ;;  %v13555_v38 = vpack.c.bf16 %v573_v8, %v569_v55  ;;  %v13557_v51 = vpack.c.bf16 %v575_v62, %v571_v2  ;;  %v18193_v59 = vand.u32 4294901760, %v13547_v58 }
  0xb7   :  { %19071 = vst [vmem:[#allocation105_spill] sm:$0xff] %v13549_v42  ;;  %19072 = vst [vmem:[#allocation106_spill] sm:$0xff] %v13551_v29  ;;  %10746 = vmatprep.subr.bf16.mxu0 %v10745_v56  ;;  %v10747_v22 = vpack.c.bf16 %v936_v7, %v924_v50  ;;  %v18192_v63 = vand.u32 4294901760, %v13549_v42  ;;  %v581_v60 = vand.u32 4294901760, %v181_v35  ;;  %v18196_v57 = vand.u32 4294901760, %v13551_v29 }
  0xb8   :  { %19073 = vst [vmem:[#allocation107_spill] sm:$0xff] %v13553_v19  ;;  %19074 = vst [vmem:[#allocation108_spill] sm:$0xff] %v13555_v38  ;;  %v18201_v24 = vand.u32 4294901760, %v13553_v19  ;;  %10686 = vmatprep.subr.bf16.mxu1 %v13555_v38  ;;  %v13564_v3 = vsub.f32 %v178_v25, %v577_v43  ;;  %v579_v16 = vand.u32 4294901760, %v177_v61  ;;  %v941_v26 = vsub.f32 %v13547_v58, %v18193_v59 }
  0xb9   :  { %19075 = vst [vmem:[#allocation109_spill] sm:$0xff] %v13557_v51  ;;  %10748 = vmatpush1.bf16.msra.mxu0 %v10747_v22  ;;  %v953_v50 = vsub.f32 %v13549_v42, %v18192_v63  ;;  %10688 = vmatpush1.bf16.msra.mxu1 %v13557_v51  ;;  %v13573_v55 = vsub.f32 %v181_v35, %v581_v60  ;;  %v583_v8 = vand.u32 4294901760, %v180_v52  ;;  %v379_v42 = vld [vmem:[#allocation5 + $0x920] sm:$0xff] }
  0xba   :  { %19076 = vst [vmem:[#allocation110_spill] sm:$0xff] %v13564_v3  ;;  %v947_v25 = vsub.f32 %v13551_v29, %v18196_v57  ;;  %v959_v22 = vsub.f32 %v13553_v19, %v18201_v24  ;;  %v18204_v2 = vand.u32 4294901760, %v13564_v3  ;;  %v13582_v62 = vsub.f32 %v177_v61, %v579_v16  ;;  %v430_v29 = vld [vmem:[#allocation2 + $0x8] sm:$0xff]  ;;  %v376_v19 = vld [vmem:[#allocation5 + $0x908] sm:$0xff] }
  0xbb   :  { %19077 = vst [vmem:[#allocation111_spill] sm:$0xff] %v13573_v55  ;;  %v942_v56 = vand.u32 4294901760, %v941_v26  ;;  %v954_v7 = vand.u32 4294901760, %v953_v50  ;;  %v18211_v63 = vand.u32 4294901760, %v13573_v55  ;;  %v13585_v59 = vsub.f32 %v180_v52, %v583_v8  ;;  %v429_v52 = vld [vmem:[#allocation2] sm:$0xff] }
  0xbc   :  { %19078 = vst [vmem:[#allocation112_spill] sm:$0xff] %v13582_v62  ;;  %v948_v35 = vand.u32 4294901760, %v947_v25  ;;  %v960_v51 = vand.u32 4294901760, %v959_v22  ;;  %v965_v57 = vsub.f32 %v13564_v3, %v18204_v2  ;;  %v18210_v38 = vand.u32 4294901760, %v13582_v62 }
  0xbd   :  { %19079 = vst [vmem:[#allocation113_spill] sm:$0xff] %v13585_v59  ;;  %v10749_v24 = vpack.c.bf16 %v954_v7, %v942_v56  ;;  %v977_v61 = vsub.f32 %v13573_v55, %v18211_v63  ;;  %v18209_v26 = vand.u32 4294901760, %v13585_v59  ;;  %v13595_v50 = vpack.c.bf16 %v581_v60, %v577_v43  ;;  %v375_v60 = vld [vmem:[#allocation5 + $0x900] sm:$0xff] }
  0xbe   :  { %v10751_v25 = vpack.c.bf16 %v960_v51, %v948_v35  ;;  %v966_v22 = vand.u32 4294901760, %v965_v57  ;;  %v971_v2 = vsub.f32 %v13582_v62, %v18210_v38  ;;  %v13600_v3 = vpack.c.bf16 %v583_v8, %v579_v16 }
  0xbf   :  { %19080 = vst [vmem:[#allocation114_spill] sm:$0xff] %v13595_v50  ;;  %10750 = vmatprep.subr.bf16.mxu0 %v10749_v24  ;;  %v978_v56 = vand.u32 4294901760, %v977_v61  ;;  %v983_v7 = vsub.f32 %v13585_v59, %v18209_v26  ;;  %10690 = vmatprep.subr.bf16.mxu1 %v13595_v50  ;;  %v13606_v43 = vand.u32 4294901760, %v430_v29  ;;  %v13609_v57 = vand.u32 4294901760, %v429_v52  ;;  %v378_v26 = vld [vmem:[#allocation5 + $0x918] sm:$0xff] }
  0xc0   :  { %19081 = vst [vmem:[#allocation115_spill] sm:$0xff] %v13600_v3  ;;  %10752 = vmatpush1.bf16.msra.mxu0 %v10751_v25  ;;  %v972_v51 = vand.u32 4294901760, %v971_v2  ;;  %10692 = vmatpush1.bf16.msra.mxu1 %v13600_v3  ;;  %v4309_v16 = vand.u32 4294901760, %v376_v19  ;;  %v4313_v61 = vand.u32 4294901760, %v379_v42  ;;  %v10757_v38 = vpack.c.bf16 %v13129_v14, %v13127_v13  ;;  %v435_v3 = vld [vmem:[#allocation2 + $0x30] sm:$0xff] }
  0xc1   :  { %19082 = vst [vmem:[#allocation116_spill] sm:$0xff] %v13609_v57  ;;  %v10753_v8 = vpack.c.bf16 %v978_v56, %v966_v22  ;;  %v984_v24 = vand.u32 4294901760, %v983_v7  ;;  %987 = vmatprep.mubr.f32.mxu0 %v13606_v43  ;;  %v13613_v35 = vsub.f32 %v430_v29, %v13606_v43  ;;  %v13618_v2 = vsub.f32 %v429_v52, %v13609_v57 }
  0xc2   :  { %v13620_v25 = vsub.f32 %v376_v19, %v4309_v16  ;;  %v4311_v63 = vand.u32 4294901760, %v375_v60  ;;  %v13625_v7 = vpack.c.bf16 %v4313_v61, %v4309_v16  ;;  %v13627_v29 = vsub.f32 %v379_v42, %v4313_v61 }
  0xc3   :  { %19083 = vst [vmem:[#allocation117_spill] sm:$0xff] %v13613_v35  ;;  %19084 = vst [vmem:[#allocation118_spill] sm:$0xff] %v13618_v2  ;;  %10754 = vmatprep.subr.bf16.mxu0 %v10753_v8  ;;  %v10755_v22 = vpack.c.bf16 %v984_v24, %v972_v51  ;;  %v13623_v56 = vand.u32 4294901760, %v13613_v35  ;;  %v13630_v50 = vand.u32 4294901760, %v13618_v2  ;;  %v4315_v14 = vand.u32 4294901760, %v378_v26 }
  0xc4   :  { %v13632_v13 = vsub.f32 %v375_v60, %v4311_v63  ;;  %v10759_v19 = vpack.c.bf16 %v13135_v18, %v13131_v15  ;;  %11782 = vmatprep.subr.bf16.mxu1 %v13625_v7  ;;  %v455_v51 = vsel %vm453_vm0, %v435_v3, 0  ;;  %v10761_v16 = vpack.c.bf16 %v13141_v21, %v13139_v20  ;;  %v113_v20 = vld [vmem:[#allocation5 + $0xd0] sm:$0xff]  ;;  %v116_v15 = vld [vmem:[#allocation5 + $0xe8] sm:$0xff] }
  0xc5   :  { %19085 = vst [vmem:[#allocation119_spill] sm:$0xff] %v13623_v56  ;;  %19086 = vst [vmem:[#allocation120_spill] sm:$0xff] %v13630_v50  ;;  %10756 = vmatpush1.bf16.msra.mxu0 %v10755_v22  ;;  %v588_v52 = vsub.f32 %v13613_v35, %v13623_v56  ;;  %v594_v42 = vsub.f32 %v13618_v2, %v13630_v50  ;;  %v13644_v60 = vsub.f32 %v378_v26, %v4315_v14 }
  0xc6   :  { %10758 = vmatprep.subr.bf16.mxu0 %v10757_v38  ;;  %v13646_v8 = vand.u32 4294901760, %v455_v51  ;;  %v13650_v61 = vpack.c.bf16 %v4315_v14, %v4311_v63  ;;  %v18221_v22 = vand.u32 4294901760, %v13620_v25  ;;  %v18222_v18 = vand.u32 4294901760, %v13627_v29 }
  0xc7   :  { %v13648_v24 = vand.u32 4294901760, %v588_v52  ;;  %v13655_v38 = vand.u32 4294901760, %v594_v42  ;;  %v18227_v26 = vand.u32 4294901760, %v13632_v13  ;;  %v18229_v50 = vand.u32 4294901760, %v13644_v60 }
  0xc8   :  { %19087 = vst [vmem:[#allocation121_spill] sm:$0xff] %v13646_v8  ;;  %989 = vmatmul.mubr.f32.vlgmr.msra.gmra.mrb[0].mxu0 %v13609_v57  ;;  %v13658_v3 = vsub.f32 %v455_v51, %v13646_v8  ;;  %v10763_v14 = vpack.c.bf16 %v13171_v37, %v13160_v33  ;;  %v4392_v63 = vsub.f32 %v13620_v25, %v18221_v22 }
  0xc9   :  { %10760 = vmatpush1.bf16.msra.mxu0 %v10759_v19  ;;  %590 = vmatprep.mubr.f32.mxu1 %v13648_v24  ;;  %v4404_v52 = vsub.f32 %v13627_v29, %v18222_v18  ;;  %v10765_v19 = vpack.c.bf16 %v13189_v4, %v13187_v1  ;;  %v4398_v42 = vsub.f32 %v13632_v13, %v18227_v26  ;;  %v18230_v18 = vmov 0.0  }
  0xca   :  { %19088 = vst [vmem:[#allocation122_spill] sm:$0xff] %v13658_v3  ;;  %596 = vmatmul.mubr.f32.vlgmr.msra.gmra.mrb[0].mxu1 %v13655_v38  ;;  %10762 = vmatprep.subr.bf16.mxu0 %v10761_v16  ;;  %v13673_v51 = vand.u32 4294901760, %v13658_v3  ;;  %v4410_v22 = vsub.f32 %v13644_v60, %v18229_v50  ;;  %v4393_v16 = vand.u32 4294901760, %v4392_v63  ;;  %v10767_v26 = vpack.c.bf16 %v13193_v6, %v13191_v5 }
  0xcb   :  { %11784 = vmatpush1.bf16.msra.mxu1 %v13650_v61  ;;  %4377 = vmatprep.mubr.f32.mxu1 %v18230_v18  ;;  %v4405_v37 = vand.u32 4294901760, %v4404_v52  ;;  %v4399_v21 = vand.u32 4294901760, %v4398_v42  ;;  %v10769_v18 = vpack.c.bf16 %v13206_v31, %v13200_v17  ;;  %v11789_v52 = vpack.c.bf16 %v13627_v29, %v13620_v25 }
  0xcc   :  { %19089 = vst [vmem:[#allocation123_spill] sm:$0xff] %v13673_v51  ;;  %v4381_v33 = vsub.f32 %v13658_v3, %v13673_v51  ;;  %v4411_v4 = vand.u32 4294901760, %v4410_v22  ;;  %1189 = vmatprep.mubr.f32.mxu0 %v13613_v35  ;;  %v10789_v22 = vpack.c.bf16 %v13369_v28, %v13367_v41  ;;  %v11791_v42 = vpack.c.bf16 %v13644_v60, %v13632_v13  ;;  %v19102_v28 = vld [vmem:[#allocation52_spill] sm:$0xff]  ;;  %v19103_v41 = vld [vmem:[#allocation53_spill] sm:$0xff] }
  0xcd   :  { %10764 = vmatpush1.bf16.msra.mxu0 %v10763_v14  ;;  %v11785_v1 = vpack.c.bf16 %v4405_v37, %v4393_v16  ;;  %v10791_v14 = vpack.c.bf16 %v13373_v10, %v13371_v44  ;;  %v10793_v37 = vpack.c.bf16 %v13393_v30, %v13384_v40  ;;  %v19091_v16 = vmov 0.0   ;;  %v19097_v30 = vld [vmem:[#allocation50_spill] sm:$0xff]  ;;  %v19098_v40 = vld [vmem:[#allocation51_spill] sm:$0xff]  ;;  %v19099_v44 = vld [vmem:[#allocation100_spill] sm:$0xff] }
  0xce   :  { %v13690_v50 = vand.u32 4294901760, %v4381_v33  ;;  %10766 = vmatprep.subr.bf16.mxu0 %v10765_v19  ;;  %v11787_v63 = vpack.c.bf16 %v4411_v4, %v4399_v21  ;;  %v10771_v33 = vpack.c.bf16 %v13228_v46, %v13226_v45  ;;  %v10795_v21 = vpack.c.bf16 %v13405_v12, %v13402_v32  ;;  %v19093_v4 = vld [vmem:[#allocation46_spill] sm:$0xff]  ;;  %v19096_v12 = vld [vmem:[#allocation99_spill] sm:$0xff] }
  0xcf   :  { %11786 = vmatprep.subr.bf16.mxu1 %v11785_v1  ;;  %v10797_v1 = vpack.c.bf16 %v13429_v9, %v13427_v53  ;;  %v19094_v53 = vld [vmem:[#allocation47_spill] sm:$0xff]  ;;  %v10777_v10 = vpack.c.bf16 %v19098_v40, %v19097_v30  ;;  %v19100_v9 = vld [vmem:[#allocation101_spill] sm:$0xff]  ;;  %v19111_v32 = vld [vmem:[#allocation62_spill] sm:$0xff]  ;;  %v19113_v46 = vand.u32 4294901760, %v13620_v25  ;;  %v19118_v25 = vand.u32 4294901760, %v13644_v60 }
  0xd0   :  { %19090 = vst [vmem:[#allocation124_spill] sm:$0xff] %v13690_v50  ;;  %4383 = vmatmul.mubr.f32.vlgmr.msra.gmra.mrb[2].mxu1 %v13690_v50  ;;  %v10773_v50 = vpack.c.bf16 %v13249_v49, %v13247_v48  ;;  %v10775_v19 = vpack.c.bf16 %v19094_v53, %v19093_v4  ;;  %v10779_v53 = vpack.c.bf16 %v19103_v41, %v19102_v28  ;;  %v19104_v4 = vld [vmem:[#allocation106_spill] sm:$0xff]  ;;  %v19105_v49 = vld [vmem:[#allocation107_spill] sm:$0xff]  ;;  %v19107_v40 = vld [vmem:[#allocation57_spill] sm:$0xff] }
  0xd1   :  { %10768 = vmatpush1.bf16.msra.mxu0 %v10767_v26  ;;  %11788 = vmatpush1.bf16.msra.mxu1 %v11787_v63  ;;  %v19092_v26 = vld [vmem:[#allocation95_spill] sm:$0xff]  ;;  %v19115_v48 = vld [vmem:[#allocation64_spill] sm:$0xff]  ;;  %v19122_v45 = vpack.c.bf16 %v13453_v11, %v13444_v34  ;;  %v164_v34 = vld [vmem:[#allocation5 + $0x268] sm:$0xff]  ;;  %v19126_v5 = vpack.c.bf16 %v13465_v36, %v13462_v0 }
  0xd2   :  { %10770 = vmatprep.subr.bf16.mxu0 %v10769_v18  ;;  %4473 = vmatprep.mubr.f32.mxu1 %v19091_v16  ;;  %v19095_v18 = vld [vmem:[#allocation98_spill] sm:$0xff]  ;;  %v19110_v63 = vld [vmem:[#allocation59_spill] sm:$0xff]  ;;  %v4876_v35 = vand.u32 4294901760, %v164_v34 }
  0xd3   :  { %11790 = vmatprep.subr.bf16.mxu1 %v11789_v52  ;;  %v19108_v52 = vld [vmem:[#allocation110_spill] sm:$0xff]  ;;  %v146_v60 = vld [vmem:[#allocation5 + $0x1d8] sm:$0xff] }
  0xd5   :  { %10772 = vmatpush1.bf16.msra.mxu0 %v10771_v33  ;;  %v19101_v33 = vld [vmem:[#allocation105_spill] sm:$0xff] }
  0xd6   :  { %10774 = vmatprep.subr.bf16.mxu0 %v10773_v50  ;;  %v19106_v50 = vld [vmem:[#allocation56_spill] sm:$0xff] }
  0xd7   :  { %v10781_v30 = vpack.c.bf16 %v19107_v40, %v19106_v50  ;;  %v19114_v40 = vand.u32 4294901760, %v13627_v29  ;;  %v89_v29 = vld [vmem:[#allocation5 + $0x10] sm:$0xff] }
  0xd8   :  { %4475 = vmatmul.mubr.f32.vlgmr.msra.gmra.mrb[2].mxu1 %v13646_v8 }
  0xd9   :  { %10776 = vmatpush1.bf16.msra.mxu0 %v10775_v19  ;;  %11792 = vmatpush1.bf16.msra.mxu1 %v11791_v42  ;;  %v19109_v42 = vld [vmem:[#allocation58_spill] sm:$0xff]  ;;  %v11797_v50 = vpack.c.bf16 %v19114_v40, %v19113_v46  ;;  %v19116_v19 = vld [vmem:[#allocation65_spill] sm:$0xff] }
  0xda   :  { %10778 = vmatprep.subr.bf16.mxu0 %v10777_v10  ;;  %4553 = vmatprep.mubr.f32.mxu1 %v19091_v16  ;;  %v10783_v41 = vpack.c.bf16 %v19110_v63, %v19109_v42  ;;  %v19112_v10 = vld [vmem:[#allocation63_spill] sm:$0xff]  ;;  %v155_v42 = vld [vmem:[#allocation5 + $0x220] sm:$0xff] }
  0xdb   :  { %11794 = vmatprep.subr.bf16.mxu1 %v13625_v7  ;;  %v10785_v28 = vpack.c.bf16 %v19112_v10, %v19111_v32  ;;  %v137_v46 = vld [vmem:[#allocation5 + $0x190] sm:$0xff]  ;;  %v104_v32 = vld [vmem:[#allocation5 + $0x88] sm:$0xff] }
  0xdd   :  { %10780 = vmatpush1.bf16.msra.mxu0 %v10779_v53  ;;  %v10787_v53 = vpack.c.bf16 %v19116_v19, %v19115_v48  ;;  %v101_v48 = vld [vmem:[#allocation5 + $0x70] sm:$0xff] }
  0xde   :  { %10782 = vmatprep.subr.bf16.mxu0 %v10781_v30  ;;  %v19117_v30 = vand.u32 4294901760, %v13632_v13  ;;  %v143_v13 = vld [vmem:[#allocation5 + $0x1c0] sm:$0xff] }
  0xe0   :  { %4556 = vmatmul.mubr.f32.vlgmr.msra.gmra.mrb[2].mxu1 %v13658_v3  ;;  %v11799_v10 = vpack.c.bf16 %v19118_v25, %v19117_v30  ;;  %v4801_v30 = vand.u32 4294901760, %v89_v29 }
  0xe1   :  { %10784 = vmatpush1.bf16.msra.mxu0 %v10783_v41  ;;  %11796 = vmatpush1.bf16.msra.mxu1 %v13650_v61  ;;  %v140_v41 = vld [vmem:[#allocation5 + $0x1a8] sm:$0xff] }
  0xe2   :  { %10786 = vmatprep.subr.bf16.mxu0 %v10785_v28  ;;  %4630 = vmatprep.mubr.f32.mxu1 %v19091_v16  ;;  %v4849_v28 = vand.u32 4294901760, %v137_v46  ;;  %v4852_v40 = vand.u32 4294901760, %v140_v41  ;;  %v13784_v17 = vsub.f32 %v89_v29, %v4801_v30 }
  0xe3   :  { %11798 = vmatprep.subr.bf16.mxu1 %v11797_v50  ;;  %v92_v50 = vld [vmem:[#allocation5 + $0x28] sm:$0xff] }
  0xe4   :  { %v4804_v25 = vand.u32 4294901760, %v92_v50  ;;  %v13776_v63 = vsub.f32 %v140_v41, %v4852_v40 }
  0xe5   :  { %10788 = vmatpush1.bf16.msra.mxu0 %v10787_v53  ;;  %v95_v53 = vld [vmem:[#allocation5 + $0x40] sm:$0xff] }
  0xe6   :  { %10790 = vmatprep.subr.bf16.mxu0 %v10789_v22  ;;  %v98_v22 = vld [vmem:[#allocation5 + $0x58] sm:$0xff]  ;;  %v4807_v3 = vand.u32 4294901760, %v95_v53  ;;  %19121 = vst [vmem:[#allocation126_spill] sm:$0xff] %v13776_v63  ;;  %v13782_v31 = vpack.c.bf16 %v4804_v25, %v4801_v30  ;;  %v161_v30 = vld [vmem:[#allocation5 + $0x250] sm:$0xff] }
  0xe7   :  { %v4810_v19 = vand.u32 4294901760, %v98_v22  ;;  %v4873_v0 = vand.u32 4294901760, %v161_v30 }
  0xe8   :  { %4634 = vmatmul.mubr.f32.vlgmr.msra.gmra.mrb[2].mxu1 %v13673_v51  ;;  %v13767_v51 = vpack.c.bf16 %v4852_v40, %v4849_v28  ;;  %19123 = vst [vmem:[#allocation127_spill] sm:$0xff] %v13782_v31  ;;  %v4816_v40 = vand.u32 4294901760, %v104_v32  ;;  %v13797_v29 = vsub.f32 %v95_v53, %v4807_v3 }
  0xe9   :  { %10792 = vmatpush1.bf16.msra.mxu0 %v10791_v14  ;;  %11800 = vmatpush1.bf16.msra.mxu1 %v11799_v10  ;;  %v149_v14 = vld [vmem:[#allocation5 + $0x1f0] sm:$0xff]  ;;  %v4855_v10 = vand.u32 4294901760, %v143_v13  ;;  %v13795_v11 = vpack.c.bf16 %v4810_v19, %v4807_v3 }
  0xea   :  { %10794 = vmatprep.subr.bf16.mxu0 %v10793_v37  ;;  %4716 = vmatprep.mubr.f32.mxu1 %v19091_v16  ;;  %19119 = vst [vmem:[#allocation125_spill] sm:$0xff] %v13767_v51  ;;  %v152_v37 = vld [vmem:[#allocation5 + $0x208] sm:$0xff]  ;;  %v4861_v6 = vand.u32 4294901760, %v149_v14  ;;  %v13818_v57 = vsub.f32 %v104_v32, %v4816_v40  ;;  %v119_v32 = vld [vmem:[#allocation5 + $0x100] sm:$0xff] }
  0xeb   :  { %11802 = vmatprep.subr.bf16.mxu1 %v13625_v7  ;;  %v4858_v7 = vand.u32 4294901760, %v146_v60  ;;  %v13789_v41 = vsub.f32 %v143_v13, %v4855_v10  ;;  %19125 = vst [vmem:[#allocation129_spill] sm:$0xff] %v13795_v11 }
  0xec   :  { %v13809_v53 = vsub.f32 %v149_v14, %v4861_v6  ;;  %19133 = vst [vmem:[#allocation135_spill] sm:$0xff] %v13818_v57 }
  0xed   :  { %10796 = vmatpush1.bf16.msra.mxu0 %v10795_v21  ;;  %v19120_v21 = vpack.c.bf16 %v13433_v47, %v13431_v39  ;;  %v4864_v47 = vand.u32 4294901760, %v152_v37  ;;  %v107_v39 = vld [vmem:[#allocation5 + $0xa0] sm:$0xff] }
  0xee   :  { %10798 = vmatprep.subr.bf16.mxu0 %v10797_v1  ;;  %v13774_v1 = vsub.f32 %v137_v46, %v4849_v28  ;;  %v13787_v46 = vsub.f32 %v92_v50, %v4804_v25  ;;  %v4813_v28 = vand.u32 4294901760, %v101_v48  ;;  %v4867_v50 = vand.u32 4294901760, %v155_v42  ;;  %19129 = vst [vmem:[#allocation131_spill] sm:$0xff] %v13809_v53 }
  0xef   :  { %v4819_v13 = vand.u32 4294901760, %v107_v39  ;;  %v13807_v3 = vpack.c.bf16 %v4864_v47, %v4861_v6  ;;  %v19134_v6 = vpack.c.bf16 %v19092_v26, %v13491_v54 }
  0xf0   :  { %4718 = vmatmul.mubr.f32.vlgmr.msra.gmra.mrb[2].mxu1 %v13646_v8  ;;  %v13813_v36 = vpack.c.bf16 %v4816_v40, %v4813_v28 }
  0xf1   :  { %10800 = vmatpush1.bf16.msra.mxu0 %v19120_v21  ;;  %11804 = vmatpush1.bf16.msra.mxu1 %v13650_v61  ;;  %v158_v21 = vld [vmem:[#allocation5 + $0x238] sm:$0xff]  ;;  %19128 = vst [vmem:[#allocation130_spill] sm:$0xff] %v13807_v3 }
  0xf2   :  { %10802 = vmatprep.subr.bf16.mxu0 %v19122_v45  ;;  %4792 = vmatprep.mubr.f32.mxu1 %v19091_v16  ;;  %v110_v61 = vld [vmem:[#allocation5 + $0xb8] sm:$0xff]  ;;  %v13791_v45 = vpack.c.bf16 %v4858_v7, %v4855_v10  ;;  %v13793_v16 = vsub.f32 %v146_v60, %v4858_v7  ;;  %v4870_v25 = vand.u32 4294901760, %v158_v21  ;;  %v19127_v60 = vpack.c.bf16 %v13489_v23, %v13487_v27 }
  0xf3   :  { %11806 = vmatprep.subr.bf16.mxu1 %v13767_v51  ;;  %v4822_v51 = vand.u32 4294901760, %v110_v61  ;;  %v13805_v10 = vsub.f32 %v98_v22, %v4810_v19  ;;  %v13811_v7 = vsub.f32 %v152_v37, %v4864_v47  ;;  %19131 = vst [vmem:[#allocation133_spill] sm:$0xff] %v13813_v36  ;;  %v13820_v23 = vsub.f32 %v155_v42, %v4867_v50  ;;  %v170_v27 = vld [vmem:[#allocation5 + $0x298] sm:$0xff] }
  0xf4   :  { %19124 = vst [vmem:[#allocation128_spill] sm:$0xff] %v13791_v45  ;;  %v4825_v19 = vand.u32 4294901760, %v113_v20  ;;  %v4828_v22 = vand.u32 4294901760, %v116_v15  ;;  %v13828_v47 = vsub.f32 %v158_v21, %v4870_v25  ;;  %v122_v37 = vld [vmem:[#allocation5 + $0x118] sm:$0xff]  ;;  %v19137_v42 = vpack.c.bf16 %v19096_v12, %v19095_v18 }
  0xf5   :  { %10804 = vmatpush1.bf16.msra.mxu0 %v19126_v5  ;;  %19130 = vst [vmem:[#allocation132_spill] sm:$0xff] %v13811_v7  ;;  %v13815_v5 = vsub.f32 %v101_v48, %v4813_v28  ;;  %v13826_v48 = vpack.c.bf16 %v4870_v25, %v4867_v50  ;;  %v13830_v14 = vpack.c.bf16 %v4822_v51, %v4819_v13  ;;  %v173_v50 = vld [vmem:[#allocation5 + $0x2b0] sm:$0xff]  ;;  %v4882_v54 = vand.u32 4294901760, %v170_v27 }
  0xf6   :  { %10806 = vmatprep.subr.bf16.mxu0 %v19127_v60  ;;  %v167_v60 = vld [vmem:[#allocation5 + $0x280] sm:$0xff]  ;;  %v13836_v28 = vsub.f32 %v107_v39, %v4819_v13  ;;  %v13838_v40 = vsub.f32 %v110_v61, %v4822_v51  ;;  %v13842_v21 = vpack.c.bf16 %v4876_v35, %v4873_v0  ;;  %v13844_v25 = vsub.f32 %v164_v34, %v4876_v35  ;;  %v125_v51 = vld [vmem:[#allocation5 + $0x130] sm:$0xff] }
  0xf7   :  { %19132 = vst [vmem:[#allocation134_spill] sm:$0xff] %v13815_v5  ;;  %19135 = vst [vmem:[#allocation136_spill] sm:$0xff] %v13826_v48  ;;  %v4879_v26 = vand.u32 4294901760, %v167_v60  ;;  %v13849_v12 = vsub.f32 %v113_v20, %v4825_v19  ;;  %v4831_v39 = vand.u32 4294901760, %v119_v32  ;;  %v4834_v13 = vand.u32 4294901760, %v122_v37 }
  0xf8   :  { %4794 = vmatmul.mubr.f32.vlgmr.msra.gmra.mrb[2].mxu1 %v13646_v8  ;;  %19136 = vst [vmem:[#allocation137_spill] sm:$0xff] %v13830_v14  ;;  %v13840_v8 = vsub.f32 %v161_v30, %v4873_v0  ;;  %19138 = vst [vmem:[#allocation138_spill] sm:$0xff] %v13842_v21  ;;  %v19141_v61 = vpack.c.bf16 %v19100_v9, %v19099_v44  ;;  %v13855_v0 = vsub.f32 %v116_v15, %v4828_v22  ;;  %v128_v30 = vld [vmem:[#allocation5 + $0x148] sm:$0xff]  ;;  %v134_v9 = vld [vmem:[#allocation5 + $0x178] sm:$0xff] }
  0xf9   :  { %11808 = vmatpush3.bf16.msra.mxu1 %v13782_v31  ;;  %10808 = vmatpush1.bf16.msra.mxu0 %v19134_v6  ;;  %v176_v6 = vld [vmem:[#allocation5 + $0x2c8] sm:$0xff]  ;;  %19140 = vst [vmem:[#allocation140_spill] sm:$0xff] %v13849_v12  ;;  %v4885_v34 = vand.u32 4294901760, %v173_v50  ;;  %v19143_v20 = vpack.c.bf16 %v19101_v33, %v13547_v58  ;;  %v13869_v44 = vsub.f32 %v170_v27, %v4882_v54  ;;  %v4837_v18 = vand.u32 4294901760, %v125_v51 }
  0xfa   :  { %11810 = vmatprep.subr.bf16.mxu1 %v13791_v45  ;;  %10810 = vmatprep.subr.bf16.mxu0 %v19137_v42  ;;  %v13847_v45 = vpack.c.bf16 %v4828_v22, %v4825_v19  ;;  %19142 = vst [vmem:[#allocation141_spill] sm:$0xff] %v13855_v0  ;;  %v4888_v35 = vand.u32 4294901760, %v176_v6  ;;  %v179_v42 = vld [vmem:[#allocation5 + $0x2e0] sm:$0xff]  ;;  %v13862_v19 = vsub.f32 %v167_v60, %v4879_v26  ;;  %v4840_v31 = vand.u32 4294901760, %v128_v30 }
  0xfb   :  { %4901 = vmatprep.mubr.f32.mxu1 %v13648_v24  ;;  %v182_v24 = vld [vmem:[#allocation5 + $0x2f8] sm:$0xff]  ;;  %v4891_v33 = vand.u32 4294901760, %v179_v42  ;;  %v19146_v60 = vpack.c.bf16 %v19105_v49, %v19104_v4  ;;  %v13879_v15 = vsub.f32 %v122_v37, %v4834_v13  ;;  %v131_v22 = vld [vmem:[#allocation5 + $0x160] sm:$0xff]  ;;  %v18296_v4 = vand.u32 4294901760, %v13793_v16 }
  0xfc   :  { %19139 = vst [vmem:[#allocation139_spill] sm:$0xff] %v13847_v45  ;;  %v13901_v58 = vsub.f32 %v173_v50, %v4885_v34  ;;  %v19153_v50 = vpack.c.bf16 %v13585_v59, %v13582_v62  ;;  %v19158_v62 = vld [vmem:[#allocation25_spill] sm:$0xff] }
  0xfd   :  { %11812 = vmatpush3.bf16.msra.mxu1 %v13795_v11  ;;  %10812 = vmatpush1.bf16.msra.mxu0 %v19141_v61  ;;  %v13867_v61 = vpack.c.bf16 %v4882_v54, %v4879_v26  ;;  %v13871_v11 = vsub.f32 %v119_v32, %v4831_v39  ;;  %v13881_v26 = vpack.c.bf16 %v4888_v35, %v4885_v34  ;;  %v19148_v54 = vand.u32 4294901760, %v13774_v1 }
  0xfe   :  { %11814 = vmatprep.subr.bf16.mxu1 %v13807_v3  ;;  %10814 = vmatprep.subr.bf16.mxu0 %v19143_v20  ;;  %v13873_v3 = vpack.c.bf16 %v4834_v13, %v4831_v39  ;;  %v4894_v20 = vand.u32 4294901760, %v182_v24  ;;  %v19149_v39 = vpack.c.bf16 %v13573_v55, %v19108_v52  ;;  %v19151_v13 = vand.u32 4294901760, %v13784_v17 }
  0xff   :  { %19144 = vst [vmem:[#allocation142_spill] sm:$0xff] %v13867_v61  ;;  %19147 = vst [vmem:[#allocation144_spill] sm:$0xff] %v13881_v26  ;;  %v5028_v27 = vsub.f32 %v13774_v1, %v19148_v54  ;;  %v19152_v54 = vand.u32 4294901760, %v13787_v46  ;;  %v13903_v55 = vsub.f32 %v176_v6, %v4888_v35  ;;  %v4843_v6 = vand.u32 4294901760, %v131_v22 }
 0x100   :  { %19145 = vst [vmem:[#allocation143_spill] sm:$0xff] %v13873_v3  ;;  %v4916_v49 = vsub.f32 %v13784_v17, %v19151_v13  ;;  %v13913_v13 = vpack.c.bf16 %v4894_v20, %v4891_v33  ;;  %v4846_v34 = vand.u32 4294901760, %v134_v9 }
 0x101   :  { %11816 = vmatpush3.bf16.msra.mxu1 %v13813_v36  ;;  %10816 = vmatpush1.bf16.msra.mxu0 %v19146_v60  ;;  %v19150_v60 = vand.u32 4294901760, %v13776_v63  ;;  %v4923_v32 = vsub.f32 %v13787_v46, %v19152_v54  ;;  %v13911_v36 = vsub.f32 %v128_v30, %v4840_v31  ;;  %v5029_v35 = vand.u32 4294901760, %v5028_v27 }
 0x102   :  { %11818 = vmatprep.subr.bf16.mxu1 %v13826_v48  ;;  %10818 = vmatprep.subr.bf16.mxu0 %v19149_v39  ;;  %v13907_v48 = vpack.c.bf16 %v4840_v31, %v4837_v18  ;;  %v19154_v54 = vand.u32 4294901760, %v13789_v41  ;;  %v19155_v31 = vld [vmem:[#allocation23_spill] sm:$0xff]  ;;  %v13929_v39 = vsub.f32 %v13793_v16, %v18296_v4  ;;  %v4943_v4 = vand.u32 4294901760, %v13815_v5 }
 0x103   :  { %v5035_v37 = vsub.f32 %v13776_v63, %v19150_v60  ;;  %v13909_v60 = vsub.f32 %v125_v51, %v4837_v18  ;;  %v4917_v51 = vand.u32 4294901760, %v4916_v49  ;;  %v4924_v30 = vand.u32 4294901760, %v4923_v32 }
 0x104   :  { %v13922_v52 = vsub.f32 %v13789_v41, %v19154_v54  ;;  %v19157_v54 = vand.u32 4294901760, %v13805_v10  ;;  %v5062_v49 = vand.u32 4294901760, %v13811_v7  ;;  %v13944_v32 = vsub.f32 %v179_v42, %v4891_v33  ;;  %v19159_v33 = vld [vmem:[#allocation30_spill] sm:$0xff] }
 0x105   :  { %11820 = vmatpush3.bf16.msra.mxu1 %v13830_v14  ;;  %10820 = vmatpush1.bf16.msra.mxu0 %v19153_v50  ;;  %v5036_v18 = vand.u32 4294901760, %v5035_v37  ;;  %v19156_v50 = vand.u32 4294901760, %v13797_v29  ;;  %v13946_v37 = vsub.f32 %v182_v24, %v4894_v20  ;;  %v13956_v14 = vsub.f32 %v134_v9, %v4846_v34 }
 0x106   :  { %11822 = vmatprep.subr.bf16.mxu1 %v13842_v21  ;;  %10822 = vmatprep.subr.bf16.mxu0 %v19155_v31  ;;  %v13939_v59 = vsub.f32 %v13805_v10, %v19157_v54  ;;  %v5055_v31 = vand.u32 4294901760, %v13809_v53  ;;  %v13952_v54 = vpack.c.bf16 %v4846_v34, %v4843_v6  ;;  %v13954_v21 = vsub.f32 %v131_v22, %v4843_v6 }
 0x107   :  { %v13934_v27 = vsub.f32 %v13797_v29, %v19156_v50  ;;  %v4950_v50 = vand.u32 4294901760, %v13818_v57  ;;  %v11837_v42 = vpack.c.bf16 %v5036_v18, %v5029_v35  ;;  %v13960_v24 = vpack.c.bf16 %v4924_v30, %v4917_v51 }
 0x108   :  { %1192 = vmatmul.mubr.f32.vlgmr.msra.gmra.mrb[0].mxu0 %v13618_v2  ;;  %v5043_v20 = vand.u32 4294901760, %v13922_v52  ;;  %v5050_v2 = vand.u32 4294901760, %v13929_v39  ;;  %v13967_v22 = vsub.f32 %v13809_v53, %v5055_v31  ;;  %v13970_v9 = vsub.f32 %v13811_v7, %v5062_v49 }
 0x109   :  { %11824 = vmatpush3.bf16.msra.mxu1 %v13847_v45  ;;  %10824 = vmatpush1.bf16.msra.mxu0 %v19158_v62  ;;  %v4931_v45 = vand.u32 4294901760, %v13934_v27  ;;  %v4938_v62 = vand.u32 4294901760, %v13939_v59  ;;  %v13974_v6 = vsub.f32 %v13815_v5, %v4943_v4  ;;  %v13977_v34 = vsub.f32 %v13818_v57, %v4950_v50  ;;  %v19160_v59 = vld [vmem:[#allocation31_spill] sm:$0xff]  ;;  %v19161_v27 = vld [vmem:[#allocation36_spill] sm:$0xff] }
 0x10a   :  { %11826 = vmatprep.subr.bf16.mxu1 %v13867_v61  ;;  %10826 = vmatprep.subr.bf16.mxu0 %v19159_v33  ;;  %v5069_v52 = vand.u32 4294901760, %v13820_v23  ;;  %v5076_v39 = vand.u32 4294901760, %v13828_v47  ;;  %v4957_v35 = vand.u32 4294901760, %v13836_v28  ;;  %v4964_v18 = vand.u32 4294901760, %v13838_v40 }
 0x10b   :  { %1329 = vmatprep.mubr.f32.mxu0 %v13623_v56  ;;  %v5083_v51 = vand.u32 4294901760, %v13840_v8  ;;  %v5090_v30 = vand.u32 4294901760, %v13844_v25  ;;  %v4971_v33 = vand.u32 4294901760, %v13849_v12  ;;  %v4978_v61 = vand.u32 4294901760, %v13855_v0 }
 0x10c   :  { %v19162_v5 = vand.u32 4294901760, %v13774_v1  ;;  %v19163_v7 = vand.u32 4294901760, %v13776_v63  ;;  %v19167_v56 = vand.u32 4294901760, %v13789_v41  ;;  %v19168_v57 = vand.u32 4294901760, %v13793_v16 }
 0x10d   :  { %11828 = vmatpush3.bf16.msra.mxu1 %v13873_v3  ;;  %10828 = vmatpush1.bf16.msra.mxu0 %v19160_v59  ;;  %v19169_v63 = vand.u32 4294901760, %v13797_v29  ;;  %v14025_v3 = vpack.c.bf16 %v5062_v49, %v5055_v31  ;;  %v14039_v31 = vpack.c.bf16 %v5090_v30, %v5083_v51  ;;  %v19178_v49 = vand.u32 4294901760, %v13862_v19 }
 0x10e   :  { %11830 = vmatprep.subr.bf16.mxu1 %v13881_v26  ;;  %10830 = vmatprep.subr.bf16.mxu0 %v19161_v27  ;;  %v13999_v53 = vpack.c.bf16 %v19163_v7, %v19162_v5  ;;  %v19164_v27 = vand.u32 4294901760, %v13784_v17  ;;  %v19165_v26 = vand.u32 4294901760, %v13787_v46  ;;  %v14013_v0 = vpack.c.bf16 %v19168_v57, %v19167_v56  ;;  %v19173_v57 = vld [vmem:[#allocation42_spill] sm:$0xff] }
 0x10f   :  { %v19170_v7 = vand.u32 4294901760, %v13805_v10  ;;  %19176 = vst [vmem:[#allocation149_spill] sm:$0xff] %v14039_v31  ;;  %v19181_v56 = vand.u32 4294901760, %v13879_v15  ;;  %v19184_v59 = vand.u32 4294901760, %v13903_v55  ;;  %v19187_v31 = vand.u32 4294901760, %v13911_v36 }
 0x110   :  { %v14005_v12 = vpack.c.bf16 %v19165_v26, %v19164_v27  ;;  %v19172_v26 = vld [vmem:[#allocation37_spill] sm:$0xff]  ;;  %v19183_v27 = vand.u32 4294901760, %v13901_v58 }
 0x111   :  { %v14019_v5 = vpack.c.bf16 %v19170_v7, %v19169_v63  ;;  %11832 = vmatpush3.bf16.msra.mxu1 %v13907_v48  ;;  %10832 = vmatpush1.bf16.msra.mxu0 %v19172_v26  ;;  %v14033_v7 = vpack.c.bf16 %v5076_v39, %v5069_v52  ;;  %v19180_v63 = vand.u32 4294901760, %v13871_v11 }
 0x112   :  { %19166 = vst [vmem:[#allocation145_spill] sm:$0xff] %v14005_v12  ;;  %v14027_v12 = vpack.c.bf16 %v4950_v50, %v4943_v4  ;;  %11834 = vmatprep.subr.bf16.mxu1 %v13913_v13  ;;  %10834 = vmatprep.subr.bf16.mxu0 %v19173_v57  ;;  %v14041_v4 = vpack.c.bf16 %v4978_v61, %v4971_v33  ;;  %v19179_v50 = vand.u32 4294901760, %v13869_v44 }
 0x113   :  { %19171 = vst [vmem:[#allocation146_spill] sm:$0xff] %v14019_v5  ;;  %19174 = vst [vmem:[#allocation147_spill] sm:$0xff] %v14033_v7  ;;  %v14035_v5 = vpack.c.bf16 %v4964_v18, %v4957_v35  ;;  %v14053_v26 = vpack.c.bf16 %v19181_v56, %v19180_v63  ;;  %v5064_v56 = vand.u32 4294901760, %v13970_v9  ;;  %v19190_v63 = vand.u32 4294901760, %v13944_v32 }
 0x114   :  { %19177 = vst [vmem:[#allocation150_spill] sm:$0xff] %v14041_v4  ;;  %v14047_v57 = vpack.c.bf16 %v19179_v50, %v19178_v49  ;;  %v19186_v4 = vand.u32 4294901760, %v13909_v60  ;;  %v19189_v49 = vld [vmem:[#allocation43_spill] sm:$0xff]  ;;  %v5057_v50 = vand.u32 4294901760, %v13967_v22  ;;  %v5070_v22 = vsub.f32 %v13820_v23, %v5069_v52 }
 0x115   :  { %19175 = vst [vmem:[#allocation148_spill] sm:$0xff] %v14035_v5  ;;  %19182 = vst [vmem:[#allocation151_spill] sm:$0xff] %v14053_v26  ;;  %v14059_v5 = vpack.c.bf16 %v19184_v59, %v19183_v27  ;;  %11836 = vmatpush3.bf16.msra.mxu1 %v13952_v54  ;;  %10836 = vmatpush1.bf16.msra.mxu0 %v19189_v49  ;;  %v19191_v26 = vand.u32 4294901760, %v13946_v37  ;;  %v19193_v27 = vand.u32 4294901760, %v13954_v21 }
 0x116   :  { %v14065_v7 = vpack.c.bf16 %v19187_v31, %v19186_v4  ;;  %11838 = vmatprep.subr.bf16.mxu1 %v11837_v42  ;;  %v19195_v4 = vld [vmem:[#allocation48_spill] sm:$0xff]  ;;  %v11841_v49 = vpack.c.bf16 %v5050_v2, %v5043_v20  ;;  %v5077_v9 = vsub.f32 %v13828_v47, %v5076_v39  ;;  %v4958_v42 = vsub.f32 %v13836_v28, %v4957_v35  ;;  %v19197_v20 = vld [vmem:[#allocation54_spill] sm:$0xff]  ;;  %v19200_v35 = vld [vmem:[#allocation55_spill] sm:$0xff] }
 0x117   :  { %19185 = vst [vmem:[#allocation152_spill] sm:$0xff] %v14059_v5  ;;  %v14075_v59 = vpack.c.bf16 %v19191_v26, %v19190_v63  ;;  %v19194_v5 = vand.u32 4294901760, %v13956_v14  ;;  %10838 = vmatprep.subr.bf16.mxu0 %v19195_v4  ;;  %v4945_v26 = vand.u32 4294901760, %v13974_v6  ;;  %v4952_v63 = vand.u32 4294901760, %v13977_v34  ;;  %v19199_v34 = vld [vmem:[#allocation141_spill] sm:$0xff] }
 0x118   :  { %19188 = vst [vmem:[#allocation153_spill] sm:$0xff] %v14065_v7  ;;  %4907 = vmatmul.mubr.f32.vlgmr.msra.gmra.mrb[4].mxu1 %v13655_v38  ;;  %v11843_v7 = vpack.c.bf16 %v4938_v62, %v4931_v45  ;;  %v4965_v2 = vsub.f32 %v13838_v40, %v4964_v18  ;;  %v5071_v52 = vand.u32 4294901760, %v5070_v22  ;;  %v5078_v39 = vand.u32 4294901760, %v5077_v9  ;;  %v19203_v22 = vld [vmem:[#allocation60_spill] sm:$0xff] }
 0x119   :  { %19192 = vst [vmem:[#allocation154_spill] sm:$0xff] %v14075_v59  ;;  %v14081_v31 = vpack.c.bf16 %v19194_v5, %v19193_v27  ;;  %11840 = vmatpush3.bf16.msra.mxu1 %v13960_v24  ;;  %v19196_v59 = vld [vmem:[#allocation49_spill] sm:$0xff]  ;;  %v11845_v5 = vpack.c.bf16 %v5064_v56, %v5057_v50  ;;  %v5084_v62 = vsub.f32 %v13840_v8, %v5083_v51  ;;  %v19198_v24 = vld [vmem:[#allocation140_spill] sm:$0xff]  ;;  %v4959_v18 = vand.u32 4294901760, %v4958_v42 }
 0x11a   :  { %10840 = vmatpush1.bf16.msra.mxu0 %v19196_v59  ;;  %11842 = vmatprep.subr.bf16.mxu1 %v11841_v49  ;;  %v5091_v38 = vsub.f32 %v13844_v25, %v5090_v30  ;;  %v11847_v45 = vpack.c.bf16 %v4952_v63, %v4945_v26  ;;  %v4972_v6 = vsub.f32 %v19198_v24, %v4971_v33  ;;  %v4966_v49 = vand.u32 4294901760, %v4965_v2 }
 0x11b   :  { %10842 = vmatprep.subr.bf16.mxu0 %v19197_v20  ;;  %5137 = vmatprep.mubr.f32.mxu1 %v13606_v43  ;;  %v4979_v50 = vsub.f32 %v19199_v34, %v4978_v61  ;;  %v19201_v56 = vand.u32 4294901760, %v13862_v19  ;;  %v19202_v51 = vand.u32 4294901760, %v13869_v44  ;;  %v11849_v9 = vpack.c.bf16 %v5078_v39, %v5071_v52  ;;  %v19207_v52 = vld [vmem:[#allocation66_spill] sm:$0xff] }
 0x11c   :  { %v5085_v33 = vand.u32 4294901760, %v5084_v62  ;;  %v5092_v26 = vand.u32 4294901760, %v5091_v38  ;;  %v4973_v61 = vand.u32 4294901760, %v4972_v6  ;;  %v19204_v63 = vand.u32 4294901760, %v13871_v11 }
 0x11d   :  { %11844 = vmatpush3.bf16.msra.mxu1 %v11843_v7  ;;  %v5098_v27 = vsub.f32 %v13862_v19, %v19201_v56  ;;  %v5105_v30 = vsub.f32 %v13869_v44, %v19202_v51  ;;  %v4980_v7 = vand.u32 4294901760, %v4979_v50  ;;  %v19205_v2 = vand.u32 4294901760, %v13879_v15 }
 0x11e   :  { %10844 = vmatpush1.bf16.msra.mxu0 %v19200_v35  ;;  %11846 = vmatprep.subr.bf16.mxu1 %v11845_v5  ;;  %v4986_v42 = vsub.f32 %v13871_v11, %v19204_v63  ;;  %v19206_v35 = vld [vmem:[#allocation61_spill] sm:$0xff]  ;;  %v11851_v51 = vpack.c.bf16 %v4966_v49, %v4959_v18  ;;  %v11853_v39 = vpack.c.bf16 %v5092_v26, %v5085_v33  ;;  %v19208_v62 = vand.u32 4294901760, %v13901_v58  ;;  %v19213_v33 = vld [vmem:[#allocation72_spill] sm:$0xff] }
 0x11f   :  { %10846 = vmatprep.subr.bf16.mxu0 %v19203_v22  ;;  %v4993_v56 = vsub.f32 %v13879_v15, %v19205_v2  ;;  %v5099_v5 = vand.u32 4294901760, %v5098_v27  ;;  %v5106_v20 = vand.u32 4294901760, %v5105_v30  ;;  %v19209_v6 = vand.u32 4294901760, %v13903_v55 }
 0x120   :  { %v5112_v38 = vsub.f32 %v13901_v58, %v19208_v62  ;;  %v11855_v63 = vpack.c.bf16 %v4980_v7, %v4973_v61  ;;  %v4987_v2 = vand.u32 4294901760, %v4986_v42  ;;  %v19211_v49 = vand.u32 4294901760, %v13909_v60 }
 0x121   :  { %11848 = vmatpush3.bf16.msra.mxu1 %v11847_v45  ;;  %v5119_v50 = vsub.f32 %v13903_v55, %v19209_v6  ;;  %v4994_v45 = vand.u32 4294901760, %v4993_v56  ;;  %v11857_v18 = vpack.c.bf16 %v5106_v20, %v5099_v5  ;;  %v19212_v30 = vand.u32 4294901760, %v13911_v36 }
 0x122   :  { %10848 = vmatpush1.bf16.msra.mxu0 %v19206_v35  ;;  %11850 = vmatprep.subr.bf16.mxu1 %v11849_v9  ;;  %v19210_v35 = vld [vmem:[#allocation67_spill] sm:$0xff]  ;;  %v5000_v27 = vsub.f32 %v13909_v60, %v19211_v49  ;;  %v5113_v26 = vand.u32 4294901760, %v5112_v38  ;;  %v19214_v61 = vand.u32 4294901760, %v13944_v32  ;;  %v19215_v42 = vand.u32 4294901760, %v13946_v37 }
 0x123   :  { %10850 = vmatprep.subr.bf16.mxu0 %v19207_v52  ;;  %v5007_v9 = vsub.f32 %v13911_v36, %v19212_v30  ;;  %v5120_v62 = vand.u32 4294901760, %v5119_v50  ;;  %v11859_v56 = vpack.c.bf16 %v4994_v45, %v4987_v2  ;;  %v19218_v38 = vand.u32 4294901760, %v13956_v14  ;;  %v19219_v30 = vld [vmem:[#allocation78_spill] sm:$0xff] }
 0x124   :  { %v5126_v7 = vsub.f32 %v13944_v32, %v19214_v61  ;;  %v5133_v20 = vsub.f32 %v13946_v37, %v19215_v42  ;;  %v5001_v5 = vand.u32 4294901760, %v5000_v27 }
 0x125   :  { %11852 = vmatpush3.bf16.msra.mxu1 %v11851_v51  ;;  %v19216_v51 = vld [vmem:[#allocation73_spill] sm:$0xff]  ;;  %v5008_v6 = vand.u32 4294901760, %v5007_v9  ;;  %v5021_v50 = vsub.f32 %v13956_v14, %v19218_v38  ;;  %v11861_v61 = vpack.c.bf16 %v5120_v62, %v5113_v26  ;;  %v19221_v9 = vld [vmem:[#allocation84_spill] sm:$0xff]  ;;  %v19224_v26 = vld [vmem:[#allocation126_spill] sm:$0xff] }
 0x126   :  { %10852 = vmatpush1.bf16.msra.mxu0 %v19210_v35  ;;  %11854 = vmatprep.subr.bf16.mxu1 %v11853_v39  ;;  %v19217_v39 = vand.u32 4294901760, %v13954_v21  ;;  %v5134_v42 = vand.u32 4294901760, %v5133_v20  ;;  %v11869_v62 = vpack.c.bf16 %v19224_v26, %v13774_v1  ;;  %v11871_v20 = vpack.c.bf16 %v13787_v46, %v13784_v17  ;;  %v19232_v46 = vld [vmem:[#allocation117_spill] sm:$0xff]  ;;  %v19239_v26 = vld [vmem:[#allocation20_spill] sm:$0xff] }
 0x127   :  { %10854 = vmatprep.subr.bf16.mxu0 %v19213_v33  ;;  %v5127_v33 = vand.u32 4294901760, %v5126_v7  ;;  %v11863_v2 = vpack.c.bf16 %v5008_v6, %v5001_v5  ;;  %v5022_v27 = vand.u32 4294901760, %v5021_v50  ;;  %v19225_v7 = vld [vmem:[#allocation91_spill] sm:$0xff]  ;;  %v19227_v5 = vld [vmem:[#allocation116_spill] sm:$0xff]  ;;  %v19228_v6 = vld [vmem:[#allocation97_spill] sm:$0xff]  ;;  %v11875_v1 = vpack.c.bf16 %v13805_v10, %v13797_v29 }
 0x128   :  { %v5014_v49 = vsub.f32 %v13954_v21, %v19217_v39  ;;  %v19230_v50 = vld [vmem:[#allocation131_spill] sm:$0xff]  ;;  %v11881_v29 = vpack.c.bf16 %v13828_v47, %v13820_v23  ;;  %v19237_v10 = vld [vmem:[#allocation109_spill] sm:$0xff]  ;;  %v11887_v23 = vpack.c.bf16 %v19199_v34, %v19198_v24  ;;  %v19244_v47 = vld [vmem:[#allocation22_spill] sm:$0xff]  ;;  %v11891_v24 = vpack.c.bf16 %v13879_v15, %v13871_v11 }
 0x129   :  { %11856 = vmatpush3.bf16.msra.mxu1 %v11855_v63  ;;  %v19220_v63 = vld [vmem:[#allocation79_spill] sm:$0xff]  ;;  %v11865_v39 = vpack.c.bf16 %v5134_v42, %v5127_v33  ;;  %v11873_v33 = vpack.c.bf16 %v13793_v16, %v13789_v41  ;;  %v19234_v16 = vld [vmem:[#allocation134_spill] sm:$0xff]  ;;  %v19253_v34 = vld [vmem:[#allocation28_spill] sm:$0xff]  ;;  %v11895_v11 = vpack.c.bf16 %v13911_v36, %v13909_v60  ;;  %v11899_v36 = vpack.c.bf16 %v13956_v14, %v13954_v21 }
 0x12a   :  { %10856 = vmatpush1.bf16.msra.mxu0 %v19216_v51  ;;  %11858 = vmatprep.subr.bf16.mxu1 %v11857_v18  ;;  %v5015_v45 = vand.u32 4294901760, %v5014_v49  ;;  %v19222_v51 = vld [vmem:[#allocation85_spill] sm:$0xff]  ;;  %v19223_v18 = vld [vmem:[#allocation90_spill] sm:$0xff]  ;;  %v19233_v42 = vld [vmem:[#allocation103_spill] sm:$0xff] }
 0x12b   :  { %10858 = vmatprep.subr.bf16.mxu0 %v19219_v30  ;;  %v19229_v49 = vld [vmem:[#allocation102_spill] sm:$0xff]  ;;  %v19235_v41 = vld [vmem:[#allocation135_spill] sm:$0xff]  ;;  %v19269_v60 = vld [vmem:[#allocation40_spill] sm:$0xff] }
 0x12c   :  { %v11867_v38 = vpack.c.bf16 %v5022_v27, %v5015_v45  ;;  %v19236_v45 = vld [vmem:[#allocation108_spill] sm:$0xff]  ;;  %v11883_v27 = vpack.c.bf16 %v13838_v40, %v13836_v28  ;;  %v19261_v15 = vld [vmem:[#allocation34_spill] sm:$0xff]  ;;  %v19281_v14 = vld [vmem:[#allocation125_spill] sm:$0xff] }
 0x12d   :  { %11860 = vmatpush3.bf16.msra.mxu1 %v11859_v56  ;;  %v19226_v56 = vld [vmem:[#allocation96_spill] sm:$0xff]  ;;  %v19282_v21 = vld [vmem:[#allocation50_spill] sm:$0xff] }
 0x12e   :  { %10860 = vmatpush1.bf16.msra.mxu0 %v19220_v63  ;;  %11862 = vmatprep.subr.bf16.mxu1 %v11861_v61  ;;  %v19231_v61 = vld [vmem:[#allocation132_spill] sm:$0xff] }
 0x12f   :  { %10862 = vmatprep.subr.bf16.mxu0 %v19221_v9  ;;  %v11877_v17 = vpack.c.bf16 %v19231_v61, %v19230_v50  ;;  %v19243_v50 = vld [vmem:[#allocation115_spill] sm:$0xff]  ;;  %v19245_v61 = vand.u32 4294901760, %v19244_v47  ;;  %v19246_v28 = vld [vmem:[#allocation24_spill] sm:$0xff] }
 0x130   :  { %v19247_v40 = vand.u32 4294901760, %v19246_v28 }
 0x131   :  { %11864 = vmatpush3.bf16.msra.mxu1 %v11863_v2  ;;  %v11879_v2 = vpack.c.bf16 %v19235_v41, %v19234_v16  ;;  %v19250_v16 = vld [vmem:[#allocation27_spill] sm:$0xff] }
 0x132   :  { %10864 = vmatpush1.bf16.msra.mxu0 %v19222_v51  ;;  %11866 = vmatprep.subr.bf16.mxu1 %v11865_v39  ;;  %v19238_v39 = vld [vmem:[#allocation114_spill] sm:$0xff]  ;;  %v19251_v41 = vand.u32 4294901760, %v19250_v16  ;;  %v19270_v16 = vand.u32 4294901760, %v19269_v60 }
 0x133   :  { %10866 = vmatprep.subr.bf16.mxu0 %v19223_v18 }
 0x135   :  { %11868 = vmatpush3.bf16.msra.mxu1 %v11867_v38  ;;  %v11885_v38 = vpack.c.bf16 %v13844_v25, %v13840_v8  ;;  %v11889_v8 = vpack.c.bf16 %v13869_v44, %v13862_v19  ;;  %v19248_v25 = vld [vmem:[#allocation26_spill] sm:$0xff]  ;;  %v11893_v44 = vpack.c.bf16 %v13903_v55, %v13901_v58  ;;  %v19257_v19 = vld [vmem:[#allocation32_spill] sm:$0xff]  ;;  %v11897_v58 = vpack.c.bf16 %v13946_v37, %v13944_v32  ;;  %v19275_v32 = vld [vmem:[#allocation45_spill] sm:$0xff] }
 0x136   :  { %10868 = vmatpush1.bf16.msra.mxu0 %v19225_v7  ;;  %11870 = vmatprep.subr.bf16.mxu1 %v11869_v62  ;;  %v19240_v62 = vand.u32 4294901760, %v19239_v26  ;;  %v19255_v26 = vld [vmem:[#allocation29_spill] sm:$0xff]  ;;  %v19265_v55 = vld [vmem:[#allocation38_spill] sm:$0xff]  ;;  %v19276_v37 = vand.u32 4294901760, %v19275_v32 }
 0x137   :  { %10870 = vmatprep.subr.bf16.mxu0 %v19226_v56 }
 0x138   :  { %5139 = vmatmul.mubr.f32.vlgmr.msra.gmra.mrb[6].mxu1 %v19227_v5 }
 0x139   :  { %11872 = vmatpush3.bf16.msra.mxu1 %v11871_v20  ;;  %5274 = vmatprep.mubr.f32.mxu1 %v19232_v46  ;;  %v19241_v20 = vld [vmem:[#allocation21_spill] sm:$0xff]  ;;  %v19249_v46 = vand.u32 4294901760, %v19248_v25 }
 0x13a   :  { %10872 = vmatpush1.bf16.msra.mxu0 %v19228_v6  ;;  %11874 = vmatprep.subr.bf16.mxu1 %v11873_v33  ;;  %v19242_v33 = vand.u32 4294901760, %v19241_v20  ;;  %v19258_v20 = vand.u32 4294901760, %v19257_v19  ;;  %v257_v6 = vld [vmem:[#allocation5 + $0x550] sm:$0xff] }
 0x13b   :  { %10874 = vmatprep.subr.bf16.mxu0 %v19229_v49 }
 0x13d   :  { %11876 = vmatpush3.bf16.msra.mxu1 %v11875_v1  ;;  %v10885_v1 = vpack.c.bf16 %v19242_v33, %v19240_v62  ;;  %v19259_v33 = vld [vmem:[#allocation33_spill] sm:$0xff] }
 0x13e   :  { %10876 = vmatpush1.bf16.msra.mxu0 %v19233_v42  ;;  %11878 = vmatprep.subr.bf16.mxu1 %v11877_v17  ;;  %v10887_v17 = vpack.c.bf16 %v19247_v40, %v19245_v61  ;;  %v19263_v61 = vld [vmem:[#allocation35_spill] sm:$0xff] }
 0x13f   :  { %10878 = vmatprep.subr.bf16.mxu0 %v19236_v45  ;;  %v19264_v28 = vand.u32 4294901760, %v19263_v61  ;;  %v19288_v61 = vld [vmem:[#allocation52_spill] sm:$0xff] }
 0x140   :  { %v206_v45 = vld [vmem:[#allocation5 + $0x3b8] sm:$0xff] }
 0x141   :  { %11880 = vmatpush3.bf16.msra.mxu1 %v11879_v2  ;;  %v10889_v2 = vpack.c.bf16 %v19251_v41, %v19249_v46  ;;  %v19271_v41 = vld [vmem:[#allocation41_spill] sm:$0xff] }
 0x142   :  { %10880 = vmatpush1.bf16.msra.mxu0 %v19237_v10  ;;  %11882 = vmatprep.subr.bf16.mxu1 %v11881_v29  ;;  %v19252_v29 = vld [vmem:[#allocation120_spill] sm:$0xff] }
 0x143   :  { %10882 = vmatprep.subr.bf16.mxu0 %v19238_v39  ;;  %v203_v10 = vld [vmem:[#allocation5 + $0x3a0] sm:$0xff] }
 0x145   :  { %11884 = vmatpush3.bf16.msra.mxu1 %v11883_v27  ;;  %v19254_v27 = vand.u32 4294901760, %v19253_v34  ;;  %v19273_v34 = vld [vmem:[#allocation44_spill] sm:$0xff] }
 0x146   :  { %10884 = vmatpush1.bf16.msra.mxu0 %v19243_v50  ;;  %11886 = vmatprep.subr.bf16.mxu1 %v11885_v38  ;;  %v19256_v38 = vand.u32 4294901760, %v19255_v26 }
 0x147   :  { %10886 = vmatprep.subr.bf16.mxu0 %v10885_v1  ;;  %v19260_v1 = vand.u32 4294901760, %v19259_v33  ;;  %v19283_v33 = vand.u32 4294901760, %v19282_v21  ;;  %v19309_v21 = vld [vmem:[#allocation64_spill] sm:$0xff] }
 0x148   :  { %v10891_v62 = vpack.c.bf16 %v19256_v38, %v19254_v27  ;;  %v19274_v27 = vand.u32 4294901760, %v19273_v34  ;;  %v19277_v38 = vld [vmem:[#allocation46_spill] sm:$0xff]  ;;  %v19301_v34 = vld [vmem:[#allocation59_spill] sm:$0xff] }
 0x149   :  { %1333 = vmatmul.mubr.f32.vlgmr.msra.gmra.mrb[0].mxu0 %v19252_v29  ;;  %11888 = vmatpush3.bf16.msra.mxu1 %v11887_v23  ;;  %v10893_v47 = vpack.c.bf16 %v19260_v1, %v19258_v20  ;;  %v19262_v23 = vand.u32 4294901760, %v19261_v15  ;;  %v19284_v1 = vld [vmem:[#allocation51_spill] sm:$0xff]  ;;  %v19286_v15 = vld [vmem:[#allocation118_spill] sm:$0xff] }
 0x14a   :  { %10888 = vmatpush1.bf16.msra.mxu0 %v10887_v17  ;;  %11890 = vmatprep.subr.bf16.mxu1 %v11889_v8  ;;  %v19266_v17 = vand.u32 4294901760, %v19265_v55  ;;  %v19267_v8 = vld [vmem:[#allocation39_spill] sm:$0xff]  ;;  %v10901_v26 = vpack.c.bf16 %v19276_v37, %v19274_v27  ;;  %v19302_v27 = vand.u32 4294901760, %v19301_v34  ;;  %v19303_v37 = vld [vmem:[#allocation130_spill] sm:$0xff] }
 0x14b   :  { %10890 = vmatprep.subr.bf16.mxu0 %v10889_v2  ;;  %1596 = vmatprep.mubr.f32.mxu0 %v13606_v43  ;;  %v10895_v40 = vpack.c.bf16 %v19264_v28, %v19262_v23  ;;  %v19268_v25 = vand.u32 4294901760, %v19267_v8  ;;  %v19272_v2 = vand.u32 4294901760, %v19271_v41  ;;  %v19287_v23 = vld [vmem:[#allocation127_spill] sm:$0xff]  ;;  %v19289_v28 = vand.u32 4294901760, %v19288_v61  ;;  %v19293_v8 = vld [vmem:[#allocation56_spill] sm:$0xff]  ;;  %v19298_v41 = vld [vmem:[#allocation129_spill] sm:$0xff] }
 0x14c   :  { %v19314_v61 = vld [vmem:[#allocation68_spill] sm:$0xff] }
 0x14d   :  { %11892 = vmatpush3.bf16.msra.mxu1 %v11891_v24  ;;  %v10897_v46 = vpack.c.bf16 %v19268_v25, %v19266_v17  ;;  %v10899_v24 = vpack.c.bf16 %v19272_v2, %v19270_v16  ;;  %v19292_v17 = vld [vmem:[#allocation128_spill] sm:$0xff]  ;;  %v19294_v25 = vand.u32 4294901760, %v19293_v8  ;;  %v19297_v16 = vld [vmem:[#allocation119_spill] sm:$0xff]  ;;  %v19299_v2 = vld [vmem:[#allocation58_spill] sm:$0xff] }
 0x14e   :  { %10892 = vmatpush1.bf16.msra.mxu0 %v10891_v62  ;;  %11894 = vmatprep.subr.bf16.mxu1 %v11893_v44  ;;  %v19278_v62 = vand.u32 4294901760, %v19277_v38  ;;  %v19279_v44 = vld [vmem:[#allocation47_spill] sm:$0xff]  ;;  %v19318_v8 = vld [vmem:[#allocation137_spill] sm:$0xff] }
 0x14f   :  { %10894 = vmatprep.subr.bf16.mxu0 %v10893_v47  ;;  %v19280_v19 = vand.u32 4294901760, %v19279_v44  ;;  %v19285_v47 = vand.u32 4294901760, %v19284_v1  ;;  %v19311_v1 = vld [vmem:[#allocation65_spill] sm:$0xff] }
 0x151   :  { %11896 = vmatpush3.bf16.msra.mxu1 %v11895_v11  ;;  %v10903_v20 = vpack.c.bf16 %v19280_v19, %v19278_v62  ;;  %v10905_v11 = vpack.c.bf16 %v19285_v47, %v19283_v33  ;;  %v19306_v62 = vld [vmem:[#allocation63_spill] sm:$0xff]  ;;  %v19310_v33 = vand.u32 4294901760, %v19309_v21  ;;  %v19312_v47 = vand.u32 4294901760, %v19311_v1  ;;  %v19333_v1 = vld [vmem:[#allocation142_spill] sm:$0xff] }
 0x152   :  { %10896 = vmatpush1.bf16.msra.mxu0 %v10895_v40  ;;  %11898 = vmatprep.subr.bf16.mxu1 %v11897_v58  ;;  %v19290_v40 = vld [vmem:[#allocation53_spill] sm:$0xff]  ;;  %v19307_v44 = vand.u32 4294901760, %v19306_v62  ;;  %v19329_v62 = vld [vmem:[#allocation76_spill] sm:$0xff] }
 0x153   :  { %10898 = vmatprep.subr.bf16.mxu0 %v10897_v46  ;;  %v19291_v58 = vand.u32 4294901760, %v19290_v40  ;;  %v19295_v46 = vld [vmem:[#allocation57_spill] sm:$0xff] }
 0x154   :  { %v19316_v40 = vld [vmem:[#allocation69_spill] sm:$0xff] }
 0x155   :  { %11900 = vmatpush3.bf16.msra.mxu1 %v11899_v36  ;;  %v10907_v55 = vpack.c.bf16 %v19291_v58, %v19289_v28  ;;  %v19296_v36 = vand.u32 4294901760, %v19295_v46  ;;  %v19315_v28 = vand.u32 4294901760, %v19314_v61  ;;  %v19317_v58 = vand.u32 4294901760, %v19316_v40  ;;  %v19336_v61 = vld [vmem:[#allocation81_spill] sm:$0xff] }
 0x156   :  { %10900 = vmatpush1.bf16.msra.mxu0 %v10899_v24  ;;  %11902 = vmatprep.subr.bf16.mxu1 %v19281_v14  ;;  %v19300_v24 = vand.u32 4294901760, %v19299_v2  ;;  %v19323_v2 = vld [vmem:[#allocation138_spill] sm:$0xff] }
 0x157   :  { %10902 = vmatprep.subr.bf16.mxu0 %v10901_v26  ;;  %v10909_v60 = vpack.c.bf16 %v19296_v36, %v19294_v25  ;;  %v19304_v26 = vld [vmem:[#allocation62_spill] sm:$0xff]  ;;  %v19321_v36 = vld [vmem:[#allocation71_spill] sm:$0xff] }
 0x158   :  { %5277 = vmatmul.mubr.f32.vlgmr.msra.gmra.mrb[8].mxu1 %v19286_v15  ;;  %v10911_v32 = vpack.c.bf16 %v19302_v27, %v19300_v24  ;;  %v19305_v38 = vand.u32 4294901760, %v19304_v26  ;;  %v19313_v15 = vld [vmem:[#allocation136_spill] sm:$0xff]  ;;  %v19319_v25 = vld [vmem:[#allocation70_spill] sm:$0xff]  ;;  %v19326_v27 = vld [vmem:[#allocation75_spill] sm:$0xff] }
 0x159   :  { %11904 = vmatpush3.bf16.msra.mxu1 %v19287_v23  ;;  %5381 = vmatprep.mubr.f32.mxu1 %v19297_v16  ;;  %v19320_v46 = vand.u32 4294901760, %v19319_v25  ;;  %v19324_v24 = vld [vmem:[#allocation74_spill] sm:$0xff] }
 0x15a   :  { %10904 = vmatpush1.bf16.msra.mxu0 %v10903_v20  ;;  %11906 = vmatprep.subr.bf16.mxu1 %v19292_v17  ;;  %v10913_v19 = vpack.c.bf16 %v19307_v44, %v19305_v38  ;;  %v19308_v20 = vld [vmem:[#allocation133_spill] sm:$0xff]  ;;  %v19325_v34 = vand.u32 4294901760, %v19324_v24  ;;  %v19328_v38 = vld [vmem:[#allocation139_spill] sm:$0xff]  ;;  %v19330_v44 = vand.u32 4294901760, %v19329_v62  ;;  %v19344_v24 = vld [vmem:[#allocation86_spill] sm:$0xff] }
 0x15b   :  { %10906 = vmatprep.subr.bf16.mxu0 %v10905_v11  ;;  %v10915_v11 = vpack.c.bf16 %v19312_v47, %v19310_v33  ;;  %v19334_v47 = vld [vmem:[#allocation80_spill] sm:$0xff] }
 0x15c   :  { %v19348_v62 = vld [vmem:[#allocation88_spill] sm:$0xff] }
 0x15d   :  { %11908 = vmatpush3.bf16.msra.mxu1 %v19298_v41 }
 0x15e   :  { %10908 = vmatpush1.bf16.msra.mxu0 %v10907_v55  ;;  %11910 = vmatprep.subr.bf16.mxu1 %v19303_v37  ;;  %v10917_v55 = vpack.c.bf16 %v19317_v58, %v19315_v28  ;;  %v19337_v28 = vand.u32 4294901760, %v19336_v61  ;;  %v19338_v58 = vld [vmem:[#allocation143_spill] sm:$0xff]  ;;  %v19354_v61 = vld [vmem:[#allocation93_spill] sm:$0xff] }
 0x15f   :  { %10910 = vmatprep.subr.bf16.mxu0 %v10909_v60  ;;  %v19322_v60 = vand.u32 4294901760, %v19321_v36 }
 0x161   :  { %11912 = vmatpush3.bf16.msra.mxu1 %v19308_v20  ;;  %v10919_v16 = vpack.c.bf16 %v19322_v60, %v19320_v46  ;;  %v19341_v46 = vld [vmem:[#allocation83_spill] sm:$0xff] }
 0x162   :  { %10912 = vmatpush1.bf16.msra.mxu0 %v10911_v32  ;;  %11914 = vmatprep.subr.bf16.mxu1 %v19313_v15  ;;  %v19327_v32 = vand.u32 4294901760, %v19326_v27  ;;  %v19342_v36 = vand.u32 4294901760, %v19341_v46  ;;  %v19346_v27 = vld [vmem:[#allocation87_spill] sm:$0xff] }
 0x163   :  { %10914 = vmatprep.subr.bf16.mxu0 %v10913_v19  ;;  %v19331_v19 = vld [vmem:[#allocation77_spill] sm:$0xff]  ;;  %v19358_v46 = vld [vmem:[#allocation95_spill] sm:$0xff] }
 0x164   :  { %v10921_v26 = vpack.c.bf16 %v19327_v32, %v19325_v34  ;;  %v19332_v21 = vand.u32 4294901760, %v19331_v19  ;;  %v19345_v34 = vand.u32 4294901760, %v19344_v24  ;;  %v19347_v32 = vand.u32 4294901760, %v19346_v27  ;;  %v19350_v19 = vld [vmem:[#allocation89_spill] sm:$0xff]  ;;  %v19360_v24 = vld [vmem:[#allocation98_spill] sm:$0xff]  ;;  %v19362_v27 = vld [vmem:[#allocation99_spill] sm:$0xff] }
 0x165   :  { %11916 = vmatpush3.bf16.msra.mxu1 %v19318_v8 }
 0x166   :  { %10916 = vmatpush1.bf16.msra.mxu0 %v10915_v11  ;;  %11918 = vmatprep.subr.bf16.mxu1 %v19323_v2  ;;  %v10923_v33 = vpack.c.bf16 %v19332_v21, %v19330_v44  ;;  %v19335_v11 = vand.u32 4294901760, %v19334_v47  ;;  %v19349_v44 = vand.u32 4294901760, %v19348_v62  ;;  %v19351_v21 = vand.u32 4294901760, %v19350_v19  ;;  %v19352_v47 = vld [vmem:[#allocation92_spill] sm:$0xff]  ;;  %v19364_v62 = vld [vmem:[#allocation145_spill] sm:$0xff] }
 0x167   :  { %10918 = vmatprep.subr.bf16.mxu0 %v10917_v55  ;;  %v19339_v55 = vld [vmem:[#allocation82_spill] sm:$0xff] }
 0x168   :  { %v10925_v40 = vpack.c.bf16 %v19337_v28, %v19335_v11  ;;  %v19340_v25 = vand.u32 4294901760, %v19339_v55  ;;  %v19353_v11 = vand.u32 4294901760, %v19352_v47  ;;  %v19355_v28 = vand.u32 4294901760, %v19354_v61  ;;  %v19356_v55 = vld [vmem:[#allocation94_spill] sm:$0xff]  ;;  %v19371_v61 = vld [vmem:[#allocation105_spill] sm:$0xff] }
 0x169   :  { %11920 = vmatpush3.bf16.msra.mxu1 %v19328_v38 }
 0x16a   :  { %10920 = vmatpush1.bf16.msra.mxu0 %v10919_v16  ;;  %11922 = vmatprep.subr.bf16.mxu1 %v19333_v1  ;;  %v10927_v60 = vpack.c.bf16 %v19342_v36, %v19340_v25  ;;  %v19343_v16 = vld [vmem:[#allocation144_spill] sm:$0xff]  ;;  %v19357_v25 = vand.u32 4294901760, %v19356_v55  ;;  %v19359_v36 = vand.u32 4294901760, %v19358_v46  ;;  %v19373_v55 = vld [vmem:[#allocation146_spill] sm:$0xff]  ;;  %v19376_v46 = vld [vmem:[#allocation107_spill] sm:$0xff] }
 0x16b   :  { %10922 = vmatprep.subr.bf16.mxu0 %v10921_v26  ;;  %v10929_v26 = vpack.c.bf16 %v19347_v32, %v19345_v34  ;;  %v19361_v34 = vand.u32 4294901760, %v19360_v24  ;;  %v19363_v32 = vand.u32 4294901760, %v19362_v27 }
 0x16d   :  { %11924 = vmatpush3.bf16.msra.mxu1 %v19338_v58 }
 0x16e   :  { %10924 = vmatpush1.bf16.msra.mxu0 %v10923_v33  ;;  %11926 = vmatprep.subr.bf16.mxu1 %v19343_v16  ;;  %v10931_v33 = vpack.c.bf16 %v19351_v21, %v19349_v44  ;;  %v19365_v44 = vld [vmem:[#allocation100_spill] sm:$0xff]  ;;  %v19367_v21 = vld [vmem:[#allocation101_spill] sm:$0xff] }
 0x16f   :  { %10926 = vmatprep.subr.bf16.mxu0 %v10925_v40  ;;  %v10933_v40 = vpack.c.bf16 %v19355_v28, %v19353_v11  ;;  %v19366_v19 = vand.u32 4294901760, %v19365_v44  ;;  %v19372_v28 = vand.u32 4294901760, %v19371_v61  ;;  %v19384_v44 = vld [vmem:[#allocation113_spill] sm:$0xff]  ;;  %v19392_v61 = vld [vmem:[#allocation30_spill] sm:$0xff] }
 0x171   :  { %11928 = vmatpush3.bf16.msra.mxu1 %v13907_v48 }
 0x172   :  { %10928 = vmatpush1.bf16.msra.mxu0 %v10927_v60  ;;  %11930 = vmatprep.subr.bf16.mxu1 %v13913_v13  ;;  %v10935_v60 = vpack.c.bf16 %v19359_v36, %v19357_v25  ;;  %v19377_v36 = vand.u32 4294901760, %v19376_v46  ;;  %v236_v46 = vld [vmem:[#allocation5 + $0x4a8] sm:$0xff] }
 0x173   :  { %10930 = vmatprep.subr.bf16.mxu0 %v10929_v26  ;;  %v10937_v26 = vpack.c.bf16 %v19363_v32, %v19361_v34  ;;  %v19380_v34 = vld [vmem:[#allocation111_spill] sm:$0xff] }
 0x174   :  { %v19381_v27 = vand.u32 4294901760, %v19380_v34  ;;  %v19400_v34 = vld [vmem:[#allocation42_spill] sm:$0xff] }
 0x175   :  { %11932 = vmatpush3.bf16.msra.mxu1 %v13952_v54 }
 0x176   :  { %10932 = vmatpush1.bf16.msra.mxu0 %v10931_v33  ;;  %11934 = vmatprep.subr.bf16.mxu1 %v13999_v53  ;;  %v19368_v33 = vand.u32 4294901760, %v19367_v21  ;;  %v19369_v53 = vld [vmem:[#allocation104_spill] sm:$0xff] }
 0x177   :  { %10934 = vmatprep.subr.bf16.mxu0 %v10933_v40  ;;  %v19370_v11 = vand.u32 4294901760, %v19369_v53  ;;  %v19389_v53 = vld [vmem:[#allocation23_spill] sm:$0xff] }
 0x178   :  { %5385 = vmatmul.mubr.f32.vlgmr.msra.gmra.mrb[10].mxu1 %v19252_v29  ;;  %v10939_v47 = vpack.c.bf16 %v19368_v33, %v19366_v19  ;;  %v19374_v29 = vld [vmem:[#allocation106_spill] sm:$0xff]  ;;  %v19385_v19 = vand.u32 4294901760, %v19384_v44  ;;  %v19386_v33 = vld [vmem:[#allocation147_spill] sm:$0xff] }
 0x179   :  { %11936 = vmatpush3.bf16.msra.mxu1 %v19364_v62  ;;  %v10941_v40 = vpack.c.bf16 %v19372_v28, %v19370_v11  ;;  %5551 = vmatprep.mubr.f32.mxu1 %v13606_v43  ;;  %v19375_v25 = vand.u32 4294901760, %v19374_v29  ;;  %v19390_v11 = vld [vmem:[#allocation150_spill] sm:$0xff]  ;;  %v19393_v28 = vld [vmem:[#allocation151_spill] sm:$0xff]  ;;  %v19396_v29 = vld [vmem:[#allocation36_spill] sm:$0xff] }
 0x17a   :  { %10936 = vmatpush1.bf16.msra.mxu0 %v10935_v60  ;;  %11938 = vmatprep.subr.bf16.mxu1 %v14013_v0  ;;  %v19378_v0 = vld [vmem:[#allocation110_spill] sm:$0xff] }
 0x17b   :  { %10938 = vmatprep.subr.bf16.mxu0 %v10937_v26  ;;  %v10943_v60 = vpack.c.bf16 %v19377_v36, %v19375_v25  ;;  %v19379_v24 = vand.u32 4294901760, %v19378_v0  ;;  %v19382_v26 = vld [vmem:[#allocation112_spill] sm:$0xff]  ;;  %v233_v25 = vld [vmem:[#allocation5 + $0x490] sm:$0xff]  ;;  %v19397_v0 = vld [vmem:[#allocation153_spill] sm:$0xff] }
 0x17c   :  { %v19383_v62 = vand.u32 4294901760, %v19382_v26  ;;  %v185_v36 = vld [vmem:[#allocation5 + $0x310] sm:$0xff]  ;;  %v239_v26 = vld [vmem:[#allocation5 + $0x4c0] sm:$0xff] }
 0x17d   :  { %11940 = vmatpush3.bf16.msra.mxu1 %v19373_v55  ;;  %v10945_v32 = vpack.c.bf16 %v19381_v27, %v19379_v24  ;;  %v19395_v55 = vld [vmem:[#allocation152_spill] sm:$0xff]  ;;  %v19398_v24 = vld [vmem:[#allocation37_spill] sm:$0xff]  ;;  %v5711_v27 = vand.u32 4294901760, %v233_v25  ;;  %v5663_v44 = vand.u32 4294901760, %v185_v36 }
 0x17e   :  { %10940 = vmatpush1.bf16.msra.mxu0 %v10939_v47  ;;  %11942 = vmatprep.subr.bf16.mxu1 %v14025_v3  ;;  %v10947_v21 = vpack.c.bf16 %v19385_v19, %v19383_v62  ;;  %v19387_v47 = vld [vmem:[#allocation148_spill] sm:$0xff]  ;;  %v19388_v3 = vld [vmem:[#allocation149_spill] sm:$0xff] }
 0x17f   :  { %10942 = vmatprep.subr.bf16.mxu0 %v10941_v40  ;;  %v19394_v40 = vld [vmem:[#allocation31_spill] sm:$0xff] }
 0x180   :  { %v242_v62 = vld [vmem:[#allocation5 + $0x4d8] sm:$0xff] }
 0x181   :  { %11944 = vmatpush3.bf16.msra.mxu1 %v14027_v12  ;;  %v19391_v12 = vld [vmem:[#allocation25_spill] sm:$0xff] }
 0x182   :  { %10944 = vmatpush1.bf16.msra.mxu0 %v10943_v60  ;;  %11946 = vmatprep.subr.bf16.mxu1 %v19386_v33  ;;  %v188_v60 = vld [vmem:[#allocation5 + $0x328] sm:$0xff]  ;;  %v194_v33 = vld [vmem:[#allocation5 + $0x358] sm:$0xff] }
 0x183   :  { %10946 = vmatprep.subr.bf16.mxu0 %v10945_v32  ;;  %v5714_v32 = vand.u32 4294901760, %v236_v46  ;;  %v5666_v19 = vand.u32 4294901760, %v188_v60 }
 0x185   :  { %11948 = vmatpush3.bf16.msra.mxu1 %v19387_v47  ;;  %v245_v47 = vld [vmem:[#allocation5 + $0x4f0] sm:$0xff] }
 0x186   :  { %10948 = vmatpush1.bf16.msra.mxu0 %v10947_v21  ;;  %11950 = vmatprep.subr.bf16.mxu1 %v19388_v3  ;;  %v191_v21 = vld [vmem:[#allocation5 + $0x340] sm:$0xff]  ;;  %v19401_v3 = vld [vmem:[#allocation43_spill] sm:$0xff]  ;;  %v5723_v50 = vand.u32 4294901760, %v245_v47 }
 0x187   :  { %10950 = vmatprep.subr.bf16.mxu0 %v19389_v53  ;;  %v5717_v53 = vand.u32 4294901760, %v239_v26 }
 0x189   :  { %1598 = vmatmul.mubr.f32.vlgmr.msra.gmra.mrb[0].mxu0 %v19227_v5  ;;  %11952 = vmatpush3.bf16.msra.mxu1 %v19390_v11  ;;  %v5720_v11 = vand.u32 4294901760, %v242_v62 }
 0x18a   :  { %10952 = vmatpush1.bf16.msra.mxu0 %v19391_v12  ;;  %11954 = vmatprep.subr.bf16.mxu1 %v14047_v57  ;;  %v19399_v57 = vld [vmem:[#allocation154_spill] sm:$0xff] }
 0x18b   :  { %10954 = vmatprep.subr.bf16.mxu0 %v19392_v61  ;;  %1733 = vmatprep.mubr.f32.mxu0 %v13606_v43  ;;  %v248_v12 = vld [vmem:[#allocation5 + $0x508] sm:$0xff]  ;;  %v197_v61 = vld [vmem:[#allocation5 + $0x370] sm:$0xff] }
 0x18c   :  { %v5675_v39 = vand.u32 4294901760, %v197_v61 }
 0x18d   :  { %11956 = vmatpush3.bf16.msra.mxu1 %v19393_v28  ;;  %v200_v28 = vld [vmem:[#allocation5 + $0x388] sm:$0xff] }
 0x18e   :  { %10956 = vmatpush1.bf16.msra.mxu0 %v19394_v40  ;;  %11958 = vmatprep.subr.bf16.mxu1 %v19395_v55  ;;  %v14368_v40 = vpack.c.bf16 %v5714_v32, %v5711_v27  ;;  %v5669_v55 = vand.u32 4294901760, %v191_v21 }
 0x18f   :  { %10958 = vmatprep.subr.bf16.mxu0 %v19396_v29  ;;  %v5672_v29 = vand.u32 4294901760, %v194_v33 }
 0x190   :  { %19402 = vst [vmem:[#allocation48_spill] sm:$0xff] %v14368_v40 }
 0x191   :  { %11960 = vmatpush3.bf16.msra.mxu1 %v19397_v0  ;;  %v14370_v0 = vsub.f32 %v233_v25, %v5711_v27  ;;  %v14381_v25 = vsub.f32 %v188_v60, %v5666_v19  ;;  %v19410_v27 = vld [vmem:[#allocation54_spill] sm:$0xff]  ;;  %v14396_v60 = vsub.f32 %v194_v33, %v5672_v29 }
 0x192   :  { %10960 = vmatpush1.bf16.msra.mxu0 %v19398_v24  ;;  %11962 = vmatprep.subr.bf16.mxu1 %v19399_v57  ;;  %v14372_v24 = vsub.f32 %v236_v46, %v5714_v32  ;;  %v14376_v57 = vsub.f32 %v185_v36, %v5663_v44  ;;  %v14383_v46 = vpack.c.bf16 %v5720_v11, %v5717_v53 }
 0x193   :  { %10962 = vmatprep.subr.bf16.mxu0 %v19400_v34  ;;  %19403 = vst [vmem:[#allocation49_spill] sm:$0xff] %v14370_v0  ;;  %v251_v34 = vld [vmem:[#allocation5 + $0x520] sm:$0xff]  ;;  %19407 = vst [vmem:[#allocation66_spill] sm:$0xff] %v14381_v25  ;;  %v14385_v36 = vsub.f32 %v239_v26, %v5717_v53  ;;  %v14389_v32 = vsub.f32 %v242_v62, %v5720_v11  ;;  %v5681_v26 = vand.u32 4294901760, %v203_v10  ;;  %v209_v53 = vld [vmem:[#allocation5 + $0x3d0] sm:$0xff] }
 0x194   :  { %19404 = vst [vmem:[#allocation140_spill] sm:$0xff] %v14372_v24  ;;  %19406 = vst [vmem:[#allocation60_spill] sm:$0xff] %v14376_v57  ;;  %v5729_v42 = vand.u32 4294901760, %v251_v34  ;;  %v14400_v62 = vsub.f32 %v245_v47, %v5723_v50 }
 0x195   :  { %11964 = vmatpush3.bf16.msra.mxu1 %v14081_v31  ;;  %v14374_v31 = vpack.c.bf16 %v5666_v19, %v5663_v44  ;;  %19408 = vst [vmem:[#allocation67_spill] sm:$0xff] %v14383_v46  ;;  %19409 = vst [vmem:[#allocation78_spill] sm:$0xff] %v14385_v36  ;;  %v14391_v44 = vpack.c.bf16 %v5672_v29, %v5669_v55  ;;  %v5684_v19 = vand.u32 4294901760, %v206_v45 }
 0x196   :  { %10964 = vmatpush1.bf16.msra.mxu0 %v19401_v3  ;;  %11966 = vmatprep.subr.bf16.mxu1 %v19281_v14  ;;  %v254_v3 = vld [vmem:[#allocation5 + $0x538] sm:$0xff]  ;;  %v5726_v14 = vand.u32 4294901760, %v248_v12  ;;  %19411 = vst [vmem:[#allocation79_spill] sm:$0xff] %v14389_v32  ;;  %19414 = vst [vmem:[#allocation90_spill] sm:$0xff] %v14396_v60  ;;  %v183_v60 = vld [vmem:[#allocation5 + $0x300] sm:$0xff]  ;;  %v14416_v47 = vsub.f32 %v251_v34, %v5729_v42 }
 0x197   :  { %10966 = vmatprep.subr.bf16.mxu0 %v19195_v4  ;;  %19405 = vst [vmem:[#allocation141_spill] sm:$0xff] %v14374_v31  ;;  %v5678_v4 = vand.u32 4294901760, %v200_v28  ;;  %19412 = vst [vmem:[#allocation84_spill] sm:$0xff] %v14391_v44  ;;  %v5732_v49 = vand.u32 4294901760, %v254_v3  ;;  %v184_v44 = vld [vmem:[#allocation5 + $0x308] sm:$0xff]  ;;  %v187_v31 = vld [vmem:[#allocation5 + $0x320] sm:$0xff] }
 0x198   :  { %5553 = vmatmul.mubr.f32.vlgmr.msra.gmra.mrb[12].mxu1 %v19227_v5  ;;  %v14398_v46 = vpack.c.bf16 %v5726_v14, %v5723_v50  ;;  %19416 = vst [vmem:[#allocation91_spill] sm:$0xff] %v14400_v62  ;;  %v14402_v11 = vsub.f32 %v248_v12, %v5726_v14  ;;  %19423 = vst [vmem:[#allocation134_spill] sm:$0xff] %v14416_v47  ;;  %v5687_v12 = vand.u32 4294901760, %v209_v53  ;;  %v263_v14 = vld [vmem:[#allocation5 + $0x580] sm:$0xff] }
 0x199   :  { %11968 = vmatpush3.bf16.msra.mxu1 %v19287_v23  ;;  %v260_v23 = vld [vmem:[#allocation5 + $0x568] sm:$0xff]  ;;  %5655 = vmatprep.mubr.f32.mxu1 %v13606_v43  ;;  %v19419_v43 = vld [vmem:[#allocation55_spill] sm:$0xff]  ;;  %v14410_v33 = vsub.f32 %v200_v28, %v5678_v4  ;;  %v14414_v50 = vpack.c.bf16 %v5732_v49, %v5729_v42  ;;  %v1741_v28 = vand.u32 4294901760, %v184_v44 }
 0x19a   :  { %10968 = vmatpush1.bf16.msra.mxu0 %v19196_v59  ;;  %11970 = vmatprep.subr.bf16.mxu1 %v19292_v17  ;;  %v14394_v59 = vsub.f32 %v191_v21, %v5669_v55  ;;  %v212_v17 = vld [vmem:[#allocation5 + $0x3e8] sm:$0xff]  ;;  %19415 = vst [vmem:[#allocation126_spill] sm:$0xff] %v14398_v46  ;;  %19417 = vst [vmem:[#allocation96_spill] sm:$0xff] %v14402_v11  ;;  %v14408_v21 = vsub.f32 %v197_v61, %v5675_v39  ;;  %v5735_v55 = vand.u32 4294901760, %v257_v6  ;;  %v186_v46 = vld [vmem:[#allocation5 + $0x318] sm:$0xff] }
 0x19b   :  { %10970 = vmatprep.subr.bf16.mxu0 %v19410_v27  ;;  %v14404_v27 = vpack.c.bf16 %v5678_v4, %v5675_v39  ;;  %19421 = vst [vmem:[#allocation132_spill] sm:$0xff] %v14410_v33  ;;  %v5738_v29 = vand.u32 4294901760, %v260_v23  ;;  %19422 = vst [vmem:[#allocation117_spill] sm:$0xff] %v14414_v50  ;;  %v14418_v39 = vsub.f32 %v254_v3, %v5732_v49  ;;  %v1745_v4 = vand.u32 4294901760, %v187_v31  ;;  %v218_v50 = vld [vmem:[#allocation5 + $0x418] sm:$0xff]  ;;  %v19428_v42 = vld [vmem:[#allocation61_spill] sm:$0xff] }
 0x19c   :  { %19413 = vst [vmem:[#allocation85_spill] sm:$0xff] %v14394_v59  ;;  %19420 = vst [vmem:[#allocation131_spill] sm:$0xff] %v14408_v21  ;;  %v14420_v61 = vpack.c.bf16 %v5684_v19, %v5681_v26  ;;  %v14424_v33 = vsub.f32 %v206_v45, %v5684_v19  ;;  %v215_v21 = vld [vmem:[#allocation5 + $0x400] sm:$0xff]  ;;  %v14430_v49 = vsub.f32 %v257_v6, %v5735_v55  ;;  %v5741_v3 = vand.u32 4294901760, %v263_v14  ;;  %v190_v19 = vld [vmem:[#allocation5 + $0x338] sm:$0xff] }
 0x19d   :  { %19418 = vst [vmem:[#allocation116_spill] sm:$0xff] %v14404_v27  ;;  %11972 = vmatpush3.bf16.msra.mxu1 %v19298_v41  ;;  %v5690_v41 = vand.u32 4294901760, %v212_v17  ;;  %19424 = vst [vmem:[#allocation135_spill] sm:$0xff] %v14418_v39  ;;  %v14422_v27 = vsub.f32 %v203_v10, %v5681_v26  ;;  %v14428_v34 = vpack.c.bf16 %v5738_v29, %v5735_v55  ;;  %v5693_v6 = vand.u32 4294901760, %v215_v21 }
 0x19e   :  { %10972 = vmatpush1.bf16.msra.mxu0 %v19419_v43  ;;  %11974 = vmatprep.subr.bf16.mxu1 %v19303_v37  ;;  %v266_v43 = vld [vmem:[#allocation5 + $0x598] sm:$0xff]  ;;  %19425 = vst [vmem:[#allocation20_spill] sm:$0xff] %v14420_v61  ;;  %19427 = vst [vmem:[#allocation22_spill] sm:$0xff] %v14424_v33  ;;  %v1743_v37 = vand.u32 4294901760, %v183_v60  ;;  %v14434_v45 = vsub.f32 %v260_v23, %v5738_v29  ;;  %v14438_v26 = vsub.f32 %v209_v53, %v5687_v12  ;;  %v269_v53 = vld [vmem:[#allocation5 + $0x5b0] sm:$0xff] }
 0x19f   :  { %10974 = vmatprep.subr.bf16.mxu0 %v19203_v22  ;;  %19426 = vst [vmem:[#allocation21_spill] sm:$0xff] %v14422_v27  ;;  %v1747_v22 = vand.u32 4294901760, %v186_v46  ;;  %19429 = vst [vmem:[#allocation24_spill] sm:$0xff] %v14428_v34  ;;  %v5744_v61 = vand.u32 4294901760, %v266_v43  ;;  %v14436_v10 = vpack.c.bf16 %v5690_v41, %v5687_v12  ;;  %v14440_v33 = vsub.f32 %v212_v17, %v5690_v41  ;;  %v192_v34 = vld [vmem:[#allocation5 + $0x348] sm:$0xff]  ;;  %v432_v12 = vld [vmem:[#allocation2 + $0x18] sm:$0xff] }
 0x1a0   :  { %19430 = vst [vmem:[#allocation26_spill] sm:$0xff] %v14430_v49  ;;  %19431 = vst [vmem:[#allocation27_spill] sm:$0xff] %v14434_v45  ;;  %v5696_v55 = vand.u32 4294901760, %v218_v50  ;;  %v189_v49 = vld [vmem:[#allocation5 + $0x330] sm:$0xff]  ;;  %v14444_v27 = vsub.f32 %v184_v44, %v1741_v28  ;;  %v14450_v23 = vsub.f32 %v183_v60, %v1743_v37  ;;  %v272_v29 = vld [vmem:[#allocation5 + $0x5c8] sm:$0xff]  ;;  %v14460_v60 = vsub.f32 %v263_v14, %v5741_v3 }
 0x1a1   :  { %11976 = vmatpush3.bf16.msra.mxu1 %v19308_v20  ;;  %19432 = vst [vmem:[#allocation120_spill] sm:$0xff] %v14436_v10  ;;  %19433 = vst [vmem:[#allocation28_spill] sm:$0xff] %v14438_v26  ;;  %v193_v20 = vld [vmem:[#allocation5 + $0x350] sm:$0xff]  ;;  %v14454_v17 = vsub.f32 %v186_v46, %v1747_v22  ;;  %v14456_v41 = vpack.c.bf16 %v5744_v61, %v5741_v3  ;;  %v14468_v26 = vsub.f32 %v215_v21, %v5693_v6  ;;  %v19449_v14 = vld [vmem:[#allocation73_spill] sm:$0xff] }
 0x1a2   :  { %10976 = vmatpush1.bf16.msra.mxu0 %v19428_v42  ;;  %11978 = vmatprep.subr.bf16.mxu1 %v19313_v15  ;;  %19434 = vst [vmem:[#allocation29_spill] sm:$0xff] %v14440_v33  ;;  %v14442_v42 = vpack.c.bf16 %v1745_v4, %v1741_v28  ;;  %19436 = vst [vmem:[#allocation33_spill] sm:$0xff] %v14444_v27  ;;  %v14446_v15 = vsub.f32 %v187_v31, %v1745_v4  ;;  %v1749_v33 = vand.u32 4294901760, %v190_v19  ;;  %v221_v28 = vld [vmem:[#allocation5 + $0x430] sm:$0xff]  ;;  %v224_v31 = vld [vmem:[#allocation5 + $0x448] sm:$0xff] }
 0x1a3   :  { %10978 = vmatprep.subr.bf16.mxu0 %v19207_v52  ;;  %v14448_v52 = vpack.c.bf16 %v1747_v22, %v1743_v37  ;;  %19439 = vst [vmem:[#allocation38_spill] sm:$0xff] %v14450_v23  ;;  %19440 = vst [vmem:[#allocation39_spill] sm:$0xff] %v14454_v17  ;;  %v1753_v44 = vand.u32 4294901760, %v193_v20  ;;  %v19442_v4 = vld [vmem:[#allocation72_spill] sm:$0xff]  ;;  %v14462_v37 = vsub.f32 %v266_v43, %v5744_v61  ;;  %v1751_v23 = vand.u32 4294901760, %v189_v49 }
 0x1a4   :  { %19435 = vst [vmem:[#allocation32_spill] sm:$0xff] %v14442_v42  ;;  %19437 = vst [vmem:[#allocation34_spill] sm:$0xff] %v14446_v15  ;;  %v196_v15 = vld [vmem:[#allocation5 + $0x368] sm:$0xff]  ;;  %v14464_v46 = vpack.c.bf16 %v5696_v55, %v5693_v6  ;;  %v5747_v22 = vand.u32 4294901760, %v269_v53  ;;  %v5750_v17 = vand.u32 4294901760, %v272_v29  ;;  %v14466_v27 = vand.u32 4294901760, %v432_v12 }
 0x1a5   :  { %19438 = vst [vmem:[#allocation35_spill] sm:$0xff] %v14448_v52  ;;  %11980 = vmatpush3.bf16.msra.mxu1 %v19318_v8  ;;  %19441 = vst [vmem:[#allocation40_spill] sm:$0xff] %v14456_v41  ;;  %v1755_v8 = vand.u32 4294901760, %v192_v34  ;;  %v14470_v45 = vsub.f32 %v218_v50, %v5696_v55  ;;  %v14474_v43 = vpack.c.bf16 %v1753_v44, %v1749_v33  ;;  %v1757_v3 = vand.u32 4294901760, %v196_v15  ;;  %v431_v55 = vld [vmem:[#allocation2 + $0x10] sm:$0xff] }
 0x1a6   :  { %10980 = vmatpush1.bf16.msra.mxu0 %v19210_v35  ;;  %11982 = vmatprep.subr.bf16.mxu1 %v19323_v2  ;;  %19443 = vst [vmem:[#allocation41_spill] sm:$0xff] %v14460_v60  ;;  %19444 = vst [vmem:[#allocation44_spill] sm:$0xff] %v14462_v37  ;;  %v199_v35 = vld [vmem:[#allocation5 + $0x380] sm:$0xff]  ;;  %v5699_v2 = vand.u32 4294901760, %v221_v28  ;;  %v14476_v61 = vsub.f32 %v190_v19, %v1749_v33  ;;  %v14480_v21 = vsub.f32 %v193_v20, %v1753_v44 }
 0x1a7   :  { %10982 = vmatprep.subr.bf16.mxu0 %v19442_v4  ;;  %19445 = vst [vmem:[#allocation45_spill] sm:$0xff] %v14464_v46  ;;  %19446 = vst [vmem:[#allocation46_spill] sm:$0xff] %v14466_v27  ;;  %v5702_v4 = vand.u32 4294901760, %v224_v31  ;;  %v1761_v37 = vand.u32 4294901760, %v199_v35  ;;  %v195_v60 = vld [vmem:[#allocation5 + $0x360] sm:$0xff]  ;;  %v14482_v50 = vpack.c.bf16 %v1755_v8, %v1751_v23  ;;  %v14484_v6 = vsub.f32 %v189_v49, %v1751_v23 }
 0x1a8   :  { %19447 = vst [vmem:[#allocation47_spill] sm:$0xff] %v14468_v26  ;;  %19448 = vst [vmem:[#allocation125_spill] sm:$0xff] %v14470_v45  ;;  %v14488_v45 = vpack.c.bf16 %v5750_v17, %v5747_v22  ;;  %v14490_v33 = vsub.f32 %v269_v53, %v5747_v22  ;;  %v275_v19 = vld [vmem:[#allocation5 + $0x5e0] sm:$0xff]  ;;  %v14499_v44 = vsub.f32 %v221_v28, %v5699_v2  ;;  %v1759_v49 = vand.u32 4294901760, %v195_v60  ;;  %v230_v22 = vld [vmem:[#allocation5 + $0x478] sm:$0xff] }
 0x1a9   :  { %11984 = vmatpush3.bf16.msra.mxu1 %v19328_v38  ;;  %19450 = vst [vmem:[#allocation50_spill] sm:$0xff] %v14474_v43  ;;  %19451 = vst [vmem:[#allocation51_spill] sm:$0xff] %v14476_v61  ;;  %v198_v38 = vld [vmem:[#allocation5 + $0x378] sm:$0xff]  ;;  %v14497_v20 = vpack.c.bf16 %v5702_v4, %v5699_v2  ;;  %v227_v23 = vld [vmem:[#allocation5 + $0x460] sm:$0xff]  ;;  %v14505_v53 = vpack.c.bf16 %v1761_v37, %v1757_v3  ;;  %v5753_v28 = vand.u32 4294901760, %v275_v19 }
 0x1aa   :  { %10984 = vmatpush1.bf16.msra.mxu0 %v19449_v14  ;;  %11986 = vmatprep.subr.bf16.mxu1 %v19333_v1  ;;  %19452 = vst [vmem:[#allocation118_spill] sm:$0xff] %v14480_v21  ;;  %19453 = vst [vmem:[#allocation127_spill] sm:$0xff] %v14482_v50  ;;  %v14486_v14 = vsub.f32 %v192_v34, %v1755_v8  ;;  %v278_v61 = vld [vmem:[#allocation5 + $0x5f8] sm:$0xff]  ;;  %v14493_v1 = vsub.f32 %v432_v12, %v14466_v27  ;;  %v1763_v8 = vand.u32 4294901760, %v198_v38 }
 0x1ab   :  { %10986 = vmatprep.subr.bf16.mxu0 %v19219_v30  ;;  %19454 = vst [vmem:[#allocation52_spill] sm:$0xff] %v14484_v6  ;;  %19456 = vst [vmem:[#allocation128_spill] sm:$0xff] %v14488_v45  ;;  %v14495_v30 = vsub.f32 %v272_v29, %v5750_v17  ;;  %v14503_v34 = vsub.f32 %v224_v31, %v5702_v4  ;;  %v14507_v12 = vand.u32 4294901760, %v431_v55  ;;  %v202_v2 = vld [vmem:[#allocation5 + $0x398] sm:$0xff]  ;;  %v5705_v4 = vand.u32 4294901760, %v227_v23 }
 0x1ac   :  { %19455 = vst [vmem:[#allocation53_spill] sm:$0xff] %v14486_v14  ;;  %19457 = vst [vmem:[#allocation56_spill] sm:$0xff] %v14490_v33  ;;  %v14511_v29 = vsub.f32 %v196_v15, %v1757_v3  ;;  %v14513_v17 = vsub.f32 %v199_v35, %v1761_v37  ;;  %v14515_v31 = vsub.f32 %v195_v60, %v1759_v49  ;;  %v14518_v27 = vand.u32 4294901760, %v14493_v1  ;;  %v211_v33 = vld [vmem:[#allocation5 + $0x3e0] sm:$0xff] }
 0x1ad   :  { %19458 = vst [vmem:[#allocation57_spill] sm:$0xff] %v14493_v1  ;;  %19459 = vst [vmem:[#allocation119_spill] sm:$0xff] %v14495_v30  ;;  %11988 = vmatpush3.bf16.msra.mxu1 %v19338_v58  ;;  %v5756_v58 = vand.u32 4294901760, %v278_v61  ;;  %v14526_v60 = vpack.c.bf16 %v1763_v8, %v1759_v49  ;;  %v1765_v35 = vand.u32 4294901760, %v202_v2  ;;  %v14529_v30 = vsub.f32 %v431_v55, %v14507_v12 }
 0x1ae   :  { %19460 = vst [vmem:[#allocation129_spill] sm:$0xff] %v14497_v20  ;;  %19461 = vst [vmem:[#allocation58_spill] sm:$0xff] %v14499_v44  ;;  %10988 = vmatpush1.bf16.msra.mxu0 %v19220_v63  ;;  %11990 = vmatprep.subr.bf16.mxu1 %v19343_v16  ;;  %v205_v63 = vld [vmem:[#allocation5 + $0x3b0] sm:$0xff]  ;;  %v5708_v44 = vand.u32 4294901760, %v230_v22  ;;  %v14537_v37 = vsub.f32 %v275_v19, %v5753_v28  ;;  %v19475_v55 = vand.u32 4294901760, %v14370_v0 }
 0x1af   :  { %19462 = vst [vmem:[#allocation59_spill] sm:$0xff] %v14503_v34  ;;  %19463 = vst [vmem:[#allocation130_spill] sm:$0xff] %v14505_v53  ;;  %10990 = vmatprep.subr.bf16.mxu0 %v19221_v9  ;;  %v201_v16 = vld [vmem:[#allocation5 + $0x390] sm:$0xff]  ;;  %v1769_v3 = vand.u32 4294901760, %v205_v63  ;;  %v14533_v9 = vsub.f32 %v198_v38, %v1763_v8  ;;  %v14535_v15 = vpack.c.bf16 %v5756_v58, %v5753_v28  ;;  %v19477_v38 = vand.u32 4294901760, %v14372_v24 }
 0x1b0   :  { %19464 = vst [vmem:[#allocation62_spill] sm:$0xff] %v14507_v12  ;;  %19465 = vst [vmem:[#allocation63_spill] sm:$0xff] %v14511_v29  ;;  %v1767_v49 = vand.u32 4294901760, %v201_v16  ;;  %v1872_v34 = vsub.f32 %v14493_v1, %v14518_v27  ;;  %v5890_v12 = vsub.f32 %v14370_v0, %v19475_v55  ;;  %v19479_v28 = vand.u32 4294901760, %v14381_v25 }
 0x1b1   :  { %19466 = vst [vmem:[#allocation133_spill] sm:$0xff] %v14513_v17  ;;  %19467 = vst [vmem:[#allocation64_spill] sm:$0xff] %v14515_v31  ;;  %11992 = vmatpush3.bf16.msra.mxu1 %v13907_v48  ;;  %v14539_v48 = vsub.f32 %v278_v61, %v5756_v58  ;;  %v5897_v19 = vsub.f32 %v14372_v24, %v19477_v38  ;;  %v19478_v61 = vand.u32 4294901760, %v14376_v57  ;;  %v14566_v38 = vand.u32 4294901760, %v14529_v30 }
 0x1b2   :  { %19468 = vst [vmem:[#allocation65_spill] sm:$0xff] %v14518_v27  ;;  %10992 = vmatpush1.bf16.msra.mxu0 %v19222_v51  ;;  %19469 = vst [vmem:[#allocation136_spill] sm:$0xff] %v14526_v60  ;;  %11994 = vmatprep.subr.bf16.mxu1 %v13913_v13  ;;  %v204_v51 = vld [vmem:[#allocation5 + $0x3a8] sm:$0xff]  ;;  %v5785_v58 = vsub.f32 %v14381_v25, %v19479_v28  ;;  %v14559_v55 = vsub.f32 %v227_v23, %v5705_v4  ;;  %v207_v23 = vld [vmem:[#allocation5 + $0x3c0] sm:$0xff] }
 0x1b3   :  { %19470 = vst [vmem:[#allocation68_spill] sm:$0xff] %v14529_v30  ;;  %10994 = vmatprep.subr.bf16.mxu0 %v19223_v18  ;;  %19471 = vst [vmem:[#allocation69_spill] sm:$0xff] %v14533_v9  ;;  %v208_v13 = vld [vmem:[#allocation5 + $0x3c8] sm:$0xff]  ;;  %v14546_v18 = vpack.c.bf16 %v5708_v44, %v5705_v4  ;;  %v5778_v8 = vsub.f32 %v14376_v57, %v19478_v61  ;;  %v14561_v27 = vsub.f32 %v230_v22, %v5708_v44  ;;  %v210_v44 = vld [vmem:[#allocation5 + $0x3d8] sm:$0xff] }
 0x1b4   :  { %19472 = vst [vmem:[#allocation137_spill] sm:$0xff] %v14535_v15  ;;  %19473 = vst [vmem:[#allocation70_spill] sm:$0xff] %v14537_v37  ;;  %v14563_v1 = vpack.c.bf16 %v1769_v3, %v1765_v35  ;;  %v14570_v61 = vsub.f32 %v202_v2, %v1765_v35  ;;  %v1771_v28 = vand.u32 4294901760, %v204_v51  ;;  %v1773_v25 = vand.u32 4294901760, %v208_v13  ;;  %v19485_v2 = vld [vmem:[#allocation141_spill] sm:$0xff]  ;;  %v19501_v37 = vld [vmem:[#allocation84_spill] sm:$0xff] }
 0x1b5   :  { %19474 = vst [vmem:[#allocation71_spill] sm:$0xff] %v14539_v48  ;;  %19476 = vst [vmem:[#allocation138_spill] sm:$0xff] %v14546_v18  ;;  %11996 = vmatpush3.bf16.msra.mxu1 %v13952_v54  ;;  %v1777_v54 = vand.u32 4294901760, %v211_v33  ;;  %v14572_v57 = vand.u32 4294901760, %v1872_v34  ;;  %v5898_v24 = vand.u32 4294901760, %v5897_v19  ;;  %v5786_v0 = vand.u32 4294901760, %v5785_v58 }
 0x1b6   :  { %10996 = vmatpush1.bf16.msra.mxu0 %v19225_v7  ;;  %19480 = vst [vmem:[#allocation74_spill] sm:$0xff] %v14559_v55  ;;  %19481 = vst [vmem:[#allocation75_spill] sm:$0xff] %v14561_v27  ;;  %11998 = vmatprep.subr.bf16.mxu1 %v14368_v40  ;;  %v5891_v7 = vand.u32 4294901760, %v5890_v12  ;;  %v5779_v40 = vand.u32 4294901760, %v5778_v8  ;;  %v19486_v35 = vld [vmem:[#allocation97_spill] sm:$0xff]  ;;  %v14580_v34 = vsub.f32 %v205_v63, %v1769_v3  ;;  %v19489_v27 = vld [vmem:[#allocation90_spill] sm:$0xff] }
 0x1b7   :  { %19482 = vst [vmem:[#allocation139_spill] sm:$0xff] %v14563_v1  ;;  %19483 = vst [vmem:[#allocation76_spill] sm:$0xff] %v14566_v38  ;;  %10998 = vmatprep.subr.bf16.mxu0 %v19226_v56  ;;  %v14582_v12 = vsub.f32 %v201_v16, %v1767_v49  ;;  %v1878_v22 = vsub.f32 %v14529_v30, %v14566_v38  ;;  %v19490_v55 = vld [vmem:[#allocation67_spill] sm:$0xff]  ;;  %v19491_v19 = vld [vmem:[#allocation102_spill] sm:$0xff]  ;;  %v14589_v8 = vpack.c.bf16 %v1771_v28, %v1767_v49 }
 0x1b8   :  { %19484 = vst [vmem:[#allocation77_spill] sm:$0xff] %v14570_v61  ;;  %5657 = vmatmul.mubr.f32.vlgmr.msra.gmra.mrb[14].mxu1 %v19227_v5  ;;  %19487 = vst [vmem:[#allocation142_spill] sm:$0xff] %v14580_v34  ;;  %v14591_v58 = vsub.f32 %v204_v51, %v1771_v28  ;;  %v1775_v56 = vand.u32 4294901760, %v207_v23  ;;  %v217_v63 = vld [vmem:[#allocation5 + $0x410] sm:$0xff]  ;;  %v14594_v16 = vpack.c.bf16 %v1777_v54, %v1773_v25  ;;  %v19496_v4 = vand.u32 4294901760, %v14385_v36  ;;  %v247_v34 = vld [vmem:[#allocation5 + $0x500] sm:$0xff] }
 0x1b9   :  { %12000 = vmatpush3.bf16.msra.mxu1 %v19485_v2  ;;  %19488 = vst [vmem:[#allocation80_spill] sm:$0xff] %v14582_v12  ;;  %19492 = vst [vmem:[#allocation81_spill] sm:$0xff] %v14589_v8  ;;  %v1779_v2 = vand.u32 4294901760, %v210_v44  ;;  %5763 = vmatprep.mubr.f32.mxu1 %v14572_v57  ;;  %v14596_v3 = vsub.f32 %v208_v13, %v1773_v25  ;;  %v14604_v51 = vpack.c.bf16 %v5898_v24, %v5891_v7  ;;  %v213_v25 = vld [vmem:[#allocation5 + $0x3f0] sm:$0xff]  ;;  %v216_v13 = vld [vmem:[#allocation5 + $0x408] sm:$0xff] }
 0x1ba   :  { %11000 = vmatpush1.bf16.msra.mxu0 %v19486_v35  ;;  %12002 = vmatprep.subr.bf16.mxu1 %v19490_v55  ;;  %19493 = vst [vmem:[#allocation143_spill] sm:$0xff] %v14591_v58  ;;  %v214_v35 = vld [vmem:[#allocation5 + $0x3f8] sm:$0xff]  ;;  %19494 = vst [vmem:[#allocation82_spill] sm:$0xff] %v14594_v16  ;;  %v5904_v38 = vsub.f32 %v14385_v36, %v19496_v4  ;;  %v14606_v28 = vpack.c.bf16 %v5786_v0, %v5779_v40  ;;  %v19500_v30 = vand.u32 4294901760, %v14394_v59 }
 0x1bb   :  { %11002 = vmatprep.subr.bf16.mxu0 %v19491_v19  ;;  %19495 = vst [vmem:[#allocation83_spill] sm:$0xff] %v14596_v3  ;;  %v19497_v19 = vand.u32 4294901760, %v14389_v32  ;;  %v14608_v55 = vsub.f32 %v211_v33, %v1777_v54  ;;  %v19502_v3 = vld [vmem:[#allocation103_spill] sm:$0xff]  ;;  %v14615_v4 = vand.u32 4294901760, %v1878_v22  ;;  %v1781_v40 = vand.u32 4294901760, %v214_v35  ;;  %v19505_v33 = vld [vmem:[#allocation126_spill] sm:$0xff] }
 0x1bc   :  { %19498 = vst [vmem:[#allocation144_spill] sm:$0xff] %v14606_v28  ;;  %v5792_v48 = vsub.f32 %v14394_v59, %v19500_v30  ;;  %v1785_v0 = vand.u32 4294901760, %v217_v63  ;;  %v19506_v54 = vld [vmem:[#allocation108_spill] sm:$0xff]  ;;  %v14622_v7 = vpack.c.bf16 %v1779_v2, %v1775_v56  ;;  %v14624_v30 = vsub.f32 %v207_v23, %v1775_v56  ;;  %v220_v28 = vld [vmem:[#allocation5 + $0x428] sm:$0xff]  ;;  %v19584_v31 = vld [vmem:[#allocation119_spill] sm:$0xff] }
 0x1bd   :  { %v5911_v49 = vsub.f32 %v14389_v32, %v19497_v19  ;;  %19499 = vst [vmem:[#allocation86_spill] sm:$0xff] %v14608_v55  ;;  %12004 = vmatpush3.bf16.msra.mxu1 %v19501_v37  ;;  %19503 = vst [vmem:[#allocation87_spill] sm:$0xff] %v14615_v4  ;;  %v19504_v19 = vand.u32 4294901760, %v19489_v27  ;;  %v5905_v22 = vand.u32 4294901760, %v5904_v38  ;;  %v1783_v32 = vand.u32 4294901760, %v213_v25  ;;  %v19513_v23 = vld [vmem:[#allocation109_spill] sm:$0xff] }
 0x1be   :  { %11004 = vmatpush1.bf16.msra.mxu0 %v19502_v3  ;;  %12006 = vmatprep.subr.bf16.mxu1 %v19505_v33  ;;  %19507 = vst [vmem:[#allocation88_spill] sm:$0xff] %v14622_v7  ;;  %19508 = vst [vmem:[#allocation89_spill] sm:$0xff] %v14624_v30  ;;  %v1787_v36 = vand.u32 4294901760, %v216_v13  ;;  %v5793_v55 = vand.u32 4294901760, %v5792_v48  ;;  %v19510_v33 = vld [vmem:[#allocation131_spill] sm:$0xff]  ;;  %v19512_v7 = vld [vmem:[#allocation116_spill] sm:$0xff]  ;;  %v14634_v37 = vpack.c.bf16 %v1785_v0, %v1781_v40 }
 0x1bf   :  { %v5799_v24 = vsub.f32 %v19489_v27, %v19504_v19  ;;  %11006 = vmatprep.subr.bf16.mxu0 %v19506_v54  ;;  %v5912_v59 = vand.u32 4294901760, %v5911_v49  ;;  %v223_v19 = vld [vmem:[#allocation5 + $0x440] sm:$0xff]  ;;  %v14628_v27 = vsub.f32 %v210_v44, %v1779_v2  ;;  %v14636_v38 = vsub.f32 %v214_v35, %v1781_v40  ;;  %v19518_v44 = vld [vmem:[#allocation114_spill] sm:$0xff]  ;;  %v19597_v9 = vld [vmem:[#allocation71_spill] sm:$0xff] }
 0x1c0   :  { %v19511_v54 = vld [vmem:[#allocation132_spill] sm:$0xff]  ;;  %19514 = vst [vmem:[#allocation93_spill] sm:$0xff] %v14634_v37  ;;  %v14638_v49 = vsub.f32 %v217_v63, %v1785_v0  ;;  %v19517_v3 = vld [vmem:[#allocation117_spill] sm:$0xff]  ;;  %v19519_v48 = vand.u32 4294901760, %v14400_v62  ;;  %v19520_v12 = vand.u32 4294901760, %v14402_v11  ;;  %v14650_v63 = vpack.c.bf16 %v1787_v36, %v1783_v32 }
 0x1c1   :  { %19509 = vst [vmem:[#allocation92_spill] sm:$0xff] %v14628_v27  ;;  %12008 = vmatpush3.bf16.msra.mxu1 %v19512_v7  ;;  %v5800_v56 = vand.u32 4294901760, %v5799_v24  ;;  %19515 = vst [vmem:[#allocation94_spill] sm:$0xff] %v14636_v38  ;;  %v1793_v24 = vand.u32 4294901760, %v223_v19  ;;  %v219_v7 = vld [vmem:[#allocation5 + $0x420] sm:$0xff]  ;;  %v222_v37 = vld [vmem:[#allocation5 + $0x438] sm:$0xff]  ;;  %v14648_v35 = vpack.c.bf16 %v5912_v59, %v5905_v22  ;;  %v14666_v40 = vsub.f32 %v216_v13, %v1787_v36 }
 0x1c2   :  { %11008 = vmatpush1.bf16.msra.mxu0 %v19513_v23  ;;  %19516 = vst [vmem:[#allocation95_spill] sm:$0xff] %v14638_v49  ;;  %12010 = vmatprep.subr.bf16.mxu1 %v19517_v3  ;;  %v5918_v2 = vsub.f32 %v14400_v62, %v19519_v48  ;;  %v5925_v58 = vsub.f32 %v14402_v11, %v19520_v12  ;;  %v1789_v23 = vand.u32 4294901760, %v220_v28  ;;  %19522 = vst [vmem:[#allocation99_spill] sm:$0xff] %v14650_v63  ;;  %v19525_v11 = vld [vmem:[#allocation21_spill] sm:$0xff]  ;;  %v19526_v49 = vld [vmem:[#allocation22_spill] sm:$0xff] }
 0x1c3   :  { %11010 = vmatprep.subr.bf16.mxu0 %v19518_v44  ;;  %19521 = vst [vmem:[#allocation98_spill] sm:$0xff] %v14648_v35  ;;  %v19523_v44 = vand.u32 4294901760, %v19510_v33  ;;  %v19524_v3 = vand.u32 4294901760, %v19511_v54  ;;  %v19527_v59 = vld [vmem:[#allocation20_spill] sm:$0xff]  ;;  %v19528_v22 = vld [vmem:[#allocation115_spill] sm:$0xff]  ;;  %v14664_v63 = vsub.f32 %v213_v25, %v1783_v32  ;;  %19530 = vst [vmem:[#allocation100_spill] sm:$0xff] %v14666_v40  ;;  %v14676_v32 = vsub.f32 %v223_v19, %v1793_v24 }
 0x1c4   :  { %v1791_v0 = vand.u32 4294901760, %v219_v7  ;;  %v1795_v35 = vand.u32 4294901760, %v222_v37  ;;  %v19531_v27 = vld [vmem:[#allocation24_spill] sm:$0xff]  ;;  %v5926_v62 = vand.u32 4294901760, %v5925_v58  ;;  %v19535_v36 = vand.u32 4294901760, %v14416_v47 }
 0x1c5   :  { %v5806_v48 = vsub.f32 %v19510_v33, %v19523_v44  ;;  %v5813_v12 = vsub.f32 %v19511_v54, %v19524_v3  ;;  %12012 = vmatpush3.bf16.msra.mxu1 %v19527_v59  ;;  %19529 = vst [vmem:[#allocation145_spill] sm:$0xff] %v14664_v63  ;;  %v14670_v44 = vpack.c.bf16 %v5800_v56, %v5793_v55  ;;  %v5919_v3 = vand.u32 4294901760, %v5918_v2  ;;  %v226_v38 = vld [vmem:[#allocation5 + $0x458] sm:$0xff]  ;;  %v229_v59 = vld [vmem:[#allocation5 + $0x470] sm:$0xff] }
 0x1c6   :  { %11012 = vmatpush1.bf16.msra.mxu0 %v19528_v22  ;;  %12014 = vmatprep.subr.bf16.mxu1 %v19531_v27  ;;  %v14672_v54 = vpack.c.bf16 %v1793_v24, %v1789_v23  ;;  %v14674_v33 = vsub.f32 %v220_v28, %v1789_v23  ;;  %19534 = vst [vmem:[#allocation105_spill] sm:$0xff] %v14676_v32  ;;  %v19536_v13 = vand.u32 4294901760, %v14418_v39  ;;  %v19537_v56 = vand.u32 4294901760, %v19525_v11  ;;  %v225_v23 = vld [vmem:[#allocation5 + $0x450] sm:$0xff]  ;;  %v228_v24 = vld [vmem:[#allocation5 + $0x468] sm:$0xff] }
 0x1c7   :  { %11014 = vmatprep.subr.bf16.mxu0 %v14442_v42  ;;  %v5932_v25 = vsub.f32 %v14416_v47, %v19535_v36  ;;  %v5807_v55 = vand.u32 4294901760, %v5806_v48  ;;  %v5814_v58 = vand.u32 4294901760, %v5813_v12  ;;  %v19538_v28 = vand.u32 4294901760, %v19526_v49  ;;  %v19540_v48 = vld [vmem:[#allocation26_spill] sm:$0xff]  ;;  %v19543_v27 = vld [vmem:[#allocation27_spill] sm:$0xff]  ;;  %v19582_v61 = vld [vmem:[#allocation93_spill] sm:$0xff] }
 0x1c8   :  { %19532 = vst [vmem:[#allocation101_spill] sm:$0xff] %v14672_v54  ;;  %19533 = vst [vmem:[#allocation104_spill] sm:$0xff] %v14674_v33  ;;  %v5939_v22 = vsub.f32 %v14418_v39, %v19536_v13  ;;  %v5820_v2 = vsub.f32 %v19525_v11, %v19537_v56  ;;  %v14693_v36 = vpack.c.bf16 %v1795_v35, %v1791_v0  ;;  %v1797_v13 = vand.u32 4294901760, %v226_v38  ;;  %v232_v47 = vld [vmem:[#allocation5 + $0x488] sm:$0xff] }
 0x1c9   :  { %1735 = vmatmul.mubr.f32.vlgmr.msra.gmra.mrb[0].mxu0 %v19227_v5  ;;  %v5827_v19 = vsub.f32 %v19526_v49, %v19538_v28  ;;  %12016 = vmatpush3.bf16.msra.mxu1 %v14436_v10  ;;  %v1801_v5 = vand.u32 4294901760, %v229_v59  ;;  %v14698_v56 = vpack.c.bf16 %v5926_v62, %v5919_v3  ;;  %v14700_v42 = vsub.f32 %v219_v7, %v1791_v0  ;;  %v19544_v62 = vld [vmem:[#allocation28_spill] sm:$0xff] }
 0x1ca   :  { %11016 = vmatpush1.bf16.msra.mxu0 %v14448_v52  ;;  %19539 = vst [vmem:[#allocation146_spill] sm:$0xff] %v14693_v36  ;;  %12018 = vmatprep.subr.bf16.mxu1 %v14456_v41  ;;  %v14702_v28 = vsub.f32 %v222_v37, %v1795_v35  ;;  %v18422_v10 = vand.u32 4294901760, %v19543_v27  ;;  %v5933_v49 = vand.u32 4294901760, %v5932_v25  ;;  %v5940_v52 = vand.u32 4294901760, %v5939_v22  ;;  %v235_v36 = vld [vmem:[#allocation5 + $0x4a0] sm:$0xff] }
 0x1cb   :  { %11018 = vmatprep.subr.bf16.mxu0 %v14474_v43  ;;  %19541 = vst [vmem:[#allocation106_spill] sm:$0xff] %v14700_v42  ;;  %v1799_v11 = vand.u32 4294901760, %v225_v23  ;;  %v1803_v39 = vand.u32 4294901760, %v228_v24  ;;  %1874 = vmatprep.mubr.f32.mxu0 %v14572_v57  ;;  %v14706_v12 = vpack.c.bf16 %v5814_v58, %v5807_v55  ;;  %v5821_v41 = vand.u32 4294901760, %v5820_v2  ;;  %v19548_v57 = vld [vmem:[#allocation29_spill] sm:$0xff]  ;;  %v234_v55 = vld [vmem:[#allocation5 + $0x498] sm:$0xff] }
 0x1cc   :  { %19542 = vst [vmem:[#allocation107_spill] sm:$0xff] %v14702_v28  ;;  %v5828_v43 = vand.u32 4294901760, %v5827_v19  ;;  %v14711_v37 = vpack.c.bf16 %v1801_v5, %v1797_v13  ;;  %v14713_v7 = vsub.f32 %v226_v38, %v1797_v13  ;;  %v19547_v35 = vand.u32 4294901760, %v19540_v48  ;;  %v231_v22 = vld [vmem:[#allocation5 + $0x480] sm:$0xff] }
 0x1cd   :  { %12020 = vmatpush3.bf16.msra.mxu1 %v14464_v46  ;;  %v14723_v58 = vsub.f32 %v229_v59, %v1801_v5  ;;  %v14728_v38 = vsub.f32 %v19543_v27, %v18422_v10  ;;  %v1805_v2 = vand.u32 4294901760, %v232_v47  ;;  %v1809_v19 = vand.u32 4294901760, %v235_v36  ;;  %v238_v46 = vld [vmem:[#allocation5 + $0x4b8] sm:$0xff] }
 0x1ce   :  { %11020 = vmatpush1.bf16.msra.mxu0 %v14482_v50  ;;  %19545 = vst [vmem:[#allocation110_spill] sm:$0xff] %v14711_v37  ;;  %19546 = vst [vmem:[#allocation111_spill] sm:$0xff] %v14713_v7  ;;  %v14718_v0 = vsub.f32 %v19540_v48, %v19547_v35  ;;  %12022 = vmatprep.subr.bf16.mxu1 %v14488_v45  ;;  %v14730_v13 = vpack.c.bf16 %v5940_v52, %v5933_v49  ;;  %v19553_v59 = vand.u32 4294901760, %v19544_v62  ;;  %v19564_v27 = vld [vmem:[#allocation39_spill] sm:$0xff] }
 0x1cf   :  { %11022 = vmatprep.subr.bf16.mxu0 %v14505_v53  ;;  %19549 = vst [vmem:[#allocation112_spill] sm:$0xff] %v14723_v58  ;;  %v14732_v35 = vpack.c.bf16 %v1803_v39, %v1799_v11  ;;  %v14734_v25 = vsub.f32 %v225_v23, %v1799_v11  ;;  %v14736_v3 = vsub.f32 %v228_v24, %v1803_v39  ;;  %v1807_v53 = vand.u32 4294901760, %v231_v22  ;;  %v19555_v39 = vld [vmem:[#allocation41_spill] sm:$0xff]  ;;  %v241_v23 = vld [vmem:[#allocation5 + $0x4d0] sm:$0xff] }
 0x1d0   :  { %v14738_v50 = vpack.c.bf16 %v5828_v43, %v5821_v41  ;;  %v5834_v5 = vsub.f32 %v19544_v62, %v19553_v59  ;;  %v1811_v45 = vand.u32 4294901760, %v234_v55  ;;  %v5947_v52 = vand.u32 4294901760, %v14718_v0  ;;  %v19556_v41 = vld [vmem:[#allocation44_spill] sm:$0xff]  ;;  %v19562_v43 = vld [vmem:[#allocation34_spill] sm:$0xff] }
 0x1d1   :  { %19550 = vst [vmem:[#allocation113_spill] sm:$0xff] %v14732_v35  ;;  %19551 = vst [vmem:[#allocation147_spill] sm:$0xff] %v14734_v25  ;;  %12024 = vmatpush3.bf16.msra.mxu1 %v14497_v20  ;;  %v19554_v49 = vand.u32 4294901760, %v19548_v57  ;;  %v5954_v24 = vand.u32 4294901760, %v14728_v38  ;;  %v14754_v59 = vpack.c.bf16 %v1809_v19, %v1805_v2  ;;  %v14756_v10 = vsub.f32 %v232_v47, %v1805_v2  ;;  %v19560_v20 = vld [vmem:[#allocation125_spill] sm:$0xff]  ;;  %v19567_v47 = vld [vmem:[#allocation51_spill] sm:$0xff] }
 0x1d2   :  { %19552 = vst [vmem:[#allocation148_spill] sm:$0xff] %v14736_v3  ;;  %11024 = vmatpush1.bf16.msra.mxu0 %v14526_v60  ;;  %12026 = vmatprep.subr.bf16.mxu1 %v14535_v15  ;;  %v14758_v60 = vsub.f32 %v235_v36, %v1809_v19  ;;  %v19563_v15 = vld [vmem:[#allocation38_spill] sm:$0xff]  ;;  %v5835_v48 = vand.u32 4294901760, %v5834_v5  ;;  %v14766_v38 = vpack.c.bf16 %v1811_v45, %v1807_v53  ;;  %v19568_v19 = vand.u32 4294901760, %v19555_v39 }
 0x1d3   :  { %v5841_v11 = vsub.f32 %v19548_v57, %v19554_v49  ;;  %11026 = vmatprep.subr.bf16.mxu0 %v14563_v1  ;;  %19557 = vst [vmem:[#allocation149_spill] sm:$0xff] %v14754_v59  ;;  %19558 = vst [vmem:[#allocation23_spill] sm:$0xff] %v14756_v10  ;;  %v19561_v57 = vld [vmem:[#allocation33_spill] sm:$0xff]  ;;  %v14768_v59 = vsub.f32 %v231_v22, %v1807_v53  ;;  %v19569_v49 = vand.u32 4294901760, %v19556_v41  ;;  %v237_v1 = vld [vmem:[#allocation5 + $0x4b0] sm:$0xff]  ;;  %v1813_v22 = vand.u32 4294901760, %v238_v46 }
 0x1d4   :  { %19559 = vst [vmem:[#allocation150_spill] sm:$0xff] %v14758_v60  ;;  %19565 = vst [vmem:[#allocation25_spill] sm:$0xff] %v14766_v38  ;;  %v5960_v62 = vsub.f32 %v19555_v39, %v19568_v19  ;;  %v1817_v36 = vand.u32 4294901760, %v241_v23  ;;  %v240_v0 = vld [vmem:[#allocation5 + $0x4c8] sm:$0xff]  ;;  %v19572_v53 = vand.u32 4294901760, %v19560_v20  ;;  %v14810_v17 = vpack.c.bf16 %v5954_v24, %v5947_v52 }
 0x1d5   :  { %19566 = vst [vmem:[#allocation30_spill] sm:$0xff] %v14768_v59  ;;  %12028 = vmatpush3.bf16.msra.mxu1 %v14546_v18  ;;  %v5842_v2 = vand.u32 4294901760, %v5841_v11  ;;  %v5967_v5 = vsub.f32 %v19556_v41, %v19569_v49  ;;  %v19571_v49 = vand.u32 4294901760, %v14468_v26  ;;  %v1815_v41 = vand.u32 4294901760, %v237_v1  ;;  %v19573_v11 = vld [vmem:[#allocation80_spill] sm:$0xff]  ;;  %v19588_v19 = vld [vmem:[#allocation46_spill] sm:$0xff] }
 0x1d6   :  { %11028 = vmatpush1.bf16.msra.mxu0 %v14589_v8  ;;  %12030 = vmatprep.subr.bf16.mxu1 %v14604_v51  ;;  %v14788_v8 = vsub.f32 %v234_v55, %v1811_v45  ;;  %v5855_v51 = vsub.f32 %v19560_v20, %v19572_v53  ;;  %v5961_v53 = vand.u32 4294901760, %v5960_v62  ;;  %v1819_v29 = vand.u32 4294901760, %v240_v0  ;;  %v19586_v62 = vld [vmem:[#allocation58_spill] sm:$0xff] }
 0x1d7   :  { %11030 = vmatprep.subr.bf16.mxu0 %v14594_v16  ;;  %v5848_v18 = vsub.f32 %v14468_v26, %v19571_v49  ;;  %v19578_v49 = vld [vmem:[#allocation144_spill] sm:$0xff]  ;;  %v5968_v20 = vand.u32 4294901760, %v5967_v5  ;;  %v14812_v39 = vpack.c.bf16 %v5842_v2, %v5835_v48  ;;  %v14814_v55 = vpack.c.bf16 %v1817_v36, %v1813_v22 }
 0x1d8   :  { %19570 = vst [vmem:[#allocation151_spill] sm:$0xff] %v14788_v8  ;;  %5769 = vmatmul.mubr.f32.vlgmr.msra.gmra.mrb[16].mxu1 %v14615_v4  ;;  %v19579_v26 = vld [vmem:[#allocation88_spill] sm:$0xff]  ;;  %v19581_v4 = vld [vmem:[#allocation98_spill] sm:$0xff]  ;;  %v14817_v30 = vsub.f32 %v238_v46, %v1813_v22  ;;  %v5856_v48 = vand.u32 4294901760, %v5855_v51  ;;  %v14824_v2 = vsub.f32 %v241_v23, %v1817_v36  ;;  %v19592_v46 = vld [vmem:[#allocation99_spill] sm:$0xff]  ;;  %v14832_v45 = vpack.c.bf16 %v1819_v29, %v1815_v41 }
 0x1d9   :  { %12032 = vmatpush3.bf16.msra.mxu1 %v19578_v49  ;;  %v19580_v16 = vld [vmem:[#allocation56_spill] sm:$0xff]  ;;  %19583 = vst [vmem:[#allocation31_spill] sm:$0xff] %v14814_v55  ;;  %v244_v49 = vld [vmem:[#allocation5 + $0x4e8] sm:$0xff]  ;;  %5999 = vmatprep.mubr.f32.mxu1 %v19588_v19  ;;  %v5849_v24 = vand.u32 4294901760, %v5848_v18  ;;  %v14830_v22 = vpack.c.bf16 %v5968_v20, %v5961_v53  ;;  %v19595_v18 = vand.u32 4294901760, %v19584_v31  ;;  %v14844_v40 = vsub.f32 %v237_v1, %v1815_v41  ;;  %v19603_v53 = vld [vmem:[#allocation75_spill] sm:$0xff] }
 0x1da   :  { %11032 = vmatpush1.bf16.msra.mxu0 %v19579_v26  ;;  %12034 = vmatprep.subr.bf16.mxu1 %v19581_v4  ;;  %19585 = vst [vmem:[#allocation152_spill] sm:$0xff] %v14817_v30  ;;  %v19587_v26 = vld [vmem:[#allocation59_spill] sm:$0xff]  ;;  %19591 = vst [vmem:[#allocation36_spill] sm:$0xff] %v14824_v2  ;;  %v19594_v5 = vand.u32 4294901760, %v19580_v16  ;;  %v1821_v52 = vand.u32 4294901760, %v244_v49  ;;  %v243_v36 = vld [vmem:[#allocation5 + $0x4e0] sm:$0xff] }
 0x1db   :  { %11034 = vmatprep.subr.bf16.mxu0 %v19582_v61  ;;  %19593 = vst [vmem:[#allocation153_spill] sm:$0xff] %v14832_v45  ;;  %v5981_v23 = vsub.f32 %v19584_v31, %v19595_v18  ;;  %v246_v51 = vld [vmem:[#allocation5 + $0x4f8] sm:$0xff]  ;;  %v19596_v20 = vld [vmem:[#allocation70_spill] sm:$0xff]  ;;  %19598 = vst [vmem:[#allocation37_spill] sm:$0xff] %v14844_v40  ;;  %v14854_v61 = vsub.f32 %v240_v0, %v1819_v29  ;;  %v19609_v42 = vand.u32 4294901760, %v19603_v53 }
 0x1dc   :  { %v5974_v19 = vsub.f32 %v19580_v16, %v19594_v5  ;;  %v19599_v5 = vand.u32 4294901760, %v19586_v62  ;;  %v19602_v4 = vld [vmem:[#allocation74_spill] sm:$0xff]  ;;  %v19606_v16 = vand.u32 4294901760, %v19596_v20  ;;  %v270_v2 = vld [vmem:[#allocation5 + $0x5b8] sm:$0xff] }
 0x1dd   :  { %12036 = vmatpush3.bf16.msra.mxu1 %v14670_v44  ;;  %v1825_v44 = vand.u32 4294901760, %v247_v34  ;;  %19601 = vst [vmem:[#allocation154_spill] sm:$0xff] %v14854_v61  ;;  %v19604_v41 = vld [vmem:[#allocation146_spill] sm:$0xff]  ;;  %v5982_v29 = vand.u32 4294901760, %v5981_v23  ;;  %v19608_v23 = vand.u32 4294901760, %v19602_v4  ;;  %v271_v61 = vld [vmem:[#allocation5 + $0x5c0] sm:$0xff] }
 0x1de   :  { %11036 = vmatpush1.bf16.msra.mxu0 %v19592_v46  ;;  %12038 = vmatprep.subr.bf16.mxu1 %v14698_v56  ;;  %v5862_v63 = vsub.f32 %v19586_v62, %v19599_v5  ;;  %v19600_v56 = vand.u32 4294901760, %v19587_v26  ;;  %v250_v46 = vld [vmem:[#allocation5 + $0x518] sm:$0xff]  ;;  %v14862_v5 = vpack.c.bf16 %v5856_v48, %v5849_v24  ;;  %v1827_v62 = vand.u32 4294901760, %v246_v51  ;;  %v253_v18 = vld [vmem:[#allocation5 + $0x530] sm:$0xff] }
 0x1df   :  { %11038 = vmatprep.subr.bf16.mxu0 %v14672_v54  ;;  %v14866_v0 = vpack.c.bf16 %v1825_v44, %v1821_v52  ;;  %v5988_v1 = vsub.f32 %v19596_v20, %v19606_v16  ;;  %v249_v48 = vld [vmem:[#allocation5 + $0x510] sm:$0xff]  ;;  %v1829_v28 = vand.u32 4294901760, %v250_v46  ;;  %v5883_v16 = vsub.f32 %v19603_v53, %v19609_v42 }
 0x1e0   :  { %v5869_v54 = vsub.f32 %v19587_v26, %v19600_v56  ;;  %v5975_v56 = vand.u32 4294901760, %v5974_v19  ;;  %v1823_v26 = vand.u32 4294901760, %v243_v36  ;;  %v252_v19 = vld [vmem:[#allocation5 + $0x528] sm:$0xff]  ;;  %v5863_v31 = vand.u32 4294901760, %v5862_v63 }
 0x1e1   :  { %12040 = vmatpush3.bf16.msra.mxu1 %v14706_v12  ;;  %19605 = vst [vmem:[#allocation42_spill] sm:$0xff] %v14866_v0  ;;  %v19607_v12 = vand.u32 4294901760, %v19597_v9  ;;  %v1833_v32 = vand.u32 4294901760, %v253_v18  ;;  %v14888_v63 = vsub.f32 %v247_v34, %v1825_v44  ;;  %v1835_v58 = vand.u32 4294901760, %v252_v19  ;;  %v19629_v8 = vld [vmem:[#allocation90_spill] sm:$0xff] }
 0x1e2   :  { %11040 = vmatpush1.bf16.msra.mxu0 %v19604_v41  ;;  %12042 = vmatprep.subr.bf16.mxu1 %v14730_v13  ;;  %v5870_v41 = vand.u32 4294901760, %v5869_v54  ;;  %v14886_v54 = vsub.f32 %v244_v49, %v1821_v52  ;;  %v1831_v13 = vand.u32 4294901760, %v249_v48  ;;  %v14892_v7 = vpack.c.bf16 %v1827_v62, %v1823_v26  ;;  %v256_v49 = vld [vmem:[#allocation5 + $0x548] sm:$0xff]  ;;  %v259_v52 = vld [vmem:[#allocation5 + $0x560] sm:$0xff] }
 0x1e3   :  { %11042 = vmatprep.subr.bf16.mxu0 %v14711_v37  ;;  %v5995_v24 = vsub.f32 %v19597_v9, %v19607_v12  ;;  %v5876_v37 = vsub.f32 %v19602_v4, %v19608_v23  ;;  %19611 = vst [vmem:[#allocation54_spill] sm:$0xff] %v14888_v63  ;;  %v19612_v23 = vld [vmem:[#allocation149_spill] sm:$0xff]  ;;  %v14894_v42 = vsub.f32 %v243_v36, %v1823_v26  ;;  %v5989_v53 = vand.u32 4294901760, %v5988_v1  ;;  %v258_v4 = vld [vmem:[#allocation5 + $0x558] sm:$0xff] }
 0x1e4   :  { %19610 = vst [vmem:[#allocation43_spill] sm:$0xff] %v14886_v54  ;;  %19613 = vst [vmem:[#allocation55_spill] sm:$0xff] %v14892_v7  ;;  %v12053_v3 = vpack.c.bf16 %v5982_v29, %v5975_v56  ;;  %v14896_v25 = vsub.f32 %v246_v51, %v1827_v62  ;;  %v14908_v62 = vsub.f32 %v253_v18, %v1833_v32  ;;  %v1837_v1 = vand.u32 4294901760, %v256_v49  ;;  %v262_v56 = vld [vmem:[#allocation5 + $0x578] sm:$0xff]  ;;  %v265_v29 = vld [vmem:[#allocation5 + $0x590] sm:$0xff] }
 0x1e5   :  { %12044 = vmatpush3.bf16.msra.mxu1 %v14738_v50  ;;  %19614 = vst [vmem:[#allocation61_spill] sm:$0xff] %v14894_v42  ;;  %v5996_v12 = vand.u32 4294901760, %v5995_v24  ;;  %v12055_v50 = vpack.c.bf16 %v5870_v41, %v5863_v31  ;;  %v5877_v44 = vand.u32 4294901760, %v5876_v37  ;;  %v14906_v31 = vsub.f32 %v250_v46, %v1829_v28  ;;  %v261_v46 = vld [vmem:[#allocation5 + $0x570] sm:$0xff]  ;;  %v19623_v26 = vld [vmem:[#allocation140_spill] sm:$0xff] }
 0x1e6   :  { %11044 = vmatpush1.bf16.msra.mxu0 %v14732_v35  ;;  %12046 = vmatprep.subr.bf16.mxu1 %v14810_v17  ;;  %19615 = vst [vmem:[#allocation72_spill] sm:$0xff] %v14896_v25  ;;  %v5884_v35 = vand.u32 4294901760, %v5883_v16  ;;  %v14900_v17 = vpack.c.bf16 %v1833_v32, %v1829_v28  ;;  %19618 = vst [vmem:[#allocation102_spill] sm:$0xff] %v14908_v62  ;;  %v14910_v36 = vpack.c.bf16 %v1835_v58, %v1831_v13  ;;  %v264_v32 = vld [vmem:[#allocation5 + $0x588] sm:$0xff]  ;;  %v267_v18 = vld [vmem:[#allocation5 + $0x5a0] sm:$0xff] }
 0x1e7   :  { %11046 = vmatprep.subr.bf16.mxu0 %v19612_v23  ;;  %v255_v23 = vld [vmem:[#allocation5 + $0x540] sm:$0xff]  ;;  %19617 = vst [vmem:[#allocation97_spill] sm:$0xff] %v14906_v31  ;;  %v12057_v37 = vpack.c.bf16 %v5996_v12, %v5989_v53  ;;  %v14914_v51 = vsub.f32 %v249_v48, %v1831_v13  ;;  %v1841_v41 = vand.u32 4294901760, %v259_v52  ;;  %v1843_v28 = vand.u32 4294901760, %v258_v4  ;;  %v19625_v48 = vld [vmem:[#allocation66_spill] sm:$0xff]  ;;  %v19648_v25 = vld [vmem:[#allocation135_spill] sm:$0xff] }
 0x1e8   :  { %19616 = vst [vmem:[#allocation73_spill] sm:$0xff] %v14900_v17  ;;  %19619 = vst [vmem:[#allocation103_spill] sm:$0xff] %v14910_v36  ;;  %v1839_v24 = vand.u32 4294901760, %v255_v23  ;;  %v12059_v16 = vpack.c.bf16 %v5884_v35, %v5877_v44  ;;  %v19624_v53 = vld [vmem:[#allocation60_spill] sm:$0xff]  ;;  %v1845_v35 = vand.u32 4294901760, %v262_v56  ;;  %v1849_v44 = vand.u32 4294901760, %v265_v29 }
 0x1e9   :  { %12048 = vmatpush3.bf16.msra.mxu1 %v14812_v39  ;;  %19620 = vst [vmem:[#allocation108_spill] sm:$0xff] %v14914_v51  ;;  %v14916_v39 = vsub.f32 %v252_v19, %v1835_v58  ;;  %v19626_v58 = vld [vmem:[#allocation78_spill] sm:$0xff]  ;;  %v19627_v19 = vld [vmem:[#allocation79_spill] sm:$0xff]  ;;  %v14935_v13 = vsub.f32 %v256_v49, %v1837_v1  ;;  %v1847_v12 = vand.u32 4294901760, %v261_v46  ;;  %v1857_v60 = vand.u32 4294901760, %v271_v61 }
 0x1ea   :  { %11048 = vmatpush1.bf16.msra.mxu0 %v14766_v38  ;;  %12050 = vmatprep.subr.bf16.mxu1 %v14830_v22  ;;  %v19622_v22 = vld [vmem:[#allocation49_spill] sm:$0xff]  ;;  %v14939_v40 = vpack.c.bf16 %v1843_v28, %v1839_v24  ;;  %v14947_v30 = vsub.f32 %v262_v56, %v1845_v35  ;;  %v19637_v49 = vld [vmem:[#allocation91_spill] sm:$0xff]  ;;  %v1855_v59 = vand.u32 4294901760, %v267_v18  ;;  %v1859_v63 = vand.u32 4294901760, %v270_v2 }
 0x1eb   :  { %11050 = vmatprep.subr.bf16.mxu0 %v14814_v55  ;;  %19621 = vst [vmem:[#allocation109_spill] sm:$0xff] %v14916_v39  ;;  %v12061_v34 = vpack.c.bf16 %v19623_v26, %v19622_v22  ;;  %v19628_v38 = vld [vmem:[#allocation85_spill] sm:$0xff]  ;;  %v14933_v26 = vpack.c.bf16 %v1841_v41, %v1837_v1  ;;  %19631 = vst [vmem:[#allocation115_spill] sm:$0xff] %v14935_v13  ;;  %v1851_v22 = vand.u32 4294901760, %v264_v32  ;;  %v19638_v1 = vld [vmem:[#allocation96_spill] sm:$0xff] }
 0x1ec   :  { %19633 = vst [vmem:[#allocation98_spill] sm:$0xff] %v14939_v40  ;;  %v14941_v55 = vsub.f32 %v255_v23, %v1839_v24  ;;  %19636 = vst [vmem:[#allocation78_spill] sm:$0xff] %v14947_v30  ;;  %v14954_v23 = vpack.c.bf16 %v1849_v44, %v1845_v35  ;;  %v19642_v56 = vld [vmem:[#allocation131_spill] sm:$0xff]  ;;  %v14987_v42 = vsub.f32 %v267_v18, %v1855_v59 }
 0x1ed   :  { %12052 = vmatpush3.bf16.msra.mxu1 %v14862_v5  ;;  %19630 = vst [vmem:[#allocation114_spill] sm:$0xff] %v14933_v26  ;;  %v268_v5 = vld [vmem:[#allocation5 + $0x5a8] sm:$0xff]  ;;  %v274_v35 = vld [vmem:[#allocation5 + $0x5d8] sm:$0xff] }
 0x1ee   :  { %11052 = vmatpush1.bf16.msra.mxu0 %v14832_v45  ;;  %12054 = vmatprep.subr.bf16.mxu1 %v12053_v3  ;;  %v14937_v45 = vsub.f32 %v259_v52, %v1841_v41  ;;  %19634 = vst [vmem:[#allocation70_spill] sm:$0xff] %v14941_v55  ;;  %19639 = vst [vmem:[#allocation79_spill] sm:$0xff] %v14954_v23  ;;  %v14956_v41 = vsub.f32 %v265_v29, %v1849_v44  ;;  %v1853_v24 = vand.u32 4294901760, %v268_v5  ;;  %v19652_v29 = vld [vmem:[#allocation22_spill] sm:$0xff] }
 0x1ef   :  { %11054 = vmatprep.subr.bf16.mxu0 %v14866_v0  ;;  %v14945_v0 = vsub.f32 %v258_v4, %v1843_v28  ;;  %v14959_v4 = vpack.c.bf16 %v1851_v22, %v1847_v12  ;;  %v19643_v28 = vld [vmem:[#allocation132_spill] sm:$0xff]  ;;  %v14963_v52 = vsub.f32 %v261_v46, %v1847_v12  ;;  %v19651_v12 = vld [vmem:[#allocation21_spill] sm:$0xff]  ;;  %19654 = vst [vmem:[#allocation160_spill] sm:$0xff] %v14987_v42  ;;  %v1861_v3 = vand.u32 4294901760, %v274_v35  ;;  %v273_v46 = vld [vmem:[#allocation5 + $0x5d0] sm:$0xff] }
 0x1f0   :  { %19632 = vst [vmem:[#allocation144_spill] sm:$0xff] %v14937_v45  ;;  %19640 = vst [vmem:[#allocation91_spill] sm:$0xff] %v14956_v41  ;;  %v14970_v44 = vsub.f32 %v268_v5, %v1853_v24  ;;  %v14985_v5 = vpack.c.bf16 %v1859_v63, %v1855_v59  ;;  %v19658_v59 = vand.u32 4294901760, %v19562_v43 }
 0x1f1   :  { %19635 = vst [vmem:[#allocation71_spill] sm:$0xff] %v14945_v0  ;;  %12056 = vmatpush3.bf16.msra.mxu1 %v12055_v50  ;;  %19641 = vst [vmem:[#allocation155_spill] sm:$0xff] %v14959_v4  ;;  %v14965_v50 = vsub.f32 %v264_v32, %v1851_v22  ;;  %v14978_v32 = vpack.c.bf16 %v1857_v60, %v1853_v24  ;;  %v14980_v22 = vsub.f32 %v271_v61, %v1857_v60 }
 0x1f2   :  { %11056 = vmatpush1.bf16.msra.mxu0 %v14892_v7  ;;  %12058 = vmatprep.subr.bf16.mxu1 %v12057_v37  ;;  %19644 = vst [vmem:[#allocation131_spill] sm:$0xff] %v14963_v52  ;;  %v277_v7 = vld [vmem:[#allocation5 + $0x5f0] sm:$0xff]  ;;  %19646 = vst [vmem:[#allocation156_spill] sm:$0xff] %v14970_v44  ;;  %v1901_v18 = vsub.f32 %v19562_v43, %v19658_v59  ;;  %v19659_v60 = vpack.c.bf16 %v19625_v48, %v19624_v53  ;;  %v1863_v61 = vand.u32 4294901760, %v273_v46 }
 0x1f3   :  { %11058 = vmatprep.subr.bf16.mxu0 %v14900_v17  ;;  %19645 = vst [vmem:[#allocation132_spill] sm:$0xff] %v14965_v50  ;;  %v19647_v17 = vld [vmem:[#allocation134_spill] sm:$0xff]  ;;  %19649 = vst [vmem:[#allocation157_spill] sm:$0xff] %v14978_v32  ;;  %v1865_v62 = vand.u32 4294901760, %v277_v7  ;;  %v19663_v59 = vpack.c.bf16 %v19627_v19, %v19626_v58  ;;  %v19668_v53 = vand.u32 4294901760, %v19563_v15 }
 0x1f4   :  { %19650 = vst [vmem:[#allocation158_spill] sm:$0xff] %v14980_v22  ;;  %19653 = vst [vmem:[#allocation159_spill] sm:$0xff] %v14985_v5  ;;  %v19656_v37 = vld [vmem:[#allocation62_spill] sm:$0xff] }
 0x1f5   :  { %12060 = vmatpush3.bf16.msra.mxu1 %v12059_v16  ;;  %v276_v16 = vld [vmem:[#allocation5 + $0x5e8] sm:$0xff]  ;;  %v15020_v39 = vsub.f32 %v277_v7, %v1865_v62  ;;  %v1902_v7 = vand.u32 4294901760, %v1901_v18 }
 0x1f6   :  { %11060 = vmatpush1.bf16.msra.mxu0 %v14910_v36  ;;  %12062 = vmatprep.subr.bf16.mxu1 %v12061_v34  ;;  %v19655_v36 = vand.u32 4294901760, %v19561_v57  ;;  %v15009_v34 = vsub.f32 %v274_v35, %v1861_v3  ;;  %v19667_v35 = vld [vmem:[#allocation29_spill] sm:$0xff] }
 0x1f7   :  { %11062 = vmatprep.subr.bf16.mxu0 %v14933_v26  ;;  %v14997_v26 = vsub.f32 %v270_v2, %v1859_v63  ;;  %v19661_v2 = vld [vmem:[#allocation26_spill] sm:$0xff]  ;;  %v19662_v63 = vld [vmem:[#allocation27_spill] sm:$0xff]  ;;  %19665 = vst [vmem:[#allocation164_spill] sm:$0xff] %v15020_v39 }
 0x1f8   :  { %v1889_v24 = vsub.f32 %v19561_v57, %v19655_v36  ;;  %6001 = vmatmul.mubr.f32.vlgmr.msra.gmra.mrb[18].mxu1 %v19656_v37  ;;  %19660 = vst [vmem:[#allocation162_spill] sm:$0xff] %v15009_v34  ;;  %v12077_v37 = vpack.c.bf16 %v19662_v63, %v19661_v2  ;;  %v15018_v36 = vpack.c.bf16 %v1865_v62, %v1861_v3  ;;  %v19669_v57 = vand.u32 4294901760, %v19564_v27 }
 0x1f9   :  { %19657 = vst [vmem:[#allocation161_spill] sm:$0xff] %v14997_v26  ;;  %12064 = vmatpush3.bf16.msra.mxu1 %v19659_v60  ;;  %v1867_v60 = vand.u32 4294901760, %v276_v16  ;;  %v1895_v63 = vsub.f32 %v19563_v15, %v19668_v53  ;;  %v19671_v62 = vand.u32 4294901760, %v19567_v47  ;;  %v19672_v53 = vpack.c.bf16 %v19629_v8, %v19628_v38  ;;  %v19680_v8 = vld [vmem:[#allocation69_spill] sm:$0xff] }
 0x1fa   :  { %11064 = vmatpush1.bf16.msra.mxu0 %v14939_v40  ;;  %12066 = vmatprep.subr.bf16.mxu1 %v19663_v59  ;;  %19664 = vst [vmem:[#allocation163_spill] sm:$0xff] %v15018_v36  ;;  %v19666_v40 = vld [vmem:[#allocation28_spill] sm:$0xff]  ;;  %v1890_v48 = vand.u32 4294901760, %v1889_v24  ;;  %v1907_v2 = vsub.f32 %v19564_v27, %v19669_v57  ;;  %v19670_v59 = vld [vmem:[#allocation57_spill] sm:$0xff]  ;;  %v19673_v57 = vand.u32 4294901760, %v14480_v21  ;;  %v19676_v24 = vpack.c.bf16 %v19638_v1, %v19637_v49 }
 0x1fb   :  { %11066 = vmatprep.subr.bf16.mxu0 %v14954_v23  ;;  %6136 = vmatprep.mubr.f32.mxu1 %v19670_v59  ;;  %v1913_v23 = vsub.f32 %v19567_v47, %v19671_v62  ;;  %v19674_v59 = vld [vmem:[#allocation63_spill] sm:$0xff]  ;;  %v19675_v62 = vld [vmem:[#allocation133_spill] sm:$0xff]  ;;  %v15053_v43 = vpack.c.bf16 %v1867_v60, %v1863_v61  ;;  %v1896_v18 = vand.u32 4294901760, %v1895_v63  ;;  %v19695_v47 = vpack.c.bf16 %v19652_v29, %v19651_v12 }
 0x1fc   :  { %v1925_v3 = vsub.f32 %v14480_v21, %v19673_v57  ;;  %v18568_v57 = vand.u32 4294901760, %v19680_v8  ;;  %v15059_v21 = vsub.f32 %v276_v16, %v1867_v60  ;;  %v1908_v15 = vand.u32 4294901760, %v1907_v2 }
 0x1fd   :  { %12068 = vmatpush3.bf16.msra.mxu1 %v19672_v53  ;;  %19677 = vst [vmem:[#allocation28_spill] sm:$0xff] %v15053_v43  ;;  %v15055_v53 = vsub.f32 %v273_v46, %v1863_v61  ;;  %v11077_v38 = vpack.c.bf16 %v1902_v7, %v1890_v48  ;;  %v1914_v1 = vand.u32 4294901760, %v1913_v23  ;;  %v19683_v61 = vpack.c.bf16 %v19643_v28, %v19642_v56  ;;  %v19689_v46 = vld [vmem:[#allocation142_spill] sm:$0xff] }
 0x1fe   :  { %11068 = vmatpush1.bf16.msra.mxu0 %v14959_v4  ;;  %12070 = vmatprep.subr.bf16.mxu1 %v19676_v24  ;;  %v19679_v4 = vld [vmem:[#allocation64_spill] sm:$0xff]  ;;  %19681 = vst [vmem:[#allocation166_spill] sm:$0xff] %v15059_v21  ;;  %v19682_v24 = vand.u32 4294901760, %v14484_v6  ;;  %v1926_v16 = vand.u32 4294901760, %v1925_v3  ;;  %v19684_v2 = vand.u32 4294901760, %v14486_v14  ;;  %v19685_v48 = vand.u32 4294901760, %v19674_v59 }
 0x1ff   :  { %11070 = vmatprep.subr.bf16.mxu0 %v14978_v32  ;;  %19678 = vst [vmem:[#allocation165_spill] sm:$0xff] %v15055_v53  ;;  %v18564_v27 = vand.u32 4294901760, %v19679_v4  ;;  %v19686_v60 = vand.u32 4294901760, %v19675_v62 }
 0x200   :  { %v1919_v32 = vsub.f32 %v14484_v6, %v19682_v24  ;;  %v1931_v63 = vsub.f32 %v14486_v14, %v19684_v2  ;;  %v1937_v23 = vsub.f32 %v19674_v59, %v19685_v48  ;;  %v19687_v24 = vpack.c.bf16 %v19648_v25, %v19647_v17  ;;  %v19688_v2 = vld [vmem:[#allocation77_spill] sm:$0xff]  ;;  %v19694_v25 = vld [vmem:[#allocation86_spill] sm:$0xff] }
 0x201   :  { %12072 = vmatpush3.bf16.msra.mxu1 %v19683_v61  ;;  %v1949_v7 = vsub.f32 %v19675_v62, %v19686_v60  ;;  %v1943_v3 = vsub.f32 %v19679_v4, %v18564_v27  ;;  %v1955_v61 = vsub.f32 %v19680_v8, %v18568_v57  ;;  %v19691_v62 = vld [vmem:[#allocation83_spill] sm:$0xff]  ;;  %v11079_v6 = vpack.c.bf16 %v1908_v15, %v1896_v18  ;;  %v19692_v14 = vld [vmem:[#allocation41_spill] sm:$0xff]  ;;  %v19693_v27 = vld [vmem:[#allocation44_spill] sm:$0xff] }
 0x202   :  { %11072 = vmatpush1.bf16.msra.mxu0 %v14985_v5  ;;  %12074 = vmatprep.subr.bf16.mxu1 %v19687_v24  ;;  %v19690_v5 = vld [vmem:[#allocation143_spill] sm:$0xff]  ;;  %v12081_v4 = vpack.c.bf16 %v19693_v27, %v19692_v14  ;;  %v11081_v59 = vpack.c.bf16 %v1926_v16, %v1914_v1  ;;  %v1920_v24 = vand.u32 4294901760, %v1919_v32  ;;  %v1932_v60 = vand.u32 4294901760, %v1931_v63 }
 0x203   :  { %11074 = vmatprep.subr.bf16.mxu0 %v15018_v36  ;;  %v1938_v48 = vand.u32 4294901760, %v1937_v23  ;;  %v1950_v15 = vand.u32 4294901760, %v1949_v7  ;;  %v1944_v18 = vand.u32 4294901760, %v1943_v3  ;;  %v19696_v36 = vand.u32 4294901760, %v19688_v2  ;;  %v19701_v63 = vld [vmem:[#allocation87_spill] sm:$0xff]  ;;  %v19703_v23 = vld [vmem:[#allocation125_spill] sm:$0xff] }
 0x204   :  { %v19697_v57 = vand.u32 4294901760, %v19689_v46  ;;  %v1956_v27 = vand.u32 4294901760, %v1955_v61  ;;  %v19699_v32 = vand.u32 4294901760, %v19690_v5  ;;  %v19704_v3 = vld [vmem:[#allocation56_spill] sm:$0xff] }
 0x205   :  { %12076 = vmatpush3.bf16.msra.mxu1 %v19695_v47  ;;  %v1961_v17 = vsub.f32 %v19688_v2, %v19696_v36  ;;  %v19698_v47 = vand.u32 4294901760, %v19573_v11  ;;  %v19702_v36 = vld [vmem:[#allocation47_spill] sm:$0xff] }
 0x206   :  { %11076 = vmatpush1.bf16.msra.mxu0 %v15053_v43  ;;  %12078 = vmatprep.subr.bf16.mxu1 %v12077_v37  ;;  %v1973_v8 = vsub.f32 %v19689_v46, %v19697_v57  ;;  %v1979_v37 = vsub.f32 %v19690_v5, %v19699_v32  ;;  %v12083_v7 = vpack.c.bf16 %v19703_v23, %v19702_v36  ;;  %v19705_v57 = vld [vmem:[#allocation119_spill] sm:$0xff]  ;;  %v19706_v43 = vand.u32 4294901760, %v19694_v25  ;;  %v19710_v5 = vld [vmem:[#allocation94_spill] sm:$0xff]  ;;  %v19716_v36 = vld [vmem:[#allocation145_spill] sm:$0xff] }
 0x207   :  { %11078 = vmatprep.subr.bf16.mxu0 %v11077_v38  ;;  %v1967_v1 = vsub.f32 %v19573_v11, %v19698_v47  ;;  %v19700_v38 = vand.u32 4294901760, %v19691_v62  ;;  %v12085_v61 = vpack.c.bf16 %v19705_v57, %v19704_v3  ;;  %v19707_v11 = vld [vmem:[#allocation89_spill] sm:$0xff]  ;;  %v19708_v32 = vpack.c.bf16 %v19667_v35, %v19666_v40  ;;  %v19711_v23 = vld [vmem:[#allocation95_spill] sm:$0xff]  ;;  %v19712_v57 = vld [vmem:[#allocation58_spill] sm:$0xff] }
 0x208   :  { %v1997_v47 = vsub.f32 %v19694_v25, %v19706_v43  ;;  %v19713_v3 = vld [vmem:[#allocation59_spill] sm:$0xff]  ;;  %v11085_v43 = vpack.c.bf16 %v1950_v15, %v1938_v48  ;;  %v1962_v25 = vand.u32 4294901760, %v1961_v17  ;;  %v1974_v2 = vand.u32 4294901760, %v1973_v8 }
 0x209   :  { %v1985_v16 = vsub.f32 %v19691_v62, %v19700_v38  ;;  %1880 = vmatmul.mubr.f32.vlgmr.msra.gmra.mrb[0].mxu0 %v19701_v63  ;;  %12080 = vmatpush3.bf16.msra.mxu1 %v19708_v32  ;;  %v11083_v38 = vpack.c.bf16 %v1932_v60, %v1920_v24  ;;  %v19709_v62 = vld [vmem:[#allocation92_spill] sm:$0xff]  ;;  %v12087_v14 = vpack.c.bf16 %v19713_v3, %v19712_v57  ;;  %v1968_v12 = vand.u32 4294901760, %v1967_v1  ;;  %v19724_v63 = vld [vmem:[#allocation106_spill] sm:$0xff] }
 0x20a   :  { %11080 = vmatpush1.bf16.msra.mxu0 %v11079_v6  ;;  %12082 = vmatprep.subr.bf16.mxu1 %v12081_v4  ;;  %v11087_v29 = vpack.c.bf16 %v1956_v27, %v1944_v18  ;;  %v1980_v35 = vand.u32 4294901760, %v1979_v37  ;;  %v19714_v6 = vld [vmem:[#allocation46_spill] sm:$0xff]  ;;  %v1998_v60 = vand.u32 4294901760, %v1997_v47  ;;  %v19715_v24 = vand.u32 4294901760, %v19707_v11  ;;  %v19731_v4 = vld [vmem:[#allocation112_spill] sm:$0xff] }
 0x20b   :  { %11082 = vmatprep.subr.bf16.mxu0 %v11081_v59  ;;  %v1986_v32 = vand.u32 4294901760, %v1985_v16  ;;  %2271 = vmatprep.mubr.f32.mxu0 %v19714_v6  ;;  %v19717_v59 = vld [vmem:[#allocation100_spill] sm:$0xff]  ;;  %v19718_v17 = vand.u32 4294901760, %v19709_v62  ;;  %v19719_v8 = vand.u32 4294901760, %v19710_v5  ;;  %v19720_v15 = vand.u32 4294901760, %v19711_v23 }
 0x20c   :  { %v1991_v46 = vsub.f32 %v19707_v11, %v19715_v24  ;;  %v12089_v1 = vpack.c.bf16 %v19597_v9, %v19596_v20  ;;  %v11089_v37 = vpack.c.bf16 %v1974_v2, %v1962_v25  ;;  %v19723_v24 = vld [vmem:[#allocation75_spill] sm:$0xff]  ;;  %v11091_v11 = vpack.c.bf16 %v1980_v35, %v1968_v12 }
 0x20d   :  { %12084 = vmatpush3.bf16.msra.mxu1 %v12083_v7  ;;  %v2003_v27 = vsub.f32 %v19709_v62, %v19718_v17  ;;  %v2009_v48 = vsub.f32 %v19710_v5, %v19719_v8  ;;  %v2021_v18 = vsub.f32 %v19711_v23, %v19720_v15  ;;  %v19721_v7 = vld [vmem:[#allocation105_spill] sm:$0xff]  ;;  %v19725_v8 = vld [vmem:[#allocation107_spill] sm:$0xff]  ;;  %v11093_v62 = vpack.c.bf16 %v1998_v60, %v1986_v32 }
 0x20e   :  { %11084 = vmatpush1.bf16.msra.mxu0 %v11083_v38  ;;  %12086 = vmatprep.subr.bf16.mxu1 %v12085_v61  ;;  %v19722_v38 = vld [vmem:[#allocation74_spill] sm:$0xff]  ;;  %v19726_v61 = vand.u32 4294901760, %v19716_v36  ;;  %v19727_v15 = vand.u32 4294901760, %v19717_v59  ;;  %v1992_v2 = vand.u32 4294901760, %v1991_v46  ;;  %v19728_v5 = vand.u32 4294901760, %v14674_v33  ;;  %v19730_v60 = vld [vmem:[#allocation111_spill] sm:$0xff] }
 0x20f   :  { %11086 = vmatprep.subr.bf16.mxu0 %v11085_v43  ;;  %v12091_v17 = vpack.c.bf16 %v19723_v24, %v19722_v38  ;;  %v2004_v47 = vand.u32 4294901760, %v2003_v27  ;;  %v2010_v16 = vand.u32 4294901760, %v2009_v48  ;;  %v2022_v23 = vand.u32 4294901760, %v2021_v18  ;;  %v19734_v48 = vld [vmem:[#allocation147_spill] sm:$0xff] }
 0x210   :  { %v2015_v43 = vsub.f32 %v19716_v36, %v19726_v61  ;;  %v2027_v25 = vsub.f32 %v19717_v59, %v19727_v15  ;;  %v2033_v12 = vsub.f32 %v14674_v33, %v19728_v5  ;;  %v19729_v35 = vand.u32 4294901760, %v19721_v7  ;;  %v19737_v59 = vld [vmem:[#allocation48_spill] sm:$0xff]  ;;  %v19744_v15 = vld [vmem:[#allocation141_spill] sm:$0xff] }
 0x211   :  { %12088 = vmatpush3.bf16.msra.mxu1 %v12087_v14  ;;  %v19732_v14 = vand.u32 4294901760, %v19724_v63  ;;  %v19733_v46 = vand.u32 4294901760, %v19725_v8  ;;  %v11097_v61 = vpack.c.bf16 %v2022_v23, %v2010_v16  ;;  %v19740_v23 = vand.u32 4294901760, %v19734_v48 }
 0x212   :  { %11088 = vmatpush1.bf16.msra.mxu0 %v11087_v29  ;;  %12090 = vmatprep.subr.bf16.mxu1 %v12089_v1  ;;  %v2045_v32 = vsub.f32 %v19721_v7, %v19729_v35  ;;  %v19735_v1 = vld [vmem:[#allocation148_spill] sm:$0xff]  ;;  %v2028_v33 = vand.u32 4294901760, %v2027_v25  ;;  %v11095_v35 = vpack.c.bf16 %v2004_v47, %v1992_v2  ;;  %v19736_v7 = vld [vmem:[#allocation150_spill] sm:$0xff] }
 0x213   :  { %11090 = vmatprep.subr.bf16.mxu0 %v11089_v37  ;;  %v2039_v29 = vsub.f32 %v19724_v63, %v19732_v14  ;;  %v2051_v27 = vsub.f32 %v19725_v8, %v19733_v46  ;;  %v18592_v5 = vand.u32 4294901760, %v19735_v1  ;;  %v2016_v37 = vand.u32 4294901760, %v2015_v43  ;;  %v19741_v25 = vld [vmem:[#allocation68_spill] sm:$0xff]  ;;  %v19750_v8 = vld [vmem:[#allocation65_spill] sm:$0xff] }
 0x214   :  { %v2034_v14 = vand.u32 4294901760, %v2033_v12  ;;  %v2046_v63 = vand.u32 4294901760, %v2045_v32  ;;  %v19738_v46 = vand.u32 4294901760, %v19730_v60  ;;  %v19739_v43 = vand.u32 4294901760, %v19731_v4  ;;  %v19742_v12 = vld [vmem:[#allocation30_spill] sm:$0xff] }
 0x215   :  { %12092 = vmatpush3.bf16.msra.mxu1 %v12091_v17  ;;  %v2052_v47 = vand.u32 4294901760, %v2051_v27  ;;  %v2063_v16 = vsub.f32 %v19734_v48, %v19740_v23  ;;  %v11099_v2 = vpack.c.bf16 %v2028_v33, %v2016_v37  ;;  %v19747_v48 = vld [vmem:[#allocation152_spill] sm:$0xff]  ;;  %v19749_v33 = vld [vmem:[#allocation67_spill] sm:$0xff] }
 0x216   :  { %11092 = vmatpush1.bf16.msra.mxu0 %v11091_v11  ;;  %12094 = vmatprep.subr.bf16.mxu1 %v19737_v59  ;;  %v2057_v18 = vsub.f32 %v19730_v60, %v19738_v46  ;;  %v2069_v17 = vsub.f32 %v19731_v4, %v19739_v43  ;;  %v2040_v11 = vand.u32 4294901760, %v2039_v29  ;;  %v19743_v46 = vld [vmem:[#allocation151_spill] sm:$0xff]  ;;  %v19745_v29 = vand.u32 4294901760, %v14756_v10 }
 0x217   :  { %11094 = vmatprep.subr.bf16.mxu0 %v11093_v62  ;;  %v2075_v62 = vsub.f32 %v19735_v1, %v18592_v5  ;;  %v19746_v43 = vand.u32 4294901760, %v19736_v7  ;;  %v19748_v1 = vld [vmem:[#allocation36_spill] sm:$0xff]  ;;  %v11101_v37 = vpack.c.bf16 %v2046_v63, %v2034_v14 }
 0x218   :  { %6139 = vmatmul.mubr.f32.vlgmr.msra.gmra.mrb[20].mxu1 %v19741_v25  ;;  %v2081_v27 = vsub.f32 %v14756_v10, %v19745_v29  ;;  %v2058_v36 = vand.u32 4294901760, %v2057_v18  ;;  %v2070_v32 = vand.u32 4294901760, %v2069_v17  ;;  %v11103_v60 = vpack.c.bf16 %v2052_v47, %v2040_v11  ;;  %v19753_v25 = vld [vmem:[#allocation37_spill] sm:$0xff]  ;;  %v19755_v63 = vld [vmem:[#allocation84_spill] sm:$0xff] }
 0x219   :  { %12096 = vmatpush3.bf16.msra.mxu1 %v19744_v15  ;;  %v2093_v23 = vsub.f32 %v19736_v7, %v19746_v43  ;;  %v2076_v4 = vand.u32 4294901760, %v2075_v62  ;;  %6243 = vmatprep.mubr.f32.mxu1 %v19750_v8  ;;  %v19751_v29 = vand.u32 4294901760, %v19742_v12  ;;  %v19752_v43 = vand.u32 4294901760, %v19743_v46  ;;  %v19758_v62 = vld [vmem:[#allocation126_spill] sm:$0xff]  ;;  %v19760_v8 = vld [vmem:[#allocation61_spill] sm:$0xff] }
 0x21a   :  { %11096 = vmatpush1.bf16.msra.mxu0 %v11095_v35  ;;  %12098 = vmatprep.subr.bf16.mxu1 %v19749_v33  ;;  %v2064_v35 = vand.u32 4294901760, %v2063_v16  ;;  %v19754_v33 = vld [vmem:[#allocation154_spill] sm:$0xff]  ;;  %v2082_v18 = vand.u32 4294901760, %v2081_v27  ;;  %v19756_v17 = vand.u32 4294901760, %v19747_v48  ;;  %v19757_v47 = vand.u32 4294901760, %v19748_v1  ;;  %v19761_v27 = vld [vmem:[#allocation72_spill] sm:$0xff] }
 0x21b   :  { %11098 = vmatprep.subr.bf16.mxu0 %v11097_v61  ;;  %v2087_v10 = vsub.f32 %v19742_v12, %v19751_v29  ;;  %v2099_v5 = vsub.f32 %v19743_v46, %v19752_v43  ;;  %v2094_v14 = vand.u32 4294901760, %v2093_v23  ;;  %v11105_v29 = vpack.c.bf16 %v2070_v32, %v2058_v36  ;;  %v19759_v61 = vld [vmem:[#allocation54_spill] sm:$0xff] }
 0x21c   :  { %v2105_v11 = vsub.f32 %v19747_v48, %v19756_v17  ;;  %v2117_v16 = vsub.f32 %v19748_v1, %v19757_v47  ;;  %v19762_v17 = vand.u32 4294901760, %v19753_v25  ;;  %v19763_v47 = vand.u32 4294901760, %v19754_v33 }
 0x21d   :  { %12100 = vmatpush3.bf16.msra.mxu1 %v19755_v63  ;;  %v2088_v12 = vand.u32 4294901760, %v2087_v10  ;;  %v2100_v46 = vand.u32 4294901760, %v2099_v5  ;;  %v11107_v36 = vpack.c.bf16 %v2076_v4, %v2064_v35  ;;  %v11109_v32 = vpack.c.bf16 %v2094_v14, %v2082_v18 }
 0x21e   :  { %11100 = vmatpush1.bf16.msra.mxu0 %v11099_v2  ;;  %12102 = vmatprep.subr.bf16.mxu1 %v19758_v62  ;;  %v2111_v48 = vsub.f32 %v19753_v25, %v19762_v17  ;;  %v2123_v1 = vsub.f32 %v19754_v33, %v19763_v47  ;;  %v2106_v7 = vand.u32 4294901760, %v2105_v11  ;;  %v2118_v43 = vand.u32 4294901760, %v2117_v16  ;;  %v19765_v2 = vld [vmem:[#allocation117_spill] sm:$0xff]  ;;  %v19768_v25 = vld [vmem:[#allocation102_spill] sm:$0xff] }
 0x21f   :  { %11102 = vmatprep.subr.bf16.mxu0 %v11101_v37  ;;  %v19764_v37 = vld [vmem:[#allocation116_spill] sm:$0xff]  ;;  %v19766_v10 = vand.u32 4294901760, %v14886_v54  ;;  %v19767_v17 = vand.u32 4294901760, %v19759_v61  ;;  %v19769_v4 = vand.u32 4294901760, %v19760_v8  ;;  %v19770_v35 = vand.u32 4294901760, %v19761_v27  ;;  %v19772_v47 = vld [vmem:[#allocation109_spill] sm:$0xff] }
 0x220   :  { %v11111_v14 = vpack.c.bf16 %v2100_v46, %v2088_v12  ;;  %v2112_v11 = vand.u32 4294901760, %v2111_v48  ;;  %v2124_v16 = vand.u32 4294901760, %v2123_v1  ;;  %v19774_v48 = vand.u32 4294901760, %v14906_v31 }
 0x221   :  { %12104 = vmatpush3.bf16.msra.mxu1 %v19764_v37  ;;  %v2129_v5 = vsub.f32 %v14886_v54, %v19766_v10  ;;  %v2141_v23 = vsub.f32 %v19759_v61, %v19767_v17  ;;  %v2147_v18 = vsub.f32 %v19761_v27, %v19770_v35  ;;  %v19771_v10 = vld [vmem:[#allocation20_spill] sm:$0xff]  ;;  %v11113_v17 = vpack.c.bf16 %v2118_v43, %v2106_v7 }
 0x222   :  { %11104 = vmatpush1.bf16.msra.mxu0 %v11103_v60  ;;  %12106 = vmatprep.subr.bf16.mxu1 %v19765_v2  ;;  %v2135_v60 = vsub.f32 %v19760_v8, %v19769_v4  ;;  %v18613_v54 = vand.u32 4294901760, %v19772_v47  ;;  %v19773_v4 = vld [vmem:[#allocation24_spill] sm:$0xff]  ;;  %v2153_v1 = vsub.f32 %v14906_v31, %v19774_v48  ;;  %v19775_v12 = vand.u32 4294901760, %v19768_v25 }
 0x223   :  { %11106 = vmatprep.subr.bf16.mxu0 %v11105_v29  ;;  %v18610_v29 = vand.u32 4294901760, %v14914_v51  ;;  %v2130_v8 = vand.u32 4294901760, %v2129_v5  ;;  %v2142_v35 = vand.u32 4294901760, %v2141_v23  ;;  %v2148_v43 = vand.u32 4294901760, %v2147_v18  ;;  %v19776_v48 = vld [vmem:[#allocation120_spill] sm:$0xff] }
 0x224   :  { %v2165_v46 = vsub.f32 %v19768_v25, %v19775_v12  ;;  %v2136_v7 = vand.u32 4294901760, %v2135_v60  ;;  %v11115_v61 = vpack.c.bf16 %v2124_v16, %v2112_v11  ;;  %v2171_v60 = vsub.f32 %v19772_v47, %v18613_v54 }
 0x225   :  { %12108 = vmatpush3.bf16.msra.mxu1 %v19771_v10  ;;  %v19777_v18 = vand.u32 4294901760, %v14935_v13  ;;  %v19778_v11 = vand.u32 4294901760, %v14937_v45  ;;  %v11117_v23 = vpack.c.bf16 %v2142_v35, %v2130_v8  ;;  %v2154_v5 = vand.u32 4294901760, %v2153_v1  ;;  %v19784_v1 = vld [vmem:[#allocation45_spill] sm:$0xff]  ;;  %v19788_v8 = vld [vmem:[#allocation140_spill] sm:$0xff] }
 0x226   :  { %11108 = vmatpush1.bf16.msra.mxu0 %v11107_v36  ;;  %12110 = vmatprep.subr.bf16.mxu1 %v19773_v4  ;;  %v2166_v33 = vand.u32 4294901760, %v2165_v46  ;;  %v11119_v36 = vpack.c.bf16 %v2148_v43, %v2136_v7  ;;  %v19781_v54 = vand.u32 4294901760, %v14945_v0  ;;  %v2172_v7 = vand.u32 4294901760, %v2171_v60 }
 0x227   :  { %11110 = vmatprep.subr.bf16.mxu0 %v11109_v32  ;;  %v2159_v32 = vsub.f32 %v14914_v51, %v18610_v29  ;;  %v2177_v12 = vsub.f32 %v14935_v13, %v19777_v18  ;;  %v2189_v16 = vsub.f32 %v14937_v45, %v19778_v11  ;;  %v19779_v29 = vld [vmem:[#allocation40_spill] sm:$0xff]  ;;  %v19782_v18 = vand.u32 4294901760, %v14947_v30 }
 0x228   :  { %v2195_v47 = vsub.f32 %v14945_v0, %v19781_v54  ;;  %v19783_v11 = vand.u32 4294901760, %v14956_v41  ;;  %v19785_v54 = vld [vmem:[#allocation128_spill] sm:$0xff]  ;;  %v19789_v0 = vand.u32 4294901760, %v19788_v8  ;;  %v19790_v60 = vand.u32 4294901760, %v14963_v52 }
 0x229   :  { %12112 = vmatpush3.bf16.msra.mxu1 %v19776_v48  ;;  %v2201_v13 = vsub.f32 %v14947_v30, %v19782_v18  ;;  %v2160_v46 = vand.u32 4294901760, %v2159_v32  ;;  %v2178_v43 = vand.u32 4294901760, %v2177_v12  ;;  %v18629_v18 = vand.u32 4294901760, %v14970_v44 }
 0x22a   :  { %11112 = vmatpush1.bf16.msra.mxu0 %v11111_v14  ;;  %12114 = vmatprep.subr.bf16.mxu1 %v19779_v29  ;;  %v19780_v14 = vand.u32 4294901760, %v14941_v55  ;;  %v18634_v30 = vand.u32 4294901760, %v14980_v22  ;;  %v2196_v31 = vand.u32 4294901760, %v2195_v47  ;;  %v2207_v12 = vsub.f32 %v14963_v52, %v19790_v60  ;;  %v19800_v52 = vld [vmem:[#allocation138_spill] sm:$0xff] }
 0x22b   :  { %11114 = vmatprep.subr.bf16.mxu0 %v11113_v17  ;;  %v2213_v17 = vsub.f32 %v14956_v41, %v19783_v11  ;;  %v19786_v11 = vld [vmem:[#allocation49_spill] sm:$0xff]  ;;  %v18637_v47 = vand.u32 4294901760, %v15009_v34  ;;  %v19798_v60 = vand.u32 4294901760, %v19626_v58  ;;  %v18636_v58 = vand.u32 4294901760, %v15055_v53 }
 0x22c   :  { %v2183_v51 = vsub.f32 %v14941_v55, %v19780_v14  ;;  %v2190_v14 = vand.u32 4294901760, %v2189_v16  ;;  %v11121_v55 = vpack.c.bf16 %v2166_v33, %v2154_v5  ;;  %v19787_v41 = vand.u32 4294901760, %v19786_v11  ;;  %v19792_v5 = vld [vmem:[#allocation129_spill] sm:$0xff] }
 0x22d   :  { %12116 = vmatpush3.bf16.msra.mxu1 %v19784_v1  ;;  %v2214_v32 = vand.u32 4294901760, %v2213_v17  ;;  %v11123_v16 = vpack.c.bf16 %v2172_v7, %v2160_v46  ;;  %v19794_v17 = vld [vmem:[#allocation60_spill] sm:$0xff]  ;;  %v19796_v7 = vld [vmem:[#allocation66_spill] sm:$0xff]  ;;  %v2208_v8 = vand.u32 4294901760, %v2207_v12 }
 0x22e   :  { %11116 = vmatpush1.bf16.msra.mxu0 %v11115_v61  ;;  %12118 = vmatprep.subr.bf16.mxu1 %v19785_v54  ;;  %v12125_v35 = vpack.c.bf16 %v19789_v0, %v19787_v41  ;;  %v2184_v45 = vand.u32 4294901760, %v2183_v51  ;;  %v2202_v61 = vand.u32 4294901760, %v2201_v13  ;;  %v11125_v11 = vpack.c.bf16 %v2190_v14, %v2178_v43  ;;  %v19793_v51 = vld [vmem:[#allocation137_spill] sm:$0xff]  ;;  %v19804_v12 = vld [vmem:[#allocation76_spill] sm:$0xff] }
 0x22f   :  { %11118 = vmatprep.subr.bf16.mxu0 %v11117_v23  ;;  %v19791_v23 = vand.u32 4294901760, %v14965_v50  ;;  %v2225_v13 = vsub.f32 %v14970_v44, %v18629_v18  ;;  %v2237_v41 = vsub.f32 %v14980_v22, %v18634_v30  ;;  %v19795_v46 = vand.u32 4294901760, %v19794_v17 }
 0x230   :  { %v19797_v43 = vand.u32 4294901760, %v19796_v7  ;;  %v11127_v0 = vpack.c.bf16 %v2196_v31, %v2184_v45  ;;  %v11129_v18 = vpack.c.bf16 %v2214_v32, %v2202_v61  ;;  %v19801_v30 = vand.u32 4294901760, %v14987_v42  ;;  %v19807_v7 = vld [vmem:[#allocation90_spill] sm:$0xff] }
 0x231   :  { %v2219_v33 = vsub.f32 %v14965_v50, %v19791_v23  ;;  %12120 = vmatpush3.bf16.msra.mxu1 %v19792_v5  ;;  %v19802_v17 = vand.u32 4294901760, %v14997_v26  ;;  %v2226_v45 = vand.u32 4294901760, %v2225_v13  ;;  %v2238_v31 = vand.u32 4294901760, %v2237_v41 }
 0x232   :  { %11120 = vmatpush1.bf16.msra.mxu0 %v11119_v36  ;;  %12122 = vmatprep.subr.bf16.mxu1 %v19793_v51  ;;  %v12127_v14 = vpack.c.bf16 %v19797_v43, %v19795_v46  ;;  %v2231_v36 = vsub.f32 %v14987_v42, %v19801_v30  ;;  %v2249_v61 = vsub.f32 %v15009_v34, %v18637_v47  ;;  %v19803_v32 = vand.u32 4294901760, %v15020_v39  ;;  %v19906_v47 = vld [vmem:[#allocation152_spill] sm:$0xff] }
 0x233   :  { %11122 = vmatprep.subr.bf16.mxu0 %v11121_v55  ;;  %v19799_v55 = vand.u32 4294901760, %v19627_v19  ;;  %v2220_v44 = vand.u32 4294901760, %v2219_v33  ;;  %v2243_v46 = vsub.f32 %v14997_v26, %v19802_v17  ;;  %v18635_v19 = vand.u32 4294901760, %v15059_v21  ;;  %v19805_v33 = vld [vmem:[#allocation85_spill] sm:$0xff] }
 0x234   :  { %v2261_v30 = vsub.f32 %v15020_v39, %v19803_v32  ;;  %v19808_v43 = vand.u32 4294901760, %v19807_v7  ;;  %v2255_v13 = vsub.f32 %v15055_v53, %v18636_v58  ;;  %v19809_v17 = vand.u32 4294901760, %v19637_v49  ;;  %v19810_v32 = vld [vmem:[#allocation96_spill] sm:$0xff]  ;;  %v19814_v49 = vld [vmem:[#allocation134_spill] sm:$0xff] }
 0x235   :  { %v12129_v23 = vpack.c.bf16 %v19799_v55, %v19798_v60  ;;  %12124 = vmatpush3.bf16.msra.mxu1 %v19800_v52  ;;  %v11131_v55 = vpack.c.bf16 %v2220_v44, %v2208_v8  ;;  %v2267_v41 = vsub.f32 %v15059_v21, %v18635_v19  ;;  %v11133_v44 = vpack.c.bf16 %v2238_v31, %v2226_v45  ;;  %v19903_v58 = vld [vmem:[#allocation30_spill] sm:$0xff] }
 0x236   :  { %11124 = vmatpush1.bf16.msra.mxu0 %v11123_v16  ;;  %12126 = vmatprep.subr.bf16.mxu1 %v12125_v35  ;;  %v19806_v16 = vand.u32 4294901760, %v19805_v33  ;;  %v2232_v35 = vand.u32 4294901760, %v2231_v36  ;;  %v19811_v33 = vand.u32 4294901760, %v19810_v32  ;;  %v2250_v8 = vand.u32 4294901760, %v2249_v61 }
 0x237   :  { %11126 = vmatprep.subr.bf16.mxu0 %v11125_v11  ;;  %v2244_v11 = vand.u32 4294901760, %v2243_v46  ;;  %v19812_v36 = vand.u32 4294901760, %v19642_v56 }
 0x238   :  { %6247 = vmatmul.mubr.f32.vlgmr.msra.gmra.mrb[22].mxu1 %v19804_v12  ;;  %v12131_v60 = vpack.c.bf16 %v19808_v43, %v19806_v16  ;;  %v12133_v16 = vpack.c.bf16 %v19811_v33, %v19809_v17  ;;  %v19815_v43 = vand.u32 4294901760, %v19814_v49  ;;  %v19816_v17 = vld [vmem:[#allocation135_spill] sm:$0xff]  ;;  %v19988_v12 = vld [vmem:[#allocation81_spill] sm:$0xff] }
 0x239   :  { %12128 = vmatpush3.bf16.msra.mxu1 %v12127_v14  ;;  %6413 = vmatprep.mubr.f32.mxu1 %v19714_v6  ;;  %v19813_v14 = vand.u32 4294901760, %v19643_v28  ;;  %v11135_v7 = vpack.c.bf16 %v2244_v11, %v2232_v35  ;;  %v19817_v45 = vand.u32 4294901760, %v19816_v17  ;;  %v19822_v35 = vld [vmem:[#allocation26_spill] sm:$0xff] }
 0x23a   :  { %11128 = vmatpush1.bf16.msra.mxu0 %v11127_v0  ;;  %12130 = vmatprep.subr.bf16.mxu1 %v12129_v23  ;;  %v2262_v0 = vand.u32 4294901760, %v2261_v30  ;;  %v2256_v23 = vand.u32 4294901760, %v2255_v13  ;;  %v19818_v30 = vld [vmem:[#allocation21_spill] sm:$0xff]  ;;  %v19823_v11 = vand.u32 4294901760, %v19822_v35  ;;  %v19824_v13 = vld [vmem:[#allocation27_spill] sm:$0xff]  ;;  %v19836_v17 = vld [vmem:[#allocation62_spill] sm:$0xff] }
 0x23b   :  { %11130 = vmatprep.subr.bf16.mxu0 %v11129_v18  ;;  %v12135_v46 = vpack.c.bf16 %v19813_v14, %v19812_v36  ;;  %v2268_v18 = vand.u32 4294901760, %v2267_v41  ;;  %v12137_v31 = vpack.c.bf16 %v19817_v45, %v19815_v43  ;;  %v19825_v41 = vand.u32 4294901760, %v19824_v13  ;;  %v19829_v36 = vld [vmem:[#allocation34_spill] sm:$0xff]  ;;  %v19830_v14 = vld [vmem:[#allocation33_spill] sm:$0xff]  ;;  %v19837_v45 = vld [vmem:[#allocation39_spill] sm:$0xff] }
 0x23c   :  { %v11137_v61 = vpack.c.bf16 %v2262_v0, %v2250_v8 }
 0x23d   :  { %12132 = vmatpush3.bf16.msra.mxu1 %v12131_v60  ;;  %v19819_v60 = vand.u32 4294901760, %v19818_v30  ;;  %v11139_v28 = vpack.c.bf16 %v2268_v18, %v2256_v23  ;;  %v12141_v33 = vpack.c.bf16 %v19825_v41, %v19823_v11  ;;  %v19834_v18 = vld [vmem:[#allocation44_spill] sm:$0xff]  ;;  %v19849_v41 = vld [vmem:[#allocation119_spill] sm:$0xff] }
 0x23e   :  { %11132 = vmatpush1.bf16.msra.mxu0 %v11131_v55  ;;  %12134 = vmatprep.subr.bf16.mxu1 %v12133_v16  ;;  %v19820_v55 = vld [vmem:[#allocation22_spill] sm:$0xff]  ;;  %v19826_v16 = vand.u32 4294901760, %v19666_v40  ;;  %v19835_v49 = vand.u32 4294901760, %v19834_v18  ;;  %v19840_v40 = vld [vmem:[#allocation47_spill] sm:$0xff]  ;;  %v19847_v11 = vld [vmem:[#allocation56_spill] sm:$0xff] }
 0x23f   :  { %11134 = vmatprep.subr.bf16.mxu0 %v11133_v44  ;;  %v19821_v56 = vand.u32 4294901760, %v19820_v55  ;;  %v19827_v44 = vld [vmem:[#allocation29_spill] sm:$0xff]  ;;  %v19841_v30 = vand.u32 4294901760, %v19840_v40  ;;  %v19848_v13 = vand.u32 4294901760, %v19847_v11  ;;  %v19860_v40 = vand.u32 4294901760, %v19596_v20  ;;  %v19870_v20 = vld [vmem:[#allocation143_spill] sm:$0xff] }
 0x240   :  { %v19828_v8 = vand.u32 4294901760, %v19827_v44  ;;  %v19851_v44 = vld [vmem:[#allocation57_spill] sm:$0xff] }
 0x241   :  { %12136 = vmatpush3.bf16.msra.mxu1 %v12135_v46  ;;  %v12139_v32 = vpack.c.bf16 %v19821_v56, %v19819_v60  ;;  %v19831_v46 = vpack.c.bf16 %v19829_v36, %v19830_v14  ;;  %v19842_v60 = vld [vmem:[#allocation125_spill] sm:$0xff] }
 0x242   :  { %11136 = vmatpush1.bf16.msra.mxu0 %v11135_v7  ;;  %12138 = vmatprep.subr.bf16.mxu1 %v12137_v31  ;;  %v12143_v0 = vpack.c.bf16 %v19828_v8, %v19826_v16  ;;  %v19832_v7 = vld [vmem:[#allocation41_spill] sm:$0xff]  ;;  %v19838_v31 = vld [vmem:[#allocation38_spill] sm:$0xff]  ;;  %v19843_v55 = vand.u32 4294901760, %v19842_v60 }
 0x243   :  { %11138 = vmatprep.subr.bf16.mxu0 %v11137_v61  ;;  %v19833_v23 = vand.u32 4294901760, %v19832_v7  ;;  %v19839_v61 = vpack.c.bf16 %v19837_v45, %v19838_v31  ;;  %v19852_v8 = vld [vmem:[#allocation53_spill] sm:$0xff]  ;;  %v19855_v7 = vand.u32 4294901760, %v19712_v57  ;;  %v19865_v57 = vand.u32 4294901760, %v19722_v38  ;;  %v19876_v38 = vld [vmem:[#allocation92_spill] sm:$0xff] }
 0x244   :  { %v12147_v56 = vpack.c.bf16 %v19843_v55, %v19841_v30  ;;  %v19861_v30 = vand.u32 4294901760, %v19597_v9  ;;  %v19862_v55 = vld [vmem:[#allocation69_spill] sm:$0xff] }
 0x245   :  { %12140 = vmatpush3.bf16.msra.mxu1 %v12139_v32  ;;  %v12145_v43 = vpack.c.bf16 %v19835_v49, %v19833_v23  ;;  %v19844_v32 = vld [vmem:[#allocation118_spill] sm:$0xff]  ;;  %v19856_v23 = vand.u32 4294901760, %v19713_v3  ;;  %v19857_v49 = vld [vmem:[#allocation133_spill] sm:$0xff]  ;;  %v19866_v3 = vand.u32 4294901760, %v19723_v24 }
 0x246   :  { %11140 = vmatpush1.bf16.msra.mxu0 %v11139_v28  ;;  %12142 = vmatprep.subr.bf16.mxu1 %v12141_v33  ;;  %v19845_v28 = vld [vmem:[#allocation51_spill] sm:$0xff]  ;;  %v19850_v33 = vand.u32 4294901760, %v19849_v41  ;;  %v12153_v60 = vpack.c.bf16 %v19861_v30, %v19860_v40  ;;  %v19868_v41 = vld [vmem:[#allocation77_spill] sm:$0xff]  ;;  %v19881_v40 = vld [vmem:[#allocation94_spill] sm:$0xff] }
 0x247   :  { %11142 = vmatprep.subr.bf16.mxu0 %v19831_v46  ;;  %v19846_v35 = vpack.c.bf16 %v19844_v32, %v19845_v28  ;;  %v12151_v18 = vpack.c.bf16 %v19856_v23, %v19855_v7  ;;  %v12155_v11 = vpack.c.bf16 %v19866_v3, %v19865_v57  ;;  %v19877_v24 = vld [vmem:[#allocation89_spill] sm:$0xff]  ;;  %v19887_v57 = vld [vmem:[#allocation104_spill] sm:$0xff]  ;;  %v19989_v32 = vld [vmem:[#allocation82_spill] sm:$0xff] }
 0x248   :  { %v12149_v16 = vpack.c.bf16 %v19850_v33, %v19848_v13  ;;  %v19867_v13 = vld [vmem:[#allocation142_spill] sm:$0xff]  ;;  %v19878_v23 = vpack.c.bf16 %v19876_v38, %v19877_v24  ;;  %v347_v24 = vld [vmem:[#allocation5 + $0x820] sm:$0xff] }
 0x249   :  { %2273 = vmatmul.mubr.f32.vlgmr.msra.gmra.mrb[0].mxu0 %v19836_v17  ;;  %12144 = vmatpush3.bf16.msra.mxu1 %v12143_v0  ;;  %v19853_v0 = vld [vmem:[#allocation52_spill] sm:$0xff]  ;;  %v19869_v33 = vpack.c.bf16 %v19867_v13, %v19868_v41  ;;  %v293_v38 = vld [vmem:[#allocation5 + $0x670] sm:$0xff]  ;;  %v6591_v13 = vand.u32 4294901760, %v347_v24 }
 0x24a   :  { %11144 = vmatpush1.bf16.msra.mxu0 %v19839_v61  ;;  %12146 = vmatprep.subr.bf16.mxu1 %v12145_v43  ;;  %v19854_v46 = vpack.c.bf16 %v19852_v8, %v19853_v0  ;;  %v19858_v43 = vld [vmem:[#allocation63_spill] sm:$0xff]  ;;  %v299_v41 = vld [vmem:[#allocation5 + $0x6a0] sm:$0xff] }
 0x24b   :  { %11146 = vmatprep.subr.bf16.mxu0 %v19846_v35  ;;  %2473 = vmatprep.mubr.f32.mxu0 %v19851_v44  ;;  %v19859_v61 = vpack.c.bf16 %v19857_v49, %v19858_v43  ;;  %v19873_v44 = vld [vmem:[#allocation86_spill] sm:$0xff] }
 0x24c   :  { %v305_v43 = vld [vmem:[#allocation5 + $0x6d0] sm:$0xff] }
 0x24d   :  { %12148 = vmatpush3.bf16.msra.mxu1 %v12147_v56  ;;  %v19863_v56 = vld [vmem:[#allocation64_spill] sm:$0xff] }
 0x24e   :  { %11148 = vmatpush1.bf16.msra.mxu0 %v19854_v46  ;;  %12150 = vmatprep.subr.bf16.mxu1 %v12149_v16  ;;  %v19864_v35 = vpack.c.bf16 %v19862_v55, %v19863_v56  ;;  %v19871_v16 = vld [vmem:[#allocation80_spill] sm:$0xff]  ;;  %v19874_v46 = vld [vmem:[#allocation83_spill] sm:$0xff]  ;;  %v356_v56 = vld [vmem:[#allocation5 + $0x868] sm:$0xff] }
 0x24f   :  { %11150 = vmatprep.subr.bf16.mxu0 %v19859_v61  ;;  %v19872_v9 = vpack.c.bf16 %v19870_v20, %v19871_v16  ;;  %v19875_v7 = vpack.c.bf16 %v19873_v44, %v19874_v46  ;;  %v19880_v61 = vld [vmem:[#allocation95_spill] sm:$0xff]  ;;  %v19935_v20 = vld [vmem:[#allocation78_spill] sm:$0xff] }
 0x250   :  { %v19882_v30 = vpack.c.bf16 %v19880_v61, %v19881_v40  ;;  %v350_v44 = vld [vmem:[#allocation5 + $0x838] sm:$0xff]  ;;  %v353_v55 = vld [vmem:[#allocation5 + $0x850] sm:$0xff] }
 0x251   :  { %12152 = vmatpush3.bf16.msra.mxu1 %v12151_v18  ;;  %v19879_v18 = vld [vmem:[#allocation67_spill] sm:$0xff] }
 0x252   :  { %11152 = vmatpush1.bf16.msra.mxu0 %v19864_v35  ;;  %12154 = vmatprep.subr.bf16.mxu1 %v12153_v60  ;;  %v19884_v60 = vld [vmem:[#allocation145_spill] sm:$0xff]  ;;  %v19934_v46 = vld [vmem:[#allocation91_spill] sm:$0xff] }
 0x253   :  { %11154 = vmatprep.subr.bf16.mxu0 %v19869_v33  ;;  %v19890_v33 = vld [vmem:[#allocation106_spill] sm:$0xff]  ;;  %v19936_v16 = vpack.c.bf16 %v19934_v46, %v19935_v20 }
 0x255   :  { %12156 = vmatpush3.bf16.msra.mxu1 %v12155_v11  ;;  %v19889_v11 = vld [vmem:[#allocation107_spill] sm:$0xff] }
 0x256   :  { %11156 = vmatpush1.bf16.msra.mxu0 %v19872_v9  ;;  %12158 = vmatprep.subr.bf16.mxu1 %v19737_v59  ;;  %v19883_v59 = vld [vmem:[#allocation100_spill] sm:$0xff]  ;;  %v19891_v9 = vpack.c.bf16 %v19889_v11, %v19890_v33 }
 0x257   :  { %11158 = vmatprep.subr.bf16.mxu0 %v19875_v7  ;;  %v19885_v35 = vpack.c.bf16 %v19883_v59, %v19884_v60  ;;  %v19892_v7 = vld [vmem:[#allocation112_spill] sm:$0xff]  ;;  %v19926_v59 = vld [vmem:[#allocation115_spill] sm:$0xff] }
 0x258   :  { %6415 = vmatmul.mubr.f32.vlgmr.msra.gmra.mrb[24].mxu1 %v19836_v17  ;;  %v287_v11 = vld [vmem:[#allocation5 + $0x640] sm:$0xff]  ;;  %v290_v33 = vld [vmem:[#allocation5 + $0x658] sm:$0xff] }
 0x259   :  { %12160 = vmatpush3.bf16.msra.mxu1 %v19744_v15  ;;  %6517 = vmatprep.mubr.f32.mxu1 %v19714_v6  ;;  %v19886_v15 = vld [vmem:[#allocation105_spill] sm:$0xff]  ;;  %v6543_v6 = vand.u32 4294901760, %v299_v41 }
 0x25a   :  { %11160 = vmatpush1.bf16.msra.mxu0 %v19878_v23  ;;  %12162 = vmatprep.subr.bf16.mxu1 %v19879_v18  ;;  %v19888_v3 = vpack.c.bf16 %v19886_v15, %v19887_v57  ;;  %v434_v18 = vld [vmem:[#allocation2 + $0x28] sm:$0xff]  ;;  %v344_v15 = vld [vmem:[#allocation5 + $0x808] sm:$0xff]  ;;  %v19925_v57 = vld [vmem:[#allocation144_spill] sm:$0xff] }
 0x25b   :  { %11162 = vmatprep.subr.bf16.mxu0 %v19882_v30  ;;  %v19896_v30 = vld [vmem:[#allocation147_spill] sm:$0xff]  ;;  %v19927_v60 = vpack.c.bf16 %v19925_v57, %v19926_v59 }
 0x25d   :  { %12164 = vmatpush3.bf16.msra.mxu1 %v19755_v63  ;;  %v19893_v63 = vld [vmem:[#allocation111_spill] sm:$0xff] }
 0x25e   :  { %11164 = vmatpush1.bf16.msra.mxu0 %v19885_v35  ;;  %12166 = vmatprep.subr.bf16.mxu1 %v19758_v62  ;;  %v19894_v23 = vpack.c.bf16 %v19892_v7, %v19893_v63  ;;  %v19895_v62 = vld [vmem:[#allocation148_spill] sm:$0xff] }
 0x25f   :  { %11166 = vmatprep.subr.bf16.mxu0 %v19888_v3  ;;  %v19897_v35 = vpack.c.bf16 %v19895_v62, %v19896_v30  ;;  %v19899_v3 = vld [vmem:[#allocation23_spill] sm:$0xff] }
 0x260   :  { %v15493_v7 = vld [vmem:[#allocation5 + $0x7d8] sm:$0xff] }
 0x261   :  { %12168 = vmatpush3.bf16.msra.mxu1 %v19764_v37  ;;  %v19898_v37 = vld [vmem:[#allocation150_spill] sm:$0xff]  ;;  %v6582_v63 = vand.u32 4294901760, %v15493_v7 }
 0x262   :  { %11168 = vmatpush1.bf16.msra.mxu0 %v19891_v9  ;;  %12170 = vmatprep.subr.bf16.mxu1 %v19765_v2  ;;  %v19900_v19 = vpack.c.bf16 %v19898_v37, %v19899_v3  ;;  %v15472_v9 = vand.u32 4294901760, %v434_v18  ;;  %v19902_v2 = vld [vmem:[#allocation151_spill] sm:$0xff]  ;;  %v19910_v37 = vld [vmem:[#allocation37_spill] sm:$0xff] }
 0x263   :  { %11170 = vmatprep.subr.bf16.mxu0 %v19894_v23  ;;  %v19904_v23 = vpack.c.bf16 %v19902_v2, %v19903_v58  ;;  %v19913_v2 = vld [vmem:[#allocation43_spill] sm:$0xff]  ;;  %v335_v3 = vld [vmem:[#allocation5 + $0x7c0] sm:$0xff] }
 0x264   :  { %19901 = vst [vmem:[#allocation87_spill] sm:$0xff] %v15472_v9  ;;  %v15483_v30 = vsub.f32 %v434_v18, %v15472_v9 }
 0x265   :  { %12172 = vmatpush3.bf16.msra.mxu1 %v19771_v10  ;;  %v19905_v10 = vld [vmem:[#allocation36_spill] sm:$0xff] }
 0x266   :  { %11172 = vmatpush1.bf16.msra.mxu0 %v19897_v35  ;;  %12174 = vmatprep.subr.bf16.mxu1 %v19773_v4  ;;  %v19907_v62 = vpack.c.bf16 %v19905_v10, %v19906_v47  ;;  %v329_v35 = vld [vmem:[#allocation5 + $0x790] sm:$0xff]  ;;  %v332_v4 = vld [vmem:[#allocation5 + $0x7a8] sm:$0xff]  ;;  %19908 = vst [vmem:[#allocation58_spill] sm:$0xff] %v15483_v30  ;;  %v15496_v18 = vand.u32 4294901760, %v15483_v30 }
 0x267   :  { %11174 = vmatprep.subr.bf16.mxu0 %v19900_v19  ;;  %v19909_v19 = vld [vmem:[#allocation154_spill] sm:$0xff]  ;;  %v6573_v58 = vand.u32 4294901760, %v329_v35  ;;  %v6576_v10 = vand.u32 4294901760, %v332_v4 }
 0x268   :  { %v284_v47 = vld [vmem:[#allocation5 + $0x628] sm:$0xff]  ;;  %19915 = vst [vmem:[#allocation59_spill] sm:$0xff] %v15496_v18 }
 0x269   :  { %12176 = vmatpush3.bf16.msra.mxu1 %v19776_v48  ;;  %v19911_v48 = vpack.c.bf16 %v19909_v19, %v19910_v37  ;;  %v6528_v19 = vand.u32 4294901760, %v284_v47  ;;  %v6579_v37 = vand.u32 4294901760, %v335_v3 }
 0x26a   :  { %11176 = vmatpush1.bf16.msra.mxu0 %v19904_v23  ;;  %12178 = vmatprep.subr.bf16.mxu1 %v19779_v29  ;;  %v19912_v23 = vld [vmem:[#allocation54_spill] sm:$0xff] }
 0x26b   :  { %11178 = vmatprep.subr.bf16.mxu0 %v19907_v62  ;;  %v19914_v29 = vpack.c.bf16 %v19912_v23, %v19913_v2  ;;  %v281_v62 = vld [vmem:[#allocation5 + $0x610] sm:$0xff]  ;;  %v15506_v2 = vpack.c.bf16 %v6576_v10, %v6573_v58  ;;  %v15521_v61 = vpack.c.bf16 %v6582_v63, %v6579_v37 }
 0x26d   :  { %12180 = vmatpush3.bf16.msra.mxu1 %v19784_v1  ;;  %v19916_v1 = vld [vmem:[#allocation61_spill] sm:$0xff]  ;;  %19920 = vst [vmem:[#allocation74_spill] sm:$0xff] %v15506_v2  ;;  %19928 = vst [vmem:[#allocation48_spill] sm:$0xff] %v15521_v61 }
 0x26e   :  { %11180 = vmatpush1.bf16.msra.mxu0 %v19911_v48  ;;  %12182 = vmatprep.subr.bf16.mxu1 %v19785_v54  ;;  %v19917_v48 = vpack.c.bf16 %v19761_v27, %v19916_v1  ;;  %v6525_v54 = vand.u32 4294901760, %v281_v62  ;;  %v19921_v27 = vld [vmem:[#allocation109_spill] sm:$0xff] }
 0x26f   :  { %11182 = vmatprep.subr.bf16.mxu0 %v19914_v29  ;;  %v19918_v29 = vld [vmem:[#allocation97_spill] sm:$0xff] }
 0x270   :  { %v19919_v23 = vpack.c.bf16 %v19768_v25, %v19918_v29  ;;  %v15515_v25 = vpack.c.bf16 %v6528_v19, %v6525_v54  ;;  %v6534_v29 = vand.u32 4294901760, %v290_v33 }
 0x271   :  { %12184 = vmatpush3.bf16.msra.mxu1 %v19792_v5  ;;  %v341_v5 = vld [vmem:[#allocation5 + $0x7f0] sm:$0xff] }
 0x272   :  { %11184 = vmatpush1.bf16.msra.mxu0 %v19917_v48  ;;  %12186 = vmatprep.subr.bf16.mxu1 %v19793_v51  ;;  %v3156_v48 = vsub.f32 %v15483_v30, %v15496_v18  ;;  %v19922_v51 = vld [vmem:[#allocation108_spill] sm:$0xff]  ;;  %19924 = vst [vmem:[#allocation75_spill] sm:$0xff] %v15515_v25  ;;  %v6585_v40 = vand.u32 4294901760, %v341_v5  ;;  %v6588_v18 = vand.u32 4294901760, %v344_v15 }
 0x273   :  { %11186 = vmatprep.subr.bf16.mxu0 %v19919_v23  ;;  %v19923_v1 = vpack.c.bf16 %v19921_v27, %v19922_v51  ;;  %v6531_v23 = vand.u32 4294901760, %v287_v11  ;;  %v19931_v51 = vld [vmem:[#allocation70_spill] sm:$0xff] }
 0x274   :  { %v15523_v27 = vand.u32 4294901760, %v3156_v48  ;;  %v15536_v48 = vpack.c.bf16 %v6588_v18, %v6585_v40 }
 0x275   :  { %12188 = vmatpush3.bf16.msra.mxu1 %v19800_v52  ;;  %v296_v52 = vld [vmem:[#allocation5 + $0x688] sm:$0xff]  ;;  %v15530_v57 = vpack.c.bf16 %v6534_v29, %v6531_v23 }
 0x276   :  { %11188 = vmatpush1.bf16.msra.mxu0 %v19923_v1  ;;  %12190 = vmatprep.subr.bf16.mxu1 %v15506_v2  ;;  %19929 = vst [vmem:[#allocation141_spill] sm:$0xff] %v15523_v27  ;;  %v19930_v1 = vld [vmem:[#allocation71_spill] sm:$0xff]  ;;  %v6540_v59 = vand.u32 4294901760, %v296_v52  ;;  %19937 = vst [vmem:[#allocation126_spill] sm:$0xff] %v15536_v48 }
 0x277   :  { %11190 = vmatprep.subr.bf16.mxu0 %v19927_v60  ;;  %v19932_v2 = vpack.c.bf16 %v19930_v1, %v19931_v51  ;;  %19933 = vst [vmem:[#allocation84_spill] sm:$0xff] %v15530_v57  ;;  %v6537_v60 = vand.u32 4294901760, %v293_v38  ;;  %v15541_v1 = vsub.f32 %v332_v4, %v6576_v10  ;;  %v15543_v51 = vsub.f32 %v281_v62, %v6525_v54  ;;  %v19941_v10 = vld [vmem:[#allocation156_spill] sm:$0xff] }
 0x278   :  { %6519 = vmatmul.mubr.f32.vlgmr.msra.gmra.mrb[26].mxu1 %v19836_v17  ;;  %v6594_v17 = vand.u32 4294901760, %v350_v44  ;;  %v6597_v4 = vand.u32 4294901760, %v353_v55  ;;  %v15564_v62 = vsub.f32 %v287_v11, %v6531_v23  ;;  %v15566_v54 = vsub.f32 %v290_v33, %v6534_v29  ;;  %v365_v23 = vld [vmem:[#allocation5 + $0x8b0] sm:$0xff] }
 0x279   :  { %12192 = vmatpush3.bf16.msra.mxu1 %v15515_v25  ;;  %v302_v25 = vld [vmem:[#allocation5 + $0x6b8] sm:$0xff]  ;;  %6625 = vmatprep.mubr.f32.mxu1 %v15523_v27  ;;  %v15551_v20 = vpack.c.bf16 %v6540_v59, %v6537_v60  ;;  %v308_v27 = vld [vmem:[#allocation5 + $0x6e8] sm:$0xff]  ;;  %v19944_v11 = vpack.c.bf16 %v14997_v26, %v14987_v42  ;;  %v15580_v33 = vsub.f32 %v347_v24, %v6591_v13  ;;  %v6609_v26 = vand.u32 4294901760, %v365_v23 }
 0x27a   :  { %11192 = vmatpush1.bf16.msra.mxu0 %v19932_v2  ;;  %12194 = vmatprep.subr.bf16.mxu1 %v15521_v61  ;;  %v15539_v2 = vsub.f32 %v329_v35, %v6573_v58  ;;  %v15545_v61 = vsub.f32 %v284_v47, %v6528_v19  ;;  %v6546_v49 = vand.u32 4294901760, %v302_v25  ;;  %v15553_v58 = vsub.f32 %v335_v3, %v6579_v37  ;;  %v359_v37 = vld [vmem:[#allocation5 + $0x880] sm:$0xff]  ;;  %v362_v3 = vld [vmem:[#allocation5 + $0x898] sm:$0xff] }
 0x27b   :  { %11194 = vmatprep.subr.bf16.mxu0 %v19936_v16  ;;  %v19938_v16 = vld [vmem:[#allocation131_spill] sm:$0xff]  ;;  %19940 = vst [vmem:[#allocation116_spill] sm:$0xff] %v15551_v20  ;;  %v19942_v47 = vpack.c.bf16 %v14980_v22, %v19941_v10  ;;  %v15559_v35 = vpack.c.bf16 %v6594_v17, %v6591_v13  ;;  %v6600_v19 = vand.u32 4294901760, %v356_v56  ;;  %v6552_v22 = vand.u32 4294901760, %v308_v27  ;;  %v433_v10 = vld [vmem:[#allocation2 + $0x20] sm:$0xff] }
 0x27c   :  { %v19939_v46 = vpack.c.bf16 %v14965_v50, %v19938_v16  ;;  %v15568_v50 = vsub.f32 %v341_v5, %v6585_v40  ;;  %v15570_v16 = vsub.f32 %v344_v15, %v6588_v18  ;;  %v15582_v40 = vpack.c.bf16 %v6546_v49, %v6543_v6  ;;  %v314_v15 = vld [vmem:[#allocation5 + $0x718] sm:$0xff] }
 0x27d   :  { %12196 = vmatpush3.bf16.msra.mxu1 %v15530_v57  ;;  %19943 = vst [vmem:[#allocation117_spill] sm:$0xff] %v15559_v35  ;;  %v15575_v57 = vsub.f32 %v296_v52, %v6540_v59  ;;  %v15590_v59 = vpack.c.bf16 %v6600_v19, %v6597_v4  ;;  %v6603_v18 = vand.u32 4294901760, %v359_v37  ;;  %v6606_v29 = vand.u32 4294901760, %v362_v3  ;;  %v15598_v52 = vld [vmem:[#allocation5 + $0x8c8] sm:$0xff] }
 0x27e   :  { %11196 = vmatpush1.bf16.msra.mxu0 %v19939_v46  ;;  %12198 = vmatprep.subr.bf16.mxu1 %v15536_v48  ;;  %v15562_v46 = vsub.f32 %v15493_v7, %v6582_v63  ;;  %v15572_v48 = vsub.f32 %v293_v38, %v6537_v60  ;;  %19945 = vst [vmem:[#allocation20_spill] sm:$0xff] %v15582_v40  ;;  %v311_v7 = vld [vmem:[#allocation5 + $0x700] sm:$0xff]  ;;  %v15600_v60 = vand.u32 4294901760, %v433_v10  ;;  %v19975_v0 = vand.u32 4294901760, %v15564_v62 }
 0x27f   :  { %11198 = vmatprep.subr.bf16.mxu0 %v19942_v47  ;;  %v6549_v47 = vand.u32 4294901760, %v305_v43  ;;  %v15585_v38 = vsub.f32 %v350_v44, %v6594_v17  ;;  %v19946_v63 = vpack.c.bf16 %v15020_v39, %v15009_v34  ;;  %19947 = vst [vmem:[#allocation24_spill] sm:$0xff] %v15590_v59  ;;  %v15592_v5 = vsub.f32 %v299_v41, %v6543_v6  ;;  %v15606_v39 = vld [vmem:[#allocation5 + $0x730] sm:$0xff]  ;;  %v15608_v34 = vld [vmem:[#allocation5 + $0x748] sm:$0xff]  ;;  %v19951_v41 = vld [vmem:[#allocation32_spill] sm:$0xff] }
 0x280   :  { %v15594_v13 = vsub.f32 %v302_v25, %v6546_v49  ;;  %v15596_v24 = vsub.f32 %v353_v55, %v6597_v4  ;;  %19948 = vst [vmem:[#allocation120_spill] sm:$0xff] %v15600_v60  ;;  %v15602_v17 = vsub.f32 %v356_v56, %v6600_v19  ;;  %v19950_v6 = vpack.c.bf16 %v15059_v21, %v15055_v53  ;;  %v19954_v55 = vld [vmem:[#allocation68_spill] sm:$0xff] }
 0x281   :  { %12200 = vmatpush3.bf16.msra.mxu1 %v15551_v20  ;;  %v15604_v44 = vpack.c.bf16 %v6552_v22, %v6549_v47  ;;  %v15614_v25 = vsub.f32 %v305_v43, %v6549_v47  ;;  %v15616_v49 = vsub.f32 %v308_v27, %v6552_v22  ;;  %v15622_v4 = vpack.c.bf16 %v6606_v29, %v6603_v18  ;;  %v15631_v43 = vld [vmem:[#allocation5 + $0x8e0] sm:$0xff]  ;;  %v15633_v47 = vld [vmem:[#allocation5 + $0x8f8] sm:$0xff]  ;;  %v19959_v27 = vld [vmem:[#allocation50_spill] sm:$0xff] }
 0x282   :  { %11200 = vmatpush1.bf16.msra.mxu0 %v19944_v11  ;;  %12202 = vmatprep.subr.bf16.mxu1 %v15559_v35  ;;  %v6555_v11 = vand.u32 4294901760, %v311_v7  ;;  %v15624_v19 = vsub.f32 %v359_v37, %v6603_v18  ;;  %v6612_v21 = vand.u32 4294901760, %v15598_v52  ;;  %v15636_v56 = vsub.f32 %v433_v10, %v15600_v60  ;;  %v19956_v22 = vld [vmem:[#allocation35_spill] sm:$0xff] }
 0x283   :  { %11202 = vmatprep.subr.bf16.mxu0 %v19946_v63  ;;  %19949 = vst [vmem:[#allocation40_spill] sm:$0xff] %v15604_v44  ;;  %v6558_v63 = vand.u32 4294901760, %v314_v15  ;;  %19952 = vst [vmem:[#allocation45_spill] sm:$0xff] %v15622_v4  ;;  %v19957_v10 = vand.u32 4294901760, %v15539_v2  ;;  %v19958_v53 = vand.u32 4294901760, %v15541_v1 }
 0x284   :  { %19953 = vst [vmem:[#allocation128_spill] sm:$0xff] %v15636_v56  ;;  %v15641_v18 = vsub.f32 %v311_v7, %v6555_v11 }
 0x285   :  { %12204 = vmatpush3.bf16.msra.mxu1 %v15582_v40  ;;  %v15639_v37 = vpack.c.bf16 %v6558_v63, %v6555_v11  ;;  %v6759_v7 = vsub.f32 %v15541_v1, %v19958_v53  ;;  %v19962_v53 = vand.u32 4294901760, %v15608_v34  ;;  %v19968_v11 = vld [vmem:[#allocation127_spill] sm:$0xff] }
 0x286   :  { %11204 = vmatpush1.bf16.msra.mxu0 %v19950_v6  ;;  %12206 = vmatprep.subr.bf16.mxu1 %v15590_v59  ;;  %v15627_v6 = vsub.f32 %v362_v3, %v6606_v29  ;;  %v15645_v3 = vld [vmem:[#allocation5 + $0x778] sm:$0xff]  ;;  %v15660_v29 = vsub.f32 %v314_v15, %v6558_v63  ;;  %v19961_v59 = vand.u32 4294901760, %v15606_v39  ;;  %v15676_v15 = vand.u32 4294901760, %v15636_v56  ;;  %v19965_v63 = vld [vmem:[#allocation65_spill] sm:$0xff] }
 0x287   :  { %11206 = vmatprep.subr.bf16.mxu0 %v19951_v41  ;;  %19955 = vst [vmem:[#allocation49_spill] sm:$0xff] %v15639_v37  ;;  %v15643_v41 = vld [vmem:[#allocation5 + $0x760] sm:$0xff]  ;;  %v6760_v35 = vand.u32 4294901760, %v6759_v7 }
 0x288   :  { %v15671_v40 = vpack.c.bf16 %v19962_v53, %v19961_v59  ;;  %19964 = vst [vmem:[#allocation137_spill] sm:$0xff] %v15676_v15  ;;  %v19971_v59 = vld [vmem:[#allocation130_spill] sm:$0xff]  ;;  %v19972_v53 = vand.u32 4294901760, %v15631_v43 }
 0x289   :  { %2476 = vmatmul.mubr.f32.vlgmr.msra.gmra.mrb[0].mxu0 %v19954_v55  ;;  %12208 = vmatpush3.bf16.msra.mxu1 %v15604_v44  ;;  %v6752_v55 = vsub.f32 %v15539_v2, %v19957_v10  ;;  %v15663_v44 = vpack.c.bf16 %v6612_v21, %v6609_v26  ;;  %v19967_v10 = vand.u32 4294901760, %v15545_v61 }
 0x28a   :  { %11208 = vmatpush1.bf16.msra.mxu0 %v19956_v22  ;;  %12210 = vmatprep.subr.bf16.mxu1 %v15622_v4  ;;  %19963 = vst [vmem:[#allocation129_spill] sm:$0xff] %v15671_v40 }
 0x28b   :  { %11210 = vmatprep.subr.bf16.mxu0 %v19959_v27  ;;  %19960 = vst [vmem:[#allocation140_spill] sm:$0xff] %v15663_v44  ;;  %2613 = vmatprep.mubr.f32.mxu0 %v19965_v63  ;;  %v19966_v27 = vand.u32 4294901760, %v15543_v51  ;;  %v6647_v4 = vsub.f32 %v15545_v61, %v19967_v10  ;;  %v6753_v42 = vand.u32 4294901760, %v6752_v55  ;;  %v19969_v63 = vand.u32 4294901760, %v15553_v58 }
 0x28c   :  { %v15696_v10 = vsub.f32 %v365_v23, %v6609_v26  ;;  %v19979_v26 = vand.u32 4294901760, %v15645_v3 }
 0x28d   :  { %v6640_v22 = vsub.f32 %v15543_v51, %v19966_v27  ;;  %12212 = vmatpush3.bf16.msra.mxu1 %v15639_v37  ;;  %v6766_v20 = vsub.f32 %v15553_v58, %v19969_v63  ;;  %v19970_v27 = vand.u32 4294901760, %v15562_v46  ;;  %v15708_v37 = vsub.f32 %v15598_v52, %v6612_v21  ;;  %v19977_v21 = vld [vmem:[#allocation136_spill] sm:$0xff] }
 0x28e   :  { %11212 = vmatpush1.bf16.msra.mxu0 %v19968_v11  ;;  %12214 = vmatprep.subr.bf16.mxu1 %v15663_v44  ;;  %v19973_v11 = vand.u32 4294901760, %v15633_v47  ;;  %v6648_v44 = vand.u32 4294901760, %v6647_v4  ;;  %v19978_v52 = vand.u32 4294901760, %v15643_v41 }
 0x28f   :  { %v6773_v8 = vsub.f32 %v15562_v46, %v19970_v27  ;;  %11214 = vmatprep.subr.bf16.mxu0 %v19971_v59  ;;  %v3162_v27 = vsub.f32 %v15636_v56, %v15676_v15  ;;  %v6641_v59 = vand.u32 4294901760, %v6640_v22  ;;  %v12221_v22 = vpack.c.bf16 %v6760_v35, %v6753_v42 }
 0x290   :  { %v15703_v55 = vpack.c.bf16 %v19973_v11, %v19972_v53  ;;  %v6654_v11 = vsub.f32 %v15564_v62, %v19975_v0  ;;  %v19976_v53 = vand.u32 4294901760, %v15566_v54  ;;  %v15726_v7 = vpack.c.bf16 %v19979_v26, %v19978_v52  ;;  %v19981_v0 = vld [vmem:[#allocation139_spill] sm:$0xff] }
 0x291   :  { %12216 = vmatpush3.bf16.msra.mxu1 %v15671_v40  ;;  %v6767_v4 = vand.u32 4294901760, %v6766_v20  ;;  %v6774_v23 = vand.u32 4294901760, %v6773_v8  ;;  %v19982_v15 = vand.u32 4294901760, %v15568_v50  ;;  %v19983_v40 = vand.u32 4294901760, %v15570_v16 }
 0x292   :  { %19974 = vst [vmem:[#allocation60_spill] sm:$0xff] %v15703_v55  ;;  %v6661_v63 = vsub.f32 %v15566_v54, %v19976_v53  ;;  %11216 = vmatpush1.bf16.msra.mxu0 %v19977_v21  ;;  %19980 = vst [vmem:[#allocation66_spill] sm:$0xff] %v15726_v7  ;;  %12218 = vmatprep.subr.bf16.mxu1 %v15703_v55  ;;  %v19984_v42 = vand.u32 4294901760, %v15606_v39  ;;  %v15743_v20 = vand.u32 4294901760, %v3162_v27  ;;  %v19986_v35 = vand.u32 4294901760, %v15572_v48 }
 0x293   :  { %11218 = vmatprep.subr.bf16.mxu0 %v19981_v0  ;;  %v6780_v53 = vsub.f32 %v15568_v50, %v19982_v15  ;;  %v6787_v21 = vsub.f32 %v15570_v16, %v19983_v40  ;;  %v19987_v15 = vand.u32 4294901760, %v15575_v57  ;;  %v12223_v40 = vpack.c.bf16 %v6648_v44, %v6641_v59 }
 0x294   :  { %v15741_v8 = vsub.f32 %v15606_v39, %v19984_v42  ;;  %19985 = vst [vmem:[#allocation138_spill] sm:$0xff] %v15743_v20  ;;  %v6668_v52 = vsub.f32 %v15572_v48, %v19986_v35  ;;  %v6655_v55 = vand.u32 4294901760, %v6654_v11  ;;  %v6662_v56 = vand.u32 4294901760, %v6661_v63 }
 0x295   :  { %v6675_v0 = vsub.f32 %v15575_v57, %v19987_v15  ;;  %12220 = vmatpush3.bf16.msra.mxu1 %v15726_v7  ;;  %v12225_v39 = vpack.c.bf16 %v6774_v23, %v6767_v4  ;;  %v6781_v15 = vand.u32 4294901760, %v6780_v53  ;;  %v6788_v44 = vand.u32 4294901760, %v6787_v21 }
 0x296   :  { %11220 = vmatpush1.bf16.msra.mxu0 %v19988_v12  ;;  %12222 = vmatprep.subr.bf16.mxu1 %v12221_v22  ;;  %v19990_v59 = vand.u32 4294901760, %v15580_v33  ;;  %v19991_v11 = vand.u32 4294901760, %v15585_v38  ;;  %v6669_v23 = vand.u32 4294901760, %v6668_v52  ;;  %v12227_v22 = vpack.c.bf16 %v6662_v56, %v6655_v55 }
 0x297   :  { %11222 = vmatprep.subr.bf16.mxu0 %v19989_v32  ;;  %v6676_v4 = vand.u32 4294901760, %v6675_v0  ;;  %v19992_v53 = vand.u32 4294901760, %v15592_v5  ;;  %v19993_v32 = vld [vmem:[#allocation88_spill] sm:$0xff]  ;;  %v19994_v0 = vand.u32 4294901760, %v15594_v13  ;;  %v19996_v56 = vand.u32 4294901760, %v15602_v17 }
 0x298   :  { %v6794_v63 = vsub.f32 %v15580_v33, %v19990_v59  ;;  %v6801_v26 = vsub.f32 %v15585_v38, %v19991_v11  ;;  %6631 = vmatmul.mubr.f32.vlgmr.msra.gmra.mrb[28].mxu1 %v15743_v20  ;;  %v19995_v11 = vand.u32 4294901760, %v15596_v24  ;;  %v12229_v59 = vpack.c.bf16 %v6788_v44, %v6781_v15 }
 0x299   :  { %v6682_v21 = vsub.f32 %v15592_v5, %v19992_v53  ;;  %12224 = vmatpush3.bf16.msra.mxu1 %v12223_v40  ;;  %v6689_v52 = vsub.f32 %v15594_v13, %v19994_v0  ;;  %v6815_v55 = vsub.f32 %v15602_v17, %v19996_v56  ;;  %v19997_v53 = vand.u32 4294901760, %v15608_v34  ;;  %v19998_v40 = vld [vmem:[#allocation93_spill] sm:$0xff]  ;;  %6861 = vmatprep.mubr.f32.mxu1 %v15472_v9 }
 0x29a   :  { %11224 = vmatpush1.bf16.msra.mxu0 %v19993_v32  ;;  %v6808_v42 = vsub.f32 %v15596_v24, %v19995_v11  ;;  %12226 = vmatprep.subr.bf16.mxu1 %v12225_v39  ;;  %v6795_v27 = vand.u32 4294901760, %v6794_v63  ;;  %v6802_v20 = vand.u32 4294901760, %v6801_v26  ;;  %v19999_v0 = vand.u32 4294901760, %v15631_v43 }
 0x29b   :  { %v15785_v35 = vsub.f32 %v15608_v34, %v19997_v53  ;;  %11226 = vmatprep.subr.bf16.mxu0 %v19998_v40  ;;  %v12231_v11 = vpack.c.bf16 %v6676_v4, %v6669_v23  ;;  %v20000_v12 = vand.u32 4294901760, %v15614_v25  ;;  %v20001_v7 = vand.u32 4294901760, %v15616_v49 }
 0x29c   :  { %v15791_v32 = vsub.f32 %v15631_v43, %v19999_v0  ;;  %v20002_v39 = vand.u32 4294901760, %v15624_v19  ;;  %v20003_v15 = vand.u32 4294901760, %v15627_v6  ;;  %v6683_v23 = vand.u32 4294901760, %v6682_v21 }
 0x29d   :  { %v6696_v56 = vsub.f32 %v15614_v25, %v20000_v12  ;;  %v6703_v34 = vsub.f32 %v15616_v49, %v20001_v7  ;;  %12228 = vmatpush3.bf16.msra.mxu1 %v12227_v22  ;;  %v20004_v12 = vld [vmem:[#allocation99_spill] sm:$0xff]  ;;  %v6690_v4 = vand.u32 4294901760, %v6689_v52  ;;  %v6809_v7 = vand.u32 4294901760, %v6808_v42 }
 0x29e   :  { %v6822_v26 = vsub.f32 %v15624_v19, %v20002_v39  ;;  %v6829_v43 = vsub.f32 %v15627_v6, %v20003_v15  ;;  %11228 = vmatpush1.bf16.msra.mxu0 %v20004_v12  ;;  %v6816_v53 = vand.u32 4294901760, %v6815_v55  ;;  %v20005_v0 = vand.u32 4294901760, %v15633_v47  ;;  %12230 = vmatprep.subr.bf16.mxu1 %v12229_v59  ;;  %v20006_v39 = vld [vmem:[#allocation101_spill] sm:$0xff] }
 0x29f   :  { %11230 = vmatprep.subr.bf16.mxu0 %v20006_v39  ;;  %v12233_v15 = vpack.c.bf16 %v6802_v20, %v6795_v27  ;;  %v20007_v22 = vand.u32 4294901760, %v15643_v41  ;;  %v20008_v42 = vand.u32 4294901760, %v15645_v3  ;;  %v6704_v55 = vand.u32 4294901760, %v6703_v34  ;;  %v20012_v34 = vld [vmem:[#allocation110_spill] sm:$0xff] }
 0x2a0   :  { %v15812_v40 = vsub.f32 %v15633_v47, %v20005_v0  ;;  %v6697_v47 = vand.u32 4294901760, %v6696_v56  ;;  %v6823_v59 = vand.u32 4294901760, %v6822_v26  ;;  %v6830_v0 = vand.u32 4294901760, %v6829_v43 }
 0x2a1   :  { %v15820_v21 = vsub.f32 %v15643_v41, %v20007_v22  ;;  %v15825_v52 = vsub.f32 %v15645_v3, %v20008_v42  ;;  %v20009_v20 = vand.u32 4294901760, %v15641_v18  ;;  %v20010_v63 = vand.u32 4294901760, %v15660_v29  ;;  %12232 = vmatpush3.bf16.msra.mxu1 %v12231_v11  ;;  %v20011_v41 = vld [vmem:[#allocation146_spill] sm:$0xff] }
 0x2a2   :  { %11232 = vmatpush1.bf16.msra.mxu0 %v20011_v41  ;;  %v12235_v22 = vpack.c.bf16 %v6690_v4, %v6683_v23  ;;  %v12237_v39 = vpack.c.bf16 %v6816_v53, %v6809_v7  ;;  %v18690_v3 = vand.u32 4294901760, %v15741_v8  ;;  %12234 = vmatprep.subr.bf16.mxu1 %v12233_v15  ;;  %v20013_v26 = vand.u32 4294901760, %v15696_v10  ;;  %v20015_v15 = vld [vmem:[#allocation113_spill] sm:$0xff] }
 0x2a3   :  { %v6710_v27 = vsub.f32 %v15641_v18, %v20009_v20  ;;  %v6717_v44 = vsub.f32 %v15660_v29, %v20010_v63  ;;  %11234 = vmatprep.subr.bf16.mxu0 %v20012_v34  ;;  %v20014_v42 = vand.u32 4294901760, %v15708_v37  ;;  %v18691_v23 = vand.u32 4294901760, %v15812_v40 }
 0x2a4   :  { %v6836_v43 = vsub.f32 %v15696_v10, %v20013_v26  ;;  %v12239_v4 = vpack.c.bf16 %v6704_v55, %v6697_v47  ;;  %v12241_v7 = vpack.c.bf16 %v6830_v0, %v6823_v59  ;;  %v6724_v56 = vsub.f32 %v15741_v8, %v18690_v3  ;;  %v20017_v47 = vld [vmem:[#allocation149_spill] sm:$0xff] }
 0x2a5   :  { %v6843_v63 = vsub.f32 %v15708_v37, %v20014_v42  ;;  %v6711_v53 = vand.u32 4294901760, %v6710_v27  ;;  %v6718_v20 = vand.u32 4294901760, %v6717_v44  ;;  %12236 = vmatpush3.bf16.msra.mxu1 %v12235_v22  ;;  %v20016_v26 = vand.u32 4294901760, %v15785_v35 }
 0x2a6   :  { %11236 = vmatpush1.bf16.msra.mxu0 %v20015_v15  ;;  %12238 = vmatprep.subr.bf16.mxu1 %v12237_v39  ;;  %v6837_v55 = vand.u32 4294901760, %v6836_v43  ;;  %v20018_v59 = vand.u32 4294901760, %v15791_v32  ;;  %v6857_v27 = vsub.f32 %v15812_v40, %v18691_v23  ;;  %v6725_v3 = vand.u32 4294901760, %v6724_v56 }
 0x2a7   :  { %v6731_v34 = vsub.f32 %v15785_v35, %v20016_v26  ;;  %11238 = vmatprep.subr.bf16.mxu0 %v20017_v47  ;;  %v6844_v44 = vand.u32 4294901760, %v6843_v63  ;;  %v12243_v22 = vpack.c.bf16 %v6718_v20, %v6711_v53  ;;  %v20019_v26 = vld [vmem:[#allocation25_spill] sm:$0xff]  ;;  %v20020_v39 = vand.u32 4294901760, %v15820_v21  ;;  %v20024_v20 = vld [vmem:[#allocation42_spill] sm:$0xff] }
 0x2a8   :  { %v6850_v0 = vsub.f32 %v15791_v32, %v20018_v59  ;;  %v20021_v43 = vand.u32 4294901760, %v15825_v52  ;;  %v20022_v59 = vld [vmem:[#allocation31_spill] sm:$0xff]  ;;  %v6858_v23 = vand.u32 4294901760, %v6857_v27 }
 0x2a9   :  { %12240 = vmatpush3.bf16.msra.mxu1 %v12239_v4  ;;  %v6732_v42 = vand.u32 4294901760, %v6731_v34  ;;  %v6738_v11 = vsub.f32 %v15820_v21, %v20020_v39  ;;  %v12245_v47 = vpack.c.bf16 %v6844_v44, %v6837_v55  ;;  %v20023_v4 = vld [vmem:[#allocation153_spill] sm:$0xff]  ;;  %v12253_v55 = vpack.c.bf16 %v15541_v1, %v15539_v2  ;;  %v20027_v44 = vld [vmem:[#allocation103_spill] sm:$0xff] }
 0x2aa   :  { %11240 = vmatpush1.bf16.msra.mxu0 %v20019_v26  ;;  %v6745_v63 = vsub.f32 %v15825_v52, %v20021_v43  ;;  %12242 = vmatprep.subr.bf16.mxu1 %v12241_v7  ;;  %v6851_v15 = vand.u32 4294901760, %v6850_v0  ;;  %v20025_v26 = vld [vmem:[#allocation55_spill] sm:$0xff]  ;;  %v20026_v7 = vld [vmem:[#allocation73_spill] sm:$0xff]  ;;  %v12261_v0 = vpack.c.bf16 %v15570_v16, %v15568_v50 }
 0x2ab   :  { %11242 = vmatprep.subr.bf16.mxu0 %v20022_v59  ;;  %v12247_v53 = vpack.c.bf16 %v6732_v42, %v6725_v3  ;;  %v6739_v56 = vand.u32 4294901760, %v6738_v11  ;;  %v12255_v3 = vpack.c.bf16 %v15545_v61, %v15543_v51  ;;  %v20028_v11 = vld [vmem:[#allocation114_spill] sm:$0xff]  ;;  %v12259_v42 = vpack.c.bf16 %v15566_v54, %v15564_v62  ;;  %v20031_v27 = vld [vmem:[#allocation155_spill] sm:$0xff] }
 0x2ac   :  { %v6746_v34 = vand.u32 4294901760, %v6745_v63  ;;  %v12249_v39 = vpack.c.bf16 %v6858_v23, %v6851_v15  ;;  %v12257_v23 = vpack.c.bf16 %v15562_v46, %v15553_v58  ;;  %v20029_v15 = vld [vmem:[#allocation98_spill] sm:$0xff]  ;;  %v20032_v63 = vld [vmem:[#allocation157_spill] sm:$0xff] }
 0x2ad   :  { %12244 = vmatpush3.bf16.msra.mxu1 %v12243_v22  ;;  %v12263_v22 = vpack.c.bf16 %v15575_v57, %v15572_v48 }
 0x2ae   :  { %11244 = vmatpush1.bf16.msra.mxu0 %v20023_v4  ;;  %12246 = vmatprep.subr.bf16.mxu1 %v12245_v47  ;;  %v12251_v43 = vpack.c.bf16 %v6746_v34, %v6739_v56  ;;  %v20030_v47 = vld [vmem:[#allocation79_spill] sm:$0xff]  ;;  %v12267_v34 = vpack.c.bf16 %v15594_v13, %v15592_v5 }
 0x2af   :  { %11246 = vmatprep.subr.bf16.mxu0 %v20024_v20  ;;  %v20033_v56 = vld [vmem:[#allocation159_spill] sm:$0xff] }
 0x2b1   :  { %12248 = vmatpush3.bf16.msra.mxu1 %v12247_v53  ;;  %v12265_v53 = vpack.c.bf16 %v15585_v38, %v15580_v33 }
 0x2b2   :  { %11248 = vmatpush1.bf16.msra.mxu0 %v20025_v26  ;;  %12250 = vmatprep.subr.bf16.mxu1 %v12249_v39  ;;  %v20034_v39 = vld [vmem:[#allocation163_spill] sm:$0xff] }
 0x2b3   :  { %11250 = vmatprep.subr.bf16.mxu0 %v20026_v7 }
 0x2b5   :  { %12252 = vmatpush3.bf16.msra.mxu1 %v12251_v43  ;;  %v12269_v43 = vpack.c.bf16 %v15602_v17, %v15596_v24 }
 0x2b6   :  { %11252 = vmatpush1.bf16.msra.mxu0 %v20027_v44  ;;  %12254 = vmatprep.subr.bf16.mxu1 %v12253_v55  ;;  %v20035_v55 = vand.u32 4294901760, %v19830_v14  ;;  %v20040_v14 = vand.u32 4294901760, %v19845_v28  ;;  %v12277_v28 = vpack.c.bf16 %v15708_v37, %v15696_v10 }
 0x2b7   :  { %11254 = vmatprep.subr.bf16.mxu0 %v20028_v11 }
 0x2b8   :  { %6863 = vmatmul.mubr.f32.vlgmr.msra.gmra.mrb[30].mxu1 %v15600_v60 }
 0x2b9   :  { %12256 = vmatpush3.bf16.msra.mxu1 %v12255_v3  ;;  %6998 = vmatprep.mubr.f32.mxu1 %v15483_v30  ;;  %v20036_v3 = vand.u32 4294901760, %v19829_v36  ;;  %v20041_v36 = vld [vmem:[#allocation118_spill] sm:$0xff] }
 0x2ba   :  { %11256 = vmatpush1.bf16.msra.mxu0 %v20029_v15  ;;  %12258 = vmatprep.subr.bf16.mxu1 %v12257_v23 }
 0x2bb   :  { %11258 = vmatprep.subr.bf16.mxu0 %v20030_v47  ;;  %v11269_v23 = vpack.c.bf16 %v20036_v3, %v20035_v55  ;;  %v20042_v55 = vand.u32 4294901760, %v20041_v36  ;;  %v20043_v3 = vld [vmem:[#allocation76_spill] sm:$0xff]  ;;  %v20073_v47 = vld [vmem:[#allocation74_spill] sm:$0xff] }
 0x2bd   :  { %12260 = vmatpush3.bf16.msra.mxu1 %v12259_v42  ;;  %v20037_v42 = vld [vmem:[#allocation28_spill] sm:$0xff] }
 0x2be   :  { %11260 = vmatpush1.bf16.msra.mxu0 %v20031_v27  ;;  %12262 = vmatprep.subr.bf16.mxu1 %v12261_v0  ;;  %v12271_v0 = vpack.c.bf16 %v15616_v49, %v15614_v25 }
 0x2bf   :  { %11262 = vmatprep.subr.bf16.mxu0 %v20032_v63  ;;  %v20063_v63 = vld [vmem:[#allocation143_spill] sm:$0xff] }
 0x2c1   :  { %12264 = vmatpush3.bf16.msra.mxu1 %v12263_v22  ;;  %v20038_v22 = vand.u32 4294901760, %v19838_v31  ;;  %v12275_v31 = vpack.c.bf16 %v15660_v29, %v15641_v18 }
 0x2c2   :  { %11264 = vmatpush1.bf16.msra.mxu0 %v20033_v56  ;;  %12266 = vmatprep.subr.bf16.mxu1 %v12265_v53  ;;  %v20039_v53 = vand.u32 4294901760, %v19837_v45 }
 0x2c3   :  { %11266 = vmatprep.subr.bf16.mxu0 %v20034_v39  ;;  %v12273_v39 = vpack.c.bf16 %v15627_v6, %v15624_v19 }
 0x2c4   :  { %v11271_v30 = vpack.c.bf16 %v20039_v53, %v20038_v22  ;;  %v20046_v22 = vld [vmem:[#allocation53_spill] sm:$0xff]  ;;  %v20048_v53 = vld [vmem:[#allocation63_spill] sm:$0xff] }
 0x2c5   :  { %12268 = vmatpush3.bf16.msra.mxu1 %v12267_v34  ;;  %v11273_v34 = vpack.c.bf16 %v20042_v55, %v20040_v14  ;;  %v20049_v36 = vand.u32 4294901760, %v20048_v53  ;;  %v20050_v14 = vld [vmem:[#allocation133_spill] sm:$0xff] }
 0x2c6   :  { %11268 = vmatpush1.bf16.msra.mxu0 %v20037_v42  ;;  %12270 = vmatprep.subr.bf16.mxu1 %v12269_v43  ;;  %v20044_v42 = vld [vmem:[#allocation52_spill] sm:$0xff]  ;;  %v20047_v43 = vand.u32 4294901760, %v20046_v22  ;;  %v20051_v55 = vand.u32 4294901760, %v20050_v14  ;;  %v20057_v53 = vld [vmem:[#allocation77_spill] sm:$0xff] }
 0x2c7   :  { %11270 = vmatprep.subr.bf16.mxu0 %v11269_v23  ;;  %v20045_v45 = vand.u32 4294901760, %v20044_v42  ;;  %v20053_v42 = vld [vmem:[#allocation64_spill] sm:$0xff]  ;;  %v20058_v14 = vand.u32 4294901760, %v20057_v53 }
 0x2c8   :  { %v20054_v22 = vand.u32 4294901760, %v20053_v42 }
 0x2c9   :  { %2617 = vmatmul.mubr.f32.vlgmr.msra.gmra.mrb[0].mxu0 %v20043_v3  ;;  %12272 = vmatpush3.bf16.msra.mxu1 %v12271_v0  ;;  %v11275_v23 = vpack.c.bf16 %v20047_v43, %v20045_v45  ;;  %v11277_v3 = vpack.c.bf16 %v20051_v55, %v20049_v36  ;;  %v20052_v0 = vld [vmem:[#allocation46_spill] sm:$0xff]  ;;  %v20055_v45 = vld [vmem:[#allocation69_spill] sm:$0xff]  ;;  %v12281_v43 = vpack.c.bf16 %v15812_v40, %v15791_v32 }
 0x2ca   :  { %11272 = vmatpush1.bf16.msra.mxu0 %v11271_v30  ;;  %12274 = vmatprep.subr.bf16.mxu1 %v12273_v39  ;;  %v12279_v30 = vpack.c.bf16 %v15785_v35, %v15741_v8  ;;  %v20056_v39 = vand.u32 4294901760, %v20055_v45  ;;  %v20059_v36 = vld [vmem:[#allocation142_spill] sm:$0xff]  ;;  %v20064_v45 = vand.u32 4294901760, %v20063_v63 }
 0x2cb   :  { %11274 = vmatprep.subr.bf16.mxu0 %v11273_v34  ;;  %2880 = vmatprep.mubr.f32.mxu0 %v20052_v0  ;;  %v20060_v55 = vand.u32 4294901760, %v20059_v36 }
 0x2cc   :  { %v11279_v34 = vpack.c.bf16 %v20056_v39, %v20054_v22  ;;  %v20067_v39 = vld [vmem:[#allocation86_spill] sm:$0xff] }
 0x2cd   :  { %12276 = vmatpush3.bf16.msra.mxu1 %v12275_v31  ;;  %v11281_v56 = vpack.c.bf16 %v20060_v55, %v20058_v14  ;;  %v12283_v31 = vpack.c.bf16 %v15825_v52, %v15820_v21  ;;  %v20068_v27 = vand.u32 4294901760, %v20067_v39  ;;  %v20069_v14 = vld [vmem:[#allocation89_spill] sm:$0xff] }
 0x2ce   :  { %11276 = vmatpush1.bf16.msra.mxu0 %v11275_v23  ;;  %12278 = vmatprep.subr.bf16.mxu1 %v12277_v28  ;;  %v20061_v23 = vld [vmem:[#allocation80_spill] sm:$0xff]  ;;  %v20065_v28 = vld [vmem:[#allocation83_spill] sm:$0xff] }
 0x2cf   :  { %11278 = vmatprep.subr.bf16.mxu0 %v11277_v3  ;;  %v20062_v42 = vand.u32 4294901760, %v20061_v23  ;;  %v20066_v3 = vand.u32 4294901760, %v20065_v28  ;;  %v20074_v23 = vld [vmem:[#allocation94_spill] sm:$0xff]  ;;  %v20079_v28 = vld [vmem:[#allocation75_spill] sm:$0xff] }
 0x2d0   :  { %v20075_v63 = vand.u32 4294901760, %v20074_v23 }
 0x2d1   :  { %12280 = vmatpush3.bf16.msra.mxu1 %v12279_v30  ;;  %v11283_v22 = vpack.c.bf16 %v20064_v45, %v20062_v42  ;;  %v11285_v53 = vpack.c.bf16 %v20068_v27, %v20066_v3  ;;  %v20070_v30 = vand.u32 4294901760, %v20069_v14  ;;  %v20076_v42 = vld [vmem:[#allocation95_spill] sm:$0xff]  ;;  %v20078_v45 = vld [vmem:[#allocation128_spill] sm:$0xff]  ;;  %v20080_v27 = vld [vmem:[#allocation145_spill] sm:$0xff] }
 0x2d2   :  { %11280 = vmatpush1.bf16.msra.mxu0 %v11279_v34  ;;  %12282 = vmatprep.subr.bf16.mxu1 %v12281_v43  ;;  %v20071_v34 = vld [vmem:[#allocation92_spill] sm:$0xff]  ;;  %v20077_v43 = vand.u32 4294901760, %v20076_v42  ;;  %v20089_v42 = vld [vmem:[#allocation59_spill] sm:$0xff] }
 0x2d3   :  { %11282 = vmatprep.subr.bf16.mxu0 %v11281_v56  ;;  %v20072_v36 = vand.u32 4294901760, %v20071_v34  ;;  %v20084_v14 = vld [vmem:[#allocation48_spill] sm:$0xff]  ;;  %v20087_v34 = vld [vmem:[#allocation105_spill] sm:$0xff] }
 0x2d4   :  { %v11289_v56 = vpack.c.bf16 %v20077_v43, %v20075_v63  ;;  %v20090_v63 = vld [vmem:[#allocation84_spill] sm:$0xff]  ;;  %v20091_v43 = vld [vmem:[#allocation106_spill] sm:$0xff] }
 0x2d5   :  { %12284 = vmatpush3.bf16.msra.mxu1 %v12283_v31  ;;  %v11287_v55 = vpack.c.bf16 %v20072_v36, %v20070_v30  ;;  %v20081_v31 = vand.u32 4294901760, %v20080_v27  ;;  %v20085_v30 = vld [vmem:[#allocation104_spill] sm:$0xff]  ;;  %v20088_v36 = vand.u32 4294901760, %v20087_v34 }
 0x2d6   :  { %11284 = vmatpush1.bf16.msra.mxu0 %v11283_v22  ;;  %12286 = vmatprep.subr.bf16.mxu1 %v20073_v47  ;;  %v20082_v22 = vld [vmem:[#allocation100_spill] sm:$0xff] }
 0x2d7   :  { %11286 = vmatprep.subr.bf16.mxu0 %v11285_v53  ;;  %v20083_v3 = vand.u32 4294901760, %v20082_v22  ;;  %v20086_v53 = vand.u32 4294901760, %v20085_v30  ;;  %v20095_v22 = vld [vmem:[#allocation126_spill] sm:$0xff]  ;;  %v20100_v34 = vld [vmem:[#allocation116_spill] sm:$0xff] }
 0x2d8   :  { %7001 = vmatmul.mubr.f32.vlgmr.msra.gmra.mrb[32].mxu1 %v20078_v45  ;;  %v20093_v45 = vld [vmem:[#allocation107_spill] sm:$0xff] }
 0x2d9   :  { %12288 = vmatpush3.bf16.msra.mxu1 %v20079_v28  ;;  %v11291_v39 = vpack.c.bf16 %v20083_v3, %v20081_v31  ;;  %v11293_v23 = vpack.c.bf16 %v20088_v36, %v20086_v53  ;;  %7105 = vmatprep.mubr.f32.mxu1 %v20089_v42  ;;  %v20094_v27 = vand.u32 4294901760, %v20093_v45  ;;  %v20096_v31 = vld [vmem:[#allocation111_spill] sm:$0xff]  ;;  %v20098_v3 = vld [vmem:[#allocation112_spill] sm:$0xff] }
 0x2da   :  { %11288 = vmatpush1.bf16.msra.mxu0 %v11287_v55  ;;  %12290 = vmatprep.subr.bf16.mxu1 %v20084_v14  ;;  %v20092_v55 = vand.u32 4294901760, %v20091_v43  ;;  %v20099_v30 = vand.u32 4294901760, %v20098_v3  ;;  %v20101_v53 = vld [vmem:[#allocation147_spill] sm:$0xff]  ;;  %v20103_v42 = vld [vmem:[#allocation148_spill] sm:$0xff]  ;;  %v20105_v43 = vld [vmem:[#allocation117_spill] sm:$0xff] }
 0x2db   :  { %11290 = vmatprep.subr.bf16.mxu0 %v11289_v56  ;;  %v20097_v56 = vand.u32 4294901760, %v20096_v31  ;;  %v20102_v36 = vand.u32 4294901760, %v20101_v53  ;;  %v20106_v45 = vld [vmem:[#allocation23_spill] sm:$0xff]  ;;  %v20110_v31 = vld [vmem:[#allocation20_spill] sm:$0xff] }
 0x2dc   :  { %v11295_v15 = vpack.c.bf16 %v20094_v27, %v20092_v55  ;;  %v20107_v55 = vand.u32 4294901760, %v20106_v45  ;;  %v20108_v27 = vld [vmem:[#allocation150_spill] sm:$0xff]  ;;  %v20115_v53 = vld [vmem:[#allocation24_spill] sm:$0xff] }
 0x2dd   :  { %12292 = vmatpush3.bf16.msra.mxu1 %v20090_v63  ;;  %v11297_v11 = vpack.c.bf16 %v20099_v30, %v20097_v56  ;;  %v20111_v56 = vld [vmem:[#allocation30_spill] sm:$0xff]  ;;  %v20113_v30 = vld [vmem:[#allocation151_spill] sm:$0xff]  ;;  %v20120_v45 = vld [vmem:[#allocation40_spill] sm:$0xff] }
 0x2de   :  { %11292 = vmatpush1.bf16.msra.mxu0 %v11291_v39  ;;  %12294 = vmatprep.subr.bf16.mxu1 %v20095_v22  ;;  %v20104_v39 = vand.u32 4294901760, %v20103_v42  ;;  %v20112_v3 = vand.u32 4294901760, %v20111_v56  ;;  %v20116_v42 = vld [vmem:[#allocation152_spill] sm:$0xff]  ;;  %v20125_v56 = vld [vmem:[#allocation45_spill] sm:$0xff] }
 0x2df   :  { %11294 = vmatprep.subr.bf16.mxu0 %v11293_v23  ;;  %v20109_v23 = vand.u32 4294901760, %v20108_v27 }
 0x2e0   :  { %v11299_v44 = vpack.c.bf16 %v20104_v39, %v20102_v36  ;;  %v20117_v36 = vand.u32 4294901760, %v20116_v42  ;;  %v20118_v39 = vld [vmem:[#allocation36_spill] sm:$0xff]  ;;  %v20130_v42 = vld [vmem:[#allocation49_spill] sm:$0xff] }
 0x2e1   :  { %12296 = vmatpush3.bf16.msra.mxu1 %v20100_v34  ;;  %v11301_v7 = vpack.c.bf16 %v20109_v23, %v20107_v55  ;;  %v20121_v55 = vld [vmem:[#allocation37_spill] sm:$0xff]  ;;  %v20123_v23 = vld [vmem:[#allocation154_spill] sm:$0xff] }
 0x2e2   :  { %11296 = vmatpush1.bf16.msra.mxu0 %v11295_v15  ;;  %12298 = vmatprep.subr.bf16.mxu1 %v20105_v43  ;;  %v20114_v15 = vand.u32 4294901760, %v20113_v30  ;;  %v20122_v27 = vand.u32 4294901760, %v20121_v55  ;;  %v20135_v55 = vld [vmem:[#allocation140_spill] sm:$0xff] }
 0x2e3   :  { %11298 = vmatprep.subr.bf16.mxu0 %v11297_v11  ;;  %v20119_v11 = vand.u32 4294901760, %v20118_v39 }
 0x2e4   :  { %v11303_v26 = vpack.c.bf16 %v20114_v15, %v20112_v3  ;;  %v20126_v3 = vld [vmem:[#allocation43_spill] sm:$0xff]  ;;  %v20128_v15 = vld [vmem:[#allocation54_spill] sm:$0xff] }
 0x2e5   :  { %12300 = vmatpush3.bf16.msra.mxu1 %v20110_v31  ;;  %v11305_v20 = vpack.c.bf16 %v20119_v11, %v20117_v36  ;;  %v20127_v30 = vand.u32 4294901760, %v20126_v3  ;;  %v20131_v36 = vld [vmem:[#allocation61_spill] sm:$0xff]  ;;  %v20133_v11 = vld [vmem:[#allocation72_spill] sm:$0xff] }
 0x2e6   :  { %11300 = vmatpush1.bf16.msra.mxu0 %v11299_v44  ;;  %12302 = vmatprep.subr.bf16.mxu1 %v20115_v53  ;;  %v20124_v44 = vand.u32 4294901760, %v20123_v23  ;;  %v20132_v39 = vand.u32 4294901760, %v20131_v36  ;;  %v20140_v3 = vld [vmem:[#allocation129_spill] sm:$0xff]  ;;  %v20145_v36 = vld [vmem:[#allocation60_spill] sm:$0xff] }
 0x2e7   :  { %11302 = vmatprep.subr.bf16.mxu0 %v11301_v7  ;;  %v20129_v7 = vand.u32 4294901760, %v20128_v15 }
 0x2e8   :  { %v11307_v4 = vpack.c.bf16 %v20124_v44, %v20122_v27  ;;  %v20136_v27 = vld [vmem:[#allocation97_spill] sm:$0xff]  ;;  %v20138_v44 = vld [vmem:[#allocation102_spill] sm:$0xff] }
 0x2e9   :  { %12304 = vmatpush3.bf16.msra.mxu1 %v20120_v45  ;;  %v11309_v59 = vpack.c.bf16 %v20129_v7, %v20127_v30  ;;  %v20137_v23 = vand.u32 4294901760, %v20136_v27  ;;  %v20141_v30 = vld [vmem:[#allocation108_spill] sm:$0xff]  ;;  %v20143_v7 = vld [vmem:[#allocation109_spill] sm:$0xff] }
 0x2ea   :  { %11304 = vmatpush1.bf16.msra.mxu0 %v11303_v26  ;;  %12306 = vmatprep.subr.bf16.mxu1 %v20125_v56  ;;  %v20134_v26 = vand.u32 4294901760, %v20133_v11  ;;  %v20142_v15 = vand.u32 4294901760, %v20141_v30  ;;  %v20154_v30 = vand.u32 4294901760, %v15545_v61  ;;  %v20166_v61 = vand.u32 4294901760, %v15564_v62 }
 0x2eb   :  { %11306 = vmatprep.subr.bf16.mxu0 %v11305_v20  ;;  %v20139_v20 = vand.u32 4294901760, %v20138_v44  ;;  %v20150_v44 = vld [vmem:[#allocation144_spill] sm:$0xff] }
 0x2ec   :  { %v11311_v45 = vpack.c.bf16 %v20134_v26, %v20132_v39  ;;  %v20146_v39 = vand.u32 4294901760, %v15539_v2  ;;  %v20148_v26 = vld [vmem:[#allocation115_spill] sm:$0xff] }
 0x2ed   :  { %12308 = vmatpush3.bf16.msra.mxu1 %v20130_v42  ;;  %v11313_v56 = vpack.c.bf16 %v20139_v20, %v20137_v23  ;;  %v20149_v27 = vand.u32 4294901760, %v20148_v26  ;;  %v20151_v23 = vand.u32 4294901760, %v20150_v44  ;;  %v20161_v26 = vld [vmem:[#allocation78_spill] sm:$0xff] }
 0x2ee   :  { %11308 = vmatpush1.bf16.msra.mxu0 %v11307_v4  ;;  %12310 = vmatprep.subr.bf16.mxu1 %v20135_v55  ;;  %v20144_v4 = vand.u32 4294901760, %v20143_v7  ;;  %v20155_v7 = vld [vmem:[#allocation70_spill] sm:$0xff] }
 0x2ef   :  { %11310 = vmatprep.subr.bf16.mxu0 %v11309_v59  ;;  %v20147_v59 = vand.u32 4294901760, %v15541_v1  ;;  %v11317_v20 = vpack.c.bf16 %v20151_v23, %v20149_v27  ;;  %v20159_v1 = vand.u32 4294901760, %v15553_v58  ;;  %v20162_v27 = vand.u32 4294901760, %v20161_v26  ;;  %v20165_v23 = vld [vmem:[#allocation137_spill] sm:$0xff]  ;;  %v20170_v58 = vld [vmem:[#allocation132_spill] sm:$0xff] }
 0x2f0   :  { %v11315_v42 = vpack.c.bf16 %v20144_v4, %v20142_v15  ;;  %v20157_v4 = vld [vmem:[#allocation71_spill] sm:$0xff]  ;;  %v20179_v26 = vand.u32 4294901760, %v15575_v57  ;;  %v20190_v57 = vand.u32 4294901760, %v15592_v5  ;;  %v20199_v5 = vand.u32 4294901760, %v15616_v49  ;;  %v20207_v49 = vld [vmem:[#allocation50_spill] sm:$0xff] }
 0x2f1   :  { %12312 = vmatpush3.bf16.msra.mxu1 %v20140_v3  ;;  %v12317_v11 = vpack.c.bf16 %v20147_v59, %v20146_v39  ;;  %v20152_v3 = vld [vmem:[#allocation66_spill] sm:$0xff]  ;;  %v20158_v2 = vand.u32 4294901760, %v20157_v4  ;;  %v20160_v39 = vand.u32 4294901760, %v15562_v46  ;;  %v20173_v4 = vand.u32 4294901760, %v15570_v16 }
 0x2f2   :  { %11312 = vmatpush1.bf16.msra.mxu0 %v11311_v45  ;;  %12314 = vmatprep.subr.bf16.mxu1 %v20145_v36  ;;  %v20153_v45 = vand.u32 4294901760, %v15543_v51 }
 0x2f3   :  { %11314 = vmatprep.subr.bf16.mxu0 %v11313_v56  ;;  %v20156_v56 = vand.u32 4294901760, %v20155_v7  ;;  %v12321_v59 = vpack.c.bf16 %v20160_v39, %v20159_v1  ;;  %v20171_v7 = vand.u32 4294901760, %v20170_v58  ;;  %v20174_v1 = vld [vmem:[#allocation156_spill] sm:$0xff] }
 0x2f4   :  { %v12319_v15 = vpack.c.bf16 %v20154_v30, %v20153_v45  ;;  %v20167_v45 = vand.u32 4294901760, %v15566_v54  ;;  %v20178_v54 = vand.u32 4294901760, %v15572_v48 }
 0x2f5   :  { %12316 = vmatpush3.bf16.msra.mxu1 %v20152_v3  ;;  %v11319_v36 = vpack.c.bf16 %v20158_v2, %v20156_v56  ;;  %v20172_v56 = vand.u32 4294901760, %v15568_v50  ;;  %v20182_v50 = vld [vmem:[#allocation161_spill] sm:$0xff] }
 0x2f6   :  { %11316 = vmatpush1.bf16.msra.mxu0 %v11315_v42  ;;  %12318 = vmatprep.subr.bf16.mxu1 %v12317_v11  ;;  %v20163_v42 = vld [vmem:[#allocation91_spill] sm:$0xff]  ;;  %v12323_v11 = vpack.c.bf16 %v20167_v45, %v20166_v61  ;;  %v20185_v61 = vand.u32 4294901760, %v15585_v38  ;;  %v20196_v38 = vand.u32 4294901760, %v15596_v24 }
 0x2f7   :  { %11318 = vmatprep.subr.bf16.mxu0 %v11317_v20  ;;  %v20164_v44 = vand.u32 4294901760, %v20163_v42  ;;  %v20168_v20 = vld [vmem:[#allocation131_spill] sm:$0xff]  ;;  %v12325_v2 = vpack.c.bf16 %v20173_v4, %v20172_v56  ;;  %v20192_v56 = vld [vmem:[#allocation165_spill] sm:$0xff] }
 0x2f8   :  { %7109 = vmatmul.mubr.f32.vlgmr.msra.gmra.mrb[34].mxu1 %v20165_v23  ;;  %v20169_v30 = vand.u32 4294901760, %v20168_v20  ;;  %v20186_v20 = vld [vmem:[#allocation162_spill] sm:$0xff]  ;;  %v20193_v4 = vand.u32 4294901760, %v20192_v56  ;;  %v20204_v24 = vld [vmem:[#allocation35_spill] sm:$0xff] }
 0x2f9   :  { %v11321_v51 = vpack.c.bf16 %v20164_v44, %v20162_v27  ;;  %12320 = vmatpush3.bf16.msra.mxu1 %v12319_v15  ;;  %v20175_v15 = vand.u32 4294901760, %v20174_v1  ;;  %7275 = vmatprep.mubr.f32.mxu1 %v15472_v9  ;;  %v20180_v27 = vld [vmem:[#allocation160_spill] sm:$0xff]  ;;  %v20183_v44 = vand.u32 4294901760, %v20182_v50  ;;  %v20208_v50 = vand.u32 4294901760, %v15696_v10  ;;  %v20234_v56 = vld [vmem:[#allocation42_spill] sm:$0xff] }
 0x2fa   :  { %11320 = vmatpush1.bf16.msra.mxu0 %v11319_v36  ;;  %v11323_v46 = vpack.c.bf16 %v20171_v7, %v20169_v30  ;;  %12322 = vmatprep.subr.bf16.mxu1 %v12321_v59  ;;  %v20176_v36 = vld [vmem:[#allocation158_spill] sm:$0xff]  ;;  %v12327_v59 = vpack.c.bf16 %v20179_v26, %v20178_v54  ;;  %v20181_v42 = vand.u32 4294901760, %v20180_v27  ;;  %v20188_v30 = vld [vmem:[#allocation164_spill] sm:$0xff]  ;;  %v20191_v7 = vand.u32 4294901760, %v15594_v13 }
 0x2fb   :  { %11322 = vmatprep.subr.bf16.mxu0 %v11321_v51  ;;  %v20177_v39 = vand.u32 4294901760, %v20176_v36  ;;  %v20184_v51 = vand.u32 4294901760, %v15580_v33  ;;  %v20189_v58 = vand.u32 4294901760, %v20188_v30  ;;  %v20201_v54 = vand.u32 4294901760, %v15624_v19  ;;  %v20203_v27 = vld [vmem:[#allocation62_spill] sm:$0xff]  ;;  %v20226_v30 = vld [vmem:[#allocation113_spill] sm:$0xff] }
 0x2fc   :  { %v11327_v16 = vpack.c.bf16 %v20183_v44, %v20181_v42  ;;  %v20202_v26 = vand.u32 4294901760, %v15627_v6  ;;  %v20209_v19 = vand.u32 4294901760, %v15708_v37  ;;  %v20210_v6 = vld [vmem:[#allocation127_spill] sm:$0xff]  ;;  %v20215_v10 = vand.u32 4294901760, %v15812_v40  ;;  %v20216_v37 = vld [vmem:[#allocation136_spill] sm:$0xff] }
 0x2fd   :  { %v11325_v62 = vpack.c.bf16 %v20177_v39, %v20175_v15  ;;  %12324 = vmatpush3.bf16.msra.mxu1 %v12323_v11  ;;  %v12329_v45 = vpack.c.bf16 %v20185_v61, %v20184_v51  ;;  %v20187_v11 = vand.u32 4294901760, %v20186_v20  ;;  %v20197_v15 = vand.u32 4294901760, %v15602_v17  ;;  %v20222_v40 = vld [vmem:[#allocation88_spill] sm:$0xff] }
 0x2fe   :  { %11324 = vmatpush1.bf16.msra.mxu0 %v11323_v46  ;;  %12326 = vmatprep.subr.bf16.mxu1 %v12325_v2  ;;  %v12331_v46 = vpack.c.bf16 %v20191_v7, %v20190_v57  ;;  %v20194_v2 = vld [vmem:[#allocation166_spill] sm:$0xff]  ;;  %v20198_v39 = vand.u32 4294901760, %v15614_v25  ;;  %v20205_v17 = vand.u32 4294901760, %v15641_v18  ;;  %v20206_v25 = vand.u32 4294901760, %v15660_v29  ;;  %v20231_v57 = vld [vmem:[#allocation31_spill] sm:$0xff]  ;;  %v20233_v7 = vld [vmem:[#allocation153_spill] sm:$0xff] }
 0x2ff   :  { %11326 = vmatprep.subr.bf16.mxu0 %v11325_v62  ;;  %v11329_v48 = vpack.c.bf16 %v20189_v58, %v20187_v11  ;;  %v20195_v1 = vand.u32 4294901760, %v20194_v2  ;;  %v12333_v36 = vpack.c.bf16 %v20197_v15, %v20196_v38  ;;  %v20200_v62 = vld [vmem:[#allocation32_spill] sm:$0xff]  ;;  %v12341_v44 = vpack.c.bf16 %v20209_v19, %v20208_v50  ;;  %v20213_v29 = vld [vmem:[#allocation130_spill] sm:$0xff]  ;;  %v20236_v2 = vld [vmem:[#allocation55_spill] sm:$0xff] }
 0x300   :  { %v12335_v13 = vpack.c.bf16 %v20199_v5, %v20198_v39  ;;  %v12339_v42 = vpack.c.bf16 %v20206_v25, %v20205_v17  ;;  %v20212_v18 = vand.u32 4294901760, %v15785_v35  ;;  %v20214_v61 = vand.u32 4294901760, %v15791_v32  ;;  %v20220_v35 = vld [vmem:[#allocation81_spill] sm:$0xff]  ;;  %v20221_v32 = vld [vmem:[#allocation82_spill] sm:$0xff]  ;;  %v20228_v58 = vld [vmem:[#allocation40_spill] sm:$0xff] }
 0x301   :  { %12328 = vmatpush3.bf16.msra.mxu1 %v12327_v59  ;;  %v11331_v33 = vpack.c.bf16 %v20195_v1, %v20193_v4  ;;  %v12337_v59 = vpack.c.bf16 %v20202_v26, %v20201_v54  ;;  %v20218_v20 = vand.u32 4294901760, %v15825_v52  ;;  %v20224_v52 = vld [vmem:[#allocation101_spill] sm:$0xff]  ;;  %v20237_v38 = vld [vmem:[#allocation60_spill] sm:$0xff]  ;;  %v20241_v54 = vld [vmem:[#allocation98_spill] sm:$0xff] }
 0x302   :  { %11328 = vmatpush1.bf16.msra.mxu0 %v11327_v16  ;;  %12330 = vmatprep.subr.bf16.mxu1 %v12329_v45  ;;  %v20211_v16 = vand.u32 4294901760, %v15741_v8  ;;  %v12345_v45 = vpack.c.bf16 %v20215_v10, %v20214_v61  ;;  %v20219_v8 = vld [vmem:[#allocation139_spill] sm:$0xff]  ;;  %v20235_v4 = vld [vmem:[#allocation129_spill] sm:$0xff]  ;;  %v20244_v25 = vld [vmem:[#allocation124_spill] sm:$0xff] }
 0x303   :  { %11330 = vmatprep.subr.bf16.mxu0 %v11329_v48  ;;  %v20230_v48 = vld [vmem:[#allocation45_spill] sm:$0xff] }
 0x304   :  { %v12343_v51 = vpack.c.bf16 %v20212_v18, %v20211_v16  ;;  %v20238_v15 = vld [vmem:[#allocation73_spill] sm:$0xff]  ;;  %v16213_v16 = vld [vmem:[#allocation5 + $0x638] sm:$0xff]  ;;  %v16215_v18 = vld [vmem:[#allocation5 + $0x650] sm:$0xff] }
 0x305   :  { %12332 = vmatpush3.bf16.msra.mxu1 %v12331_v46  ;;  %v16199_v17 = vld [vmem:[#allocation5 + $0x620] sm:$0xff] }
 0x306   :  { %11332 = vmatpush1.bf16.msra.mxu0 %v11331_v33  ;;  %12334 = vmatprep.subr.bf16.mxu1 %v12333_v36  ;;  %v3029_v19 = vand.u32 4294901760, %v16199_v17 }
 0x307   :  { %11334 = vmatprep.subr.bf16.mxu0 %v20200_v62  ;;  %v20240_v62 = vld [vmem:[#allocation114_spill] sm:$0xff] }
 0x309   :  { %2882 = vmatmul.mubr.f32.vlgmr.msra.gmra.mrb[0].mxu0 %v20203_v27  ;;  %12336 = vmatpush3.bf16.msra.mxu1 %v12335_v13  ;;  %v18710_v13 = vmov 0.0|0.0  }
 0x30a   :  { %11336 = vmatpush1.bf16.msra.mxu0 %v20204_v24  ;;  %12338 = vmatprep.subr.bf16.mxu1 %v12337_v59  ;;  %v20243_v59 = vld [vmem:[#allocation79_spill] sm:$0xff]  ;;  %v16197_v24 = vld [vmem:[#allocation5 + $0x608] sm:$0xff] }
 0x30b   :  { %11338 = vmatprep.subr.bf16.mxu0 %v20207_v49  ;;  %3017 = vmatprep.mubr.f32.mxu0 %v20052_v0  ;;  %v20217_v0 = vand.u32 4294901760, %v15820_v21  ;;  %v20223_v21 = vld [vmem:[#allocation93_spill] sm:$0xff]  ;;  %v3025_v50 = vand.u32 4294901760, %v16197_v24 }
 0x30c   :  { %v20246_v49 = vld [vmem:[#allocation157_spill] sm:$0xff] }
 0x30d   :  { %12340 = vmatpush3.bf16.msra.mxu1 %v12339_v42  ;;  %v12347_v11 = vpack.c.bf16 %v20218_v20, %v20217_v0  ;;  %v20245_v42 = vld [vmem:[#allocation155_spill] sm:$0xff]  ;;  %v18712_v0 = vand.u32 4294901760, %v16213_v16  ;;  %v18709_v20 = vand.u32 4294901760, %v16215_v18 }
 0x30e   :  { %11340 = vmatpush1.bf16.msra.mxu0 %v20210_v6  ;;  %12342 = vmatprep.subr.bf16.mxu1 %v12341_v44  ;;  %v16208_v44 = vld [vmem:[#allocation5 + $0x600] sm:$0xff]  ;;  %v16210_v6 = vld [vmem:[#allocation5 + $0x618] sm:$0xff] }
 0x30f   :  { %11342 = vmatprep.subr.bf16.mxu0 %v20213_v29  ;;  %v18714_v61 = vand.u32 4294901760, %v16208_v44  ;;  %v18713_v10 = vand.u32 4294901760, %v16210_v6 }
 0x311   :  { %12344 = vmatpush3.bf16.msra.mxu1 %v12343_v51  ;;  %v20247_v51 = vld [vmem:[#allocation159_spill] sm:$0xff] }
 0x312   :  { %11344 = vmatpush1.bf16.msra.mxu0 %v20216_v37  ;;  %12346 = vmatprep.subr.bf16.mxu1 %v12345_v45  ;;  %v20248_v45 = vld [vmem:[#allocation163_spill] sm:$0xff]  ;;  %v16227_v37 = vpack.c.bf16 %v3029_v19, %v3025_v50 }
 0x313   :  { %11346 = vmatprep.subr.bf16.mxu0 %v20219_v8  ;;  %v16233_v8 = vld [vmem:[#allocation5 + $0x648] sm:$0xff] }
 0x314   :  { %20249 = vst [vmem:[#allocation85_spill] sm:$0xff] %v16227_v37 }
 0x315   :  { %12348 = vmatpush3.bf16.msra.mxu1 %v12347_v11  ;;  %v16231_v11 = vld [vmem:[#allocation5 + $0x630] sm:$0xff] }
 0x316   :  { %11348 = vmatpush1.bf16.msra.mxu0 %v20220_v35  ;;  %12350 = vmatprep.subr.bf16.mxu1 %v20073_v47  ;;  %v20225_v47 = vld [vmem:[#allocation110_spill] sm:$0xff] }
 0x317   :  { %11350 = vmatprep.subr.bf16.mxu0 %v20221_v32  ;;  %v16235_v35 = vld [vmem:[#allocation5 + $0x668] sm:$0xff]  ;;  %v16237_v32 = vld [vmem:[#allocation5 + $0x680] sm:$0xff] }
 0x318   :  { %7277 = vmatmul.mubr.f32.vlgmr.msra.gmra.mrb[36].mxu1 %v15600_v60 }
 0x319   :  { %12352 = vmatpush3.bf16.msra.mxu1 %v20079_v28  ;;  %7379 = vmatprep.mubr.f32.mxu1 %v15472_v9  ;;  %v377_v28 = vld [vmem:[#allocation5 + $0x910] sm:$0xff] }
 0x31a   :  { %11352 = vmatpush1.bf16.msra.mxu0 %v20222_v40  ;;  %12354 = vmatprep.subr.bf16.mxu1 %v20084_v14  ;;  %v380_v14 = vld [vmem:[#allocation5 + $0x928] sm:$0xff]  ;;  %v349_v9 = vld [vmem:[#allocation5 + $0x830] sm:$0xff] }
 0x31b   :  { %11354 = vmatprep.subr.bf16.mxu0 %v20223_v21  ;;  %v20250_v40 = vld [vmem:[#allocation121_spill] sm:$0xff]  ;;  %v20251_v21 = vld [vmem:[#allocation28_spill] sm:$0xff] }
 0x31d   :  { %12356 = vmatpush3.bf16.msra.mxu1 %v20090_v63  ;;  %v7387_v63 = vand.u32 4294901760, %v377_v28 }
 0x31e   :  { %11356 = vmatpush1.bf16.msra.mxu0 %v20004_v12  ;;  %12358 = vmatprep.subr.bf16.mxu1 %v20095_v22  ;;  %v7390_v12 = vand.u32 4294901760, %v380_v14  ;;  %v20227_v22 = vld [vmem:[#allocation149_spill] sm:$0xff] }
 0x31f   :  { %11358 = vmatprep.subr.bf16.mxu0 %v20224_v52  ;;  %v16245_v52 = vpack.c.bf16 %v18713_v10, %v18714_v61  ;;  %v16414_v61 = vld [vmem:[#allocation5 + $0x750] sm:$0xff]  ;;  %v20273_v10 = vand.u32 4294901760, %v16208_v44 }
 0x320   :  { %v16186_v36 = vpack.c.bf16 %v7390_v12, %v7387_v63 }
 0x321   :  { %12360 = vmatpush3.bf16.msra.mxu1 %v20100_v34  ;;  %v20229_v34 = vld [vmem:[#allocation25_spill] sm:$0xff]  ;;  %20252 = vst [vmem:[#allocation90_spill] sm:$0xff] %v16245_v52 }
 0x322   :  { %11360 = vmatpush1.bf16.msra.mxu0 %v20011_v41  ;;  %12362 = vmatprep.subr.bf16.mxu1 %v20105_v43  ;;  %v16162_v41 = vsub.f32 %v377_v28, %v7387_v63  ;;  %v16164_v43 = vsub.f32 %v380_v14, %v7390_v12  ;;  %v18705_v28 = vand.u32 4294901760, %v16233_v8  ;;  %v16249_v14 = vpop.f32.mrb[0].mxu1  ;;  %v18704_v63 = vand.u32 4294901760, %v16235_v35 }
 0x323   :  { %11362 = vmatprep.subr.bf16.mxu0 %v20225_v47  ;;  %v18706_v47 = vand.u32 4294901760, %v16231_v11  ;;  %20253 = vst [vmem:[#allocation96_spill] sm:$0xff] %v16249_v14  ;;  %v18701_v12 = vand.u32 4294901760, %v16237_v32  ;;  %v16484_v14 = vld [vmem:[#allocation5 + $0x798] sm:$0xff] }
 0x324   :  { %v7473_v46 = vand.u32 4294901760, %v16164_v43  ;;  %v12388_v29 = vpack.c.bf16 %v16164_v43, %v16162_v41 }
 0x325   :  { %12364 = vmatpush3.bf16.msra.mxu1 %v20110_v31  ;;  %v20232_v31 = vld [vmem:[#allocation49_spill] sm:$0xff] }
 0x326   :  { %11364 = vmatpush1.bf16.msra.mxu0 %v20226_v30  ;;  %12366 = vmatprep.subr.bf16.mxu1 %v20115_v53  ;;  %v7466_v53 = vand.u32 4294901760, %v16162_v41  ;;  %v7474_v33 = vsub.f32 %v16164_v43, %v7473_v46  ;;  %v16258_v30 = vpack.c.bf16 %v18709_v20, %v18712_v0  ;;  %v16360_v43 = vld [vmem:[#allocation5 + $0x708] sm:$0xff]  ;;  %v16426_v20 = vsub.f32 %v16199_v17, %v3029_v19 }
 0x327   :  { %11366 = vmatprep.subr.bf16.mxu0 %v20227_v22  ;;  %v16262_v22 = vld [vmem:[#allocation5 + $0x660] sm:$0xff]  ;;  %v16435_v0 = vsub.f32 %v16208_v44, %v20273_v10  ;;  %v20279_v17 = vand.u32 4294901760, %v16215_v18  ;;  %v20281_v44 = vand.u32 4294901760, %v16231_v11 }
 0x328   :  { %v7467_v1 = vsub.f32 %v16162_v41, %v7466_v53  ;;  %v7475_v5 = vand.u32 4294901760, %v7474_v33  ;;  %20254 = vst [vmem:[#allocation134_spill] sm:$0xff] %v16258_v30  ;;  %v16358_v41 = vld [vmem:[#allocation5 + $0x6f0] sm:$0xff]  ;;  %20272 = vst [vmem:[#allocation51_spill] sm:$0xff] %v16426_v20 }
 0x329   :  { %12368 = vmatpush3.bf16.msra.mxu1 %v20228_v58  ;;  %v16264_v58 = vld [vmem:[#allocation5 + $0x678] sm:$0xff]  ;;  %20274 = vst [vmem:[#allocation56_spill] sm:$0xff] %v16435_v0  ;;  %v16450_v19 = vsub.f32 %v16215_v18, %v20279_v17  ;;  %v16456_v10 = vsub.f32 %v16231_v11, %v20281_v44  ;;  %v3083_v18 = vand.u32 4294901760, %v16414_v61  ;;  %v20286_v17 = vand.u32 4294901760, %v16233_v8 }
 0x32a   :  { %11368 = vmatpush1.bf16.msra.mxu0 %v20229_v34  ;;  %12370 = vmatprep.subr.bf16.mxu1 %v20230_v48  ;;  %v7468_v39 = vand.u32 4294901760, %v7467_v1  ;;  %v16266_v34 = vpop.f32.mrb[1].mxu1  ;;  %v16269_v48 = vld [vmem:[#allocation5 + $0x698] sm:$0xff] }
 0x32b   :  { %11370 = vmatprep.subr.bf16.mxu0 %v20231_v57  ;;  %20255 = vst [vmem:[#allocation135_spill] sm:$0xff] %v16266_v34  ;;  %v16271_v57 = vld [vmem:[#allocation5 + $0x6b0] sm:$0xff]  ;;  %v18694_v1 = vand.u32 4294901760, %v16269_v48  ;;  %20280 = vst [vmem:[#allocation67_spill] sm:$0xff] %v16450_v19  ;;  %v327_v34 = vld [vmem:[#allocation5 + $0x780] sm:$0xff] }
 0x32c   :  { %v12385_v26 = vpack.c.bf16 %v7475_v5, %v7468_v39  ;;  %v18693_v33 = vand.u32 4294901760, %v16271_v57  ;;  %v16301_v39 = vld [vmem:[#allocation5 + $0x6c8] sm:$0xff]  ;;  %v16303_v5 = vld [vmem:[#allocation5 + $0x6e0] sm:$0xff]  ;;  %20282 = vst [vmem:[#allocation68_spill] sm:$0xff] %v16456_v10 }
 0x32d   :  { %12372 = vmatpush3.bf16.msra.mxu1 %v20232_v31  ;;  %v16279_v31 = vpack.c.bf16 %v18705_v28, %v18706_v47  ;;  %v16392_v28 = vld [vmem:[#allocation5 + $0x758] sm:$0xff]  ;;  %v16394_v47 = vld [vmem:[#allocation5 + $0x770] sm:$0xff] }
 0x32e   :  { %11372 = vmatpush1.bf16.msra.mxu0 %v20233_v7  ;;  %12374 = vmatprep.subr.bf16.mxu1 %v20135_v55  ;;  %v20239_v55 = vld [vmem:[#allocation103_spill] sm:$0xff]  ;;  %v18698_v7 = vand.u32 4294901760, %v16262_v22  ;;  %v20289_v11 = vand.u32 4294901760, %v16394_v47 }
 0x32f   :  { %11374 = vmatprep.subr.bf16.mxu0 %v20234_v56  ;;  %20256 = vst [vmem:[#allocation21_spill] sm:$0xff] %v16279_v31  ;;  %v18695_v56 = vand.u32 4294901760, %v16264_v58 }
 0x331   :  { %12376 = vmatpush3.bf16.msra.mxu1 %v20235_v4  ;;  %v20257_v4 = vld [vmem:[#allocation141_spill] sm:$0xff] }
 0x332   :  { %11376 = vmatpush1.bf16.msra.mxu0 %v20236_v2  ;;  %12378 = vmatprep.subr.bf16.mxu1 %v20237_v38  ;;  %v16284_v2 = vpop.f32.mrb[2].mxu1  ;;  %v16295_v38 = vld [vmem:[#allocation5 + $0x690] sm:$0xff] }
 0x333   :  { %11378 = vmatprep.subr.bf16.mxu0 %v20238_v15  ;;  %20258 = vst [vmem:[#allocation22_spill] sm:$0xff] %v16284_v2  ;;  %v16297_v15 = vld [vmem:[#allocation5 + $0x6a8] sm:$0xff]  ;;  %v16471_v2 = vsub.f32 %v16233_v8, %v20286_v17  ;;  %v20291_v8 = vand.u32 4294901760, %v16235_v35 }
 0x335   :  { %12380 = vmatpush3.bf16.msra.mxu1 %v20152_v3  ;;  %v20242_v3 = vmov 0.0   ;;  %20287 = vst [vmem:[#allocation99_spill] sm:$0xff] %v16471_v2  ;;  %v16489_v17 = vsub.f32 %v16235_v35, %v20291_v8  ;;  %v20297_v35 = vand.u32 4294901760, %v16269_v48 }
 0x336   :  { %11380 = vmatpush1.bf16.msra.mxu0 %v20239_v55  ;;  %12381 = vmatprep.subr.bf16.mxu1 %v18710_v13  ;;  %v16299_v55 = vpop.f32.mrb[3].mxu1 }
 0x337   :  { %11382 = vmatprep.subr.bf16.mxu0 %v20240_v62  ;;  %20260 = vst [vmem:[#allocation27_spill] sm:$0xff] %v16299_v55  ;;  %v20261_v62 = vld [vmem:[#allocation122_spill] sm:$0xff]  ;;  %20292 = vst [vmem:[#allocation118_spill] sm:$0xff] %v16489_v17  ;;  %v16509_v8 = vsub.f32 %v16269_v48, %v20297_v35 }
 0x338   :  { %7381 = vmatmul.mubr.f32.vlgmr.msra.gmra.mrb[38].mxu1 %v15600_v60 }
 0x339   :  { %12383 = vmatpush3.bf16.msra.mxu1 %v16186_v36  ;;  %10381 = vmatprep.mubr.msk.f32.mxu1 %vm13023_vm1, %v20242_v3 }
 0x33a   :  { %11384 = vmatpush1.bf16.msra.mxu0 %v20241_v54  ;;  %12384 = vmatprep.subr.bf16.mxu1 %v18710_v13  ;;  %v16312_v54 = vpack.c.bf16 %v18695_v56, %v18698_v7  ;;  %v20266_v7 = vld [vmem:[#allocation123_spill] sm:$0xff] }
 0x33b   :  { %11386 = vmatprep.subr.bf16.mxu0 %v20243_v59  ;;  %v18696_v59 = vand.u32 4294901760, %v16297_v15 }
 0x33c   :  { %10382 = vmatmul.mubr.f32.vlgmr.msra.gmra.mrb[40].mxu1 %v20244_v25  ;;  %20262 = vst [vmem:[#allocation29_spill] sm:$0xff] %v16312_v54  ;;  %v16323_v25 = vpack.c.bf16 %v18693_v33, %v18694_v1 }
 0x33d   :  { %12386 = vmatpush3.bf16.msra.mxu1 %v12385_v26  ;;  %10388 = vmatprep.mubr.msk.f32.mxu1 %vm13023_vm1, %v20242_v3  ;;  %v18697_v26 = vand.u32 4294901760, %v16295_v38 }
 0x33e   :  { %11388 = vmatpush1.bf16.msra.mxu0 %v20245_v42  ;;  %12387 = vmatprep.subr.bf16.mxu1 %v18710_v13  ;;  %20263 = vst [vmem:[#allocation34_spill] sm:$0xff] %v16323_v25  ;;  %v18700_v42 = vand.u32 4294901760, %v16301_v39 }
 0x33f   :  { %11390 = vmatprep.subr.bf16.mxu0 %v20246_v49  ;;  %v18699_v49 = vand.u32 4294901760, %v16303_v5 }
 0x341   :  { %v16354_v56 = vpack.c.bf16 %v18699_v49, %v18700_v42  ;;  %v18716_v42 = vand.u32 4294901760, %v16358_v41 }
 0x342   :  { %11392 = vmatpush1.bf16.msra.mxu0 %v20247_v51  ;;  %v16327_v51 = vld [vmem:[#allocation5 + $0x6c0] sm:$0xff] }
 0x343   :  { %11394 = vmatprep.subr.bf16.mxu0 %v20248_v45  ;;  %v16332_v45 = vld [vmem:[#allocation5 + $0x6f8] sm:$0xff]  ;;  %v18703_v33 = vand.u32 4294901760, %v16327_v51  ;;  %20265 = vst [vmem:[#allocation41_spill] sm:$0xff] %v16354_v56 }
 0x344   :  { %10389 = vmatmul.mubr.f32.vlgmr.msra.gmra.mrb[40].mxu1 %v20250_v40 }
 0x345   :  { %12389 = vmatpush3.bf16.msra.mxu1 %v12388_v29  ;;  %10395 = vmatprep.mubr.msk.f32.mxu1 %vm13023_vm1, %v20242_v3  ;;  %v16329_v29 = vld [vmem:[#allocation5 + $0x6d8] sm:$0xff] }
 0x346   :  { %11396 = vmatpush1.bf16.msra.mxu0 %v20251_v21  ;;  %12390 = vmatprep.subr.bf16.mxu1 %v18710_v13  ;;  %v16334_v21 = vld [vmem:[#allocation5 + $0x710] sm:$0xff]  ;;  %v18702_v1 = vand.u32 4294901760, %v16329_v29 }
 0x347   :  { %11398 = vmatprep.subr.bf16.mxu0 %v16227_v37 }
 0x348   :  { %v16372_v49 = vpack.c.bf16 %v18702_v1, %v18703_v33  ;;  %v16387_v33 = vld [vmem:[#allocation5 + $0x720] sm:$0xff] }
 0x349   :  { %3019 = vmatmul.mubr.f32.vlgmr.msra.gmra.mrb[0].mxu0 %v20203_v27  ;;  %v16291_v27 = vpack.c.bf16 %v18701_v12, %v18704_v63  ;;  %v18715_v12 = vand.u32 4294901760, %v16360_v43  ;;  %v16389_v63 = vld [vmem:[#allocation5 + $0x738] sm:$0xff] }
 0x34a   :  { %11400 = vmatpush1.bf16.msra.mxu0 %v16245_v52  ;;  %3158 = vmatprep.mubr.f32.mxu0 %v20257_v4  ;;  %v16341_v4 = vpack.c.bf16 %v18696_v59, %v18697_v26  ;;  %v18708_v59 = vand.u32 4294901760, %v16332_v45  ;;  %v18707_v26 = vand.u32 4294901760, %v16334_v21  ;;  %20267 = vst [vmem:[#allocation44_spill] sm:$0xff] %v16372_v49  ;;  %v343_v52 = vld [vmem:[#allocation5 + $0x800] sm:$0xff] }
 0x34b   :  { %11402 = vmatprep.subr.bf16.mxu0 %v16258_v30  ;;  %20259 = vst [vmem:[#allocation26_spill] sm:$0xff] %v16291_v27  ;;  %v340_v30 = vld [vmem:[#allocation5 + $0x7e8] sm:$0xff] }
 0x34c   :  { %10396 = vmatmul.mubr.f32.vlgmr.msra.gmra.mrb[40].mxu1 %v20261_v62  ;;  %20264 = vst [vmem:[#allocation33_spill] sm:$0xff] %v16341_v4  ;;  %v12394_v62 = vpack.c.bf16 %v7473_v46, %v7466_v53  ;;  %v16362_v53 = vld [vmem:[#allocation5 + $0x728] sm:$0xff]  ;;  %v16364_v46 = vld [vmem:[#allocation5 + $0x740] sm:$0xff] }
 0x34d   :  { %12392 = vmatpush3.bf16.msra.mxu1 %v16186_v36  ;;  %10402 = vmatprep.mubr.msk.f32.mxu1 %vm13023_vm1, %v20242_v3  ;;  %v18717_v1 = vand.u32 4294901760, %v16364_v46 }
 0x34e   :  { %11404 = vmatpush1.bf16.msra.mxu0 %v16279_v31  ;;  %12393 = vmatprep.subr.bf16.mxu1 %v18710_v13 }
 0x34f   :  { %11406 = vmatprep.subr.bf16.mxu0 %v16291_v27 }
 0x352   :  { %11408 = vmatpush1.bf16.msra.mxu0 %v16312_v54  ;;  %v20309_v54 = vand.u32 4294901760, %v16329_v29 }
 0x353   :  { %11410 = vmatprep.subr.bf16.mxu0 %v16323_v25 }
 0x354   :  { %10403 = vmatmul.mubr.f32.vlgmr.msra.gmra.mrb[40].mxu1 %v20266_v7  ;;  %v16383_v7 = vpack.c.bf16 %v18707_v26, %v18708_v59  ;;  %v16401_v26 = vpack.c.bf16 %v18715_v12, %v18716_v42  ;;  %v16416_v12 = vld [vmem:[#allocation5 + $0x768] sm:$0xff]  ;;  %v16421_v42 = vsub.f32 %v16197_v24, %v3025_v50  ;;  %v20275_v59 = vand.u32 4294901760, %v16210_v6 }
 0x355   :  { %12395 = vmatpush3.bf16.msra.mxu1 %v12394_v62  ;;  %10409 = vmatprep.mubr.msk.f32.mxu1 %vm13023_vm1, %v20242_v3  ;;  %v18718_v62 = vand.u32 4294901760, %v16362_v53  ;;  %v20277_v24 = vand.u32 4294901760, %v16213_v16  ;;  %v16551_v27 = vsub.f32 %v16329_v29, %v20309_v54  ;;  %v20317_v54 = vand.u32 4294901760, %v16360_v43 }
 0x356   :  { %11412 = vmatpush1.bf16.msra.mxu0 %v16341_v4  ;;  %20268 = vst [vmem:[#allocation39_spill] sm:$0xff] %v16383_v7  ;;  %12396 = vmatprep.subr.bf16.mxu1 %v18710_v13  ;;  %20269 = vst [vmem:[#allocation38_spill] sm:$0xff] %v16401_v26  ;;  %v16440_v55 = vsub.f32 %v16210_v6, %v20275_v59  ;;  %v20283_v6 = vand.u32 4294901760, %v16387_v33 }
 0x357   :  { %11414 = vmatprep.subr.bf16.mxu0 %v16354_v56  ;;  %v16410_v13 = vpack.c.bf16 %v18717_v1, %v18718_v62  ;;  %20271 = vst [vmem:[#allocation125_spill] sm:$0xff] %v16421_v42  ;;  %v16428_v1 = vld [vmem:[#allocation5 + $0x788] sm:$0xff]  ;;  %v16430_v62 = vld [vmem:[#allocation5 + $0x7a0] sm:$0xff]  ;;  %v16445_v50 = vsub.f32 %v16213_v16, %v20277_v24  ;;  %v20284_v16 = vand.u32 4294901760, %v16389_v63  ;;  %v3087_v24 = vand.u32 4294901760, %v16416_v12  ;;  %20310 = vst [vmem:[#allocation64_spill] sm:$0xff] %v16551_v27 }
 0x358   :  { %20276 = vst [vmem:[#allocation119_spill] sm:$0xff] %v16440_v55  ;;  %v20301_v56 = vand.u32 4294901760, %v16301_v39  ;;  %v16571_v29 = vsub.f32 %v16360_v43, %v20317_v54 }
 0x359   :  { %20270 = vst [vmem:[#allocation47_spill] sm:$0xff] %v16410_v13  ;;  %20278 = vst [vmem:[#allocation57_spill] sm:$0xff] %v16445_v50  ;;  %v16464_v59 = vpack.c.bf16 %v20284_v16, %v20283_v6  ;;  %v3089_v6 = vand.u32 4294901760, %v16428_v1  ;;  %v3093_v16 = vand.u32 4294901760, %v16430_v62  ;;  %v16532_v35 = vpack.c.bf16 %v3087_v24, %v3083_v18 }
 0x35a   :  { %11416 = vmatpush1.bf16.msra.mxu0 %v16372_v49  ;;  %v337_v49 = vld [vmem:[#allocation5 + $0x7d0] sm:$0xff]  ;;  %v16529_v48 = vsub.f32 %v16301_v39, %v20301_v56  ;;  %v336_v39 = vld [vmem:[#allocation5 + $0x7c8] sm:$0xff]  ;;  %20318 = vst [vmem:[#allocation80_spill] sm:$0xff] %v16571_v29 }
 0x35b   :  { %11418 = vmatprep.subr.bf16.mxu0 %v16383_v7  ;;  %20285 = vst [vmem:[#allocation65_spill] sm:$0xff] %v16464_v59  ;;  %v334_v7 = vld [vmem:[#allocation5 + $0x7b8] sm:$0xff]  ;;  %20303 = vst [vmem:[#allocation53_spill] sm:$0xff] %v16532_v35  ;;  %v3101_v4 = vand.u32 4294901760, %v337_v49  ;;  %v333_v56 = vld [vmem:[#allocation5 + $0x7b0] sm:$0xff]  ;;  %v3103_v37 = vand.u32 4294901760, %v336_v39 }
 0x35c   :  { %10410 = vmatmul.mubr.f32.vlgmr.msra.gmra.mrb[40].mxu1 %v20250_v40  ;;  %20302 = vst [vmem:[#allocation52_spill] sm:$0xff] %v16529_v48  ;;  %v3099_v54 = vand.u32 4294901760, %v333_v56 }
 0x35d   :  { %12398 = vmatpush3.bf16.msra.mxu1 %v16186_v36  ;;  %10416 = vmatprep.mubr.msk.f32.mxu1 %vm13023_vm1, %v20242_v3  ;;  %v20288_v36 = vand.u32 4294901760, %v16392_v28  ;;  %v20293_v3 = vand.u32 4294901760, %v16237_v32 }
 0x35e   :  { %11420 = vmatpush1.bf16.msra.mxu0 %v16401_v26 }
 0x35f   :  { %11422 = vmatprep.subr.bf16.mxu0 %v16410_v13  ;;  %v16480_v44 = vpack.c.bf16 %v20289_v11, %v20288_v36  ;;  %v16494_v23 = vsub.f32 %v16237_v32, %v20293_v3  ;;  %v20295_v36 = vand.u32 4294901760, %v16262_v22  ;;  %v20296_v13 = vand.u32 4294901760, %v16264_v58 }
 0x360   :  { %v20298_v3 = vand.u32 4294901760, %v16271_v57 }
 0x361   :  { %20290 = vst [vmem:[#allocation146_spill] sm:$0xff] %v16480_v44  ;;  %20294 = vst [vmem:[#allocation76_spill] sm:$0xff] %v16494_v23  ;;  %v16499_v11 = vsub.f32 %v16262_v22, %v20295_v36  ;;  %v16504_v26 = vsub.f32 %v16264_v58, %v20296_v13  ;;  %v20299_v22 = vand.u32 4294901760, %v16295_v38  ;;  %v20300_v13 = vand.u32 4294901760, %v16297_v15 }
 0x362   :  { %v16514_v32 = vsub.f32 %v16271_v57, %v20298_v3  ;;  %11424 = vmatpush1.bf16.msra.mxu0 %v16464_v59  ;;  %v3091_v57 = vand.u32 4294901760, %v327_v34  ;;  %v3095_v3 = vand.u32 4294901760, %v16484_v14  ;;  %v20307_v59 = vand.u32 4294901760, %v16327_v51 }
 0x363   :  { %v16519_v36 = vsub.f32 %v16295_v38, %v20299_v22  ;;  %v16524_v58 = vsub.f32 %v16297_v15, %v20300_v13  ;;  %v20304_v38 = vand.u32 4294901760, %v16303_v5  ;;  %11426 = vmatprep.subr.bf16.mxu0 %v16480_v44  ;;  %v16541_v15 = vpack.c.bf16 %v3093_v16, %v3089_v6 }
 0x364   :  { %v3097_v13 = vand.u32 4294901760, %v334_v7  ;;  %v16546_v25 = vsub.f32 %v16327_v51, %v20307_v59  ;;  %v20313_v44 = vand.u32 4294901760, %v16334_v21  ;;  %v20315_v51 = vand.u32 4294901760, %v16358_v41  ;;  %10417 = vmatmul.mubr.f32.vlgmr.msra.gmra.mrb[40].mxu1 %v20250_v40 }
 0x365   :  { %v16538_v22 = vsub.f32 %v16303_v5, %v20304_v38  ;;  %20306 = vst [vmem:[#allocation133_spill] sm:$0xff] %v16541_v15  ;;  %v20311_v5 = vand.u32 4294901760, %v16332_v45  ;;  %v16590_v43 = vpack.c.bf16 %v3095_v3, %v3091_v57  ;;  %v16622_v29 = vsub.f32 %v327_v34, %v3091_v57 }
 0x366   :  { %20308 = vst [vmem:[#allocation46_spill] sm:$0xff] %v16546_v25  ;;  %v16561_v31 = vsub.f32 %v16334_v21, %v20313_v44  ;;  %v16566_v59 = vsub.f32 %v16358_v41, %v20315_v51  ;;  %v20321_v21 = vand.u32 4294901760, %v16364_v46  ;;  %v20323_v41 = vand.u32 4294901760, %v16387_v33  ;;  %11428 = vmatpush1.bf16.msra.mxu0 %v16532_v35 }
 0x367   :  { %20305 = vst [vmem:[#allocation63_spill] sm:$0xff] %v16538_v22  ;;  %v16556_v38 = vsub.f32 %v16332_v45, %v20311_v5  ;;  %v20319_v45 = vand.u32 4294901760, %v16362_v53  ;;  %20325 = vst [vmem:[#allocation89_spill] sm:$0xff] %v16590_v43  ;;  %11430 = vmatprep.subr.bf16.mxu0 %v16541_v15  ;;  %v16598_v40 = vpack.c.bf16 %v3101_v4, %v3097_v13  ;;  %v20329_v35 = vand.u32 4294901760, %v16392_v28 }
 0x368   :  { %20314 = vst [vmem:[#allocation77_spill] sm:$0xff] %v16561_v31  ;;  %20316 = vst [vmem:[#allocation142_spill] sm:$0xff] %v16566_v59  ;;  %v16581_v44 = vsub.f32 %v16364_v46, %v20321_v21  ;;  %v16587_v51 = vsub.f32 %v16387_v33, %v20323_v41  ;;  %v3105_v46 = vand.u32 4294901760, %v340_v30  ;;  %v3109_v21 = vand.u32 4294901760, %v343_v52  ;;  %v342_v33 = vld [vmem:[#allocation5 + $0x7f8] sm:$0xff] }
 0x369   :  { %20312 = vst [vmem:[#allocation69_spill] sm:$0xff] %v16556_v38  ;;  %v16576_v5 = vsub.f32 %v16362_v53, %v20319_v45  ;;  %v339_v53 = vld [vmem:[#allocation5 + $0x7e0] sm:$0xff]  ;;  %v20326_v45 = vand.u32 4294901760, %v16389_v63  ;;  %20328 = vst [vmem:[#allocation74_spill] sm:$0xff] %v16598_v40  ;;  %v346_v41 = vld [vmem:[#allocation5 + $0x818] sm:$0xff]  ;;  %v16617_v15 = vsub.f32 %v16428_v1, %v3089_v6  ;;  %v16628_v1 = vsub.f32 %v16484_v14, %v3095_v3 }
 0x36a   :  { %20322 = vst [vmem:[#allocation83_spill] sm:$0xff] %v16581_v44  ;;  %20324 = vst [vmem:[#allocation86_spill] sm:$0xff] %v16587_v51  ;;  %v16603_v51 = vsub.f32 %v16392_v28, %v20329_v35  ;;  %v20330_v44 = vand.u32 4294901760, %v16394_v47  ;;  %v3107_v28 = vand.u32 4294901760, %v339_v53  ;;  %v345_v35 = vld [vmem:[#allocation5 + $0x810] sm:$0xff]  ;;  %11432 = vmatpush1.bf16.msra.mxu0 %v16590_v43  ;;  %v16633_v34 = vsub.f32 %v337_v49, %v3101_v4  ;;  %v358_v14 = vld [vmem:[#allocation5 + $0x878] sm:$0xff] }
 0x36b   :  { %20320 = vst [vmem:[#allocation143_spill] sm:$0xff] %v16576_v5  ;;  %v16595_v60 = vsub.f32 %v16389_v63, %v20326_v45  ;;  %v16611_v63 = vsub.f32 %v16414_v61, %v3083_v18  ;;  %v16614_v45 = vsub.f32 %v16416_v12, %v3087_v24  ;;  %20334 = vst [vmem:[#allocation145_spill] sm:$0xff] %v16617_v15  ;;  %v3113_v61 = vand.u32 4294901760, %v346_v41  ;;  %v352_v12 = vld [vmem:[#allocation5 + $0x848] sm:$0xff]  ;;  %v355_v24 = vld [vmem:[#allocation5 + $0x860] sm:$0xff] }
 0x36c   :  { %v16608_v5 = vsub.f32 %v16394_v47, %v20330_v44  ;;  %20336 = vst [vmem:[#allocation48_spill] sm:$0xff] %v16622_v29  ;;  %v16625_v47 = vpack.c.bf16 %v3103_v37, %v3099_v54  ;;  %v3111_v44 = vand.u32 4294901760, %v342_v33  ;;  %v3117_v18 = vand.u32 4294901760, %v349_v9  ;;  %20338 = vst [vmem:[#allocation105_spill] sm:$0xff] %v16628_v1  ;;  %11434 = vmatprep.subr.bf16.mxu0 %v16598_v40  ;;  %v354_v15 = vld [vmem:[#allocation5 + $0x858] sm:$0xff]  ;;  %v361_v3 = vld [vmem:[#allocation5 + $0x890] sm:$0xff] }
 0x36d   :  { %20327 = vst [vmem:[#allocation92_spill] sm:$0xff] %v16595_v60  ;;  %20332 = vst [vmem:[#allocation95_spill] sm:$0xff] %v16611_v63  ;;  %v16620_v60 = vsub.f32 %v16430_v62, %v3093_v16  ;;  %v348_v63 = vld [vmem:[#allocation5 + $0x828] sm:$0xff]  ;;  %v16631_v62 = vsub.f32 %v334_v7, %v3097_v13  ;;  %v16635_v6 = vpack.c.bf16 %v3109_v21, %v3105_v46  ;;  %v351_v16 = vld [vmem:[#allocation5 + $0x840] sm:$0xff]  ;;  %v3115_v1 = vand.u32 4294901760, %v345_v35 }
 0x36e   :  { %20331 = vst [vmem:[#allocation94_spill] sm:$0xff] %v16608_v5  ;;  %20333 = vst [vmem:[#allocation75_spill] sm:$0xff] %v16614_v45  ;;  %v16637_v57 = vsub.f32 %v333_v56, %v3099_v54  ;;  %v16639_v43 = vsub.f32 %v336_v39, %v3103_v37  ;;  %v16641_v29 = vsub.f32 %v340_v30, %v3105_v46  ;;  %v3119_v40 = vand.u32 4294901760, %v348_v63  ;;  %v357_v49 = vld [vmem:[#allocation5 + $0x870] sm:$0xff]  ;;  %v360_v4 = vld [vmem:[#allocation5 + $0x888] sm:$0xff] }
 0x36f   :  { %20335 = vst [vmem:[#allocation100_spill] sm:$0xff] %v16620_v60  ;;  %20337 = vst [vmem:[#allocation104_spill] sm:$0xff] %v16625_v47  ;;  %v16643_v60 = vsub.f32 %v343_v52, %v3109_v21  ;;  %v3121_v7 = vand.u32 4294901760, %v352_v12  ;;  %v3125_v13 = vand.u32 4294901760, %v355_v24  ;;  %11436 = vmatpush1.bf16.msra.mxu0 %v16625_v47  ;;  %v16648_v56 = vsub.f32 %v339_v53, %v3107_v28  ;;  %v364_v21 = vld [vmem:[#allocation5 + $0x8a8] sm:$0xff] }
 0x370   :  { %20339 = vst [vmem:[#allocation84_spill] sm:$0xff] %v16631_v62  ;;  %20340 = vst [vmem:[#allocation106_spill] sm:$0xff] %v16633_v34  ;;  %v16646_v34 = vpack.c.bf16 %v3111_v44, %v3107_v28  ;;  %v16650_v37 = vsub.f32 %v342_v33, %v3111_v44  ;;  %v16652_v30 = vpack.c.bf16 %v3117_v18, %v3113_v61  ;;  %11438 = vmatprep.subr.bf16.mxu0 %v16635_v6 }
 0x371   :  { %20341 = vst [vmem:[#allocation107_spill] sm:$0xff] %v16635_v6  ;;  %20342 = vst [vmem:[#allocation126_spill] sm:$0xff] %v16637_v57  ;;  %v3123_v52 = vand.u32 4294901760, %v351_v16  ;;  %v3127_v39 = vand.u32 4294901760, %v354_v15  ;;  %v3129_v54 = vand.u32 4294901760, %v358_v14  ;;  %v3133_v46 = vand.u32 4294901760, %v361_v3 }
 0x372   :  { %20343 = vst [vmem:[#allocation111_spill] sm:$0xff] %v16639_v43  ;;  %20344 = vst [vmem:[#allocation112_spill] sm:$0xff] %v16641_v29  ;;  %v16655_v29 = vsub.f32 %v346_v41, %v3113_v61  ;;  %v16657_v43 = vsub.f32 %v349_v9, %v3117_v18  ;;  %v3131_v47 = vand.u32 4294901760, %v357_v49  ;;  %v3135_v57 = vand.u32 4294901760, %v360_v4  ;;  %v363_v9 = vld [vmem:[#allocation5 + $0x8a0] sm:$0xff]  ;;  %v16672_v18 = vld [vmem:[#allocation5 + $0x8b8] sm:$0xff] }
 0x373   :  { %20345 = vst [vmem:[#allocation116_spill] sm:$0xff] %v16643_v60  ;;  %20346 = vst [vmem:[#allocation147_spill] sm:$0xff] %v16646_v34  ;;  %v367_v60 = vld [vmem:[#allocation5 + $0x8c0] sm:$0xff]  ;;  %v16659_v53 = vpack.c.bf16 %v3119_v40, %v3115_v1  ;;  %v16661_v33 = vsub.f32 %v345_v35, %v3115_v1  ;;  %v16663_v28 = vsub.f32 %v348_v63, %v3119_v40  ;;  %11440 = vmatpush1.bf16.msra.mxu0 %v16646_v34 }
 0x374   :  { %20347 = vst [vmem:[#allocation148_spill] sm:$0xff] %v16650_v37  ;;  %20348 = vst [vmem:[#allocation117_spill] sm:$0xff] %v16652_v30  ;;  %v16665_v44 = vpack.c.bf16 %v3125_v13, %v3121_v7  ;;  %v16668_v6 = vsub.f32 %v352_v12, %v3121_v7  ;;  %v16670_v37 = vsub.f32 %v355_v24, %v3125_v13  ;;  %v3137_v41 = vand.u32 4294901760, %v364_v21 }
 0x375   :  { %20349 = vst [vmem:[#allocation23_spill] sm:$0xff] %v16657_v43  ;;  %20350 = vst [vmem:[#allocation150_spill] sm:$0xff] %v16659_v53  ;;  %v3141_v61 = vand.u32 4294901760, %v367_v60  ;;  %11442 = vmatprep.subr.bf16.mxu0 %v16652_v30  ;;  %v16675_v43 = vpack.c.bf16 %v3127_v39, %v3123_v52  ;;  %v16677_v35 = vsub.f32 %v351_v16, %v3123_v52  ;;  %v3139_v34 = vand.u32 4294901760, %v363_v9 }
 0x376   :  { %20351 = vst [vmem:[#allocation20_spill] sm:$0xff] %v16665_v44  ;;  %v16679_v40 = vsub.f32 %v354_v15, %v3127_v39  ;;  %v16681_v63 = vpack.c.bf16 %v3133_v46, %v3129_v54  ;;  %v16683_v1 = vsub.f32 %v358_v14, %v3129_v54  ;;  %v16685_v12 = vsub.f32 %v361_v3, %v3133_v46  ;;  %v370_v14 = vld [vmem:[#allocation5 + $0x8d8] sm:$0xff]  ;;  %v16700_v3 = vld [vmem:[#allocation5 + $0x8f0] sm:$0xff]  ;;  %v16723_v46 = vld [vmem:[#allocation5 + $0x8e8] sm:$0xff] }
 0x377   :  { %20352 = vst [vmem:[#allocation30_spill] sm:$0xff] %v16675_v43  ;;  %v16687_v24 = vpack.c.bf16 %v3135_v57, %v3131_v47  ;;  %v16689_v7 = vsub.f32 %v357_v49, %v3131_v47  ;;  %v16691_v13 = vsub.f32 %v360_v4, %v3135_v57  ;;  %v3143_v30 = vand.u32 4294901760, %v16672_v18  ;;  %11444 = vmatpush1.bf16.msra.mxu0 %v16659_v53  ;;  %v16721_v54 = vld [vmem:[#allocation5 + $0x8d0] sm:$0xff] }
 0x378   :  { %20353 = vst [vmem:[#allocation151_spill] sm:$0xff] %v16681_v63  ;;  %v16696_v15 = vpack.c.bf16 %v3141_v61, %v3137_v41  ;;  %v16698_v52 = vsub.f32 %v364_v21, %v3137_v41  ;;  %11446 = vmatprep.subr.bf16.mxu0 %v16665_v44  ;;  %v16705_v57 = vsub.f32 %v367_v60, %v3141_v61  ;;  %v3145_v47 = vand.u32 4294901760, %v370_v14 }
 0x379   :  { %20354 = vst [vmem:[#allocation24_spill] sm:$0xff] %v16687_v24  ;;  %v16714_v16 = vpack.c.bf16 %v3143_v30, %v3139_v34  ;;  %v20358_v61 = vand.u32 4294901760, %v16421_v42  ;;  %v20359_v21 = vand.u32 4294901760, %v16426_v20  ;;  %v20360_v39 = vand.u32 4294901760, %v16435_v0 }
 0x37a   :  { %20355 = vst [vmem:[#allocation152_spill] sm:$0xff] %v16696_v15  ;;  %20356 = vst [vmem:[#allocation36_spill] sm:$0xff] %v16705_v57  ;;  %v20365_v60 = vand.u32 4294901760, %v16456_v10  ;;  %v16775_v57 = vsub.f32 %v370_v14, %v3145_v47 }
 0x37b   :  { %20357 = vst [vmem:[#allocation37_spill] sm:$0xff] %v16714_v16  ;;  %v3173_v49 = vsub.f32 %v16421_v42, %v20358_v61  ;;  %11448 = vmatpush1.bf16.msra.mxu0 %v16675_v43  ;;  %v3185_v41 = vsub.f32 %v16426_v20, %v20359_v21  ;;  %v3179_v4 = vsub.f32 %v16435_v0, %v20360_v39  ;;  %v20362_v43 = vand.u32 4294901760, %v16440_v55 }
 0x37c   :  { %11450 = vmatprep.subr.bf16.mxu0 %v16681_v63  ;;  %v16734_v61 = vsub.f32 %v363_v9, %v3139_v34  ;;  %v20363_v42 = vand.u32 4294901760, %v16445_v50  ;;  %v20364_v20 = vand.u32 4294901760, %v16450_v19  ;;  %v3203_v44 = vsub.f32 %v16456_v10, %v20365_v60  ;;  %20374 = vst [vmem:[#allocation61_spill] sm:$0xff] %v16775_v57 }
 0x37d   :  { %v3191_v53 = vsub.f32 %v16440_v55, %v20362_v43  ;;  %v20366_v63 = vand.u32 4294901760, %v16471_v2  ;;  %v20367_v9 = vand.u32 4294901760, %v16489_v17  ;;  %v20368_v55 = vand.u32 4294901760, %v16494_v23 }
 0x37e   :  { %20361 = vst [vmem:[#allocation154_spill] sm:$0xff] %v16734_v61  ;;  %v3197_v21 = vsub.f32 %v16445_v50, %v20363_v42  ;;  %v3209_v39 = vsub.f32 %v16450_v19, %v20364_v20  ;;  %v20369_v50 = vand.u32 4294901760, %v16700_v3  ;;  %v3174_v10 = vand.u32 4294901760, %v3173_v49 }
 0x37f   :  { %v3215_v34 = vsub.f32 %v16471_v2, %v20366_v63  ;;  %v3221_v43 = vsub.f32 %v16489_v17, %v20367_v9  ;;  %v3233_v42 = vsub.f32 %v16494_v23, %v20368_v55  ;;  %11452 = vmatpush1.bf16.msra.mxu0 %v16687_v24  ;;  %v3186_v63 = vand.u32 4294901760, %v3185_v41 }
 0x380   :  { %v16759_v0 = vpack.c.bf16 %v20369_v50, %v3145_v47  ;;  %v3180_v2 = vand.u32 4294901760, %v3179_v4  ;;  %v20371_v19 = vand.u32 4294901760, %v16499_v11  ;;  %v20372_v17 = vand.u32 4294901760, %v16504_v26  ;;  %11454 = vmatprep.subr.bf16.mxu0 %v16696_v15 }
 0x381   :  { %v3192_v50 = vand.u32 4294901760, %v3191_v53  ;;  %v3198_v23 = vand.u32 4294901760, %v3197_v21  ;;  %v3210_v20 = vand.u32 4294901760, %v3209_v39  ;;  %v18819_v60 = vand.u32 4294901760, %v16509_v8 }
 0x382   :  { %20370 = vst [vmem:[#allocation43_spill] sm:$0xff] %v16759_v0  ;;  %v3227_v9 = vsub.f32 %v16499_v11, %v20371_v19  ;;  %v3239_v55 = vsub.f32 %v16504_v26, %v20372_v17  ;;  %v3204_v49 = vand.u32 4294901760, %v3203_v44  ;;  %v3216_v61 = vand.u32 4294901760, %v3215_v34 }
 0x383   :  { %v3222_v24 = vand.u32 4294901760, %v3221_v43  ;;  %v3234_v41 = vand.u32 4294901760, %v3233_v42  ;;  %v16773_v4 = vsub.f32 %v16672_v18, %v3143_v30  ;;  %11456 = vmatpush1.bf16.msra.mxu0 %v16714_v16  ;;  %v20375_v53 = vand.u32 4294901760, %v16721_v54 }
 0x384   :  { %v20376_v21 = vand.u32 4294901760, %v16723_v46  ;;  %v11461_v44 = vpack.c.bf16 %v3186_v63, %v3174_v10  ;;  %v3228_v34 = vand.u32 4294901760, %v3227_v9  ;;  %v3240_v43 = vand.u32 4294901760, %v3239_v55  ;;  %11458 = vmatprep.subr.bf16.mxu0 %v16759_v0  ;;  %v20382_v55 = vld [vmem:[#allocation83_spill] sm:$0xff] }
 0x385   :  { %20373 = vst [vmem:[#allocation54_spill] sm:$0xff] %v16773_v4  ;;  %v11463_v30 = vpack.c.bf16 %v3192_v50, %v3180_v2  ;;  %v11465_v18 = vpack.c.bf16 %v3210_v20, %v3198_v23  ;;  %v3245_v14 = vsub.f32 %v16509_v8, %v18819_v60  ;;  %v18820_v47 = vand.u32 4294901760, %v16524_v58 }
 0x386   :  { %v16784_v39 = vpack.c.bf16 %v20376_v21, %v20375_v53  ;;  %v11467_v42 = vpack.c.bf16 %v3216_v61, %v3204_v49  ;;  %v11469_v17 = vpack.c.bf16 %v3234_v41, %v3222_v24  ;;  %v18821_v19 = vand.u32 4294901760, %v16529_v48  ;;  %v20380_v21 = vld [vmem:[#allocation80_spill] sm:$0xff] }
 0x387   :  { %v18826_v53 = vand.u32 4294901760, %v16538_v22  ;;  %v20378_v10 = vand.u32 4294901760, %v16514_v32  ;;  %v20379_v9 = vand.u32 4294901760, %v16519_v36  ;;  %v18829_v2 = vand.u32 4294901760, %v16546_v25 }
 0x388   :  { %20377 = vst [vmem:[#allocation72_spill] sm:$0xff] %v16784_v39  ;;  %v18834_v20 = vand.u32 4294901760, %v16551_v27  ;;  %11460 = vmatpush1.bf16.msra.mxu0 %v16784_v39  ;;  %v11471_v24 = vpack.c.bf16 %v3240_v43, %v3228_v34  ;;  %v3246_v49 = vand.u32 4294901760, %v3245_v14  ;;  %v3263_v41 = vsub.f32 %v16524_v58, %v18820_v47  ;;  %v20383_v14 = vld [vmem:[#allocation138_spill] sm:$0xff] }
 0x389   :  { %v3257_v63 = vsub.f32 %v16514_v32, %v20378_v10  ;;  %v16799_v23 = vsub.f32 %v16519_v36, %v20379_v9  ;;  %11462 = vmatprep.subr.bf16.mxu0 %v11461_v44  ;;  %v20381_v9 = vld [vmem:[#allocation143_spill] sm:$0xff]  ;;  %v3269_v34 = vsub.f32 %v16529_v48, %v18821_v19  ;;  %v3281_v43 = vsub.f32 %v16538_v22, %v18826_v53  ;;  %v20384_v10 = vld [vmem:[#allocation86_spill] sm:$0xff]  ;;  %v20385_v19 = vld [vmem:[#allocation92_spill] sm:$0xff] }
 0x38a   :  { %v438_v44 = vlaneseq  ;;  %v3275_v47 = vsub.f32 %v16546_v25, %v18829_v2  ;;  %v3287_v60 = vsub.f32 %v16551_v27, %v18834_v20  ;;  %v20386_v53 = vand.u32 4294901760, %v16556_v38  ;;  %v20389_v25 = vld [vmem:[#allocation87_spill] sm:$0xff] }
 0x38b   :  { %3164 = vmatmul.mubr.f32.vlgmr.msra.gmra.mrb[0].mxu0 %v20383_v14  ;;  %v3258_v0 = vand.u32 4294901760, %v3257_v63  ;;  %v20387_v14 = vand.u32 4294901760, %v16561_v31  ;;  %v20388_v2 = vand.u32 4294901760, %v16566_v59  ;;  %v3252_v20 = vand.u32 4294901760, %v16799_v23 }
 0x38c   :  { %11464 = vmatpush1.bf16.msra.mxu0 %v11463_v30  ;;  %v3293_v50 = vsub.f32 %v16556_v38, %v20386_v53  ;;  %3555 = vmatprep.mubr.f32.mxu0 %v20389_v25  ;;  %v3264_v39 = vand.u32 4294901760, %v3263_v41  ;;  %v20390_v30 = vand.u32 4294901760, %v20380_v21  ;;  %v20391_v53 = vand.u32 4294901760, %v20381_v9 }
 0x38d   :  { %v3305_v16 = vsub.f32 %v16561_v31, %v20387_v14  ;;  %v3299_v15 = vsub.f32 %v16566_v59, %v20388_v2  ;;  %11466 = vmatprep.subr.bf16.mxu0 %v11465_v18  ;;  %v3270_v38 = vand.u32 4294901760, %v3269_v34  ;;  %v3282_v14 = vand.u32 4294901760, %v3281_v43 }
 0x38e   :  { %v3311_v63 = vsub.f32 %v20380_v21, %v20390_v30  ;;  %v3317_v61 = vsub.f32 %v20381_v9, %v20391_v53  ;;  %v20392_v31 = vand.u32 4294901760, %v20382_v55  ;;  %v16848_v59 = vshrl.u32 %v438_v44, 7  ;;  %v9449_v9 = vpop.f32.mrb[4].mxu1 }
 0x38f   :  { %v3276_v18 = vand.u32 4294901760, %v3275_v47  ;;  %v3288_v25 = vand.u32 4294901760, %v3287_v60  ;;  %v20394_v23 = vand.u32 4294901760, %v20384_v10  ;;  %v20395_v30 = vand.u32 4294901760, %v20385_v19  ;;  %v9450_v22 = vpop.f32.mrb[5].mxu1 }
 0x390   :  { %v3329_v2 = vsub.f32 %v20382_v55, %v20392_v31  ;;  %20393 = vst [vmem:[#allocation140_spill] sm:$0xff] %v16848_v59  ;;  %11468 = vmatpush1.bf16.msra.mxu0 %v11467_v42  ;;  %v3294_v53 = vand.u32 4294901760, %v3293_v50  ;;  %v3306_v34 = vand.u32 4294901760, %v3305_v16  ;;  %v3300_v43 = vand.u32 4294901760, %v3299_v15  ;;  %v436_v55 = vld [vmem:[#allocation7] sm:$0x7] }
 0x391   :  { %v3323_v41 = vsub.f32 %v20384_v10, %v20394_v23  ;;  %v3335_v21 = vsub.f32 %v20385_v19, %v20395_v30  ;;  %v448_v27 = vsub.s32 2, %v16848_v59  ;;  %11470 = vmatprep.subr.bf16.mxu0 %v11469_v17  ;;  %v11473_v31 = vpack.c.bf16 %v3258_v0, %v3246_v49  ;;  %v9484_v42 = vpop.f32.mrb[6].mxu1  ;;  %v20398_v0 = vld [vmem:[#allocation95_spill] sm:$0xff] }
 0x392   :  { %v3312_v44 = vand.u32 4294901760, %v3311_v63  ;;  %v3318_v47 = vand.u32 4294901760, %v3317_v61  ;;  %v3330_v23 = vand.u32 4294901760, %v3329_v2  ;;  %v9451_v30 = vadd.f32 %v9450_v22, %v9449_v9  ;;  %v9485_v59 = vpop.f32.mrb[7].mxu1 }
 0x393   :  { %v449_v48 = vrot.slane %v436_v55, %v448_v27  ;;  %v20396_v16 = vand.u32 4294901760, %v16700_v3  ;;  %v3324_v50 = vand.u32 4294901760, %v3323_v41  ;;  %v3336_v17 = vand.u32 4294901760, %v3335_v21  ;;  %v20399_v55 = vld [vmem:[#allocation145_spill] sm:$0xff]  ;;  %v9519_v19 = vpop.f32.mrb[8].mxu1 }
 0x394   :  { %v18855_v49 = vand.u32 4294901760, %v20398_v0  ;;  %11472 = vmatpush1.bf16.msra.mxu0 %v11471_v24  ;;  %v11475_v61 = vpack.c.bf16 %v3264_v39, %v3252_v20  ;;  %v11477_v63 = vpack.c.bf16 %v3282_v14, %v3270_v38  ;;  %v18854_v60 = vand.u32 4294901760, %v16614_v45  ;;  %v9520_v20 = vpop.f32.mrb[9].mxu1 }
 0x395   :  { %v16862_v15 = vsub.f32 %v16700_v3, %v20396_v16  ;;  %v4909_v2 = vadd.f32 %v9451_v30, %v449_v48  ;;  %11474 = vmatprep.subr.bf16.mxu0 %v11473_v31  ;;  %v11479_v27 = vpack.c.bf16 %v3288_v25, %v3276_v18  ;;  %v11481_v22 = vpack.c.bf16 %v3306_v34, %v3294_v53  ;;  %v9554_v14 = vpop.f32.mrb[10].mxu1  ;;  %v20402_v53 = vld [vmem:[#allocation100_spill] sm:$0xff] }
 0x396   :  { %v18858_v9 = vand.u32 4294901760, %v20399_v55  ;;  %v9486_v10 = vadd.f32 %v9485_v59, %v9484_v42  ;;  %v11483_v3 = vpack.c.bf16 %v3312_v44, %v3300_v43  ;;  %v11485_v16 = vpack.c.bf16 %v3330_v23, %v3318_v47  ;;  %v20403_v43 = vld [vmem:[#allocation48_spill] sm:$0xff]  ;;  %v20404_v44 = vld [vmem:[#allocation105_spill] sm:$0xff]  ;;  %v9555_v23 = vpop.f32.mrb[11].mxu1  ;;  %v20407_v47 = vld [vmem:[#allocation111_spill] sm:$0xff] }
 0x397   :  { %20397 = vst [vmem:[#allocation97_spill] sm:$0xff] %v16862_v15  ;;  %v20400_v21 = vand.u32 4294901760, %v16603_v51  ;;  %v20401_v39 = vand.u32 4294901760, %v16608_v5  ;;  %v16873_v48 = vpack.c.bf16 %v3336_v17, %v3324_v50  ;;  %v16878_v25 = vsub.f32 %v20398_v0, %v18855_v49  ;;  %v9589_v50 = vpop.f32.mrb[12].mxu1 }
 0x398   :  { %v5141_v59 = vadd.f32 %v9486_v10, %v4909_v2  ;;  %v9521_v24 = vadd.f32 %v9520_v20, %v9519_v19  ;;  %11476 = vmatpush1.bf16.msra.mxu0 %v11475_v61  ;;  %v16883_v18 = vsub.f32 %v16614_v45, %v18854_v60  ;;  %v3365_v10 = vsub.f32 %v20399_v55, %v18858_v9  ;;  %v20405_v2 = vld [vmem:[#allocation106_spill] sm:$0xff]  ;;  %v9590_v60 = vpop.f32.mrb[13].mxu1 }
 0x399   :  { %v3341_v41 = vsub.f32 %v16603_v51, %v20400_v21  ;;  %v3353_v38 = vsub.f32 %v16608_v5, %v20401_v39  ;;  %11478 = vmatprep.subr.bf16.mxu0 %v11477_v63  ;;  %v18860_v19 = vand.u32 4294901760, %v16631_v62  ;;  %v9556_v42 = vadd.f32 %v9555_v23, %v9554_v14  ;;  %v20406_v39 = vld [vmem:[#allocation126_spill] sm:$0xff]  ;;  %v9624_v45 = vpop.f32.mrb[14].mxu1  ;;  %v20412_v63 = vld [vmem:[#allocation116_spill] sm:$0xff] }
 0x39a   :  { %v5279_v30 = vadd.f32 %v9521_v24, %v5141_v59  ;;  %v18861_v21 = vand.u32 4294901760, %v20405_v2  ;;  %v18866_v20 = vand.u32 4294901760, %v20406_v39  ;;  %v3348_v49 = vand.u32 4294901760, %v16878_v25  ;;  %v9625_v23 = vpop.f32.mrb[15].mxu1 }
 0x39b   :  { %v3342_v17 = vand.u32 4294901760, %v3341_v41  ;;  %v3354_v61 = vand.u32 4294901760, %v3353_v38  ;;  %v9591_v34 = vadd.f32 %v9590_v60, %v9589_v50  ;;  %v3360_v9 = vand.u32 4294901760, %v16883_v18 }
 0x39c   :  { %v5387_v31 = vadd.f32 %v9556_v42, %v5279_v30  ;;  %11480 = vmatpush1.bf16.msra.mxu0 %v11479_v27  ;;  %v20408_v59 = vand.u32 4294901760, %v20402_v53  ;;  %v20409_v38 = vand.u32 4294901760, %v20403_v43  ;;  %v20410_v14 = vand.u32 4294901760, %v20404_v44  ;;  %v9659_v42 = vpop.f32.mrb[16].mxu1 }
 0x39d   :  { %11482 = vmatprep.subr.bf16.mxu0 %v11481_v22  ;;  %v3366_v30 = vand.u32 4294901760, %v3365_v10  ;;  %v3389_v60 = vsub.f32 %v16631_v62, %v18860_v19  ;;  %v9626_v18 = vadd.f32 %v9625_v23, %v9624_v45  ;;  %v3401_v50 = vsub.f32 %v20405_v2, %v18861_v21  ;;  %v9660_v10 = vpop.f32.mrb[17].mxu1 }
 0x39e   :  { %v3377_v41 = vsub.f32 %v20402_v53, %v20408_v59  ;;  %v3371_v24 = vsub.f32 %v20403_v43, %v20409_v38  ;;  %v3383_v25 = vsub.f32 %v20404_v44, %v20410_v14  ;;  %v5555_v27 = vadd.f32 %v9591_v34, %v5387_v31  ;;  %v20411_v38 = vld [vmem:[#allocation112_spill] sm:$0xff]  ;;  %v9694_v23 = vpop.f32.mrb[18].mxu1 }
 0x39f   :  { %v3395_v59 = vsub.f32 %v20406_v39, %v18866_v20  ;;  %v20413_v44 = vand.u32 4294901760, %v20407_v47  ;;  %v9661_v31 = vadd.f32 %v9660_v10, %v9659_v42  ;;  %v20414_v43 = vld [vmem:[#allocation148_spill] sm:$0xff]  ;;  %v9695_v39 = vpop.f32.mrb[19].mxu1  ;;  %v11489_v14 = vpack.c.bf16 %v3354_v61, %v3342_v17 }
 0x3a0   :  { %v5659_v34 = vadd.f32 %v9626_v18, %v5555_v27  ;;  %11484 = vmatpush1.bf16.msra.mxu0 %v11483_v3  ;;  %v3378_v21 = vand.u32 4294901760, %v3377_v41  ;;  %v3372_v2 = vand.u32 4294901760, %v3371_v24  ;;  %v3384_v62 = vand.u32 4294901760, %v3383_v25  ;;  %v9729_v0 = vpop.f32.mrb[20].mxu1 }
 0x3a1   :  { %v3407_v19 = vsub.f32 %v20407_v47, %v20413_v44  ;;  %v18893_v20 = vand.u32 4294901760, %v20414_v43  ;;  %11486 = vmatprep.subr.bf16.mxu0 %v11485_v16  ;;  %v3390_v22 = vand.u32 4294901760, %v3389_v60  ;;  %v9696_v55 = vadd.f32 %v9695_v39, %v9694_v23  ;;  %v9730_v24 = vpop.f32.mrb[21].mxu1 }
 0x3a2   :  { %v5771_v53 = vadd.f32 %v9661_v31, %v5659_v34  ;;  %v3402_v5 = vand.u32 4294901760, %v3401_v50  ;;  %v3396_v44 = vand.u32 4294901760, %v3395_v59  ;;  %v20415_v45 = vand.u32 4294901760, %v20411_v38  ;;  %v9764_v39 = vpop.f32.mrb[22].mxu1 }
 0x3a3   :  { %v20416_v3 = vand.u32 4294901760, %v20412_v63  ;;  %v3408_v25 = vand.u32 4294901760, %v3407_v19  ;;  %v20417_v18 = vand.u32 4294901760, %v16648_v56  ;;  %v9731_v61 = vadd.f32 %v9730_v24, %v9729_v0  ;;  %v9765_v10 = vpop.f32.mrb[23].mxu1 }
 0x3a4   :  { %v3413_v27 = vsub.f32 %v20411_v38, %v20415_v45  ;;  %v6003_v17 = vadd.f32 %v9696_v55, %v5771_v53  ;;  %11488 = vmatpush1.bf16.msra.mxu0 %v16873_v48  ;;  %v11491_v60 = vpack.c.bf16 %v3360_v9, %v3348_v49  ;;  %v11493_v42 = vpack.c.bf16 %v3378_v21, %v3366_v30  ;;  %v20418_v45 = vld [vmem:[#allocation23_spill] sm:$0xff]  ;;  %v9799_v55 = vpop.f32.mrb[24].mxu1 }
 0x3a5   :  { %v3425_v41 = vsub.f32 %v20412_v63, %v20416_v3  ;;  %v3419_v16 = vsub.f32 %v16648_v56, %v20417_v18  ;;  %v11495_v50 = vpack.c.bf16 %v3384_v62, %v3372_v2  ;;  %v3431_v59 = vsub.f32 %v20414_v43, %v18893_v20  ;;  %11490 = vmatprep.subr.bf16.mxu0 %v11489_v14  ;;  %v9800_v9 = vpop.f32.mrb[25].mxu1 }
 0x3a6   :  { %v18892_v19 = vand.u32 4294901760, %v16655_v29  ;;  %v18891_v34 = vand.u32 4294901760, %v20418_v45  ;;  %v6141_v31 = vadd.f32 %v9731_v61, %v6003_v17  ;;  %v9766_v23 = vadd.f32 %v9765_v10, %v9764_v39  ;;  %v9834_v30 = vpop.f32.mrb[26].mxu1 }
 0x3a7   :  { %v11497_v0 = vpack.c.bf16 %v3402_v5, %v3390_v22  ;;  %v3414_v53 = vand.u32 4294901760, %v3413_v27  ;;  %v3426_v3 = vand.u32 4294901760, %v3425_v41  ;;  %v18880_v49 = vand.u32 4294901760, %v16661_v33  ;;  %v9835_v61 = vpop.f32.mrb[27].mxu1 }
 0x3a8   :  { %v11499_v62 = vpack.c.bf16 %v3408_v25, %v3396_v44  ;;  %v3420_v48 = vand.u32 4294901760, %v3419_v16  ;;  %v6249_v2 = vadd.f32 %v9766_v23, %v6141_v31  ;;  %v9801_v21 = vadd.f32 %v9800_v9, %v9799_v55  ;;  %11492 = vmatpush1.bf16.msra.mxu0 %v11491_v60  ;;  %v9869_v41 = vpop.f32.mrb[28].mxu1 }
 0x3a9   :  { %v3432_v14 = vand.u32 4294901760, %v3431_v59  ;;  %v18878_v24 = vand.u32 4294901760, %v16663_v28  ;;  %v18877_v18 = vand.u32 4294901760, %v16668_v6  ;;  %v18875_v17 = vand.u32 4294901760, %v16670_v37  ;;  %11494 = vmatprep.subr.bf16.mxu0 %v11493_v42  ;;  %v9870_v42 = vpop.f32.mrb[29].mxu1 }
 0x3aa   :  { %v3437_v5 = vsub.f32 %v16655_v29, %v18892_v19  ;;  %v3449_v22 = vsub.f32 %v20418_v45, %v18891_v34  ;;  %v6417_v44 = vadd.f32 %v9801_v21, %v6249_v2  ;;  %v9836_v27 = vadd.f32 %v9835_v61, %v9834_v30  ;;  %v9904_v55 = vpop.f32.mrb[30].mxu1  ;;  %v20448_v34 = vld [vmem:[#allocation92_spill] sm:$0xff] }
 0x3ab   :  { %v11501_v25 = vpack.c.bf16 %v3426_v3, %v3414_v53  ;;  %v3443_v16 = vsub.f32 %v16661_v33, %v18880_v49  ;;  %v18874_v39 = vand.u32 4294901760, %v16677_v35  ;;  %v18873_v60 = vand.u32 4294901760, %v16679_v40  ;;  %v9905_v21 = vpop.f32.mrb[31].mxu1 }
 0x3ac   :  { %v18876_v59 = vand.u32 4294901760, %v16683_v1  ;;  %v18879_v10 = vand.u32 4294901760, %v16685_v12  ;;  %v6521_v31 = vadd.f32 %v9836_v27, %v6417_v44  ;;  %v9871_v23 = vadd.f32 %v9870_v42, %v9869_v41  ;;  %11496 = vmatpush1.bf16.msra.mxu0 %v11495_v50  ;;  %v9939_v42 = vpop.f32.mrb[32].mxu1 }
 0x3ad   :  { %v11503_v9 = vpack.c.bf16 %v3432_v14, %v3420_v48  ;;  %v3455_v53 = vsub.f32 %v16663_v28, %v18878_v24  ;;  %v3461_v3 = vsub.f32 %v16668_v6, %v18877_v18  ;;  %v3473_v2 = vsub.f32 %v16670_v37, %v18875_v17  ;;  %11498 = vmatprep.subr.bf16.mxu0 %v11497_v0  ;;  %v20421_v24 = vld [vmem:[#allocation36_spill] sm:$0xff] }
 0x3ae   :  { %v3438_v30 = vand.u32 4294901760, %v3437_v5  ;;  %v3450_v61 = vand.u32 4294901760, %v3449_v22  ;;  %v6633_v44 = vadd.f32 %v9871_v23, %v6521_v31  ;;  %v9906_v27 = vadd.f32 %v9905_v21, %v9904_v55  ;;  %v9940_v31 = vpop.f32.mrb[33].mxu1 }
 0x3af   :  { %v3444_v50 = vand.u32 4294901760, %v3443_v16  ;;  %v3467_v48 = vsub.f32 %v16677_v35, %v18874_v39  ;;  %v3479_v14 = vsub.f32 %v16679_v40, %v18873_v60  ;;  %v18890_v41 = vand.u32 4294901760, %v16689_v7 }
 0x3b0   :  { %v3485_v0 = vsub.f32 %v16683_v1, %v18876_v59  ;;  %v3497_v5 = vsub.f32 %v16685_v12, %v18879_v10  ;;  %v18889_v22 = vand.u32 4294901760, %v16691_v13  ;;  %v6865_v16 = vadd.f32 %v9906_v27, %v6633_v44  ;;  %11500 = vmatpush1.bf16.msra.mxu0 %v11499_v62 }
 0x3b1   :  { %v3456_v23 = vand.u32 4294901760, %v3455_v53  ;;  %v3462_v55 = vand.u32 4294901760, %v3461_v3  ;;  %v3474_v21 = vand.u32 4294901760, %v3473_v2  ;;  %v9941_v60 = vadd.f32 %v9940_v31, %v9939_v42  ;;  %11502 = vmatprep.subr.bf16.mxu0 %v11501_v25 }
 0x3b2   :  { %v20419_v39 = vand.u32 4294901760, %v16721_v54  ;;  %v11505_v59 = vpack.c.bf16 %v3450_v61, %v3438_v30  ;;  %v18888_v18 = vand.u32 4294901760, %v16698_v52  ;;  %v18887_v10 = vand.u32 4294901760, %v20421_v24  ;;  %v20424_v61 = vld [vmem:[#allocation154_spill] sm:$0xff] }
 0x3b3   :  { %v20422_v49 = vand.u32 4294901760, %v16723_v46  ;;  %v3468_v62 = vand.u32 4294901760, %v3467_v48  ;;  %v3480_v53 = vand.u32 4294901760, %v3479_v14  ;;  %v16989_v3 = vadd.f32 %v9941_v60, %v6865_v16 }
 0x3b4   :  { %v16980_v17 = vsub.f32 %v16721_v54, %v20419_v39  ;;  %v3486_v2 = vand.u32 4294901760, %v3485_v0  ;;  %v3498_v27 = vand.u32 4294901760, %v3497_v5  ;;  %v3491_v54 = vsub.f32 %v16689_v7, %v18890_v41  ;;  %11504 = vmatpush1.bf16.msra.mxu0 %v11503_v9 }
 0x3b5   :  { %v16987_v44 = vsub.f32 %v16723_v46, %v20422_v49  ;;  %v3503_v25 = vsub.f32 %v16691_v13, %v18889_v22  ;;  %v11507_v39 = vpack.c.bf16 %v3456_v23, %v3444_v50  ;;  %v11509_v30 = vpack.c.bf16 %v3474_v21, %v3462_v55  ;;  %11506 = vmatprep.subr.bf16.mxu0 %v11505_v59  ;;  %v20444_v22 = vld [vmem:[#allocation80_spill] sm:$0xff] }
 0x3b6   :  { %20420 = vst [vmem:[#allocation102_spill] sm:$0xff] %v16980_v17  ;;  %v18885_v46 = vand.u32 4294901760, %v20424_v61  ;;  %v18882_v49 = vand.u32 4294901760, %v16773_v4  ;;  %v3509_v60 = vsub.f32 %v16698_v52, %v18888_v18  ;;  %v3521_v48 = vsub.f32 %v20421_v24, %v18887_v10  ;;  %v20443_v18 = vld [vmem:[#allocation142_spill] sm:$0xff] }
 0x3b7   :  { %20423 = vst [vmem:[#allocation108_spill] sm:$0xff] %v16987_v44  ;;  %v18881_v14 = vand.u32 4294901760, %v16775_v57  ;;  %v18883_v42 = vand.u32 4294901760, %v16862_v15  ;;  %v11511_v9 = vpack.c.bf16 %v3480_v53, %v3468_v62  ;;  %v11513_v50 = vpack.c.bf16 %v3498_v27, %v3486_v2 }
 0x3b8   :  { %v3492_v0 = vand.u32 4294901760, %v3491_v54  ;;  %v3504_v5 = vand.u32 4294901760, %v3503_v25  ;;  %11508 = vmatpush1.bf16.msra.mxu0 %v11507_v39  ;;  %v3515_v59 = vsub.f32 %v20424_v61, %v18885_v46  ;;  %v3527_v16 = vsub.f32 %v16773_v4, %v18882_v49  ;;  %v20428_v46 = vld [vmem:[#allocation119_spill] sm:$0xff] }
 0x3b9   :  { %v18884_v31 = vand.u32 4294901760, %v16980_v17  ;;  %v18886_v23 = vand.u32 4294901760, %v16987_v44  ;;  %11510 = vmatprep.subr.bf16.mxu0 %v11509_v30  ;;  %v3510_v55 = vand.u32 4294901760, %v3509_v60  ;;  %v3522_v21 = vand.u32 4294901760, %v3521_v48 }
 0x3ba   :  { %v3533_v62 = vsub.f32 %v16775_v57, %v18881_v14  ;;  %v3545_v53 = vsub.f32 %v16862_v15, %v18883_v42  ;;  %v11515_v2 = vpack.c.bf16 %v3504_v5, %v3492_v0  ;;  %v3516_v27 = vand.u32 4294901760, %v3515_v59  ;;  %v20425_v5 = vld [vmem:[#allocation125_spill] sm:$0xff]  ;;  %v20426_v59 = vld [vmem:[#allocation51_spill] sm:$0xff] }
 0x3bb   :  { %v3528_v54 = vand.u32 4294901760, %v3527_v16  ;;  %v3539_v25 = vsub.f32 %v16980_v17, %v18884_v31  ;;  %v3551_v39 = vsub.f32 %v16987_v44, %v18886_v23  ;;  %v11517_v30 = vpack.c.bf16 %v3522_v21, %v3510_v55  ;;  %v20427_v31 = vld [vmem:[#allocation56_spill] sm:$0xff]  ;;  %v20430_v55 = vld [vmem:[#allocation67_spill] sm:$0xff] }
 0x3bc   :  { %11512 = vmatpush1.bf16.msra.mxu0 %v11511_v9  ;;  %v3534_v60 = vand.u32 4294901760, %v3533_v62  ;;  %v3546_v48 = vand.u32 4294901760, %v3545_v53  ;;  %v11525_v16 = vpack.c.bf16 %v20426_v59, %v20425_v5  ;;  %v11527_v23 = vpack.c.bf16 %v20428_v46, %v20427_v31  ;;  %v20431_v62 = vld [vmem:[#allocation120_spill] sm:$0xff] }
 0x3bd   :  { %11514 = vmatprep.subr.bf16.mxu0 %v11513_v50  ;;  %v11519_v14 = vpack.c.bf16 %v3528_v54, %v3516_v27  ;;  %v3540_v49 = vand.u32 4294901760, %v3539_v25  ;;  %v3552_v42 = vand.u32 4294901760, %v3551_v39  ;;  %v20429_v50 = vld [vmem:[#allocation57_spill] sm:$0xff]  ;;  %v20432_v53 = vld [vmem:[#allocation68_spill] sm:$0xff] }
 0x3be   :  { %v11521_v9 = vpack.c.bf16 %v3546_v48, %v3534_v60  ;;  %v11529_v21 = vpack.c.bf16 %v20430_v55, %v20429_v50 }
 0x3bf   :  { %v11523_v0 = vpack.c.bf16 %v3552_v42, %v3540_v49  ;;  %v20435_v49 = vld [vmem:[#allocation118_spill] sm:$0xff]  ;;  %v20436_v42 = vld [vmem:[#allocation76_spill] sm:$0xff] }
 0x3c0   :  { %11516 = vmatpush1.bf16.msra.mxu0 %v11515_v2  ;;  %v20433_v2 = vld [vmem:[#allocation99_spill] sm:$0xff]  ;;  %v11533_v54 = vpack.c.bf16 %v20436_v42, %v20435_v49 }
 0x3c1   :  { %11518 = vmatprep.subr.bf16.mxu0 %v11517_v30  ;;  %v11531_v27 = vpack.c.bf16 %v20433_v2, %v20432_v53  ;;  %v11535_v30 = vpack.c.bf16 %v16504_v26, %v16499_v11 }
 0x3c4   :  { %11520 = vmatpush1.bf16.msra.mxu0 %v11519_v14  ;;  %v20434_v14 = vld [vmem:[#allocation58_spill] sm:$0xff] }
 0x3c5   :  { %11522 = vmatprep.subr.bf16.mxu0 %v11521_v9  ;;  %v11539_v9 = vpack.c.bf16 %v16524_v58, %v16519_v36 }
 0x3c8   :  { %11524 = vmatpush1.bf16.msra.mxu0 %v11523_v0  ;;  %v20437_v0 = vld [vmem:[#allocation52_spill] sm:$0xff] }
 0x3c9   :  { %11526 = vmatprep.subr.bf16.mxu0 %v11525_v16  ;;  %v20438_v16 = vld [vmem:[#allocation63_spill] sm:$0xff] }
 0x3cb   :  { %3557 = vmatmul.mubr.f32.vlgmr.msra.gmra.mrb[0].mxu0 %v20431_v62  ;;  %v9974_v25 = vpop.f32.mrb[34].mxu1  ;;  %v20451_v62 = vld [vmem:[#allocation75_spill] sm:$0xff] }
 0x3cc   :  { %11528 = vmatpush1.bf16.msra.mxu0 %v11527_v23  ;;  %3757 = vmatprep.mubr.f32.mxu0 %v20434_v14  ;;  %v9975_v39 = vpop.f32.mrb[35].mxu1  ;;  %v11537_v23 = vpack.c.bf16 %v16514_v32, %v16509_v8  ;;  %v20440_v14 = vld [vmem:[#allocation64_spill] sm:$0xff] }
 0x3cd   :  { %11530 = vmatprep.subr.bf16.mxu0 %v11529_v21  ;;  %v9976_v60 = vadd.f32 %v9975_v39, %v9974_v25  ;;  %v11541_v21 = vpack.c.bf16 %v20438_v16, %v20437_v0  ;;  %v20441_v25 = vld [vmem:[#allocation69_spill] sm:$0xff] }
 0x3cf   :  { %v7111_v48 = vadd.f32 %v9976_v60, %v16989_v3  ;;  %v11547_v3 = vpack.c.bf16 %v20444_v22, %v20443_v18  ;;  %v20446_v60 = vld [vmem:[#allocation83_spill] sm:$0xff]  ;;  %v20455_v18 = vld [vmem:[#allocation105_spill] sm:$0xff] }
 0x3d0   :  { %11532 = vmatpush1.bf16.msra.mxu0 %v11531_v27  ;;  %v20439_v27 = vld [vmem:[#allocation46_spill] sm:$0xff] }
 0x3d1   :  { %11534 = vmatprep.subr.bf16.mxu0 %v11533_v54  ;;  %v11543_v10 = vpack.c.bf16 %v20440_v14, %v20439_v27  ;;  %v20442_v54 = vld [vmem:[#allocation77_spill] sm:$0xff] }
 0x3d2   :  { %v11545_v39 = vpack.c.bf16 %v20442_v54, %v20441_v25  ;;  %v20453_v25 = vld [vmem:[#allocation100_spill] sm:$0xff] }
 0x3d4   :  { %11536 = vmatpush1.bf16.msra.mxu0 %v11535_v30  ;;  %v20445_v30 = vld [vmem:[#allocation143_spill] sm:$0xff] }
 0x3d5   :  { %11538 = vmatprep.subr.bf16.mxu0 %v11537_v23  ;;  %v11549_v41 = vpack.c.bf16 %v20446_v60, %v20445_v30  ;;  %v20447_v23 = vld [vmem:[#allocation86_spill] sm:$0xff] }
 0x3d6   :  { %v11551_v19 = vpack.c.bf16 %v20448_v34, %v20447_v23  ;;  %v20457_v30 = vld [vmem:[#allocation106_spill] sm:$0xff] }
 0x3d8   :  { %11540 = vmatpush1.bf16.msra.mxu0 %v11539_v9  ;;  %v20449_v9 = vld [vmem:[#allocation94_spill] sm:$0xff] }
 0x3d9   :  { %11542 = vmatprep.subr.bf16.mxu0 %v11541_v21  ;;  %v11553_v20 = vpack.c.bf16 %v20449_v9, %v16603_v51  ;;  %v20450_v21 = vld [vmem:[#allocation95_spill] sm:$0xff] }
 0x3da   :  { %v11555_v54 = vpack.c.bf16 %v20451_v62, %v20450_v21 }
 0x3dc   :  { %11544 = vmatpush1.bf16.msra.mxu0 %v11543_v10  ;;  %v20452_v10 = vld [vmem:[#allocation145_spill] sm:$0xff] }
 0x3dd   :  { %11546 = vmatprep.subr.bf16.mxu0 %v11545_v39  ;;  %v11557_v22 = vpack.c.bf16 %v20453_v25, %v20452_v10  ;;  %v20454_v39 = vld [vmem:[#allocation48_spill] sm:$0xff] }
 0x3de   :  { %v11559_v60 = vpack.c.bf16 %v20455_v18, %v20454_v39 }
 0x3e0   :  { %11548 = vmatpush1.bf16.msra.mxu0 %v11547_v3  ;;  %v20456_v3 = vld [vmem:[#allocation84_spill] sm:$0xff] }
 0x3e1   :  { %11550 = vmatprep.subr.bf16.mxu0 %v11549_v41  ;;  %v11561_v34 = vpack.c.bf16 %v20457_v30, %v20456_v3  ;;  %v20458_v41 = vld [vmem:[#allocation126_spill] sm:$0xff] }
 0x3e2   :  { %v11563_v9 = vpack.c.bf16 %v20407_v47, %v20458_v41 }
 0x3e4   :  { %11552 = vmatpush1.bf16.msra.mxu0 %v11551_v19  ;;  %v11565_v19 = vpack.c.bf16 %v20412_v63, %v20411_v38 }
 0x3e5   :  { %11554 = vmatprep.subr.bf16.mxu0 %v11553_v20 }
 0x3e8   :  { %11556 = vmatpush1.bf16.msra.mxu0 %v11555_v54  ;;  %v11567_v54 = vpack.c.bf16 %v20414_v43, %v16648_v56 }
 0x3e9   :  { %11558 = vmatprep.subr.bf16.mxu0 %v11557_v22  ;;  %v11569_v22 = vpack.c.bf16 %v20418_v45, %v16655_v29 }
 0x3eb   :  { %v10009_v20 = vpop.f32.mrb[36].mxu1 }
 0x3ec   :  { %11560 = vmatpush1.bf16.msra.mxu0 %v11559_v60  ;;  %v10010_v62 = vpop.f32.mrb[37].mxu1  ;;  %v11571_v60 = vpack.c.bf16 %v16663_v28, %v16661_v33 }
 0x3ed   :  { %11562 = vmatprep.subr.bf16.mxu0 %v11561_v34  ;;  %v10011_v25 = vadd.f32 %v10010_v62, %v10009_v20  ;;  %v11573_v34 = vpack.c.bf16 %v16670_v37, %v16668_v6  ;;  %v11577_v62 = vpack.c.bf16 %v16685_v12, %v16683_v1  ;;  %v11585_v20 = vpack.c.bf16 %v16862_v15, %v16775_v57  ;;  %v20465_v15 = vld [vmem:[#allocation26_spill] sm:$0xff] }
 0x3ef   :  { %v7279_v30 = vadd.f32 %v10011_v25, %v7111_v48  ;;  %v11579_v48 = vpack.c.bf16 %v16691_v13, %v16689_v7  ;;  %v11581_v25 = vpack.c.bf16 %v20421_v24, %v16698_v52 }
 0x3f0   :  { %11564 = vmatpush1.bf16.msra.mxu0 %v11563_v9  ;;  %v11575_v9 = vpack.c.bf16 %v16679_v40, %v16677_v35 }
 0x3f1   :  { %11566 = vmatprep.subr.bf16.mxu0 %v11565_v19  ;;  %v11583_v19 = vpack.c.bf16 %v16773_v4, %v20424_v61  ;;  %v20464_v4 = vld [vmem:[#allocation21_spill] sm:$0xff] }
 0x3f2   :  { %v403_v61 = vld [vmem:[#allocation8 + $0xb0] sm:$0xff] }
 0x3f4   :  { %11568 = vmatpush1.bf16.msra.mxu0 %v11567_v54  ;;  %v11587_v54 = vpack.c.bf16 %v16987_v44, %v16980_v17  ;;  %v20473_v17 = vld [vmem:[#allocation47_spill] sm:$0xff] }
 0x3f5   :  { %11570 = vmatprep.subr.bf16.mxu0 %v11569_v22  ;;  %v20459_v22 = vld [vmem:[#allocation85_spill] sm:$0xff] }
 0x3f8   :  { %11572 = vmatpush1.bf16.msra.mxu0 %v11571_v60  ;;  %v20460_v60 = vld [vmem:[#allocation128_spill] sm:$0xff] }
 0x3f9   :  { %11574 = vmatprep.subr.bf16.mxu0 %v11573_v34  ;;  %v20461_v34 = vld [vmem:[#allocation90_spill] sm:$0xff] }
 0x3fc   :  { %11576 = vmatpush1.bf16.msra.mxu0 %v11575_v9  ;;  %v20462_v9 = vld [vmem:[#allocation59_spill] sm:$0xff] }
 0x3fd   :  { %11578 = vmatprep.subr.bf16.mxu0 %v11577_v62  ;;  %v20463_v62 = vld [vmem:[#allocation134_spill] sm:$0xff] }
 0x400   :  { %11580 = vmatpush1.bf16.msra.mxu0 %v11579_v48 }
 0x401   :  { %11582 = vmatprep.subr.bf16.mxu0 %v11581_v25 }
 0x404   :  { %11584 = vmatpush1.bf16.msra.mxu0 %v11583_v19 }
 0x405   :  { %11586 = vmatprep.subr.bf16.mxu0 %v11585_v20  ;;  %v20466_v20 = vld [vmem:[#allocation29_spill] sm:$0xff] }
 0x408   :  { %11588 = vmatpush1.bf16.msra.mxu0 %v11587_v54  ;;  %v20467_v54 = vld [vmem:[#allocation34_spill] sm:$0xff] }
 0x409   :  { %11590 = vmatprep.subr.bf16.mxu0 %v20459_v22  ;;  %v20468_v22 = vld [vmem:[#allocation33_spill] sm:$0xff] }
 0x40b   :  { %3760 = vmatmul.mubr.f32.vlgmr.msra.gmra.mrb[0].mxu0 %v20460_v60  ;;  %v10044_v48 = vpop.f32.mrb[38].mxu1  ;;  %v20469_v60 = vld [vmem:[#allocation41_spill] sm:$0xff] }
 0x40c   :  { %11592 = vmatpush1.bf16.msra.mxu0 %v20461_v34  ;;  %3897 = vmatprep.mubr.f32.mxu0 %v20462_v9  ;;  %v10045_v25 = vpop.f32.mrb[39].mxu1  ;;  %v20470_v34 = vld [vmem:[#allocation44_spill] sm:$0xff]  ;;  %v20471_v9 = vld [vmem:[#allocation39_spill] sm:$0xff] }
 0x40d   :  { %11594 = vmatprep.subr.bf16.mxu0 %v20463_v62  ;;  %v10046_v19 = vadd.f32 %v10045_v25, %v10044_v48  ;;  %v20472_v62 = vld [vmem:[#allocation38_spill] sm:$0xff]  ;;  %v20474_v48 = vld [vmem:[#allocation65_spill] sm:$0xff] }
 0x40e   :  { %v20475_v25 = vld [vmem:[#allocation146_spill] sm:$0xff] }
 0x40f   :  { %v7383_v44 = vadd.f32 %v10046_v19, %v7279_v30  ;;  %v20476_v30 = vld [vmem:[#allocation53_spill] sm:$0xff] }
 0x410   :  { %11596 = vmatpush1.bf16.msra.mxu0 %v20464_v4  ;;  %v20477_v19 = vld [vmem:[#allocation133_spill] sm:$0xff] }
 0x411   :  { %11598 = vmatprep.subr.bf16.mxu0 %v20465_v15  ;;  %v20487_v15 = vld [vmem:[#allocation151_spill] sm:$0xff] }
 0x414   :  { %11600 = vmatpush1.bf16.msra.mxu0 %v20466_v20 }
 0x415   :  { %11602 = vmatprep.subr.bf16.mxu0 %v20467_v54  ;;  %v20478_v54 = vld [vmem:[#allocation89_spill] sm:$0xff] }
 0x418   :  { %11604 = vmatpush1.bf16.msra.mxu0 %v20468_v22  ;;  %v20479_v22 = vld [vmem:[#allocation74_spill] sm:$0xff] }
 0x419   :  { %11606 = vmatprep.subr.bf16.mxu0 %v20469_v60  ;;  %v20480_v60 = vld [vmem:[#allocation104_spill] sm:$0xff] }
 0x41c   :  { %11608 = vmatpush1.bf16.msra.mxu0 %v20470_v34  ;;  %v20481_v34 = vld [vmem:[#allocation107_spill] sm:$0xff] }
 0x41d   :  { %11610 = vmatprep.subr.bf16.mxu0 %v20471_v9  ;;  %v20482_v9 = vld [vmem:[#allocation147_spill] sm:$0xff] }
 0x420   :  { %11612 = vmatpush1.bf16.msra.mxu0 %v20472_v62  ;;  %v20483_v62 = vld [vmem:[#allocation117_spill] sm:$0xff] }
 0x421   :  { %11614 = vmatprep.subr.bf16.mxu0 %v20473_v17  ;;  %v20484_v17 = vld [vmem:[#allocation150_spill] sm:$0xff] }
 0x424   :  { %11616 = vmatpush1.bf16.msra.mxu0 %v20474_v48  ;;  %v20485_v48 = vld [vmem:[#allocation20_spill] sm:$0xff] }
 0x425   :  { %11618 = vmatprep.subr.bf16.mxu0 %v20475_v25 }
 0x428   :  { %11620 = vmatpush1.bf16.msra.mxu0 %v20476_v30 }
 0x429   :  { %11622 = vmatprep.subr.bf16.mxu0 %v20477_v19  ;;  %v20486_v19 = vld [vmem:[#allocation30_spill] sm:$0xff] }
 0x42c   :  { %11624 = vmatpush1.bf16.msra.mxu0 %v20478_v54 }
 0x42d   :  { %11626 = vmatprep.subr.bf16.mxu0 %v20479_v22 }
 0x430   :  { %11628 = vmatpush1.bf16.msra.mxu0 %v20480_v60  ;;  %v20488_v60 = vld [vmem:[#allocation24_spill] sm:$0xff] }
 0x431   :  { %11630 = vmatprep.subr.bf16.mxu0 %v20481_v34  ;;  %v20489_v34 = vld [vmem:[#allocation152_spill] sm:$0xff] }
 0x434   :  { %11632 = vmatpush1.bf16.msra.mxu0 %v20482_v9  ;;  %v20490_v9 = vld [vmem:[#allocation37_spill] sm:$0xff] }
 0x435   :  { %11634 = vmatprep.subr.bf16.mxu0 %v20483_v62  ;;  %v20491_v62 = vld [vmem:[#allocation43_spill] sm:$0xff] }
 0x437   :  { %v7841_v25 = vpop.f32.mrb[40].mxu1 }
 0x438   :  { %11636 = vmatpush1.bf16.msra.mxu0 %v20484_v17  ;;  %v12741_v30 = vadd.f32 %v7841_v25, %v7383_v44  ;;  %v10418_v20 = vpop.f32.mrb[41].mxu1  ;;  %v20492_v17 = vand.u32 4294901760, %v20425_v5  ;;  %v20495_v25 = vand.u32 4294901760, %v20427_v31  ;;  %v20500_v5 = vand.u32 4294901760, %v20432_v53 }
 0x439   :  { %11638 = vmatprep.subr.bf16.mxu0 %v20485_v48  ;;  %v20493_v48 = vand.u32 4294901760, %v20426_v59  ;;  %v20494_v20 = vld [vmem:[#allocation72_spill] sm:$0xff]  ;;  %v20501_v59 = vand.u32 4294901760, %v20433_v2  ;;  %v20503_v31 = vand.u32 4294901760, %v20436_v42  ;;  %v20507_v42 = vand.u32 4294901760, %v16509_v8 }
 0x43a   :  { %v7847_v54 = vmax.f32 %v12741_v30, 0.0  ;;  %v20496_v30 = vand.u32 4294901760, %v20428_v46  ;;  %v397_v46 = vld [vmem:[#allocation8 + $0x80] sm:$0xff]  ;;  %v382_v2 = vld [vmem:[#allocation8 + $0x8] sm:$0xff] }
 0x43b   :  { %v11653_v44 = vpack.c.bf16 %v20493_v48, %v20492_v17  ;;  %v11659_v17 = vpack.c.bf16 %v20501_v59, %v20500_v5  ;;  %v20502_v48 = vand.u32 4294901760, %v20435_v49  ;;  %v7907_v53 = vand.u32 4294901760, %v397_v46  ;;  %v399_v5 = vld [vmem:[#allocation8 + $0x90] sm:$0xff]  ;;  %v400_v49 = vld [vmem:[#allocation8 + $0x98] sm:$0xff]  ;;  %v386_v8 = vld [vmem:[#allocation8 + $0x28] sm:$0xff] }
 0x43c   :  { %11640 = vmatpush1.bf16.msra.mxu0 %v20486_v19  ;;  %7850 = vst [vmem:[#allocation11 + $0x10] sm:$0xff] %v7847_v54  ;;  %v11655_v54 = vpack.c.bf16 %v20496_v30, %v20495_v25  ;;  %v398_v25 = vld [vmem:[#allocation8 + $0x88] sm:$0xff]  ;;  %v20508_v59 = vand.u32 4294901760, %v16514_v32 }
 0x43d   :  { %11642 = vmatprep.subr.bf16.mxu0 %v20487_v15  ;;  %v20499_v15 = vld [vmem:[#allocation137_spill] sm:$0xff]  ;;  %v17160_v19 = vsub.f32 %v397_v46, %v7907_v53 }
 0x440   :  { %11644 = vmatpush1.bf16.msra.mxu0 %v20488_v60  ;;  %v20497_v60 = vand.u32 4294901760, %v20429_v50  ;;  %v20504_v50 = vand.u32 4294901760, %v16499_v11  ;;  %v7916_v11 = vand.u32 4294901760, %v400_v49 }
 0x441   :  { %11646 = vmatprep.subr.bf16.mxu0 %v20489_v34  ;;  %v20498_v34 = vand.u32 4294901760, %v20430_v55  ;;  %v20505_v55 = vand.u32 4294901760, %v16504_v26  ;;  %v384_v26 = vld [vmem:[#allocation8 + $0x18] sm:$0xff] }
 0x442   :  { %v17175_v46 = vsub.f32 %v400_v49, %v7916_v11 }
 0x444   :  { %11648 = vmatpush1.bf16.msra.mxu0 %v20490_v9  ;;  %v11657_v9 = vpack.c.bf16 %v20498_v34, %v20497_v60  ;;  %v11663_v34 = vpack.c.bf16 %v20505_v55, %v20504_v50  ;;  %v7910_v60 = vand.u32 4294901760, %v398_v25  ;;  %v401_v50 = vld [vmem:[#allocation8 + $0xa0] sm:$0xff]  ;;  %20516 = vst [vmem:[#allocation91_spill] sm:$0xff] %v17175_v46 }
 0x445   :  { %11650 = vmatprep.subr.bf16.mxu0 %v20491_v62  ;;  %v383_v62 = vld [vmem:[#allocation8 + $0x10] sm:$0xff] }
 0x446   :  { %v17158_v55 = vpack.c.bf16 %v7910_v60, %v7907_v53  ;;  %v17162_v22 = vsub.f32 %v398_v25, %v7910_v60  ;;  %v7865_v25 = vand.u32 4294901760, %v383_v62  ;;  %v7919_v53 = vand.u32 4294901760, %v401_v50 }
 0x448   :  { %11652 = vmatpush1.bf16.msra.mxu0 %v20494_v20  ;;  %v11661_v20 = vpack.c.bf16 %v20503_v31, %v20502_v48  ;;  %v11665_v48 = vpack.c.bf16 %v20508_v59, %v20507_v42  ;;  %v7913_v31 = vand.u32 4294901760, %v399_v5  ;;  %20509 = vst [vmem:[#allocation109_spill] sm:$0xff] %v17158_v55  ;;  %20510 = vst [vmem:[#allocation115_spill] sm:$0xff] %v17162_v22  ;;  %12400 = vmatprep.subr.bf16.mxu1 %v17158_v55 }
 0x449   :  { %11654 = vmatprep.subr.bf16.mxu0 %v11653_v44  ;;  %v381_v44 = vld [vmem:[#allocation8] sm:$0xff] }
 0x44a   :  { %v7859_v30 = vand.u32 4294901760, %v381_v44  ;;  %v17170_v42 = vpack.c.bf16 %v7916_v11, %v7913_v31  ;;  %v17172_v59 = vsub.f32 %v399_v5, %v7913_v31  ;;  %v17185_v31 = vsub.f32 %v401_v50, %v7919_v53  ;;  %v388_v11 = vld [vmem:[#allocation8 + $0x38] sm:$0xff] }
 0x44b   :  { %3901 = vmatmul.mubr.f32.vlgmr.msra.gmra.mrb[0].mxu0 %v20499_v15  ;;  %v20506_v15 = vld [vmem:[#allocation87_spill] sm:$0xff] }
 0x44c   :  { %11656 = vmatpush1.bf16.msra.mxu0 %v11655_v54  ;;  %4164 = vmatprep.mubr.f32.mxu0 %v20506_v15  ;;  %v7862_v54 = vand.u32 4294901760, %v382_v2  ;;  %v17164_v4 = vsub.f32 %v381_v44, %v7859_v30  ;;  %v385_v15 = vld [vmem:[#allocation8 + $0x20] sm:$0xff]  ;;  %20514 = vst [vmem:[#allocation71_spill] sm:$0xff] %v17170_v42  ;;  %20515 = vst [vmem:[#allocation78_spill] sm:$0xff] %v17172_v59  ;;  %v7868_v44 = vand.u32 4294901760, %v384_v26 }
 0x44d   :  { %11658 = vmatprep.subr.bf16.mxu0 %v11657_v9  ;;  %v402_v9 = vld [vmem:[#allocation8 + $0xa8] sm:$0xff] }
 0x44e   :  { %20511 = vst [vmem:[#allocation144_spill] sm:$0xff] %v17164_v4  ;;  %v17166_v57 = vpack.c.bf16 %v7862_v54, %v7859_v30  ;;  %v17168_v32 = vsub.f32 %v382_v2, %v7862_v54  ;;  %v7922_v60 = vand.u32 4294901760, %v402_v9  ;;  %v7871_v30 = vand.u32 4294901760, %v385_v15  ;;  %v404_v54 = vld [vmem:[#allocation8 + $0xb8] sm:$0xff]  ;;  %v387_v4 = vld [vmem:[#allocation8 + $0x30] sm:$0xff] }
 0x44f   :  { %v7874_v2 = vand.u32 4294901760, %v386_v8  ;;  %v17179_v5 = vpack.c.bf16 %v7868_v44, %v7865_v25  ;;  %v17183_v49 = vsub.f32 %v384_v26, %v7868_v44  ;;  %v7877_v50 = vand.u32 4294901760, %v387_v4  ;;  %v20531_v44 = vld [vmem:[#allocation69_spill] sm:$0xff] }
 0x450   :  { %20512 = vst [vmem:[#allocation66_spill] sm:$0xff] %v17166_v57  ;;  %20513 = vst [vmem:[#allocation70_spill] sm:$0xff] %v17168_v32  ;;  %11660 = vmatpush1.bf16.msra.mxu0 %v11659_v17  ;;  %12402 = vmatpush3.bf16.msra.mxu1 %v17166_v57  ;;  %v7925_v32 = vand.u32 4294901760, %v403_v61  ;;  %v17181_v17 = vsub.f32 %v383_v62, %v7865_v25  ;;  %v20518_v57 = vand.u32 4294901760, %v16524_v58  ;;  %v7928_v62 = vand.u32 4294901760, %v404_v54 }
 0x451   :  { %11662 = vmatprep.subr.bf16.mxu0 %v11661_v20  ;;  %12404 = vmatprep.subr.bf16.mxu1 %v17170_v42  ;;  %v20517_v20 = vand.u32 4294901760, %v16519_v36  ;;  %v17191_v46 = vpack.c.bf16 %v7922_v60, %v7919_v53  ;;  %v17193_v59 = vsub.f32 %v402_v9, %v7922_v60  ;;  %v17195_v22 = vsub.f32 %v385_v15, %v7871_v30  ;;  %v20533_v60 = vld [vmem:[#allocation77_spill] sm:$0xff] }
 0x452   :  { %v17197_v42 = vsub.f32 %v386_v8, %v7874_v2  ;;  %v17199_v26 = vsub.f32 %v403_v61, %v7925_v32  ;;  %v20523_v25 = vand.u32 4294901760, %v20437_v0  ;;  %v20524_v36 = vand.u32 4294901760, %v20438_v16 }
 0x453   :  { %v11667_v55 = vpack.c.bf16 %v20518_v57, %v20517_v20  ;;  %20519 = vst [vmem:[#allocation131_spill] sm:$0xff] %v17193_v59  ;;  %20520 = vst [vmem:[#allocation132_spill] sm:$0xff] %v17195_v22  ;;  %v17206_v57 = vpack.c.bf16 %v7874_v2, %v7871_v30  ;;  %v7880_v9 = vand.u32 4294901760, %v388_v11  ;;  %v17211_v15 = vsub.f32 %v404_v54, %v7928_v62  ;;  %v20538_v54 = vld [vmem:[#allocation80_spill] sm:$0xff] }
 0x454   :  { %11664 = vmatpush1.bf16.msra.mxu0 %v11663_v34  ;;  %20521 = vst [vmem:[#allocation156_spill] sm:$0xff] %v17197_v42  ;;  %20522 = vst [vmem:[#allocation158_spill] sm:$0xff] %v17199_v26  ;;  %v11669_v58 = vpack.c.bf16 %v20524_v36, %v20523_v25  ;;  %12406 = vmatpush3.bf16.msra.mxu1 %v17179_v5  ;;  %v17209_v34 = vpack.c.bf16 %v7928_v62, %v7925_v32  ;;  %v20529_v0 = vand.u32 4294901760, %v20439_v27  ;;  %v20542_v62 = vld [vmem:[#allocation83_spill] sm:$0xff] }
 0x455   :  { %11666 = vmatprep.subr.bf16.mxu0 %v11665_v48  ;;  %12408 = vmatprep.subr.bf16.mxu1 %v17191_v46  ;;  %20526 = vst [vmem:[#allocation161_spill] sm:$0xff] %v17211_v15  ;;  %v17213_v61 = vsub.f32 %v387_v4, %v7877_v50  ;;  %v17215_v8 = vsub.f32 %v388_v11, %v7880_v9  ;;  %v20530_v16 = vand.u32 4294901760, %v20440_v14  ;;  %v20532_v53 = vand.u32 4294901760, %v20531_v44  ;;  %v20536_v4 = vld [vmem:[#allocation142_spill] sm:$0xff]  ;;  %v20540_v14 = vld [vmem:[#allocation143_spill] sm:$0xff] }
 0x456   :  { %20525 = vst [vmem:[#allocation160_spill] sm:$0xff] %v17209_v34  ;;  %v20534_v30 = vand.u32 4294901760, %v20533_v60  ;;  %v17226_v32 = vpack.c.bf16 %v7880_v9, %v7877_v50  ;;  %v20539_v27 = vand.u32 4294901760, %v20538_v54  ;;  %v20541_v20 = vand.u32 4294901760, %v20540_v14  ;;  %v20554_v54 = vld [vmem:[#allocation100_spill] sm:$0xff] }
 0x457   :  { %20527 = vst [vmem:[#allocation162_spill] sm:$0xff] %v17213_v61  ;;  %20528 = vst [vmem:[#allocation164_spill] sm:$0xff] %v17215_v8  ;;  %v11671_v48 = vpack.c.bf16 %v20530_v16, %v20529_v0  ;;  %v20543_v25 = vand.u32 4294901760, %v20542_v62  ;;  %v20544_v50 = vand.u32 4294901760, %v20447_v23  ;;  %v20547_v16 = vand.u32 4294901760, %v16603_v51  ;;  %v20559_v62 = vld [vmem:[#allocation106_spill] sm:$0xff] }
 0x458   :  { %11668 = vmatpush1.bf16.msra.mxu0 %v11667_v55  ;;  %v11673_v2 = vpack.c.bf16 %v20534_v30, %v20532_v53  ;;  %12410 = vmatpush3.bf16.msra.mxu1 %v17206_v57  ;;  %20535 = vst [vmem:[#allocation165_spill] sm:$0xff] %v17226_v32  ;;  %v20537_v55 = vand.u32 4294901760, %v20536_v4  ;;  %v20550_v60 = vand.u32 4294901760, %v20450_v21  ;;  %v20551_v30 = vld [vmem:[#allocation75_spill] sm:$0xff]  ;;  %v20555_v23 = vand.u32 4294901760, %v20554_v54  ;;  %v20583_v54 = vld [vmem:[#allocation54_spill] sm:$0xff] }
 0x459   :  { %11670 = vmatprep.subr.bf16.mxu0 %v11669_v58  ;;  %12412 = vmatprep.subr.bf16.mxu1 %v17209_v34  ;;  %v11677_v36 = vpack.c.bf16 %v20543_v25, %v20541_v20  ;;  %v20545_v58 = vld [vmem:[#allocation92_spill] sm:$0xff]  ;;  %v20557_v51 = vand.u32 4294901760, %v20455_v18  ;;  %v20558_v20 = vand.u32 4294901760, %v20456_v3  ;;  %v20560_v21 = vand.u32 4294901760, %v20559_v62 }
 0x45a   :  { %v11675_v11 = vpack.c.bf16 %v20539_v27, %v20537_v55  ;;  %v20546_v9 = vand.u32 4294901760, %v20545_v58  ;;  %v20553_v55 = vand.u32 4294901760, %v20452_v10  ;;  %v20562_v10 = vand.u32 4294901760, %v20407_v47 }
 0x45b   :  { %v11689_v25 = vpack.c.bf16 %v20560_v21, %v20558_v20  ;;  %v20563_v58 = vand.u32 4294901760, %v20411_v38  ;;  %v20565_v18 = vand.u32 4294901760, %v16648_v56  ;;  %v20566_v3 = vand.u32 4294901760, %v20414_v43  ;;  %v20591_v20 = vld [vmem:[#allocation108_spill] sm:$0xff] }
 0x45c   :  { %11672 = vmatpush1.bf16.msra.mxu0 %v11671_v48  ;;  %12414 = vmatpush3.bf16.msra.mxu1 %v17226_v32  ;;  %v11679_v0 = vpack.c.bf16 %v20546_v9, %v20544_v50  ;;  %v20548_v48 = vld [vmem:[#allocation94_spill] sm:$0xff]  ;;  %v11685_v27 = vpack.c.bf16 %v20555_v23, %v20553_v55  ;;  %v20569_v47 = vand.u32 4294901760, %v16661_v33  ;;  %v20570_v38 = vand.u32 4294901760, %v16663_v28  ;;  %v20594_v21 = vld [vmem:[#allocation120_spill] sm:$0xff] }
 0x45d   :  { %11674 = vmatprep.subr.bf16.mxu0 %v11673_v2  ;;  %v20549_v44 = vand.u32 4294901760, %v20548_v48  ;;  %v20552_v2 = vand.u32 4294901760, %v20551_v30  ;;  %v20572_v56 = vand.u32 4294901760, %v16670_v37  ;;  %v20573_v43 = vand.u32 4294901760, %v16677_v35 }
 0x45e   :  { %v20576_v33 = vand.u32 4294901760, %v16685_v12  ;;  %v20577_v28 = vand.u32 4294901760, %v16689_v7  ;;  %v20579_v37 = vand.u32 4294901760, %v16698_v52  ;;  %v20580_v35 = vand.u32 4294901760, %v20421_v24  ;;  %v20585_v12 = vld [vmem:[#allocation61_spill] sm:$0xff] }
 0x45f   :  { %v11681_v53 = vpack.c.bf16 %v20549_v44, %v20547_v16  ;;  %v11683_v4 = vpack.c.bf16 %v20552_v2, %v20550_v60  ;;  %v20567_v16 = vand.u32 4294901760, %v16655_v29  ;;  %v11699_v44 = vpack.c.bf16 %v20570_v38, %v20569_v47  ;;  %v20593_v24 = vld [vmem:[#allocation85_spill] sm:$0xff]  ;;  %v20609_v38 = vld [vmem:[#allocation146_spill] sm:$0xff] }
 0x460   :  { %11676 = vmatpush1.bf16.msra.mxu0 %v11675_v11  ;;  %v20556_v11 = vand.u32 4294901760, %v20454_v39  ;;  %v20564_v39 = vand.u32 4294901760, %v20412_v63  ;;  %v20571_v63 = vand.u32 4294901760, %v16668_v6  ;;  %v20574_v29 = vand.u32 4294901760, %v16679_v40  ;;  %v20581_v40 = vld [vmem:[#allocation154_spill] sm:$0xff]  ;;  %v20608_v47 = vld [vmem:[#allocation65_spill] sm:$0xff] }
 0x461   :  { %11678 = vmatprep.subr.bf16.mxu0 %v11677_v36  ;;  %v20561_v36 = vand.u32 4294901760, %v20458_v41  ;;  %v20568_v41 = vand.u32 4294901760, %v20418_v45  ;;  %v20575_v45 = vand.u32 4294901760, %v16683_v1  ;;  %v20578_v6 = vand.u32 4294901760, %v16691_v13  ;;  %v20589_v13 = vld [vmem:[#allocation102_spill] sm:$0xff] }
 0x462   :  { %v11687_v14 = vpack.c.bf16 %v20557_v51, %v20556_v11  ;;  %v11693_v9 = vpack.c.bf16 %v20564_v39, %v20563_v58  ;;  %v11703_v60 = vpack.c.bf16 %v20574_v29, %v20573_v43  ;;  %v20582_v55 = vand.u32 4294901760, %v20581_v40  ;;  %v20587_v11 = vld [vmem:[#allocation97_spill] sm:$0xff]  ;;  %v20599_v58 = vld [vmem:[#allocation26_spill] sm:$0xff]  ;;  %v20614_v43 = vld [vmem:[#allocation104_spill] sm:$0xff] }
 0x463   :  { %v11691_v50 = vpack.c.bf16 %v20562_v10, %v20561_v36  ;;  %v11697_v48 = vpack.c.bf16 %v20568_v41, %v20567_v16  ;;  %v11705_v30 = vpack.c.bf16 %v20576_v33, %v20575_v45  ;;  %v11707_v2 = vpack.c.bf16 %v20578_v6, %v20577_v28  ;;  %v20596_v36 = vld [vmem:[#allocation87_spill] sm:$0xff]  ;;  %v20597_v10 = vld [vmem:[#allocation134_spill] sm:$0xff]  ;;  %v20600_v39 = vld [vmem:[#allocation29_spill] sm:$0xff] }
 0x464   :  { %11680 = vmatpush1.bf16.msra.mxu0 %v11679_v0  ;;  %v11695_v0 = vpack.c.bf16 %v20566_v3, %v20565_v18  ;;  %v20584_v1 = vand.u32 4294901760, %v20583_v54  ;;  %v20588_v7 = vand.u32 4294901760, %v20587_v11  ;;  %v20592_v52 = vand.u32 4294901760, %v20591_v20  ;;  %v20602_v18 = vld [vmem:[#allocation33_spill] sm:$0xff]  ;;  %v20605_v16 = vld [vmem:[#allocation39_spill] sm:$0xff]  ;;  %v20606_v41 = vld [vmem:[#allocation38_spill] sm:$0xff] }
 0x465   :  { %11682 = vmatprep.subr.bf16.mxu0 %v11681_v53  ;;  %v11701_v53 = vpack.c.bf16 %v20572_v56, %v20571_v63  ;;  %v20603_v3 = vld [vmem:[#allocation41_spill] sm:$0xff]  ;;  %v20615_v29 = vld [vmem:[#allocation107_spill] sm:$0xff]  ;;  %v20618_v33 = vld [vmem:[#allocation150_spill] sm:$0xff] }
 0x466   :  { %v11711_v23 = vpack.c.bf16 %v20584_v1, %v20582_v55  ;;  %v20611_v63 = vld [vmem:[#allocation133_spill] sm:$0xff]  ;;  %v20620_v28 = vld [vmem:[#allocation30_spill] sm:$0xff]  ;;  %v20621_v6 = vld [vmem:[#allocation151_spill] sm:$0xff] }
 0x467   :  { %v20612_v56 = vld [vmem:[#allocation89_spill] sm:$0xff]  ;;  %v20626_v40 = vld [vmem:[#allocation72_spill] sm:$0xff]  ;;  %v405_v55 = vld [vmem:[#allocation8 + $0xc0] sm:$0xff] }
 0x468   :  { %11684 = vmatpush1.bf16.msra.mxu0 %v11683_v4  ;;  %v11709_v4 = vpack.c.bf16 %v20580_v35, %v20579_v37  ;;  %v20617_v45 = vld [vmem:[#allocation117_spill] sm:$0xff]  ;;  %v20623_v37 = vld [vmem:[#allocation152_spill] sm:$0xff]  ;;  %v7931_v1 = vand.u32 4294901760, %v405_v55 }
 0x469   :  { %11686 = vmatprep.subr.bf16.mxu0 %v11685_v27  ;;  %v20586_v27 = vand.u32 4294901760, %v20585_v12  ;;  %v20624_v35 = vld [vmem:[#allocation37_spill] sm:$0xff]  ;;  %v406_v54 = vld [vmem:[#allocation8 + $0xc8] sm:$0xff]  ;;  %v389_v12 = vld [vmem:[#allocation8 + $0x40] sm:$0xff] }
 0x46a   :  { %v7883_v11 = vand.u32 4294901760, %v389_v12  ;;  %v408_v20 = vld [vmem:[#allocation8 + $0xd8] sm:$0xff] }
 0x46b   :  { %v11713_v51 = vpack.c.bf16 %v20588_v7, %v20586_v27  ;;  %v390_v27 = vld [vmem:[#allocation8 + $0x48] sm:$0xff] }
 0x46c   :  { %11688 = vmatpush1.bf16.msra.mxu0 %v11687_v14  ;;  %v20590_v14 = vand.u32 4294901760, %v20589_v13  ;;  %v7886_v7 = vand.u32 4294901760, %v390_v27 }
 0x46d   :  { %11690 = vmatprep.subr.bf16.mxu0 %v11689_v25  ;;  %v20595_v25 = vld [vmem:[#allocation90_spill] sm:$0xff] }
 0x46e   :  { %v11715_v62 = vpack.c.bf16 %v20592_v52, %v20590_v14  ;;  %v17351_v13 = vpack.c.bf16 %v7886_v7, %v7883_v11  ;;  %v407_v14 = vld [vmem:[#allocation8 + $0xd0] sm:$0xff] }
 0x46f   :  { %v7937_v52 = vand.u32 4294901760, %v407_v14 }
 0x470   :  { %11692 = vmatpush1.bf16.msra.mxu0 %v11691_v50  ;;  %v20598_v50 = vld [vmem:[#allocation21_spill] sm:$0xff]  ;;  %20628 = vst [vmem:[#allocation32_spill] sm:$0xff] %v17351_v13 }
 0x471   :  { %11694 = vmatprep.subr.bf16.mxu0 %v11693_v9  ;;  %v20601_v9 = vld [vmem:[#allocation34_spill] sm:$0xff] }
 0x474   :  { %11696 = vmatpush1.bf16.msra.mxu0 %v11695_v0  ;;  %v20604_v0 = vld [vmem:[#allocation44_spill] sm:$0xff] }
 0x475   :  { %11698 = vmatprep.subr.bf16.mxu0 %v11697_v48  ;;  %v20607_v48 = vld [vmem:[#allocation47_spill] sm:$0xff] }
 0x478   :  { %11700 = vmatpush1.bf16.msra.mxu0 %v11699_v44  ;;  %v20610_v44 = vld [vmem:[#allocation53_spill] sm:$0xff] }
 0x479   :  { %11702 = vmatprep.subr.bf16.mxu0 %v11701_v53  ;;  %v20613_v53 = vld [vmem:[#allocation74_spill] sm:$0xff] }
 0x47c   :  { %11704 = vmatpush1.bf16.msra.mxu0 %v11703_v60  ;;  %v20616_v60 = vld [vmem:[#allocation147_spill] sm:$0xff] }
 0x47d   :  { %11706 = vmatprep.subr.bf16.mxu0 %v11705_v30  ;;  %v20619_v30 = vld [vmem:[#allocation20_spill] sm:$0xff] }
 0x480   :  { %11708 = vmatpush1.bf16.msra.mxu0 %v11707_v2  ;;  %v20622_v2 = vld [vmem:[#allocation24_spill] sm:$0xff] }
 0x481   :  { %11710 = vmatprep.subr.bf16.mxu0 %v11709_v4  ;;  %v20625_v4 = vld [vmem:[#allocation43_spill] sm:$0xff] }
 0x484   :  { %11712 = vmatpush1.bf16.msra.mxu0 %v11711_v23  ;;  %v7934_v23 = vand.u32 4294901760, %v406_v54 }
 0x485   :  { %11714 = vmatprep.subr.bf16.mxu0 %v11713_v51 }
 0x486   :  { %v17349_v51 = vpack.c.bf16 %v7934_v23, %v7931_v1 }
 0x488   :  { %11716 = vmatpush1.bf16.msra.mxu0 %v11715_v62  ;;  %20627 = vst [vmem:[#allocation166_spill] sm:$0xff] %v17349_v51  ;;  %12416 = vmatprep.subr.bf16.mxu1 %v17349_v51  ;;  %v7940_v62 = vand.u32 4294901760, %v408_v20 }
 0x489   :  { %11718 = vmatprep.subr.bf16.mxu0 %v20593_v24  ;;  %v391_v24 = vld [vmem:[#allocation8 + $0x50] sm:$0xff]  ;;  %12418 = vmatpush3.bf16.msra.mxu1 %v17351_v13 }
 0x48b   :  { %4166 = vmatmul.mubr.f32.vlgmr.msra.gmra.mrb[0].mxu0 %v20594_v21 }
 0x48c   :  { %11720 = vmatpush1.bf16.msra.mxu0 %v20595_v25  ;;  %4301 = vmatprep.mubr.f32.mxu0 %v20596_v36  ;;  %v7889_v25 = vand.u32 4294901760, %v391_v24 }
 0x48d   :  { %11722 = vmatprep.subr.bf16.mxu0 %v20597_v10  ;;  %v17355_v10 = vpack.c.bf16 %v7940_v62, %v7937_v52 }
 0x48f   :  { %20629 = vst [vmem:[#allocation62_spill] sm:$0xff] %v17355_v10  ;;  %12420 = vmatprep.subr.bf16.mxu1 %v17355_v10 }
 0x490   :  { %11724 = vmatpush1.bf16.msra.mxu0 %v20598_v50 }
 0x491   :  { %11726 = vmatprep.subr.bf16.mxu0 %v20599_v58  ;;  %v409_v58 = vld [vmem:[#allocation8 + $0xe0] sm:$0xff] }
 0x494   :  { %11728 = vmatpush1.bf16.msra.mxu0 %v20600_v39  ;;  %v410_v39 = vld [vmem:[#allocation8 + $0xe8] sm:$0xff] }
 0x495   :  { %11730 = vmatprep.subr.bf16.mxu0 %v20601_v9  ;;  %v7943_v9 = vand.u32 4294901760, %v409_v58 }
 0x498   :  { %11732 = vmatpush1.bf16.msra.mxu0 %v20602_v18  ;;  %v7946_v18 = vand.u32 4294901760, %v410_v39 }
 0x499   :  { %11734 = vmatprep.subr.bf16.mxu0 %v20603_v3  ;;  %v393_v3 = vld [vmem:[#allocation8 + $0x60] sm:$0xff] }
 0x49c   :  { %11736 = vmatpush1.bf16.msra.mxu0 %v20604_v0  ;;  %v394_v0 = vld [vmem:[#allocation8 + $0x68] sm:$0xff] }
 0x49d   :  { %11738 = vmatprep.subr.bf16.mxu0 %v20605_v16  ;;  %v7895_v16 = vand.u32 4294901760, %v393_v3 }
 0x4a0   :  { %11740 = vmatpush1.bf16.msra.mxu0 %v20606_v41  ;;  %v7898_v41 = vand.u32 4294901760, %v394_v0 }
 0x4a1   :  { %11742 = vmatprep.subr.bf16.mxu0 %v20607_v48  ;;  %v17361_v48 = vpack.c.bf16 %v7946_v18, %v7943_v9 }
 0x4a3   :  { %20631 = vst [vmem:[#allocation50_spill] sm:$0xff] %v17361_v48 }
 0x4a4   :  { %11744 = vmatpush1.bf16.msra.mxu0 %v20608_v47  ;;  %v17363_v47 = vsub.f32 %v405_v55, %v7931_v1  ;;  %v18915_v1 = vand.u32 4294901760, %v17160_v19 }
 0x4a5   :  { %11746 = vmatprep.subr.bf16.mxu0 %v20609_v38  ;;  %v17365_v38 = vsub.f32 %v406_v54, %v7934_v23  ;;  %v20645_v23 = vld [vmem:[#allocation115_spill] sm:$0xff] }
 0x4a6   :  { %20632 = vst [vmem:[#allocation127_spill] sm:$0xff] %v17363_v47 }
 0x4a7   :  { %20633 = vst [vmem:[#allocation130_spill] sm:$0xff] %v17365_v38 }
 0x4a8   :  { %11748 = vmatpush1.bf16.msra.mxu0 %v20610_v44  ;;  %v17367_v44 = vsub.f32 %v389_v12, %v7883_v11  ;;  %v18914_v12 = vand.u32 4294901760, %v20645_v23 }
 0x4a9   :  { %11750 = vmatprep.subr.bf16.mxu0 %v20611_v63  ;;  %v17369_v63 = vsub.f32 %v390_v27, %v7886_v7  ;;  %v20646_v27 = vld [vmem:[#allocation144_spill] sm:$0xff] }
 0x4aa   :  { %20634 = vst [vmem:[#allocation136_spill] sm:$0xff] %v17367_v44  ;;  %v18912_v11 = vand.u32 4294901760, %v20646_v27 }
 0x4ab   :  { %20635 = vst [vmem:[#allocation139_spill] sm:$0xff] %v17369_v63 }
 0x4ac   :  { %11752 = vmatpush1.bf16.msra.mxu0 %v20612_v56  ;;  %v411_v56 = vld [vmem:[#allocation8 + $0xf0] sm:$0xff] }
 0x4ad   :  { %11754 = vmatprep.subr.bf16.mxu0 %v20613_v53  ;;  %v412_v53 = vld [vmem:[#allocation8 + $0xf8] sm:$0xff] }
 0x4b0   :  { %11756 = vmatpush1.bf16.msra.mxu0 %v20614_v43  ;;  %v395_v43 = vld [vmem:[#allocation8 + $0x70] sm:$0xff] }
 0x4b1   :  { %11758 = vmatprep.subr.bf16.mxu0 %v20615_v29  ;;  %v17371_v29 = vsub.f32 %v407_v14, %v7937_v52  ;;  %v7901_v55 = vand.u32 4294901760, %v395_v43 }
 0x4b3   :  { %20636 = vst [vmem:[#allocation81_spill] sm:$0xff] %v17371_v29  ;;  %v17400_v52 = vsub.f32 %v395_v43, %v7901_v55 }
 0x4b4   :  { %11760 = vmatpush1.bf16.msra.mxu0 %v20616_v60  ;;  %v17373_v60 = vsub.f32 %v408_v20, %v7940_v62 }
 0x4b5   :  { %11762 = vmatprep.subr.bf16.mxu0 %v20617_v45  ;;  %v17375_v45 = vsub.f32 %v391_v24, %v7889_v25  ;;  %20650 = vst [vmem:[#allocation49_spill] sm:$0xff] %v17400_v52  ;;  %v18962_v13 = vand.u32 4294901760, %v17400_v52 }
 0x4b6   :  { %20637 = vst [vmem:[#allocation82_spill] sm:$0xff] %v17373_v60 }
 0x4b7   :  { %20638 = vst [vmem:[#allocation88_spill] sm:$0xff] %v17375_v45 }
 0x4b8   :  { %11764 = vmatpush1.bf16.msra.mxu0 %v20618_v33 }
 0x4b9   :  { %11766 = vmatprep.subr.bf16.mxu0 %v20619_v30  ;;  %v396_v30 = vld [vmem:[#allocation8 + $0x78] sm:$0xff] }
 0x4ba   :  { %v7904_v54 = vand.u32 4294901760, %v396_v30 }
 0x4bc   :  { %11768 = vmatpush1.bf16.msra.mxu0 %v20620_v28  ;;  %v17380_v28 = vsub.f32 %v409_v58, %v7943_v9  ;;  %v17402_v62 = vpack.c.bf16 %v7904_v54, %v7901_v55  ;;  %v17404_v24 = vsub.f32 %v396_v30, %v7904_v54  ;;  %v20653_v58 = vld [vmem:[#allocation70_spill] sm:$0xff] }
 0x4bd   :  { %11770 = vmatprep.subr.bf16.mxu0 %v20621_v6  ;;  %v17382_v6 = vsub.f32 %v410_v39, %v7946_v18  ;;  %v18911_v39 = vand.u32 4294901760, %v20653_v58  ;;  %v20654_v9 = vld [vmem:[#allocation78_spill] sm:$0xff] }
 0x4be   :  { %20640 = vst [vmem:[#allocation101_spill] sm:$0xff] %v17380_v28  ;;  %20651 = vst [vmem:[#allocation153_spill] sm:$0xff] %v17402_v62  ;;  %v18913_v18 = vand.u32 4294901760, %v20654_v9 }
 0x4bf   :  { %20641 = vst [vmem:[#allocation110_spill] sm:$0xff] %v17382_v6  ;;  %20652 = vst [vmem:[#allocation42_spill] sm:$0xff] %v17404_v24  ;;  %v7981_v30 = vsub.f32 %v20653_v58, %v18911_v39 }
 0x4c0   :  { %11772 = vmatpush1.bf16.msra.mxu0 %v20622_v2  ;;  %v17384_v2 = vpack.c.bf16 %v7898_v41, %v7895_v16 }
 0x4c1   :  { %11774 = vmatprep.subr.bf16.mxu0 %v20623_v37  ;;  %v17386_v37 = vsub.f32 %v393_v3, %v7895_v16  ;;  %v20655_v3 = vld [vmem:[#allocation91_spill] sm:$0xff] }
 0x4c2   :  { %20642 = vst [vmem:[#allocation113_spill] sm:$0xff] %v17384_v2 }
 0x4c3   :  { %20643 = vst [vmem:[#allocation149_spill] sm:$0xff] %v17386_v37 }
 0x4c4   :  { %11776 = vmatpush1.bf16.msra.mxu0 %v20624_v35  ;;  %v17388_v35 = vsub.f32 %v394_v0, %v7898_v41  ;;  %v18917_v0 = vand.u32 4294901760, %v20655_v3 }
 0x4c5   :  { %11778 = vmatprep.subr.bf16.mxu0 %v20625_v4  ;;  %v7949_v4 = vand.u32 4294901760, %v411_v56 }
 0x4c6   :  { %20644 = vst [vmem:[#allocation40_spill] sm:$0xff] %v17388_v35 }
 0x4c7   :  { %v17396_v14 = vsub.f32 %v411_v56, %v7949_v4  ;;  %v18916_v56 = vand.u32 4294901760, %v17181_v17 }
 0x4c8   :  { %11780 = vmatpush1.bf16.msra.mxu0 %v20626_v40  ;;  %v7952_v40 = vand.u32 4294901760, %v412_v53 }
 0x4c9   :  { %20648 = vst [vmem:[#allocation45_spill] sm:$0xff] %v17396_v14  ;;  %v7988_v54 = vsub.f32 %v17181_v17, %v18916_v56 }
 0x4ca   :  { %v17394_v7 = vpack.c.bf16 %v7952_v40, %v7949_v4  ;;  %v17398_v20 = vsub.f32 %v412_v53, %v7952_v40  ;;  %v18923_v53 = vand.u32 4294901760, %v17183_v49  ;;  %v8100_v4 = vsub.f32 %v20654_v9, %v18913_v18 }
 0x4cb   :  { %4303 = vmatmul.mubr.f32.vlgmr.msra.gmra.mrb[0].mxu0 %v20594_v21  ;;  %v392_v21 = vld [vmem:[#allocation8 + $0x58] sm:$0xff]  ;;  %v8107_v40 = vsub.f32 %v20655_v3, %v18917_v0  ;;  %v18921_v18 = vand.u32 4294901760, %v17193_v59 }
 0x4cc   :  { %v7892_v36 = vand.u32 4294901760, %v392_v21  ;;  %20647 = vst [vmem:[#allocation25_spill] sm:$0xff] %v17394_v7  ;;  %20649 = vst [vmem:[#allocation31_spill] sm:$0xff] %v17398_v20  ;;  %v8101_v39 = vand.u32 4294901760, %v8100_v4  ;;  %v18920_v4 = vand.u32 4294901760, %v17197_v42 }
 0x4ce   :  { %v17357_v50 = vpack.c.bf16 %v7892_v36, %v7889_v25  ;;  %v17377_v33 = vsub.f32 %v392_v21, %v7892_v36  ;;  %v8086_v21 = vsub.f32 %v17160_v19, %v18915_v1  ;;  %v8093_v25 = vsub.f32 %v20645_v23, %v18914_v12 }
 0x4cf   :  { %v7974_v36 = vsub.f32 %v20646_v27, %v18912_v11  ;;  %v8108_v11 = vand.u32 4294901760, %v8107_v40  ;;  %v7989_v12 = vand.u32 4294901760, %v7988_v54 }
 0x4d0   :  { %20630 = vst [vmem:[#allocation35_spill] sm:$0xff] %v17357_v50  ;;  %12422 = vmatpush3.bf16.msra.mxu1 %v17357_v50  ;;  %20639 = vst [vmem:[#allocation93_spill] sm:$0xff] %v17377_v33  ;;  %v8087_v16 = vand.u32 4294901760, %v8086_v21  ;;  %v8094_v41 = vand.u32 4294901760, %v8093_v25  ;;  %v7995_v21 = vsub.f32 %v17183_v49, %v18923_v53  ;;  %v18918_v25 = vand.u32 4294901760, %v17185_v31 }
 0x4d1   :  { %12424 = vmatprep.subr.bf16.mxu1 %v17361_v48  ;;  %v7975_v43 = vand.u32 4294901760, %v7974_v36  ;;  %v7982_v36 = vand.u32 4294901760, %v7981_v30  ;;  %v17445_v0 = vpack.c.bf16 %v8108_v11, %v8101_v39  ;;  %v8121_v30 = vsub.f32 %v17193_v59, %v18921_v18 }
 0x4d2   :  { %v12431_v55 = vpack.c.bf16 %v8094_v41, %v8087_v16  ;;  %v7996_v1 = vand.u32 4294901760, %v7995_v21  ;;  %v8114_v16 = vsub.f32 %v17185_v31, %v18918_v25  ;;  %v18919_v41 = vand.u32 4294901760, %v17195_v22 }
 0x4d3   :  { %v17443_v56 = vpack.c.bf16 %v7982_v36, %v7975_v43  ;;  %v18922_v21 = vand.u32 4294901760, %v17199_v26  ;;  %v8122_v25 = vand.u32 4294901760, %v8121_v30  ;;  %v8009_v11 = vsub.f32 %v17197_v42, %v18920_v4 }
 0x4d4   :  { %12426 = vmatpush3.bf16.msra.mxu1 %v17384_v2  ;;  %v17451_v40 = vpack.c.bf16 %v7996_v1, %v7989_v12  ;;  %v8002_v54 = vsub.f32 %v17195_v22, %v18919_v41  ;;  %v18926_v39 = vand.u32 4294901760, %v17211_v15  ;;  %v18927_v43 = vand.u32 4294901760, %v17213_v61 }
 0x4d5   :  { %12428 = vmatprep.subr.bf16.mxu1 %v17394_v7  ;;  %v8128_v1 = vsub.f32 %v17199_v26, %v18922_v21  ;;  %v18928_v12 = vand.u32 4294901760, %v17215_v8  ;;  %v8010_v41 = vand.u32 4294901760, %v8009_v11  ;;  %v18931_v21 = vand.u32 4294901760, %v17363_v47 }
 0x4d6   :  { %v8003_v36 = vand.u32 4294901760, %v8002_v54  ;;  %v8135_v30 = vsub.f32 %v17211_v15, %v18926_v39  ;;  %v8016_v4 = vsub.f32 %v17213_v61, %v18927_v43  ;;  %v18932_v53 = vand.u32 4294901760, %v17365_v38 }
 0x4d7   :  { %v8129_v18 = vand.u32 4294901760, %v8128_v1  ;;  %v8023_v54 = vsub.f32 %v17215_v8, %v18928_v12  ;;  %v8142_v43 = vsub.f32 %v17363_v47, %v18931_v21  ;;  %v18938_v12 = vand.u32 4294901760, %v17369_v63 }
 0x4d8   :  { %12430 = vmatpush3.bf16.msra.mxu1 %v17402_v62  ;;  %v8017_v11 = vand.u32 4294901760, %v8016_v4  ;;  %v18935_v62 = vand.u32 4294901760, %v17367_v44  ;;  %v8149_v1 = vsub.f32 %v17365_v38, %v18932_v53  ;;  %v18939_v4 = vand.u32 4294901760, %v17371_v29 }
 0x4d9   :  { %12432 = vmatprep.subr.bf16.mxu1 %v12431_v55  ;;  %v8115_v55 = vand.u32 4294901760, %v8114_v16  ;;  %v8024_v39 = vand.u32 4294901760, %v8023_v54  ;;  %v8143_v54 = vand.u32 4294901760, %v8142_v43  ;;  %v8037_v53 = vsub.f32 %v17369_v63, %v18938_v12 }
 0x4da   :  { %v8150_v21 = vand.u32 4294901760, %v8149_v1  ;;  %v18944_v43 = vand.u32 4294901760, %v17377_v33  ;;  %v18945_v12 = vand.u32 4294901760, %v17380_v28 }
 0x4db   :  { %v17466_v16 = vpack.c.bf16 %v8122_v25, %v8115_v55  ;;  %v17479_v25 = vpack.c.bf16 %v8010_v41, %v8003_v36  ;;  %v8136_v55 = vand.u32 4294901760, %v8135_v30  ;;  %v8030_v41 = vsub.f32 %v17367_v44, %v18935_v62 }
 0x4dc   :  { %v18940_v36 = vand.u32 4294901760, %v17373_v60  ;;  %v17496_v30 = vpack.c.bf16 %v8024_v39, %v8017_v11  ;;  %v18941_v62 = vand.u32 4294901760, %v17375_v45  ;;  %v17508_v48 = vpack.c.bf16 %v8150_v21, %v8143_v54 }
 0x4dd   :  { %v17489_v7 = vpack.c.bf16 %v8136_v55, %v8129_v18  ;;  %v8031_v2 = vand.u32 4294901760, %v8030_v41  ;;  %v8156_v18 = vsub.f32 %v17371_v29, %v18939_v4  ;;  %v8038_v39 = vand.u32 4294901760, %v8037_v53 }
 0x4de   :  { %v8163_v55 = vsub.f32 %v17373_v60, %v18940_v36  ;;  %v8044_v41 = vsub.f32 %v17375_v45, %v18941_v62  ;;  %v8051_v36 = vsub.f32 %v17377_v33, %v18944_v43  ;;  %v18950_v21 = vand.u32 4294901760, %v17382_v6 }
 0x4df   :  { %v8157_v11 = vand.u32 4294901760, %v8156_v18  ;;  %v17515_v4 = vpack.c.bf16 %v8038_v39, %v8031_v2  ;;  %v18951_v53 = vand.u32 4294901760, %v17386_v37  ;;  %v18952_v62 = vand.u32 4294901760, %v17388_v35 }
 0x4e0   :  { %v8164_v1 = vand.u32 4294901760, %v8163_v55  ;;  %v8045_v18 = vand.u32 4294901760, %v8044_v41  ;;  %v8170_v55 = vsub.f32 %v17380_v28, %v18945_v12  ;;  %v8052_v50 = vand.u32 4294901760, %v8051_v36 }
 0x4e1   :  { %v8177_v2 = vsub.f32 %v17382_v6, %v18950_v21  ;;  %v8058_v39 = vsub.f32 %v17386_v37, %v18951_v53  ;;  %v18960_v41 = vand.u32 4294901760, %v17398_v20 }
 0x4e2   :  { %v17522_v54 = vpack.c.bf16 %v8164_v1, %v8157_v11  ;;  %v8171_v43 = vand.u32 4294901760, %v8170_v55  ;;  %v8065_v11 = vsub.f32 %v17388_v35, %v18952_v62  ;;  %v18955_v1 = vand.u32 4294901760, %v17396_v14 }
 0x4e3   :  { %v17539_v12 = vpack.c.bf16 %v8052_v50, %v8045_v18  ;;  %v8178_v36 = vand.u32 4294901760, %v8177_v2  ;;  %v8059_v10 = vand.u32 4294901760, %v8058_v39  ;;  %v8191_v55 = vsub.f32 %v17398_v20, %v18960_v41 }
 0x4e4   :  { %v8066_v21 = vand.u32 4294901760, %v8065_v11  ;;  %v8184_v53 = vsub.f32 %v17396_v14, %v18955_v1  ;;  %v18961_v62 = vand.u32 4294901760, %v17404_v24  ;;  %v8072_v50 = vsub.f32 %v17400_v52, %v18962_v13 }
 0x4e5   :  { %v17549_v51 = vpack.c.bf16 %v8178_v36, %v8171_v43  ;;  %v8192_v39 = vand.u32 4294901760, %v8191_v55  ;;  %v12463_v43 = vpack.c.bf16 %v20645_v23, %v17160_v19  ;;  %v12465_v36 = vpack.c.bf16 %v20653_v58, %v20646_v27 }
 0x4e6   :  { %v17554_v18 = vpack.c.bf16 %v8066_v21, %v8059_v10  ;;  %v8185_v2 = vand.u32 4294901760, %v8184_v53  ;;  %v8079_v11 = vsub.f32 %v17404_v24, %v18961_v62  ;;  %v8073_v1 = vand.u32 4294901760, %v8072_v50 }
 0x4e7   :  { %v12467_v10 = vpack.c.bf16 %v20655_v3, %v20654_v9  ;;  %v12469_v21 = vpack.c.bf16 %v17183_v49, %v17181_v17  ;;  %v12471_v53 = vpack.c.bf16 %v17193_v59, %v17185_v31  ;;  %v12473_v55 = vpack.c.bf16 %v17197_v42, %v17195_v22  ;;  %v20659_v42 = vld [vmem:[#allocation22_spill] sm:$0xff] }
 0x4e8   :  { %v12459_v32 = vpack.c.bf16 %v8192_v39, %v8185_v2  ;;  %v8080_v34 = vand.u32 4294901760, %v8079_v11  ;;  %v12479_v50 = vpack.c.bf16 %v17365_v38, %v17363_v47  ;;  %v12481_v2 = vpack.c.bf16 %v17369_v63, %v17367_v44  ;;  %v20656_v47 = vld [vmem:[#allocation140_spill] sm:$0xff] }
 0x4e9   :  { %v12483_v39 = vpack.c.bf16 %v17373_v60, %v17371_v29  ;;  %v12485_v11 = vpack.c.bf16 %v17377_v33, %v17375_v45  ;;  %v12487_v62 = vpack.c.bf16 %v17382_v6, %v17380_v28  ;;  %v12489_v13 = vpack.c.bf16 %v17388_v35, %v17386_v37  ;;  %v12824_v60 = vld [vmem:[#allocation7] sm:$0x7]  ;;  %v20657_v33 = vld [vmem:[#allocation96_spill] sm:$0xff] }
 0x4ea   :  { %v12461_v41 = vpack.c.bf16 %v8080_v34, %v8073_v1  ;;  %v12475_v34 = vpack.c.bf16 %v17211_v15, %v17199_v26  ;;  %v12477_v1 = vpack.c.bf16 %v17215_v8, %v17213_v61  ;;  %v12491_v8 = vpack.c.bf16 %v17398_v20, %v17396_v14  ;;  %v20658_v15 = vld [vmem:[#allocation135_spill] sm:$0xff] }
 0x4eb   :  { %v12493_v38 = vpack.c.bf16 %v17404_v24, %v17400_v52  ;;  %v440_v63 = vsub.s32 0, %v20656_v47  ;;  %v444_v44 = vsub.s32 1, %v20656_v47  ;;  %v20660_v14 = vld [vmem:[#allocation27_spill] sm:$0xff] }
 0x4ed   :  { %v441_v29 = vrot.slane %v12824_v60, %v440_v63  ;;  %v445_v61 = vrot.slane %v12824_v60, %v444_v44  ;;  %v20664_v60 = vld [vmem:[#allocation160_spill] sm:$0xff] }
 0x4ef   :  { %v598_v45 = vadd.f32 %v20657_v33, %v441_v29  ;;  %v600_v6 = vadd.f32 %v20658_v15, %v445_v61  ;;  %v20669_v33 = vld [vmem:[#allocation35_spill] sm:$0xff] }
 0x59e   :  { %v4304_v28 = vpop.f32.mrb[0].mxu0 }
 0x59f   :  { %v12736_v26 = vadd.f32 %v4304_v28, %v598_v45  ;;  %v4306_v35 = vpop.f32.mrb[1].mxu0  ;;  %v20668_v45 = vld [vmem:[#allocation62_spill] sm:$0xff] }
 0x5a0   :  { %v12739_v37 = vadd.f32 %v4306_v35, %v600_v6  ;;  %v20670_v28 = vld [vmem:[#allocation50_spill] sm:$0xff]  ;;  %v20671_v6 = vld [vmem:[#allocation113_spill] sm:$0xff]  ;;  %v20673_v35 = vand.u32 4294901760, %v17160_v19  ;;  %v20680_v19 = vand.u32 4294901760, %v17181_v17 }
 0x5a1   :  { %v12737_v20 = vadd.f32 %v12736_v26, %v20659_v42 }
 0x5a2   :  { %v12740_v22 = vadd.f32 %v12739_v37, %v20660_v14  ;;  %v20672_v37 = vld [vmem:[#allocation25_spill] sm:$0xff] }
 0x5a3   :  { %v7845_v24 = vmax.f32 %v12737_v20, 0.0  ;;  %v20675_v20 = vld [vmem:[#allocation153_spill] sm:$0xff] }
 0x5a4   :  { %v7846_v52 = vmax.f32 %v12740_v22, 0.0 }
 0x5a5   :  { %v17597_v59 = vand.u32 4294901760, %v7845_v24  ;;  %7848 = vst [vmem:[#allocation11] sm:$0xff] %v7845_v24 }
 0x5a6   :  { %v17599_v47 = vand.u32 4294901760, %v7846_v52  ;;  %7849 = vst [vmem:[#allocation11 + $0x8] sm:$0xff] %v7846_v52 }
 0x5a7   :  { %v17602_v44 = vsub.f32 %v7845_v24, %v17597_v59 }
 0x5a8   :  { %v7955_v15 = vsub.f32 %v7846_v52, %v17599_v47  ;;  %v20676_v52 = vand.u32 4294901760, %v20646_v27 }
 0x5a9   :  { %v7962_v61 = vand.u32 4294901760, %v17602_v44 }
 0x5aa   :  { %v7956_v63 = vand.u32 4294901760, %v7955_v15 }
 0x5ab   :  { %v7963_v42 = vsub.f32 %v17602_v44, %v7962_v61 }
 0x5ac   :  { %v7957_v26 = vsub.f32 %v7955_v15, %v7956_v63 }
 0x5ad   :  { %v7964_v29 = vand.u32 4294901760, %v7963_v42 }
 0x5ae   :  { %v7958_v22 = vand.u32 4294901760, %v7957_v26  ;;  %v20707_v26 = vld [vmem:[#allocation82_spill] sm:$0xff] }
 0x5b0   :  { %7959 = vmatprep.mubr.f32.mxu1 %v7958_v22  ;;  %v20708_v22 = vand.u32 4294901760, %v20707_v26  ;;  %v17756_v26 = vld [vmem:[#allocation8 + $0x168] sm:$0xff] }
 0x5b1   :  { %7965 = vmatmul.mubr.f32.vlgmr.msra.gmra.mrb[42].mxu1 %v7964_v29 }
 0x5b2   :  { %12434 = vmatpush3.bf16.msra.mxu1 %v17443_v56  ;;  %8195 = vmatprep.mubr.f32.mxu1 %v17599_v47  ;;  %v20679_v56 = vand.u32 4294901760, %v20655_v3  ;;  %v20685_v3 = vld [vmem:[#allocation132_spill] sm:$0xff] }
 0x5b3   :  { %12436 = vmatprep.subr.bf16.mxu1 %v17445_v0  ;;  %v20678_v0 = vand.u32 4294901760, %v20654_v9 }
 0x5b6   :  { %12438 = vmatpush3.bf16.msra.mxu1 %v17451_v40  ;;  %v12531_v40 = vpack.c.bf16 %v20679_v56, %v20678_v0  ;;  %v20715_v56 = vld [vmem:[#allocation110_spill] sm:$0xff] }
 0x5b7   :  { %12440 = vmatprep.subr.bf16.mxu1 %v17466_v16 }
 0x5ba   :  { %12442 = vmatpush3.bf16.msra.mxu1 %v17479_v25  ;;  %v20686_v25 = vand.u32 4294901760, %v20685_v3 }
 0x5bb   :  { %12444 = vmatprep.subr.bf16.mxu1 %v17489_v7  ;;  %v20674_v7 = vand.u32 4294901760, %v20645_v23  ;;  %v20681_v23 = vand.u32 4294901760, %v17183_v49  ;;  %v20693_v49 = vld [vmem:[#allocation162_spill] sm:$0xff] }
 0x5bd   :  { %v12527_v14 = vpack.c.bf16 %v20674_v7, %v20673_v35  ;;  %v12533_v27 = vpack.c.bf16 %v20681_v23, %v20680_v19  ;;  %v20709_v35 = vld [vmem:[#allocation88_spill] sm:$0xff]  ;;  %v20717_v23 = vld [vmem:[#allocation149_spill] sm:$0xff] }
 0x5be   :  { %12446 = vmatpush3.bf16.msra.mxu1 %v17496_v30  ;;  %v20710_v7 = vand.u32 4294901760, %v20709_v35 }
 0x5bf   :  { %12448 = vmatprep.subr.bf16.mxu1 %v17508_v48  ;;  %v20663_v48 = vld [vmem:[#allocation71_spill] sm:$0xff] }
 0x5c2   :  { %12450 = vmatpush3.bf16.msra.mxu1 %v17515_v4  ;;  %v20687_v4 = vld [vmem:[#allocation156_spill] sm:$0xff] }
 0x5c3   :  { %12452 = vmatprep.subr.bf16.mxu1 %v17522_v54  ;;  %v20688_v30 = vand.u32 4294901760, %v20687_v4 }
 0x5c5   :  { %v12537_v54 = vpack.c.bf16 %v20688_v30, %v20686_v25  ;;  %v20723_v25 = vld [vmem:[#allocation31_spill] sm:$0xff] }
 0x5c6   :  { %12454 = vmatpush3.bf16.msra.mxu1 %v17539_v12  ;;  %v20683_v12 = vld [vmem:[#allocation131_spill] sm:$0xff]  ;;  %v20724_v4 = vand.u32 4294901760, %v20723_v25 }
 0x5c7   :  { %12456 = vmatprep.subr.bf16.mxu1 %v17549_v51  ;;  %v20662_v51 = vld [vmem:[#allocation66_spill] sm:$0xff]  ;;  %v20684_v16 = vand.u32 4294901760, %v20683_v12 }
 0x5ca   :  { %12458 = vmatpush3.bf16.msra.mxu1 %v17554_v18 }
 0x5cb   :  { %12460 = vmatprep.subr.bf16.mxu1 %v12459_v32  ;;  %v20661_v32 = vld [vmem:[#allocation109_spill] sm:$0xff] }
 0x5ce   :  { %12462 = vmatpush3.bf16.msra.mxu1 %v12461_v41  ;;  %v20689_v41 = vld [vmem:[#allocation158_spill] sm:$0xff] }
 0x5cf   :  { %12464 = vmatprep.subr.bf16.mxu1 %v12463_v43  ;;  %v20690_v18 = vand.u32 4294901760, %v20689_v41  ;;  %v20691_v43 = vld [vmem:[#allocation161_spill] sm:$0xff] }
 0x5d0   :  { %v20692_v17 = vand.u32 4294901760, %v20691_v43 }
 0x5d1   :  { %8197 = vmatmul.mubr.f32.vlgmr.msra.gmra.mrb[44].mxu1 %v17597_v59 }
 0x5d2   :  { %12466 = vmatpush3.bf16.msra.mxu1 %v12465_v36  ;;  %8332 = vmatprep.mubr.f32.mxu1 %v7955_v15  ;;  %v12539_v36 = vpack.c.bf16 %v20692_v17, %v20690_v18  ;;  %v20727_v18 = vld [vmem:[#allocation42_spill] sm:$0xff] }
 0x5d3   :  { %12468 = vmatprep.subr.bf16.mxu1 %v12467_v10  ;;  %v20694_v10 = vand.u32 4294901760, %v20693_v49  ;;  %v20728_v43 = vand.u32 4294901760, %v20727_v18 }
 0x5d6   :  { %12470 = vmatpush3.bf16.msra.mxu1 %v12469_v21  ;;  %v20695_v21 = vld [vmem:[#allocation164_spill] sm:$0xff] }
 0x5d7   :  { %12472 = vmatprep.subr.bf16.mxu1 %v12471_v53 }
 0x5da   :  { %12474 = vmatpush3.bf16.msra.mxu1 %v12473_v55  ;;  %v20697_v55 = vld [vmem:[#allocation127_spill] sm:$0xff] }
 0x5db   :  { %12476 = vmatprep.subr.bf16.mxu1 %v12475_v34  ;;  %v20698_v34 = vand.u32 4294901760, %v20697_v55 }
 0x5de   :  { %12478 = vmatpush3.bf16.msra.mxu1 %v12477_v1  ;;  %v20699_v1 = vld [vmem:[#allocation130_spill] sm:$0xff] }
 0x5df   :  { %12480 = vmatprep.subr.bf16.mxu1 %v12479_v50  ;;  %v20700_v50 = vand.u32 4294901760, %v20699_v1  ;;  %v423_v1 = vld [vmem:[#allocation8 + $0x150] sm:$0xff] }
 0x5e2   :  { %12482 = vmatpush3.bf16.msra.mxu1 %v12481_v2  ;;  %v12543_v2 = vpack.c.bf16 %v20700_v50, %v20698_v34  ;;  %v424_v50 = vld [vmem:[#allocation8 + $0x158] sm:$0xff] }
 0x5e3   :  { %12484 = vmatprep.subr.bf16.mxu1 %v12483_v39  ;;  %v20701_v39 = vld [vmem:[#allocation136_spill] sm:$0xff] }
 0x5e6   :  { %12486 = vmatpush3.bf16.msra.mxu1 %v12485_v11  ;;  %v20702_v11 = vand.u32 4294901760, %v20701_v39 }
 0x5e7   :  { %12488 = vmatprep.subr.bf16.mxu1 %v12487_v62  ;;  %v20677_v62 = vand.u32 4294901760, %v20653_v58  ;;  %v20682_v58 = vand.u32 4294901760, %v17185_v31  ;;  %v20696_v31 = vand.u32 4294901760, %v20695_v21 }
 0x5e9   :  { %v12529_v24 = vpack.c.bf16 %v20677_v62, %v20676_v52  ;;  %v12535_v9 = vpack.c.bf16 %v20684_v16, %v20682_v58  ;;  %v12541_v53 = vpack.c.bf16 %v20696_v31, %v20694_v10  ;;  %v20719_v58 = vld [vmem:[#allocation40_spill] sm:$0xff] }
 0x5ea   :  { %12490 = vmatpush3.bf16.msra.mxu1 %v12489_v13  ;;  %v20665_v13 = vld [vmem:[#allocation165_spill] sm:$0xff]  ;;  %v20720_v12 = vand.u32 4294901760, %v20719_v58  ;;  %v422_v31 = vld [vmem:[#allocation8 + $0x148] sm:$0xff] }
 0x5eb   :  { %12492 = vmatprep.subr.bf16.mxu1 %v12491_v8  ;;  %v20666_v8 = vld [vmem:[#allocation166_spill] sm:$0xff]  ;;  %v8748_v34 = vand.u32 4294901760, %v422_v31 }
 0x5ee   :  { %12494 = vmatpush3.bf16.msra.mxu1 %v12493_v38  ;;  %v20667_v38 = vld [vmem:[#allocation32_spill] sm:$0xff] }
 0x5ef   :  { %12496 = vmatprep.subr.bf16.mxu1 %v20661_v32 }
 0x5f1   :  { %8335 = vmatmul.mubr.f32.vlgmr.msra.gmra.mrb[46].mxu1 %v17602_v44  ;;  %v20703_v44 = vld [vmem:[#allocation139_spill] sm:$0xff] }
 0x5f2   :  { %12498 = vmatpush3.bf16.msra.mxu1 %v20662_v51  ;;  %8439 = vmatprep.mubr.f32.mxu1 %v7956_v63  ;;  %v20704_v15 = vand.u32 4294901760, %v20703_v44  ;;  %v20705_v63 = vld [vmem:[#allocation81_spill] sm:$0xff]  ;;  %v8751_v44 = vand.u32 4294901760, %v423_v1 }
 0x5f3   :  { %12500 = vmatprep.subr.bf16.mxu1 %v20663_v48  ;;  %v20706_v42 = vand.u32 4294901760, %v20705_v63 }
 0x5f5   :  { %v12547_v29 = vpack.c.bf16 %v20708_v22, %v20706_v42  ;;  %v17754_v42 = vld [vmem:[#allocation8 + $0x160] sm:$0xff] }
 0x5f6   :  { %12502 = vmatpush3.bf16.msra.mxu1 %v17179_v5 }
 0x5f7   :  { %12504 = vmatprep.subr.bf16.mxu1 %v17191_v46 }
 0x5fa   :  { %12506 = vmatpush3.bf16.msra.mxu1 %v17206_v57 }
 0x5fb   :  { %12508 = vmatprep.subr.bf16.mxu1 %v20664_v60 }
 0x5fe   :  { %12510 = vmatpush3.bf16.msra.mxu1 %v20665_v13 }
 0x5ff   :  { %12512 = vmatprep.subr.bf16.mxu1 %v20666_v8 }
 0x602   :  { %12514 = vmatpush3.bf16.msra.mxu1 %v20667_v38 }
 0x603   :  { %12516 = vmatprep.subr.bf16.mxu1 %v20668_v45 }
 0x606   :  { %12518 = vmatpush3.bf16.msra.mxu1 %v20669_v33 }
 0x607   :  { %12520 = vmatprep.subr.bf16.mxu1 %v20670_v28 }
 0x60a   :  { %12522 = vmatpush3.bf16.msra.mxu1 %v20671_v6 }
 0x60b   :  { %12524 = vmatprep.subr.bf16.mxu1 %v20672_v37 }
 0x60e   :  { %12526 = vmatpush3.bf16.msra.mxu1 %v20675_v20 }
 0x60f   :  { %12528 = vmatprep.subr.bf16.mxu1 %v12527_v14  ;;  %v20711_v14 = vld [vmem:[#allocation93_spill] sm:$0xff] }
 0x610   :  { %v20712_v52 = vand.u32 4294901760, %v20711_v14 }
 0x611   :  { %8443 = vmatmul.mubr.f32.vlgmr.msra.gmra.mrb[48].mxu1 %v7962_v61  ;;  %v12545_v61 = vpack.c.bf16 %v20704_v15, %v20702_v11  ;;  %v8754_v15 = vand.u32 4294901760, %v424_v50 }
 0x612   :  { %12530 = vmatpush3.bf16.msra.mxu1 %v12529_v24  ;;  %8609 = vmatprep.mubr.f32.mxu1 %v17599_v47  ;;  %v12549_v62 = vpack.c.bf16 %v20712_v52, %v20710_v7  ;;  %v20713_v24 = vld [vmem:[#allocation101_spill] sm:$0xff]  ;;  %v8757_v52 = vand.u32 4294901760, %v17754_v42 }
 0x613   :  { %12532 = vmatprep.subr.bf16.mxu1 %v12531_v40  ;;  %v20714_v0 = vand.u32 4294901760, %v20713_v24  ;;  %v20716_v40 = vand.u32 4294901760, %v20715_v56  ;;  %v17765_v14 = vpack.c.bf16 %v8754_v15, %v8751_v44  ;;  %v17773_v56 = vld [vmem:[#allocation8 + $0x178] sm:$0xff] }
 0x615   :  { %v12551_v19 = vpack.c.bf16 %v20716_v40, %v20714_v0  ;;  %v427_v0 = vld [vmem:[#allocation8 + $0x170] sm:$0xff] }
 0x616   :  { %12534 = vmatpush3.bf16.msra.mxu1 %v12533_v27  ;;  %v20718_v27 = vand.u32 4294901760, %v20717_v23 }
 0x617   :  { %12536 = vmatprep.subr.bf16.mxu1 %v12535_v9  ;;  %v20721_v9 = vld [vmem:[#allocation45_spill] sm:$0xff] }
 0x618   :  { %v12553_v16 = vpack.c.bf16 %v20720_v12, %v20718_v27  ;;  %v20722_v3 = vand.u32 4294901760, %v20721_v9  ;;  %v8763_v9 = vand.u32 4294901760, %v427_v0 }
 0x61a   :  { %12538 = vmatpush3.bf16.msra.mxu1 %v12537_v54  ;;  %v12555_v30 = vpack.c.bf16 %v20724_v4, %v20722_v3  ;;  %v20725_v54 = vld [vmem:[#allocation49_spill] sm:$0xff]  ;;  %v8766_v3 = vand.u32 4294901760, %v17773_v56 }
 0x61b   :  { %12540 = vmatprep.subr.bf16.mxu1 %v12539_v36  ;;  %v20726_v41 = vand.u32 4294901760, %v20725_v54  ;;  %v420_v36 = vld [vmem:[#allocation8 + $0x138] sm:$0xff] }
 0x61c   :  { %v8742_v21 = vand.u32 4294901760, %v420_v36 }
 0x61d   :  { %v12557_v17 = vpack.c.bf16 %v20728_v43, %v20726_v41 }
 0x61e   :  { %12542 = vmatpush3.bf16.msra.mxu1 %v12541_v53  ;;  %v17801_v43 = vsub.f32 %v420_v36, %v8742_v21  ;;  %v17826_v36 = vsub.f32 %v423_v1, %v8751_v44 }
 0x61f   :  { %12544 = vmatprep.subr.bf16.mxu1 %v12543_v2 }
 0x622   :  { %12546 = vmatpush3.bf16.msra.mxu1 %v12545_v61  ;;  %v12825_v61 = vld [vmem:[#allocation11 + $0x10] sm:$0xff] }
 0x623   :  { %12548 = vmatprep.subr.bf16.mxu1 %v12547_v29  ;;  %v17751_v63 = vand.u32 4294901760, %v12825_v61 }
 0x625   :  { %v17770_v24 = vsub.f32 %v12825_v61, %v17751_v63 }
 0x626   :  { %12550 = vmatpush3.bf16.msra.mxu1 %v12549_v62  ;;  %v8760_v62 = vand.u32 4294901760, %v17756_v26 }
 0x627   :  { %12552 = vmatprep.subr.bf16.mxu1 %v12551_v19  ;;  %v8803_v25 = vand.u32 4294901760, %v17770_v24 }
 0x62a   :  { %12554 = vmatpush3.bf16.msra.mxu1 %v12553_v16  ;;  %v17788_v16 = vpack.c.bf16 %v8760_v62, %v8757_v52 }
 0x62b   :  { %12556 = vmatprep.subr.bf16.mxu1 %v12555_v30 }
 0x62e   :  { %12558 = vmatpush3.bf16.msra.mxu1 %v12557_v17  ;;  %v17804_v17 = vpack.c.bf16 %v8766_v3, %v8763_v9 }
 0x62f   :  { %12560 = vmatprep.subr.bf16.mxu1 %v20661_v32  ;;  %v415_v32 = vld [vmem:[#allocation8 + $0x110] sm:$0xff] }
 0x631   :  { %8611 = vmatmul.mubr.f32.vlgmr.msra.gmra.mrb[50].mxu1 %v17597_v59 }
 0x632   :  { %12562 = vmatpush3.bf16.msra.mxu1 %v20662_v51  ;;  %8713 = vmatprep.mubr.f32.mxu1 %v17599_v47  ;;  %v413_v47 = vld [vmem:[#allocation8 + $0x100] sm:$0xff]  ;;  %v416_v51 = vld [vmem:[#allocation8 + $0x118] sm:$0xff] }
 0x633   :  { %12564 = vmatprep.subr.bf16.mxu1 %v20663_v48 }
 0x636   :  { %12566 = vmatpush3.bf16.msra.mxu1 %v17179_v5  ;;  %v414_v5 = vld [vmem:[#allocation8 + $0x108] sm:$0xff] }
 0x637   :  { %12568 = vmatprep.subr.bf16.mxu1 %v17191_v46  ;;  %v8721_v46 = vand.u32 4294901760, %v413_v47 }
 0x639   :  { %v17744_v2 = vsub.f32 %v413_v47, %v8721_v46 }
 0x63a   :  { %12570 = vmatpush3.bf16.msra.mxu1 %v17206_v57  ;;  %v8724_v57 = vand.u32 4294901760, %v414_v5 }
 0x63b   :  { %12572 = vmatprep.subr.bf16.mxu1 %v20664_v60  ;;  %v8727_v60 = vand.u32 4294901760, %v415_v32  ;;  %v8814_v35 = vand.u32 4294901760, %v17744_v2 }
 0x63c   :  { %v17726_v48 = vpack.c.bf16 %v8724_v57, %v8721_v46  ;;  %v17746_v39 = vsub.f32 %v414_v5, %v8724_v57  ;;  %v8804_v46 = vsub.f32 %v17770_v24, %v8803_v25 }
 0x63d   :  { %v17758_v22 = vsub.f32 %v415_v32, %v8727_v60  ;;  %v8815_v19 = vsub.f32 %v17744_v2, %v8814_v35  ;;  %v17814_v32 = vsub.f32 %v422_v31, %v8748_v34 }
 0x63e   :  { %12574 = vmatpush3.bf16.msra.mxu1 %v20665_v13  ;;  %v8730_v13 = vand.u32 4294901760, %v416_v51  ;;  %v8821_v7 = vand.u32 4294901760, %v17746_v39 }
 0x63f   :  { %12576 = vmatprep.subr.bf16.mxu1 %v20666_v8  ;;  %v20729_v8 = vmov 0.0|0.0   ;;  %v8828_v27 = vand.u32 4294901760, %v17758_v22  ;;  %v8816_v30 = vand.u32 4294901760, %v8815_v19  ;;  %v8877_v31 = vand.u32 4294901760, %v17814_v32 }
 0x640   :  { %v17760_v29 = vsub.f32 %v416_v51, %v8730_v13  ;;  %v8822_v23 = vsub.f32 %v17746_v39, %v8821_v7  ;;  %v8884_v19 = vand.u32 4294901760, %v17826_v36 }
 0x641   :  { %v8829_v41 = vsub.f32 %v17758_v22, %v8828_v27 }
 0x642   :  { %12578 = vmatpush3.bf16.msra.mxu1 %v20667_v38  ;;  %v417_v38 = vld [vmem:[#allocation8 + $0x120] sm:$0xff]  ;;  %v8835_v58 = vand.u32 4294901760, %v17760_v29  ;;  %v8823_v54 = vand.u32 4294901760, %v8822_v23 }
 0x643   :  { %12580 = vmatprep.subr.bf16.mxu1 %v20668_v45  ;;  %v418_v45 = vld [vmem:[#allocation8 + $0x128] sm:$0xff] }
 0x644   :  { %v8836_v18 = vsub.f32 %v17760_v29, %v8835_v58  ;;  %v12616_v51 = vpack.c.bf16 %v8823_v54, %v8816_v30  ;;  %v17853_v30 = vsub.f32 %v17756_v26, %v8760_v62  ;;  %v17865_v26 = vsub.f32 %v17773_v56, %v8766_v3 }
 0x646   :  { %12582 = vmatpush3.bf16.msra.mxu1 %v20669_v33  ;;  %v17731_v33 = vpack.c.bf16 %v8730_v13, %v8727_v60  ;;  %v8830_v60 = vand.u32 4294901760, %v8829_v41  ;;  %v8837_v13 = vand.u32 4294901760, %v8836_v18 }
 0x647   :  { %12584 = vmatprep.subr.bf16.mxu1 %v20670_v28  ;;  %v8733_v28 = vand.u32 4294901760, %v417_v38 }
 0x649   :  { %v17775_v40 = vsub.f32 %v417_v38, %v8733_v28 }
 0x64a   :  { %12586 = vmatpush3.bf16.msra.mxu1 %v20671_v6  ;;  %v8736_v6 = vand.u32 4294901760, %v418_v45 }
 0x64b   :  { %12588 = vmatprep.subr.bf16.mxu1 %v20672_v37  ;;  %v20730_v37 = vmov 0.0   ;;  %v8842_v47 = vand.u32 4294901760, %v17775_v40 }
 0x64c   :  { %v17737_v49 = vpack.c.bf16 %v8736_v6, %v8733_v28  ;;  %v17785_v12 = vsub.f32 %v418_v45, %v8736_v6  ;;  %v8863_v6 = vand.u32 4294901760, %v17801_v43 }
 0x64d   :  { %v8843_v38 = vsub.f32 %v17775_v40, %v8842_v47 }
 0x64e   :  { %12590 = vmatpush3.bf16.msra.mxu1 %v20675_v20  ;;  %v419_v20 = vld [vmem:[#allocation8 + $0x130] sm:$0xff]  ;;  %v8849_v5 = vand.u32 4294901760, %v17785_v12  ;;  %v8864_v1 = vsub.f32 %v17801_v43, %v8863_v6 }
 0x64f   :  { %12591 = vmatprep.subr.bf16.mxu1 %v20729_v8  ;;  %v8739_v10 = vand.u32 4294901760, %v419_v20 }
 0x650   :  { %v8850_v45 = vsub.f32 %v17785_v12, %v8849_v5 }
 0x651   :  { %8715 = vmatmul.mubr.f32.vlgmr.msra.gmra.mrb[52].mxu1 %v17597_v59  ;;  %v421_v59 = vld [vmem:[#allocation8 + $0x140] sm:$0xff]  ;;  %v17741_v53 = vpack.c.bf16 %v8742_v21, %v8739_v10  ;;  %v17793_v4 = vsub.f32 %v419_v20, %v8739_v10  ;;  %v8805_v20 = vand.u32 4294901760, %v8804_v46  ;;  %v17828_v10 = vsub.f32 %v424_v50, %v8754_v15 }
 0x652   :  { %12593 = vmatpush3.bf16.msra.mxu1 %v17726_v48  ;;  %10451 = vmatprep.mubr.msk.f32.mxu1 %vm13023_vm1, %v20730_v37  ;;  %v8745_v55 = vand.u32 4294901760, %v421_v59  ;;  %v12619_v21 = vpack.c.bf16 %v8837_v13, %v8830_v60  ;;  %v17842_v50 = vsub.f32 %v17754_v42, %v8757_v52  ;;  %v8878_v15 = vsub.f32 %v17814_v32, %v8877_v31 }
 0x653   :  { %12594 = vmatprep.subr.bf16.mxu1 %v20729_v8  ;;  %v8856_v28 = vand.u32 4294901760, %v17793_v4  ;;  %v8891_v23 = vand.u32 4294901760, %v17828_v10  ;;  %v8865_v42 = vand.u32 4294901760, %v8864_v1  ;;  %v17856_v52 = vsub.f32 %v427_v0, %v8763_v9 }
 0x654   :  { %v17749_v11 = vpack.c.bf16 %v8748_v34, %v8745_v55  ;;  %v17812_v57 = vsub.f32 %v421_v59, %v8745_v55  ;;  %v8844_v55 = vand.u32 4294901760, %v8843_v38  ;;  %v8851_v34 = vand.u32 4294901760, %v8850_v45 }
 0x655   :  { %v8857_v61 = vsub.f32 %v17793_v4, %v8856_v28  ;;  %v8879_v46 = vand.u32 4294901760, %v8878_v15  ;;  %v8892_v60 = vsub.f32 %v17828_v10, %v8891_v23  ;;  %v8898_v13 = vand.u32 4294901760, %v17842_v50 }
 0x656   :  { %12596 = vmatpush3.bf16.msra.mxu1 %v17731_v33  ;;  %v8870_v59 = vand.u32 4294901760, %v17812_v57  ;;  %v12622_v54 = vpack.c.bf16 %v8851_v34, %v8844_v55  ;;  %v8905_v0 = vand.u32 4294901760, %v17853_v30  ;;  %v8912_v3 = vand.u32 4294901760, %v17856_v52 }
 0x657   :  { %12597 = vmatprep.subr.bf16.mxu1 %v20729_v8  ;;  %v8858_v41 = vand.u32 4294901760, %v8857_v61  ;;  %v8893_v45 = vand.u32 4294901760, %v8892_v60  ;;  %v12640_v60 = vpack.c.bf16 %v17746_v39, %v17744_v2  ;;  %v12694_v2 = vpack.c.bf16 %v8849_v5, %v8842_v47 }
 0x658   :  { %v8871_v44 = vsub.f32 %v17812_v57, %v8870_v59  ;;  %v8906_v56 = vsub.f32 %v17853_v30, %v8905_v0  ;;  %v8913_v1 = vsub.f32 %v17856_v52, %v8912_v3  ;;  %v12697_v39 = vpack.c.bf16 %v8863_v6, %v8856_v28 }
 0x659   :  { %v12625_v62 = vpack.c.bf16 %v8865_v42, %v8858_v41 }
 0x65a   :  { %12599 = vmatpush3.bf16.msra.mxu1 %v17737_v49  ;;  %v8872_v18 = vand.u32 4294901760, %v8871_v44  ;;  %v8907_v61 = vand.u32 4294901760, %v8906_v56  ;;  %v9416_v56 = vld [vmem:[#allocation10] ss:$0 sm:$0xff] }
 0x65b   :  { %12600 = vmatprep.subr.bf16.mxu1 %v20729_v8 }
 0x65c   :  { %v12628_v9 = vpack.c.bf16 %v8879_v46, %v8872_v18  ;;  %v8914_v18 = vand.u32 4294901760, %v8913_v1 }
 0x65e   :  { %12602 = vmatpush3.bf16.msra.mxu1 %v17741_v53 }
 0x65f   :  { %12603 = vmatprep.subr.bf16.mxu1 %v20729_v8 }
 0x662   :  { %12605 = vmatpush3.bf16.msra.mxu1 %v17749_v11 }
 0x663   :  { %12606 = vmatprep.subr.bf16.mxu1 %v20729_v8 }
 0x666   :  { %12608 = vmatpush3.bf16.msra.mxu1 %v17765_v14 }
 0x667   :  { %12609 = vmatprep.subr.bf16.mxu1 %v20729_v8 }
 0x66a   :  { %12611 = vmatpush3.bf16.msra.mxu1 %v17788_v16 }
 0x66b   :  { %12612 = vmatprep.subr.bf16.mxu1 %v20729_v8 }
 0x66e   :  { %12614 = vmatpush3.bf16.msra.mxu1 %v17804_v17 }
 0x66f   :  { %12615 = vmatprep.subr.bf16.mxu1 %v20729_v8 }
 0x671   :  { %10452 = vmatmul.mubr.f32.vlgmr.msra.gmra.mrb[54].mxu1 %v8805_v20  ;;  %v8899_v20 = vsub.f32 %v17842_v50, %v8898_v13 }
 0x672   :  { %12617 = vmatpush3.bf16.msra.mxu1 %v12616_v51  ;;  %10486 = vmatprep.mubr.msk.f32.mxu1 %vm13023_vm1, %v20730_v37  ;;  %v8885_v51 = vsub.f32 %v17826_v36, %v8884_v19 }
 0x673   :  { %12618 = vmatprep.subr.bf16.mxu1 %v20729_v8  ;;  %v8900_v34 = vand.u32 4294901760, %v8899_v20  ;;  %v12655_v20 = vpack.c.bf16 %v17828_v10, %v17826_v36 }
 0x674   :  { %v8886_v38 = vand.u32 4294901760, %v8885_v51 }
 0x675   :  { %v12634_v42 = vpack.c.bf16 %v8907_v61, %v8900_v34 }
 0x676   :  { %12620 = vmatpush3.bf16.msra.mxu1 %v12619_v21  ;;  %v8919_v21 = vand.u32 4294901760, %v17865_v26  ;;  %v12631_v55 = vpack.c.bf16 %v8893_v45, %v8886_v38  ;;  %v12649_v38 = vpack.c.bf16 %v17801_v43, %v17793_v4  ;;  %v12652_v45 = vpack.c.bf16 %v17814_v32, %v17812_v57 }
 0x677   :  { %12621 = vmatprep.subr.bf16.mxu1 %v20729_v8 }
 0x678   :  { %v8920_v44 = vsub.f32 %v17865_v26, %v8919_v21 }
 0x67a   :  { %12623 = vmatpush3.bf16.msra.mxu1 %v12622_v54  ;;  %v8921_v46 = vand.u32 4294901760, %v8920_v44  ;;  %v12658_v44 = vpack.c.bf16 %v17853_v30, %v17842_v50 }
 0x67b   :  { %12624 = vmatprep.subr.bf16.mxu1 %v20729_v8 }
 0x67c   :  { %v12637_v51 = vpack.c.bf16 %v8921_v46, %v8914_v18 }
 0x67e   :  { %12626 = vmatpush3.bf16.msra.mxu1 %v12625_v62  ;;  %v12643_v62 = vpack.c.bf16 %v17760_v29, %v17758_v22  ;;  %v12700_v22 = vpack.c.bf16 %v8877_v31, %v8870_v59  ;;  %v12703_v29 = vpack.c.bf16 %v8891_v23, %v8884_v19 }
 0x67f   :  { %12627 = vmatprep.subr.bf16.mxu1 %v20729_v8 }
 0x682   :  { %12629 = vmatpush3.bf16.msra.mxu1 %v12628_v9  ;;  %v12646_v9 = vpack.c.bf16 %v17785_v12, %v17775_v40  ;;  %v12706_v40 = vpack.c.bf16 %v8905_v0, %v8898_v13 }
 0x683   :  { %12630 = vmatprep.subr.bf16.mxu1 %v20729_v8 }
 0x684   :  { %v10097_v15 = vpop.f32.mrb[42].mxu1 }
 0x685   :  { %v10098_v54 = vpop.f32.mrb[43].mxu1 }
 0x686   :  { %v10099_v41 = vadd.f32 %v10098_v54, %v10097_v15  ;;  %12632 = vmatpush3.bf16.msra.mxu1 %v12631_v55  ;;  %v12661_v54 = vpack.c.bf16 %v17865_v26, %v17856_v52 }
 0x687   :  { %12633 = vmatprep.subr.bf16.mxu1 %v20729_v8 }
 0x688   :  { %v7967_v61 = vadd.f32 %v10099_v41, %v9416_v56 }
 0x68a   :  { %12635 = vmatpush3.bf16.msra.mxu1 %v12634_v42 }
 0x68b   :  { %12636 = vmatprep.subr.bf16.mxu1 %v20729_v8 }
 0x68e   :  { %12638 = vmatpush3.bf16.msra.mxu1 %v12637_v51  ;;  %v12688_v51 = vpack.c.bf16 %v8821_v7, %v8814_v35 }
 0x68f   :  { %12639 = vmatprep.subr.bf16.mxu1 %v20729_v8 }
 0x691   :  { %10487 = vmatmul.mubr.f32.vlgmr.msra.gmra.mrb[54].mxu1 %v17751_v63 }
 0x692   :  { %12641 = vmatpush3.bf16.msra.mxu1 %v12640_v60  ;;  %10521 = vmatprep.mubr.msk.f32.mxu1 %vm13023_vm1, %v20730_v37  ;;  %v12691_v60 = vpack.c.bf16 %v8835_v58, %v8828_v27  ;;  %v12709_v58 = vpack.c.bf16 %v8919_v21, %v8912_v3 }
 0x693   :  { %12642 = vmatprep.subr.bf16.mxu1 %v20729_v8 }
 0x696   :  { %12644 = vmatpush3.bf16.msra.mxu1 %v12643_v62 }
 0x697   :  { %12645 = vmatprep.subr.bf16.mxu1 %v20729_v8 }
 0x69a   :  { %12647 = vmatpush3.bf16.msra.mxu1 %v12646_v9 }
 0x69b   :  { %12648 = vmatprep.subr.bf16.mxu1 %v20729_v8 }
 0x69e   :  { %12650 = vmatpush3.bf16.msra.mxu1 %v12649_v38 }
 0x69f   :  { %12651 = vmatprep.subr.bf16.mxu1 %v20729_v8 }
 0x6a2   :  { %12653 = vmatpush3.bf16.msra.mxu1 %v12652_v45 }
 0x6a3   :  { %12654 = vmatprep.subr.bf16.mxu1 %v20729_v8 }
 0x6a4   :  { %v10132_v55 = vpop.f32.mrb[44].mxu1 }
 0x6a5   :  { %v10133_v34 = vpop.f32.mrb[45].mxu1 }
 0x6a6   :  { %v10134_v1 = vadd.f32 %v10133_v34, %v10132_v55  ;;  %12656 = vmatpush3.bf16.msra.mxu1 %v12655_v20 }
 0x6a7   :  { %12657 = vmatprep.subr.bf16.mxu1 %v20729_v8 }
 0x6a8   :  { %v8199_v15 = vadd.f32 %v10134_v1, %v7967_v61 }
 0x6aa   :  { %12659 = vmatpush3.bf16.msra.mxu1 %v12658_v44 }
 0x6ab   :  { %12660 = vmatprep.subr.bf16.mxu1 %v20729_v8 }
 0x6ae   :  { %12662 = vmatpush3.bf16.msra.mxu1 %v12661_v54 }
 0x6af   :  { %12663 = vmatprep.subr.bf16.mxu1 %v20729_v8 }
 0x6b1   :  { %10522 = vmatmul.mubr.f32.vlgmr.msra.gmra.mrb[54].mxu1 %v17770_v24 }
 0x6b2   :  { %12665 = vmatpush3.bf16.msra.mxu1 %v17726_v48  ;;  %10556 = vmatprep.mubr.msk.f32.mxu1 %vm13023_vm1, %v20730_v37 }
 0x6b3   :  { %12666 = vmatprep.subr.bf16.mxu1 %v20729_v8 }
 0x6b6   :  { %12668 = vmatpush3.bf16.msra.mxu1 %v17731_v33 }
 0x6b7   :  { %12669 = vmatprep.subr.bf16.mxu1 %v20729_v8 }
 0x6ba   :  { %12671 = vmatpush3.bf16.msra.mxu1 %v17737_v49 }
 0x6bb   :  { %12672 = vmatprep.subr.bf16.mxu1 %v20729_v8 }
 0x6be   :  { %12674 = vmatpush3.bf16.msra.mxu1 %v17741_v53 }
 0x6bf   :  { %12675 = vmatprep.subr.bf16.mxu1 %v20729_v8 }
 0x6c2   :  { %12677 = vmatpush3.bf16.msra.mxu1 %v17749_v11 }
 0x6c3   :  { %12678 = vmatprep.subr.bf16.mxu1 %v20729_v8 }
 0x6c4   :  { %v10167_v41 = vpop.f32.mrb[46].mxu1 }
 0x6c5   :  { %v10168_v42 = vpop.f32.mrb[47].mxu1 }
 0x6c6   :  { %v10169_v18 = vadd.f32 %v10168_v42, %v10167_v41  ;;  %12680 = vmatpush3.bf16.msra.mxu1 %v17765_v14 }
 0x6c7   :  { %12681 = vmatprep.subr.bf16.mxu1 %v20729_v8 }
 0x6c8   :  { %v8337_v46 = vadd.f32 %v10169_v18, %v8199_v15 }
 0x6ca   :  { %12683 = vmatpush3.bf16.msra.mxu1 %v17788_v16 }
 0x6cb   :  { %12684 = vmatprep.subr.bf16.mxu1 %v20729_v8 }
 0x6ce   :  { %12686 = vmatpush3.bf16.msra.mxu1 %v17804_v17 }
 0x6cf   :  { %12687 = vmatprep.subr.bf16.mxu1 %v20729_v8 }
 0x6d1   :  { %10557 = vmatmul.mubr.f32.vlgmr.msra.gmra.mrb[54].mxu1 %v8803_v25 }
 0x6d2   :  { %12689 = vmatpush3.bf16.msra.mxu1 %v12688_v51  ;;  %10591 = vmatprep.mubr.msk.f32.mxu1 %vm13023_vm1, %v20730_v37 }
 0x6d3   :  { %12690 = vmatprep.subr.bf16.mxu1 %v20729_v8 }
 0x6d6   :  { %12692 = vmatpush3.bf16.msra.mxu1 %v12691_v60 }
 0x6d7   :  { %12693 = vmatprep.subr.bf16.mxu1 %v20729_v8 }
 0x6da   :  { %12695 = vmatpush3.bf16.msra.mxu1 %v12694_v2 }
 0x6db   :  { %12696 = vmatprep.subr.bf16.mxu1 %v20729_v8 }
 0x6de   :  { %12698 = vmatpush3.bf16.msra.mxu1 %v12697_v39 }
 0x6df   :  { %12699 = vmatprep.subr.bf16.mxu1 %v20729_v8 }
 0x6e2   :  { %12701 = vmatpush3.bf16.msra.mxu1 %v12700_v22 }
 0x6e3   :  { %12702 = vmatprep.subr.bf16.mxu1 %v20729_v8 }
 0x6e4   :  { %v10202_v35 = vpop.f32.mrb[48].mxu1 }
 0x6e5   :  { %v10203_v7 = vpop.f32.mrb[49].mxu1 }
 0x6e6   :  { %v10204_v24 = vadd.f32 %v10203_v7, %v10202_v35  ;;  %12704 = vmatpush3.bf16.msra.mxu1 %v12703_v29 }
 0x6e7   :  { %12705 = vmatprep.subr.bf16.mxu1 %v20729_v8 }
 0x6e8   :  { %v8445_v27 = vadd.f32 %v10204_v24, %v8337_v46 }
 0x6ea   :  { %12707 = vmatpush3.bf16.msra.mxu1 %v12706_v40 }
 0x6eb   :  { %12708 = vmatprep.subr.bf16.mxu1 %v20729_v8 }
 0x6ee   :  { %12710 = vmatpush3.bf16.msra.mxu1 %v12709_v58 }
 0x6ef   :  { %12711 = vmatprep.subr.bf16.mxu1 %v20729_v8 }
 0x6f1   :  { %10592 = vmatmul.mubr.f32.vlgmr.msra.gmra.mrb[54].mxu1 %v17751_v63 }
 0x6f2   :  { %12713 = vmatpush3.bf16.msra.mxu1 %v17726_v48  ;;  %10626 = vmatprep.mubr.msk.f32.mxu1 %vm13023_vm1, %v20730_v37 }
 0x6f3   :  { %12714 = vmatprep.subr.bf16.mxu1 %v20729_v8 }
 0x6f6   :  { %12716 = vmatpush3.bf16.msra.mxu1 %v17731_v33 }
 0x6f7   :  { %12717 = vmatprep.subr.bf16.mxu1 %v20729_v8 }
 0x6fa   :  { %12719 = vmatpush3.bf16.msra.mxu1 %v17737_v49 }
 0x6fb   :  { %12720 = vmatprep.subr.bf16.mxu1 %v20729_v8 }
 0x6fe   :  { %12722 = vmatpush3.bf16.msra.mxu1 %v17741_v53 }
 0x6ff   :  { %12723 = vmatprep.subr.bf16.mxu1 %v20729_v8 }
 0x702   :  { %12725 = vmatpush3.bf16.msra.mxu1 %v17749_v11 }
 0x703   :  { %12726 = vmatprep.subr.bf16.mxu1 %v20729_v8 }
 0x704   :  { %v10237_v48 = vpop.f32.mrb[50].mxu1 }
 0x705   :  { %v10238_v37 = vpop.f32.mrb[51].mxu1 }
 0x706   :  { %v10239_v12 = vadd.f32 %v10238_v37, %v10237_v48  ;;  %12728 = vmatpush3.bf16.msra.mxu1 %v17765_v14 }
 0x707   :  { %12729 = vmatprep.subr.bf16.mxu1 %v20729_v8 }
 0x708   :  { %v8613_v33 = vadd.f32 %v10239_v12, %v8445_v27 }
 0x70a   :  { %12731 = vmatpush3.bf16.msra.mxu1 %v17788_v16 }
 0x70b   :  { %12732 = vmatprep.subr.bf16.mxu1 %v20729_v8 }
 0x70e   :  { %12734 = vmatpush3.bf16.msra.mxu1 %v17804_v17 }
 0x711   :  { %10627 = vmatmul.mubr.f32.vlgmr.msra.gmra.mrb[54].mxu1 %v17751_v63 }
 0x724   :  { %v10272_v49 = vpop.f32.mrb[52].mxu1 }
 0x725   :  { %v10273_v53 = vpop.f32.mrb[53].mxu1 }
 0x726   :  { %v10274_v11 = vadd.f32 %v10273_v53, %v10272_v49 }
 0x728   :  { %v8717_v25 = vadd.f32 %v10274_v11, %v8613_v33 }
 0x7e4   :  { %v9357_v4 = vpop.f32.mrb[54].mxu1 }
 0x7e5   :  { %v12742_v43 = vadd.f32 %v9357_v4, %v8717_v25  ;;  %v10628_v47 = vpop.f32.mrb[55].mxu1 }
 0x7e7   :  { %9361 = vst [vmem:[#allocation12] sm:$0xff] %v12742_v43  ;;  %9362 = vmax.xlane.f32.xlu0 %v12742_v43 }
 0x874   :  { %v9363_v14 = vpop.xlane.xlu0 %9362 }
 0x875   :  { %v9364_v5 = vsub.f32 %v12742_v43, %v9363_v14 }
 0x877   :  { %v9365_v57 = vmul.f32 1.442695, %v9364_v5 }
 0x879   :  { %12820 = vpow2.f32 %v9365_v57 }
 0x883   :  { %v12821_v16 = vpop.eup %12820 }
 0x884   :  { %9367 = vadd.xlane.f32.xlu0 %v12821_v16 }
 0x885   :  { %12947 = shalt.err (!%p12944_p2)
}
 0x886   :  { %s12948_s21 = scalar_lea.hbm %s18040_s6, 128 }
 0x887   :  { %p12949_p3 = scmp.ne.s32.totalorder %s18040_s6, %s12948_s21  ;;  %p12952_p4 = scmp.lt.u32.totalorder %s12948_s21, %s18040_s6 }
 0x889   :  { %p12954_p5 = pnand %p12952_p4, %p12949_p3 }
 0x88b   :  { %12957 = shalt.err (!%p12954_p5)
}
 0x88c   :  { %9391 = dma.vmem_to_hbm [thread:$0]  %s9389_s3, 128, %s18040_s6, [#allocation13]  }
 0x88d   :  { %s12958_s26 = scalar_lea.vmem %s9379_s17, 384  ;;  %p12963_p7 = scmp.lt.s32.totalorder %s9379_s17, %s9379_s17 }
 0x88e   :  { %p12959_p6 = scmp.ne.s32.totalorder %s9379_s17, %s12958_s26  ;;  %p12964_p8 = scmp.lt.s32.totalorder %s12958_s26, %s12958_s26 }
 0x890   :  { %p12965_p9 = por %p12964_p8, %p12963_p7 }
 0x892   :  { %p12966_p10 = pnand %p12965_p9, %p12959_p6 }
 0x894   :  { %12969 = shalt.err (!%p12966_p10)
}
 0x895   :  { %s12970_s29 = scalar_lea.hbm %s18039_s5, 384 }
 0x896   :  { %p12971_p11 = scmp.ne.s32.totalorder %s18039_s5, %s12970_s29  ;;  %p12974_p12 = scmp.lt.u32.totalorder %s12970_s29, %s18039_s5 }
 0x898   :  { %p12976_p13 = pnand %p12974_p12, %p12971_p11 }
 0x89a   :  { %12979 = shalt.err (!%p12976_p13)
}
 0x89b   :  { %9381 = dma.vmem_to_hbm [thread:$0]  %s9379_s17, 384, %s18039_s5, [#allocation4]  }
 0x89c   :  { %s13026_s13 = smov [#allocation14]  }
 0x89d   :  { %s9398_s14 = sshll.u32 %s13026_s13, 4  ;;  %s9399_s14 = int_to_ptr.vmem [resolvable:$true] %s9398_s14 }
 0x89e   :  { %s12980_s2 = scalar_lea.vmem %s9399_s14, 128  ;;  %p12985_p1 = scmp.lt.s32.totalorder %s9399_s14, %s9399_s14 }
 0x89f   :  { %p12981_p0 = scmp.ne.s32.totalorder %s9399_s14, %s12980_s2  ;;  %p12986_p2 = scmp.lt.s32.totalorder %s12980_s2, %s12980_s2 }
 0x8a1   :  { %p12987_p3 = por %p12986_p2, %p12985_p1 }
 0x8a3   :  { %p12988_p4 = pnand %p12987_p3, %p12981_p0 }
 0x911   :  { %v9368_v8 = vpop.xlane.xlu0 %9367 }
 0x912   :  { %12822 = vrcp.f32 %v9368_v8 }
 0x91c   :  { %v12823_v63 = vpop.eup %12822 }
 0x91d   :  { %v9370_v17 = vmul.f32 %v12823_v63, %v12821_v16 }
 0x91f   :  { %9371 = vst [vmem:[#allocation14] sm:$0xff] %v9370_v17 }
 0x920   :  { %12991 = shalt.err (!%p12988_p4)
}
 0x921   :  { %s12992_s4 = scalar_lea.hbm %s18041_s7, 128 }
 0x922   :  { %p12993_p5 = scmp.ne.s32.totalorder %s18041_s7, %s12992_s4  ;;  %p12996_p6 = scmp.lt.u32.totalorder %s12992_s4, %s18041_s7 }
 0x924   :  { %p12998_p7 = pnand %p12996_p6, %p12993_p5 }
 0x926   :  { %13001 = shalt.err (!%p12998_p7)
}
 0x927   :  { %9401 = dma.vmem_to_hbm [thread:$0]  %s9399_s14, 128, %s18041_s7, [#allocation13]  }
 0x928   :  { %13008 = dma.done.wait [#allocation4], 384  }
 0x929   :  { %13009 = vsyncadd [#allocation4], 4294966912 }
 0x92a   :  { %13010 = dma.done.wait [#allocation13], 256  }
 0x92b   :  { %13011 = vsyncadd [#allocation13], 4294967040 }
 0x92c   :  { %9411 = vsyncpa [#allocation3], 1 }
 0x92d   :  { %9412 = vsyncpa [#allocation6], 1 }
 0x92e   :  { %9413 = vsyncpa [#allocation9], 1 }
 0x92f   :  { %9414 = vsyncpa [#allocation4], 1 }
 0x930   :  { %9415 = vsyncpa [#allocation13], 1 }

</bundles_post_ra>
